<compile_context>
chip_gen: v5e
topology: v5e:2x2
jax: 0.10.0
libtpu: 0.0.40
codegen_flags: <defaults>
</compile_context>

<pallas_src>
import functools
import numpy as np
import jax
import jax.numpy as jnp
from jax.experimental import pallas as pl
from jax.experimental.pallas import tpu as pltpu

# ----- config (mirrors the PyTorch `args`); 'ibp' branch => disc == 0 -----
IMG_CHANNEL = 4
IMG_SIZE = 32
HIDDEN = 32
CONT = 16
DISC = 0
TAU = 0.5
BN_EPS = 1e-5
FEAT = 64 * 4 * 4


def _full_spec(shape):
    n = len(shape)
    return pl.BlockSpec(shape, lambda *_: (0,) * n)


_ARB1 = pltpu.CompilerParams(dimension_semantics=("arbitrary",))


# --------------------------------------------------------------------------
# Kernel 1: conv-as-GEMM (transposed, lane-dense) + bias + BatchNorm + ReLU.
#   cols^T: (K, M) bf16, W: (Cout, K) bf16, out: (Cout, M) bf16,  M = N*Ho*Wo
# --------------------------------------------------------------------------
def _conv_bn_relu_kernel(cols_ref, w_ref, b_ref, g_ref, bt_ref, o_ref):
    acc = jnp.dot(w_ref[...], cols_ref[...], preferred_element_type=jnp.float32)
    acc = acc + b_ref[...]
    # BatchNorm2d training-mode stats: per channel over (N,H,W) == lane axis.
    mean = jnp.mean(acc, axis=1, keepdims=True)
    var = jnp.mean(jnp.square(acc - mean), axis=1, keepdims=True)   # biased var
    y = (acc - mean) * jax.lax.rsqrt(var + BN_EPS)
    o_ref[...] = jnp.maximum(y * g_ref[...] + bt_ref[...], 0.0).astype(o_ref.dtype)


# --------------------------------------------------------------------------
# Kernel 2: ConvTranspose as 4 sub-pixel phase GEMMs + bias + BatchNorm + ReLU.
#   cols: (4, 4*Cin, M) bf16, W: (4, Cout, 4*Cin) bf16, out: (4, Cout, M) bf16
#   BN stats are taken over all 4 phases (i.e. the whole (N, 2H, 2W) output).
# --------------------------------------------------------------------------
def _convt_bn_relu_kernel(cols_ref, w_ref, b_ref, g_ref, bt_ref, o_ref):
    nph = cols_ref.shape[0]
    ss = [jnp.dot(w_ref[p], cols_ref[p], preferred_element_type=jnp.float32)
          + b_ref[...] for p in range(nph)]
    cnt = float(nph * ss[0].shape[1])
    mean = sum(jnp.sum(s, axis=1, keepdims=True) for s in ss) / cnt
    var = sum(jnp.sum(jnp.square(s - mean), axis=1, keepdims=True) for s in ss) / cnt
    inv = jax.lax.rsqrt(var + BN_EPS)
    for p in range(nph):
        o_ref[p] = jnp.maximum((ss[p] - mean) * inv * g_ref[...] + bt_ref[...],
                               0.0).astype(o_ref.dtype)


# Final transposed conv: no BN, sigmoid epilogue, f32 output.
def _convt_sigmoid_kernel(cols_ref, w_ref, b_ref, o_ref):
    for p in range(cols_ref.shape[0]):
        s = jnp.dot(w_ref[p], cols_ref[p], preferred_element_type=jnp.float32)
        o_ref[p] = jax.nn.sigmoid(s + b_ref[...]).astype(o_ref.dtype)


# --------------------------------------------------------------------------
# Kernel 3: features2hidden + 5 packed heads + reparameterized sampling of
# Normal(phi, psi) and RelaxedBernoulli(tau, pi) + latent2features (2 Linears),
# all fused into one pallas_call.
# --------------------------------------------------------------------------
def _middle_kernel(tau, feats_ref, f2hw_ref, f2hb_ref, hw_ref, hb_ref,
                   eps_ref, u_ref, l1w_ref, l1b_ref, l2w_ref, l2b_ref,
                   pi_o, phi_o, psi_o, ta_o, tb_o, dec_o):
    # features2hidden: Linear + ReLU
    hid = jnp.dot(feats_ref[...], f2hw_ref[...], preferred_element_type=jnp.float32)
    hid = jnp.maximum(hid + f2hb_ref[...], 0.0)                       # (B, 32)

    # 5 heads packed into one (HIDDEN, 5*CONT) matmul; split in-register.
    heads = jnp.dot(hid.astype(jnp.bfloat16), hw_ref[...],
                    preferred_element_type=jnp.float32) + hb_ref[...]  # (B, 80)
    C = CONT
    pi_raw = heads[:, 0 * C:1 * C]
    phi = heads[:, 1 * C:2 * C]
    psi_raw = heads[:, 2 * C:3 * C]
    ta_raw = heads[:, 3 * C:4 * C]
    tb_raw = heads[:, 4 * C:5 * C]

    def softplus(v):
        return jnp.maximum(v, 0.0) + jnp.log1p(jnp.exp(-jnp.abs(v)))

    pi = jnp.clip(jax.nn.sigmoid(pi_raw), 1e-4, 1.0 - 1e-4)
    psi = jnp.exp(0.5 * psi_raw)
    taua = softplus(jnp.maximum(ta_raw, 0.0)) + 0.1
    taub = softplus(jnp.maximum(tb_raw, 0.0)) + 0.1

    # Normal(phi, psi).rsample()
    g = phi + psi * eps_ref[...]
    # RelaxedBernoulli(tau, probs=pi).rsample()
    u = u_ref[...]
    logistic = jnp.log(u) - jnp.log1p(-u)
    mask = jax.nn.sigmoid((logistic + jnp.log(pi) - jnp.log1p(-pi)) / tau)
    rep = g * mask                                                     # (B, 16)

    # latent2features: Linear + ReLU, Linear + ReLU
    d1 = jnp.dot(rep.astype(jnp.bfloat16), l1w_ref[...],
                 preferred_element_type=jnp.float32) + l1b_ref[...]
    d1 = jnp.maximum(d1, 0.0)
    dec = jnp.dot(d1.astype(jnp.bfloat16), l2w_ref[...],
                  preferred_element_type=jnp.float32) + l2b_ref[...]
    dec = jnp.maximum(dec, 0.0)                                        # (B, 1024)

    pi_o[...] = pi
    phi_o[...] = phi
    psi_o[...] = psi
    ta_o[...] = taua
    tb_o[...] = taub
    dec_o[...] = dec.astype(dec_o.dtype)


# --------------------------------------------------------------------------
# pallas_call wrappers
# --------------------------------------------------------------------------
def conv_bn_relu(colsT, w, b, g, bt):
    Cout, K = w.shape
    M = colsT.shape[1]
    return pl.pallas_call(
        _conv_bn_relu_kernel,
        out_shape=jax.ShapeDtypeStruct((Cout, M), jnp.bfloat16),
        grid=(1,),
        in_specs=[_full_spec((K, M)), _full_spec((Cout, K)),
                  _full_spec((Cout, 1)), _full_spec((Cout, 1)), _full_spec((Cout, 1))],
        out_specs=_full_spec((Cout, M)),
        compiler_params=_ARB1,
    )(colsT, w, b, g, bt)


def convt_bn_relu(cols4, w, b, g, bt):
    P, K, M = cols4.shape
    Cout = w.shape[1]
    return pl.pallas_call(
        _convt_bn_relu_kernel,
        out_shape=jax.ShapeDtypeStruct((P, Cout, M), jnp.bfloat16),
        grid=(1,),
        in_specs=[_full_spec((P, K, M)), _full_spec((P, Cout, K)),
                  _full_spec((Cout, 1)), _full_spec((Cout, 1)), _full_spec((Cout, 1))],
        out_specs=_full_spec((P, Cout, M)),
        compiler_params=_ARB1,
    )(cols4, w, b, g, bt)


def convt_sigmoid(cols4, w, b):
    P, K, M = cols4.shape
    Cout = w.shape[1]
    return pl.pallas_call(
        _convt_sigmoid_kernel,
        out_shape=jax.ShapeDtypeStruct((P, Cout, M), jnp.float32),
        grid=(1,),
        in_specs=[_full_spec((P, K, M)), _full_spec((P, Cout, K)),
                  _full_spec((Cout, 1))],
        out_specs=_full_spec((P, Cout, M)),
        compiler_params=_ARB1,
    )(cols4, w, b)


def heads_and_decoder_linears(feats, params, eps, u):
    B = feats.shape[0]
    C = CONT
    return pl.pallas_call(
        functools.partial(_middle_kernel, TAU),
        out_shape=(jax.ShapeDtypeStruct((B, C), jnp.float32),) * 5
        + (jax.ShapeDtypeStruct((B, FEAT), jnp.bfloat16),),
        grid=(1,),
        in_specs=[_full_spec((B, FEAT)),
                  _full_spec((FEAT, HIDDEN)), _full_spec((1, HIDDEN)),
                  _full_spec((HIDDEN, 5 * C)), _full_spec((1, 5 * C)),
                  _full_spec((B, C)), _full_spec((B, C)),
                  _full_spec((C + DISC, HIDDEN)), _full_spec((1, HIDDEN)),
                  _full_spec((HIDDEN, FEAT)), _full_spec((1, FEAT))],
        out_specs=tuple(_full_spec((B, C)) for _ in range(5))
        + (_full_spec((B, FEAT)),),
        compiler_params=_ARB1,
    )(feats, params["f2h_w"], params["f2h_b"],
      params["heads_w"], params["heads_b"], eps, u,
      params["l2f1_w"], params["l2f1_b"], params["l2f2_w"], params["l2f2_b"])


# --------------------------------------------------------------------------
# Patch-extraction glue (plain JAX, tiny arrays; GEMM/BN/activations are in
# the Pallas kernels above).  Layout is channel-first (C, N, H, W) throughout.
# --------------------------------------------------------------------------
def _im2colT(x_cnhw, stride, pad):
    # 4x4 taps; cols^T: (16*C, N*Ho*Wo). K ordered (tap, cin), M ordered (n, ho, wo).
    C, N, H, W = x_cnhw.shape
    xp = jnp.pad(x_cnhw, ((0, 0), (0, 0), (pad, pad), (pad, pad)))
    Ho = (H + 2 * pad - 4) // stride + 1
    Wo = (W + 2 * pad - 4) // stride + 1
    taps = [xp[:, :, i:i + stride * Ho:stride, j:j + stride * Wo:stride]
            for i in range(4) for j in range(4)]
    cols = jnp.stack(taps, axis=0)                    # (16, C, N, Ho, Wo)
    return cols.reshape(16 * C, N * Ho * Wo), (N, Ho, Wo)


def _subpixel_colsT(x_cnhw):
    # ConvTranspose2d(k=4, s=2, p=1) == 4 output phases, each a stride-1 2x2 conv.
    # Phase p = 2*py+px; tap (a,b) of phase (py,px) maps to kernel element
    # (kh, kw) = ((3 if py==0 else 2) - 2a, (3 if px==0 else 2) - 2b).
    C, N, H, W = x_cnhw.shape
    phases = []
    for py in (0, 1):
        for px in (0, 1):
            ph = (1, 0) if py == 0 else (0, 1)
            pw = (1, 0) if px == 0 else (0, 1)
            xp = jnp.pad(x_cnhw, ((0, 0), (0, 0), ph, pw))
            taps = [xp[:, :, a:a + H, b:b + W] for a in (0, 1) for b in (0, 1)]
            phases.append(jnp.stack(taps, axis=0).reshape(4 * C, N * H * W))
    return jnp.stack(phases, axis=0)                  # (4, 4*C, N*H*W)


def _subpixel_interleave(o, N, H, W):
    # o: (4, Cout, N*H*W) phase outputs -> full output (Cout, N, 2H, 2W).
    Cout = o.shape[1]
    o = o.reshape(2, 2, Cout, N, H, W)                # (py, px, Cout, N, H, W)
    o = jnp.transpose(o, (2, 3, 4, 0, 5, 1))          # (Cout, N, H, py, W, px)
    return o.reshape(Cout, N, 2 * H, 2 * W)


# --------------------------------------------------------------------------
# Full forward pass (model_type='ibp').
# --------------------------------------------------------------------------
@jax.jit
def model_forward(x_nchw, params, eps, u):
    N = x_nchw.shape[0]
    x = jnp.transpose(x_nchw, (1, 0, 2, 3)).astype(jnp.bfloat16)   # (C, N, H, W)

    # ----- encoder: img2features (conv + BN + ReLU fused per layer) -----
    cols, (_, H, W) = _im2colT(x, stride=2, pad=1)
    y = conv_bn_relu(cols, params["ec1_w"], params["ec1_b"],
                     params["ebn1_g"], params["ebn1_b"]).reshape(32, N, H, W)
    cols, (_, H, W) = _im2colT(y, stride=2, pad=1)
    y = conv_bn_relu(cols, params["ec2_w"], params["ec2_b"],
                     params["ebn2_g"], params["ebn2_b"]).reshape(64, N, H, W)
    cols, (_, H, W) = _im2colT(y, stride=2, pad=1)
    y = conv_bn_relu(cols, params["ec3_w"], params["ec3_b"],
                     params["ebn3_g"], params["ebn3_b"]).reshape(64, N, H, W)

    # PyTorch NCHW flatten ordering for the Linear input
    feats = jnp.transpose(y, (1, 0, 2, 3)).reshape(N, FEAT)

    # ----- f2h + heads + reparameterized sampling + latent2features -----
    pi, phi, psi, taua, taub, dec = heads_and_decoder_linears(feats, params, eps, u)

    # ----- decoder: features2img (sub-pixel convT + BN + ReLU fused) -----
    d = jnp.transpose(dec.reshape(N, 64, 4, 4), (1, 0, 2, 3))      # (64, N, 4, 4)
    y = convt_bn_relu(_subpixel_colsT(d), params["dc1_w"], params["dc1_b"],
                      params["dbn1_g"], params["dbn1_b"])
    y = _subpixel_interleave(y, N, 4, 4)                           # (32, N, 8, 8)
    y = convt_bn_relu(_subpixel_colsT(y), params["dc2_w"], params["dc2_b"],
                      params["dbn2_g"], params["dbn2_b"])
    y = _subpixel_interleave(y, N, 8, 8)                           # (32, N, 16, 16)
    y = convt_sigmoid(_subpixel_colsT(y), params["dc3_w"], params["dc3_b"])
    y = _subpixel_interleave(y, N, 16, 16)                         # (4, N, 32, 32)
    xbar = jnp.transpose(y, (1, 0, 2, 3)).reshape(N, -1)
    return xbar, pi, phi, psi, taua, taub


# --------------------------------------------------------------------------
# Deterministic parameter init (PyTorch-style U(-1/sqrt(fan_in), 1/sqrt(fan_in))).
# Conv weights stored directly in (transposed) GEMM layout; GEMM weights in bf16.
# --------------------------------------------------------------------------
def init_params(key):
    def uinit(k, shape, fan_in, dtype=jnp.float32):
        s = 1.0 / np.sqrt(fan_in)
        return jax.random.uniform(k, shape, jnp.float32, -s, s).astype(dtype)

    keys = iter(jax.random.split(key, 32))
    p = {}
    # encoder convs: GEMM layout (Cout, 16*Cin), K ordered (tap, cin)
    for name, cin, cout in (("ec1", IMG_CHANNEL, 32), ("ec2", 32, 64), ("ec3", 64, 64)):
        fan = 16 * cin
        p[name + "_w"] = uinit(next(keys), (cout, 16 * cin), fan, jnp.bfloat16)
        p[name + "_b"] = uinit(next(keys), (cout, 1), fan)
    # batch norms
    for name, c in (("ebn1", 32), ("ebn2", 64), ("ebn3", 64), ("dbn1", 32), ("dbn2", 32)):
        p[name + "_g"] = jnp.ones((c, 1), jnp.float32)
        p[name + "_b"] = jnp.zeros((c, 1), jnp.float32)
    # features2hidden
    p["f2h_w"] = uinit(next(keys), (FEAT, HIDDEN), FEAT, jnp.bfloat16)
    p["f2h_b"] = uinit(next(keys), (1, HIDDEN), FEAT)
    # 5 heads packed: order (pi, phi, psi, taua, taub)
    ws, bs = [], []
    for _ in range(5):
        ws.append(uinit(next(keys), (HIDDEN, CONT), HIDDEN))
        bs.append(uinit(next(keys), (1, CONT), HIDDEN))
    p["heads_w"] = jnp.concatenate(ws, axis=1).astype(jnp.bfloat16)
    p["heads_b"] = jnp.concatenate(bs, axis=1)
    # latent2features
    p["l2f1_w"] = uinit(next(keys), (CONT + DISC, HIDDEN), CONT + DISC, jnp.bfloat16)
    p["l2f1_b"] = uinit(next(keys), (1, HIDDEN), CONT + DISC)
    p["l2f2_w"] = uinit(next(keys), (HIDDEN, FEAT), HIDDEN, jnp.bfloat16)
    p["l2f2_b"] = uinit(next(keys), (1, FEAT), HIDDEN)
    # decoder transposed convs: per-phase GEMM layout (4, Cout, 4*Cin)
    # TODO(synk): PyTorch ConvTranspose2d default init uses fan_in=k*k*out_channels;
    # we keep k*k*Cin (init-scale only; forward math is unchanged).
    for name, cin, cout in (("dc1", 64, 32), ("dc2", 32, 32), ("dc3", 32, IMG_CHANNEL)):
        fan = 16 * cin
        p[name + "_w"] = uinit(next(keys), (4, cout, 4 * cin), fan, jnp.bfloat16)
        p[name + "_b"] = uinit(next(keys), (cout, 1), fan)
    return p


if __name__ == "__main__":
    key = jax.random.PRNGKey(0)
    kx, keps, ku, kp = jax.random.split(key, 4)
    batch = 2
    x = jax.random.normal(kx, (batch, IMG_CHANNEL, IMG_SIZE, IMG_SIZE), jnp.float32)
    params = init_params(kp)
    # reparameterization noise (drawn outside; the reparam math runs in-kernel)
    eps = jax.random.normal(keps, (batch, CONT), jnp.float32)
    u = jax.random.uniform(ku, (batch, CONT), jnp.float32, 1e-6, 1.0 - 1e-6)

    outs = jax.block_until_ready(model_forward(x, params, eps, u))
    xbar, pi, phi, psi, taua, taub = outs
    assert xbar.shape == (batch, IMG_CHANNEL * IMG_SIZE * IMG_SIZE)
    assert pi.shape == phi.shape == psi.shape == taua.shape == taub.shape == (batch, CONT)
    assert bool(jnp.all(jnp.isfinite(xbar)))
    assert bool(jnp.all((xbar >= 0.0) & (xbar <= 1.0)))
    print("KERNEL_OK")
</pallas_src>

<mosaic_0001>
module attributes {stable_mosaic.version = 11 : i64} {
  func.func @_conv_bn_relu_kernel(%arg0: i32, %arg1: memref<64x512xbf16, #tpu.memory_space<vmem>>, %arg2: memref<32x64xbf16, #tpu.memory_space<vmem>>, %arg3: memref<32x1xf32, #tpu.memory_space<vmem>>, %arg4: memref<32x1xf32, #tpu.memory_space<vmem>>, %arg5: memref<32x1xf32, #tpu.memory_space<vmem>>, %arg6: memref<32x512xbf16, #tpu.memory_space<vmem>>) attributes {dimension_semantics = [#tpu.dimension_semantics<arbitrary>], iteration_bounds = array<i64: 1>, scalar_prefetch = 0 : i64, scratch_operands = 0 : i64, tpu.core_type = #tpu.core_type<tc>, window_params = [{pipeline_mode = #tpu.pipeline_mode<synchronous>, transform_indices = @transform_0, window_bounds = array<i64: 64, 512>}, {pipeline_mode = #tpu.pipeline_mode<synchronous>, transform_indices = @transform_1, window_bounds = array<i64: 32, 64>}, {pipeline_mode = #tpu.pipeline_mode<synchronous>, transform_indices = @transform_2, window_bounds = array<i64: 32, 1>}, {pipeline_mode = #tpu.pipeline_mode<synchronous>, transform_indices = @transform_3, window_bounds = array<i64: 32, 1>}, {pipeline_mode = #tpu.pipeline_mode<synchronous>, transform_indices = @transform_4, window_bounds = array<i64: 32, 1>}, {pipeline_mode = #tpu.pipeline_mode<synchronous>, transform_indices = @transform_5, window_bounds = array<i64: 32, 512>}]} {
    %c0 = arith.constant 0 : index
    %c0_0 = arith.constant 0 : index
    %0 = vector.load %arg2[%c0, %c0_0] : memref<32x64xbf16, #tpu.memory_space<vmem>>, vector<32x64xbf16>
    %c0_1 = arith.constant 0 : index
    %c0_2 = arith.constant 0 : index
    %1 = vector.load %arg1[%c0_1, %c0_2] : memref<64x512xbf16, #tpu.memory_space<vmem>>, vector<64x512xbf16>
    %cst = arith.constant dense<0.000000e+00> : vector<32x512xf32>
    %2 = tpu.matmul %0, %1, %cst {dimension_numbers = #tpu.dot_dimension_numbers<[1], [0], [0], [1], [0, 0, 1, 1], [], []>} : vector<32x64xbf16>, vector<64x512xbf16>, vector<32x512xf32> -> vector<32x512xf32>
    %c0_3 = arith.constant 0 : index
    %c0_4 = arith.constant 0 : index
    %3 = vector.load %arg3[%c0_3, %c0_4] : memref<32x1xf32, #tpu.memory_space<vmem>>, vector<32x1xf32>
    %4 = vector.broadcast %3 : vector<32x1xf32> to vector<32x512xf32>
    %5 = arith.addf %2, %4 : vector<32x512xf32>
    %cst_5 = arith.constant dense<0.000000e+00> : vector<32xf32>
    %6 = vector.multi_reduction <add>, %5, %cst_5 [1] : vector<32x512xf32> to vector<32xf32>
    %7 = vector.shape_cast %6 : vector<32xf32> to vector<32x1xf32>
    %cst_6 = arith.constant 5.120000e+02 : f32
    %8 = vector.broadcast %cst_6 : f32 to vector<32x1xf32>
    %9 = arith.divf %7, %8 : vector<32x1xf32>
    %10 = vector.broadcast %9 : vector<32x1xf32> to vector<32x512xf32>
    %11 = arith.subf %5, %10 : vector<32x512xf32>
    %12 = arith.mulf %11, %11 : vector<32x512xf32>
    %cst_7 = arith.constant dense<0.000000e+00> : vector<32xf32>
    %13 = vector.multi_reduction <add>, %12, %cst_7 [1] : vector<32x512xf32> to vector<32xf32>
    %14 = vector.shape_cast %13 : vector<32xf32> to vector<32x1xf32>
    %cst_8 = arith.constant 5.120000e+02 : f32
    %15 = vector.broadcast %cst_8 : f32 to vector<32x1xf32>
    %16 = arith.divf %14, %15 : vector<32x1xf32>
    %17 = vector.broadcast %9 : vector<32x1xf32> to vector<32x512xf32>
    %18 = arith.subf %5, %17 : vector<32x512xf32>
    %cst_9 = arith.constant 9.99999974E-6 : f32
    %19 = vector.broadcast %cst_9 : f32 to vector<32x1xf32>
    %20 = arith.addf %16, %19 : vector<32x1xf32>
    %21 = math.rsqrt %20 : vector<32x1xf32>
    %22 = vector.broadcast %21 : vector<32x1xf32> to vector<32x512xf32>
    %23 = arith.mulf %18, %22 : vector<32x512xf32>
    %c0_10 = arith.constant 0 : index
    %c0_11 = arith.constant 0 : index
    %24 = vector.load %arg4[%c0_10, %c0_11] : memref<32x1xf32, #tpu.memory_space<vmem>>, vector<32x1xf32>
    %25 = vector.broadcast %24 : vector<32x1xf32> to vector<32x512xf32>
    %26 = arith.mulf %23, %25 : vector<32x512xf32>
    %c0_12 = arith.constant 0 : index
    %c0_13 = arith.constant 0 : index
    %27 = vector.load %arg5[%c0_12, %c0_13] : memref<32x1xf32, #tpu.memory_space<vmem>>, vector<32x1xf32>
    %28 = vector.broadcast %27 : vector<32x1xf32> to vector<32x512xf32>
    %29 = arith.addf %26, %28 : vector<32x512xf32>
    %cst_14 = arith.constant 0.000000e+00 : f32
    %30 = vector.broadcast %cst_14 : f32 to vector<32x512xf32>
    %31 = arith.maximumf %29, %30 : vector<32x512xf32>
    %32 = arith.truncf %31 : vector<32x512xf32> to vector<32x512xbf16>
    %c0_15 = arith.constant 0 : index
    %c0_16 = arith.constant 0 : index
    %33 = vector.load %arg6[%c0_15, %c0_16] : memref<32x512xbf16, #tpu.memory_space<vmem>>, vector<32x512xbf16>
    tpu.vector_store %arg6[%c0_15, %c0_16], %32 {strides = array<i32>} : memref<32x512xbf16, #tpu.memory_space<vmem>>, vector<32x512xbf16>,
    return
  }
  func.func @transform_0(%arg0: i32) -> (i32, i32) {
    %c0_i32 = arith.constant 0 : i32
    %c0_i32_0 = arith.constant 0 : i32
    %c0_i32_1 = arith.constant 0 : i32
    return %c0_i32, %c0_i32_0 : i32, i32
  }
  func.func @transform_1(%arg0: i32) -> (i32, i32) {
    %c0_i32 = arith.constant 0 : i32
    %c0_i32_0 = arith.constant 0 : i32
    %c0_i32_1 = arith.constant 0 : i32
    return %c0_i32, %c0_i32_0 : i32, i32
  }
  func.func @transform_2(%arg0: i32) -> (i32, i32) {
    %c0_i32 = arith.constant 0 : i32
    %c0_i32_0 = arith.constant 0 : i32
    %c0_i32_1 = arith.constant 0 : i32
    return %c0_i32, %c0_i32_0 : i32, i32
  }
  func.func @transform_3(%arg0: i32) -> (i32, i32) {
    %c0_i32 = arith.constant 0 : i32
    %c0_i32_0 = arith.constant 0 : i32
    %c0_i32_1 = arith.constant 0 : i32
    return %c0_i32, %c0_i32_0 : i32, i32
  }
  func.func @transform_4(%arg0: i32) -> (i32, i32) {
    %c0_i32 = arith.constant 0 : i32
    %c0_i32_0 = arith.constant 0 : i32
    %c0_i32_1 = arith.constant 0 : i32
    return %c0_i32, %c0_i32_0 : i32, i32
  }
  func.func @transform_5(%arg0: i32) -> (i32, i32) {
    %c0_i32 = arith.constant 0 : i32
    %c0_i32_0 = arith.constant 0 : i32
    %c0_i32_1 = arith.constant 0 : i32
    return %c0_i32, %c0_i32_0 : i32, i32
  }
}

module attributes {stable_mosaic.version = 11 : i64} {
  func.func @_conv_bn_relu_kernel(%arg0: i32, %arg1: memref<512x128xbf16, #tpu.memory_space<vmem>>, %arg2: memref<64x512xbf16, #tpu.memory_space<vmem>>, %arg3: memref<64x1xf32, #tpu.memory_space<vmem>>, %arg4: memref<64x1xf32, #tpu.memory_space<vmem>>, %arg5: memref<64x1xf32, #tpu.memory_space<vmem>>, %arg6: memref<64x128xbf16, #tpu.memory_space<vmem>>) attributes {dimension_semantics = [#tpu.dimension_semantics<arbitrary>], iteration_bounds = array<i64: 1>, scalar_prefetch = 0 : i64, scratch_operands = 0 : i64, tpu.core_type = #tpu.core_type<tc>, window_params = [{pipeline_mode = #tpu.pipeline_mode<synchronous>, transform_indices = @transform_0, window_bounds = array<i64: 512, 128>}, {pipeline_mode = #tpu.pipeline_mode<synchronous>, transform_indices = @transform_1, window_bounds = array<i64: 64, 512>}, {pipeline_mode = #tpu.pipeline_mode<synchronous>, transform_indices = @transform_2, window_bounds = array<i64: 64, 1>}, {pipeline_mode = #tpu.pipeline_mode<synchronous>, transform_indices = @transform_3, window_bounds = array<i64: 64, 1>}, {pipeline_mode = #tpu.pipeline_mode<synchronous>, transform_indices = @transform_4, window_bounds = array<i64: 64, 1>}, {pipeline_mode = #tpu.pipeline_mode<synchronous>, transform_indices = @transform_5, window_bounds = array<i64: 64, 128>}]} {
    %c0 = arith.constant 0 : index
    %c0_0 = arith.constant 0 : index
    %0 = vector.load %arg2[%c0, %c0_0] : memref<64x512xbf16, #tpu.memory_space<vmem>>, vector<64x512xbf16>
    %c0_1 = arith.constant 0 : index
    %c0_2 = arith.constant 0 : index
    %1 = vector.load %arg1[%c0_1, %c0_2] : memref<512x128xbf16, #tpu.memory_space<vmem>>, vector<512x128xbf16>
    %cst = arith.constant dense<0.000000e+00> : vector<64x128xf32>
    %2 = tpu.matmul %0, %1, %cst {dimension_numbers = #tpu.dot_dimension_numbers<[1], [0], [0], [1], [0, 0, 1, 1], [], []>} : vector<64x512xbf16>, vector<512x128xbf16>, vector<64x128xf32> -> vector<64x128xf32>
    %c0_3 = arith.constant 0 : index
    %c0_4 = arith.constant 0 : index
    %3 = vector.load %arg3[%c0_3, %c0_4] : memref<64x1xf32, #tpu.memory_space<vmem>>, vector<64x1xf32>
    %4 = vector.broadcast %3 : vector<64x1xf32> to vector<64x128xf32>
    %5 = arith.addf %2, %4 : vector<64x128xf32>
    %cst_5 = arith.constant dense<0.000000e+00> : vector<64xf32>
    %6 = vector.multi_reduction <add>, %5, %cst_5 [1] : vector<64x128xf32> to vector<64xf32>
    %7 = vector.shape_cast %6 : vector<64xf32> to vector<64x1xf32>
    %cst_6 = arith.constant 1.280000e+02 : f32
    %8 = vector.broadcast %cst_6 : f32 to vector<64x1xf32>
    %9 = arith.divf %7, %8 : vector<64x1xf32>
    %10 = vector.broadcast %9 : vector<64x1xf32> to vector<64x128xf32>
    %11 = arith.subf %5, %10 : vector<64x128xf32>
    %12 = arith.mulf %11, %11 : vector<64x128xf32>
    %cst_7 = arith.constant dense<0.000000e+00> : vector<64xf32>
    %13 = vector.multi_reduction <add>, %12, %cst_7 [1] : vector<64x128xf32> to vector<64xf32>
    %14 = vector.shape_cast %13 : vector<64xf32> to vector<64x1xf32>
    %cst_8 = arith.constant 1.280000e+02 : f32
    %15 = vector.broadcast %cst_8 : f32 to vector<64x1xf32>
    %16 = arith.divf %14, %15 : vector<64x1xf32>
    %17 = vector.broadcast %9 : vector<64x1xf32> to vector<64x128xf32>
    %18 = arith.subf %5, %17 : vector<64x128xf32>
    %cst_9 = arith.constant 9.99999974E-6 : f32
    %19 = vector.broadcast %cst_9 : f32 to vector<64x1xf32>
    %20 = arith.addf %16, %19 : vector<64x1xf32>
    %21 = math.rsqrt %20 : vector<64x1xf32>
    %22 = vector.broadcast %21 : vector<64x1xf32> to vector<64x128xf32>
    %23 = arith.mulf %18, %22 : vector<64x128xf32>
    %c0_10 = arith.constant 0 : index
    %c0_11 = arith.constant 0 : index
    %24 = vector.load %arg4[%c0_10, %c0_11] : memref<64x1xf32, #tpu.memory_space<vmem>>, vector<64x1xf32>
    %25 = vector.broadcast %24 : vector<64x1xf32> to vector<64x128xf32>
    %26 = arith.mulf %23, %25 : vector<64x128xf32>
    %c0_12 = arith.constant 0 : index
    %c0_13 = arith.constant 0 : index
    %27 = vector.load %arg5[%c0_12, %c0_13] : memref<64x1xf32, #tpu.memory_space<vmem>>, vector<64x1xf32>
    %28 = vector.broadcast %27 : vector<64x1xf32> to vector<64x128xf32>
    %29 = arith.addf %26, %28 : vector<64x128xf32>
    %cst_14 = arith.constant 0.000000e+00 : f32
    %30 = vector.broadcast %cst_14 : f32 to vector<64x128xf32>
    %31 = arith.maximumf %29, %30 : vector<64x128xf32>
    %32 = arith.truncf %31 : vector<64x128xf32> to vector<64x128xbf16>
    %c0_15 = arith.constant 0 : index
    %c0_16 = arith.constant 0 : index
    %33 = vector.load %arg6[%c0_15, %c0_16] : memref<64x128xbf16, #tpu.memory_space<vmem>>, vector<64x128xbf16>
    tpu.vector_store %arg6[%c0_15, %c0_16], %32 {strides = array<i32>} : memref<64x128xbf16, #tpu.memory_space<vmem>>, vector<64x128xbf16>,
    return
  }
  func.func @transform_0(%arg0: i32) -> (i32, i32) {
    %c0_i32 = arith.constant 0 : i32
    %c0_i32_0 = arith.constant 0 : i32
    %c0_i32_1 = arith.constant 0 : i32
    return %c0_i32, %c0_i32_0 : i32, i32
  }
  func.func @transform_1(%arg0: i32) -> (i32, i32) {
    %c0_i32 = arith.constant 0 : i32
    %c0_i32_0 = arith.constant 0 : i32
    %c0_i32_1 = arith.constant 0 : i32
    return %c0_i32, %c0_i32_0 : i32, i32
  }
  func.func @transform_2(%arg0: i32) -> (i32, i32) {
    %c0_i32 = arith.constant 0 : i32
    %c0_i32_0 = arith.constant 0 : i32
    %c0_i32_1 = arith.constant 0 : i32
    return %c0_i32, %c0_i32_0 : i32, i32
  }
  func.func @transform_3(%arg0: i32) -> (i32, i32) {
    %c0_i32 = arith.constant 0 : i32
    %c0_i32_0 = arith.constant 0 : i32
    %c0_i32_1 = arith.constant 0 : i32
    return %c0_i32, %c0_i32_0 : i32, i32
  }
  func.func @transform_4(%arg0: i32) -> (i32, i32) {
    %c0_i32 = arith.constant 0 : i32
    %c0_i32_0 = arith.constant 0 : i32
    %c0_i32_1 = arith.constant 0 : i32
    return %c0_i32, %c0_i32_0 : i32, i32
  }
  func.func @transform_5(%arg0: i32) -> (i32, i32) {
    %c0_i32 = arith.constant 0 : i32
    %c0_i32_0 = arith.constant 0 : i32
    %c0_i32_1 = arith.constant 0 : i32
    return %c0_i32, %c0_i32_0 : i32, i32
  }
}

module attributes {stable_mosaic.version = 11 : i64} {
  func.func @_conv_bn_relu_kernel(%arg0: i32, %arg1: memref<1024x32xbf16, #tpu.memory_space<vmem>>, %arg2: memref<64x1024xbf16, #tpu.memory_space<vmem>>, %arg3: memref<64x1xf32, #tpu.memory_space<vmem>>, %arg4: memref<64x1xf32, #tpu.memory_space<vmem>>, %arg5: memref<64x1xf32, #tpu.memory_space<vmem>>, %arg6: memref<64x32xbf16, #tpu.memory_space<vmem>>) attributes {dimension_semantics = [#tpu.dimension_semantics<arbitrary>], iteration_bounds = array<i64: 1>, scalar_prefetch = 0 : i64, scratch_operands = 0 : i64, tpu.core_type = #tpu.core_type<tc>, window_params = [{pipeline_mode = #tpu.pipeline_mode<synchronous>, transform_indices = @transform_0, window_bounds = array<i64: 1024, 32>}, {pipeline_mode = #tpu.pipeline_mode<synchronous>, transform_indices = @transform_1, window_bounds = array<i64: 64, 1024>}, {pipeline_mode = #tpu.pipeline_mode<synchronous>, transform_indices = @transform_2, window_bounds = array<i64: 64, 1>}, {pipeline_mode = #tpu.pipeline_mode<synchronous>, transform_indices = @transform_3, window_bounds = array<i64: 64, 1>}, {pipeline_mode = #tpu.pipeline_mode<synchronous>, transform_indices = @transform_4, window_bounds = array<i64: 64, 1>}, {pipeline_mode = #tpu.pipeline_mode<synchronous>, transform_indices = @transform_5, window_bounds = array<i64: 64, 32>}]} {
    %c0 = arith.constant 0 : index
    %c0_0 = arith.constant 0 : index
    %0 = vector.load %arg2[%c0, %c0_0] : memref<64x1024xbf16, #tpu.memory_space<vmem>>, vector<64x1024xbf16>
    %c0_1 = arith.constant 0 : index
    %c0_2 = arith.constant 0 : index
    %1 = vector.load %arg1[%c0_1, %c0_2] : memref<1024x32xbf16, #tpu.memory_space<vmem>>, vector<1024x32xbf16>
    %cst = arith.constant dense<0.000000e+00> : vector<64x32xf32>
    %2 = tpu.matmul %0, %1, %cst {dimension_numbers = #tpu.dot_dimension_numbers<[1], [0], [0], [1], [0, 0, 1, 1], [], []>} : vector<64x1024xbf16>, vector<1024x32xbf16>, vector<64x32xf32> -> vector<64x32xf32>
    %c0_3 = arith.constant 0 : index
    %c0_4 = arith.constant 0 : index
    %3 = vector.load %arg3[%c0_3, %c0_4] : memref<64x1xf32, #tpu.memory_space<vmem>>, vector<64x1xf32>
    %4 = vector.broadcast %3 : vector<64x1xf32> to vector<64x32xf32>
    %5 = arith.addf %2, %4 : vector<64x32xf32>
    %cst_5 = arith.constant dense<0.000000e+00> : vector<64xf32>
    %6 = vector.multi_reduction <add>, %5, %cst_5 [1] : vector<64x32xf32> to vector<64xf32>
    %7 = vector.shape_cast %6 : vector<64xf32> to vector<64x1xf32>
    %cst_6 = arith.constant 3.200000e+01 : f32
    %8 = vector.broadcast %cst_6 : f32 to vector<64x1xf32>
    %9 = arith.divf %7, %8 : vector<64x1xf32>
    %10 = vector.broadcast %9 : vector<64x1xf32> to vector<64x32xf32>
    %11 = arith.subf %5, %10 : vector<64x32xf32>
    %12 = arith.mulf %11, %11 : vector<64x32xf32>
    %cst_7 = arith.constant dense<0.000000e+00> : vector<64xf32>
    %13 = vector.multi_reduction <add>, %12, %cst_7 [1] : vector<64x32xf32> to vector<64xf32>
    %14 = vector.shape_cast %13 : vector<64xf32> to vector<64x1xf32>
    %cst_8 = arith.constant 3.200000e+01 : f32
    %15 = vector.broadcast %cst_8 : f32 to vector<64x1xf32>
    %16 = arith.divf %14, %15 : vector<64x1xf32>
    %17 = vector.broadcast %9 : vector<64x1xf32> to vector<64x32xf32>
    %18 = arith.subf %5, %17 : vector<64x32xf32>
    %cst_9 = arith.constant 9.99999974E-6 : f32
    %19 = vector.broadcast %cst_9 : f32 to vector<64x1xf32>
    %20 = arith.addf %16, %19 : vector<64x1xf32>
    %21 = math.rsqrt %20 : vector<64x1xf32>
    %22 = vector.broadcast %21 : vector<64x1xf32> to vector<64x32xf32>
    %23 = arith.mulf %18, %22 : vector<64x32xf32>
    %c0_10 = arith.constant 0 : index
    %c0_11 = arith.constant 0 : index
    %24 = vector.load %arg4[%c0_10, %c0_11] : memref<64x1xf32, #tpu.memory_space<vmem>>, vector<64x1xf32>
    %25 = vector.broadcast %24 : vector<64x1xf32> to vector<64x32xf32>
    %26 = arith.mulf %23, %25 : vector<64x32xf32>
    %c0_12 = arith.constant 0 : index
    %c0_13 = arith.constant 0 : index
    %27 = vector.load %arg5[%c0_12, %c0_13] : memref<64x1xf32, #tpu.memory_space<vmem>>, vector<64x1xf32>
    %28 = vector.broadcast %27 : vector<64x1xf32> to vector<64x32xf32>
    %29 = arith.addf %26, %28 : vector<64x32xf32>
    %cst_14 = arith.constant 0.000000e+00 : f32
    %30 = vector.broadcast %cst_14 : f32 to vector<64x32xf32>
    %31 = arith.maximumf %29, %30 : vector<64x32xf32>
    %32 = arith.truncf %31 : vector<64x32xf32> to vector<64x32xbf16>
    %c0_15 = arith.constant 0 : index
    %c0_16 = arith.constant 0 : index
    %33 = vector.load %arg6[%c0_15, %c0_16] : memref<64x32xbf16, #tpu.memory_space<vmem>>, vector<64x32xbf16>
    tpu.vector_store %arg6[%c0_15, %c0_16], %32 {strides = array<i32>} : memref<64x32xbf16, #tpu.memory_space<vmem>>, vector<64x32xbf16>,
    return
  }
  func.func @transform_0(%arg0: i32) -> (i32, i32) {
    %c0_i32 = arith.constant 0 : i32
    %c0_i32_0 = arith.constant 0 : i32
    %c0_i32_1 = arith.constant 0 : i32
    return %c0_i32, %c0_i32_0 : i32, i32
  }
  func.func @transform_1(%arg0: i32) -> (i32, i32) {
    %c0_i32 = arith.constant 0 : i32
    %c0_i32_0 = arith.constant 0 : i32
    %c0_i32_1 = arith.constant 0 : i32
    return %c0_i32, %c0_i32_0 : i32, i32
  }
  func.func @transform_2(%arg0: i32) -> (i32, i32) {
    %c0_i32 = arith.constant 0 : i32
    %c0_i32_0 = arith.constant 0 : i32
    %c0_i32_1 = arith.constant 0 : i32
    return %c0_i32, %c0_i32_0 : i32, i32
  }
  func.func @transform_3(%arg0: i32) -> (i32, i32) {
    %c0_i32 = arith.constant 0 : i32
    %c0_i32_0 = arith.constant 0 : i32
    %c0_i32_1 = arith.constant 0 : i32
    return %c0_i32, %c0_i32_0 : i32, i32
  }
  func.func @transform_4(%arg0: i32) -> (i32, i32) {
    %c0_i32 = arith.constant 0 : i32
    %c0_i32_0 = arith.constant 0 : i32
    %c0_i32_1 = arith.constant 0 : i32
    return %c0_i32, %c0_i32_0 : i32, i32
  }
  func.func @transform_5(%arg0: i32) -> (i32, i32) {
    %c0_i32 = arith.constant 0 : i32
    %c0_i32_0 = arith.constant 0 : i32
    %c0_i32_1 = arith.constant 0 : i32
    return %c0_i32, %c0_i32_0 : i32, i32
  }
}

module attributes {stable_mosaic.version = 11 : i64} {
  func.func @_middle_kernel(%arg0: i32, %arg1: memref<2x1024xbf16, #tpu.memory_space<vmem>>, %arg2: memref<1024x32xbf16, #tpu.memory_space<vmem>>, %arg3: memref<1x32xf32, #tpu.memory_space<vmem>>, %arg4: memref<32x80xbf16, #tpu.memory_space<vmem>>, %arg5: memref<1x80xf32, #tpu.memory_space<vmem>>, %arg6: memref<2x16xf32, #tpu.memory_space<vmem>>, %arg7: memref<2x16xf32, #tpu.memory_space<vmem>>, %arg8: memref<16x32xbf16, #tpu.memory_space<vmem>>, %arg9: memref<1x32xf32, #tpu.memory_space<vmem>>, %arg10: memref<32x1024xbf16, #tpu.memory_space<vmem>>, %arg11: memref<1x1024xf32, #tpu.memory_space<vmem>>, %arg12: memref<2x16xf32, #tpu.memory_space<vmem>>, %arg13: memref<2x16xf32, #tpu.memory_space<vmem>>, %arg14: memref<2x16xf32, #tpu.memory_space<vmem>>, %arg15: memref<2x16xf32, #tpu.memory_space<vmem>>, %arg16: memref<2x16xf32, #tpu.memory_space<vmem>>, %arg17: memref<2x1024xbf16, #tpu.memory_space<vmem>>) attributes {dimension_semantics = [#tpu.dimension_semantics<arbitrary>], iteration_bounds = array<i64: 1>, scalar_prefetch = 0 : i64, scratch_operands = 0 : i64, tpu.core_type = #tpu.core_type<tc>, window_params = [{pipeline_mode = #tpu.pipeline_mode<synchronous>, transform_indices = @transform_0, window_bounds = array<i64: 2, 1024>}, {pipeline_mode = #tpu.pipeline_mode<synchronous>, transform_indices = @transform_1, window_bounds = array<i64: 1024, 32>}, {pipeline_mode = #tpu.pipeline_mode<synchronous>, transform_indices = @transform_2, window_bounds = array<i64: 1, 32>}, {pipeline_mode = #tpu.pipeline_mode<synchronous>, transform_indices = @transform_3, window_bounds = array<i64: 32, 80>}, {pipeline_mode = #tpu.pipeline_mode<synchronous>, transform_indices = @transform_4, window_bounds = array<i64: 1, 80>}, {pipeline_mode = #tpu.pipeline_mode<synchronous>, transform_indices = @transform_5, window_bounds = array<i64: 2, 16>}, {pipeline_mode = #tpu.pipeline_mode<synchronous>, transform_indices = @transform_6, window_bounds = array<i64: 2, 16>}, {pipeline_mode = #tpu.pipeline_mode<synchronous>, transform_indices = @transform_7, window_bounds = array<i64: 16, 32>}, {pipeline_mode = #tpu.pipeline_mode<synchronous>, transform_indices = @transform_8, window_bounds = array<i64: 1, 32>}, {pipeline_mode = #tpu.pipeline_mode<synchronous>, transform_indices = @transform_9, window_bounds = array<i64: 32, 1024>}, {pipeline_mode = #tpu.pipeline_mode<synchronous>, transform_indices = @transform_10, window_bounds = array<i64: 1, 1024>}, {pipeline_mode = #tpu.pipeline_mode<synchronous>, transform_indices = @transform_11, window_bounds = array<i64: 2, 16>}, {pipeline_mode = #tpu.pipeline_mode<synchronous>, transform_indices = @transform_12, window_bounds = array<i64: 2, 16>}, {pipeline_mode = #tpu.pipeline_mode<synchronous>, transform_indices = @transform_13, window_bounds = array<i64: 2, 16>}, {pipeline_mode = #tpu.pipeline_mode<synchronous>, transform_indices = @transform_14, window_bounds = array<i64: 2, 16>}, {pipeline_mode = #tpu.pipeline_mode<synchronous>, transform_indices = @transform_15, window_bounds = array<i64: 2, 16>}, {pipeline_mode = #tpu.pipeline_mode<synchronous>, transform_indices = @transform_16, window_bounds = array<i64: 2, 1024>}]} {
    %c0 = arith.constant 0 : index
    %c0_0 = arith.constant 0 : index
    %0 = vector.load %arg1[%c0, %c0_0] : memref<2x1024xbf16, #tpu.memory_space<vmem>>, vector<2x1024xbf16>
    %c0_1 = arith.constant 0 : index
    %c0_2 = arith.constant 0 : index
    %1 = vector.load %arg2[%c0_1, %c0_2] : memref<1024x32xbf16, #tpu.memory_space<vmem>>, vector<1024x32xbf16>
    %cst = arith.constant dense<0.000000e+00> : vector<2x32xf32>
    %2 = tpu.matmul %0, %1, %cst {dimension_numbers = #tpu.dot_dimension_numbers<[1], [0], [0], [1], [0, 0, 1, 1], [], []>} : vector<2x1024xbf16>, vector<1024x32xbf16>, vector<2x32xf32> -> vector<2x32xf32>
    %c0_3 = arith.constant 0 : index
    %c0_4 = arith.constant 0 : index
    %3 = vector.load %arg3[%c0_3, %c0_4] : memref<1x32xf32, #tpu.memory_space<vmem>>, vector<1x32xf32>
    %4 = vector.broadcast %3 : vector<1x32xf32> to vector<2x32xf32>
    %5 = arith.addf %2, %4 : vector<2x32xf32>
    %cst_5 = arith.constant 0.000000e+00 : f32
    %6 = vector.broadcast %cst_5 : f32 to vector<2x32xf32>
    %7 = arith.maximumf %5, %6 : vector<2x32xf32>
    %8 = arith.truncf %7 : vector<2x32xf32> to vector<2x32xbf16>
    %c0_6 = arith.constant 0 : index
    %c0_7 = arith.constant 0 : index
    %9 = vector.load %arg4[%c0_6, %c0_7] : memref<32x80xbf16, #tpu.memory_space<vmem>>, vector<32x80xbf16>
    %cst_8 = arith.constant dense<0.000000e+00> : vector<2x80xf32>
    %10 = tpu.matmul %8, %9, %cst_8 {dimension_numbers = #tpu.dot_dimension_numbers<[1], [0], [0], [1], [0, 0, 1, 1], [], []>} : vector<2x32xbf16>, vector<32x80xbf16>, vector<2x80xf32> -> vector<2x80xf32>
    %c0_9 = arith.constant 0 : index
    %c0_10 = arith.constant 0 : index
    %11 = vector.load %arg5[%c0_9, %c0_10] : memref<1x80xf32, #tpu.memory_space<vmem>>, vector<1x80xf32>
    %12 = vector.broadcast %11 : vector<1x80xf32> to vector<2x80xf32>
    %13 = arith.addf %10, %12 : vector<2x80xf32>
    %14 = vector.extract_strided_slice %13 {offsets = [0, 0], sizes = [2, 16], strides = [1, 1]} : vector<2x80xf32> to vector<2x16xf32>
    %15 = vector.extract_strided_slice %13 {offsets = [0, 16], sizes = [2, 16], strides = [1, 1]} : vector<2x80xf32> to vector<2x16xf32>
    %16 = vector.extract_strided_slice %13 {offsets = [0, 32], sizes = [2, 16], strides = [1, 1]} : vector<2x80xf32> to vector<2x16xf32>
    %17 = vector.extract_strided_slice %13 {offsets = [0, 48], sizes = [2, 16], strides = [1, 1]} : vector<2x80xf32> to vector<2x16xf32>
    %18 = vector.extract_strided_slice %13 {offsets = [0, 64], sizes = [2, 16], strides = [1, 1]} : vector<2x80xf32> to vector<2x16xf32>
    %19 = arith.negf %14 : vector<2x16xf32>
    %20 = math.exp %19 : vector<2x16xf32>
    %cst_11 = arith.constant 1.000000e+00 : f32
    %21 = vector.broadcast %cst_11 : f32 to vector<2x16xf32>
    %22 = arith.addf %21, %20 : vector<2x16xf32>
    %23 = arith.divf %21, %22 : vector<2x16xf32>
    %cst_12 = arith.constant 9.99999974E-5 : f32
    %cst_13 = arith.constant 0.999899983 : f32
    %24 = vector.broadcast %cst_12 : f32 to vector<2x16xf32>
    %25 = arith.maximumf %24, %23 : vector<2x16xf32>
    %26 = vector.broadcast %cst_13 : f32 to vector<2x16xf32>
    %27 = arith.minimumf %26, %25 : vector<2x16xf32>
    %cst_14 = arith.constant 5.000000e-01 : f32
    %28 = vector.broadcast %cst_14 : f32 to vector<2x16xf32>
    %29 = arith.mulf %28, %16 : vector<2x16xf32>
    %30 = math.exp %29 : vector<2x16xf32>
    %cst_15 = arith.constant 0.000000e+00 : f32
    %31 = vector.broadcast %cst_15 : f32 to vector<2x16xf32>
    %32 = arith.maximumf %17, %31 : vector<2x16xf32>
    %cst_16 = arith.constant 0.000000e+00 : f32
    %33 = vector.broadcast %cst_16 : f32 to vector<2x16xf32>
    %34 = arith.maximumf %32, %33 : vector<2x16xf32>
    %35 = math.absf %32 : vector<2x16xf32>
    %cst_17 = arith.constant 0.000000e+00 : f32
    %36 = vector.broadcast %cst_17 : f32 to vector<2x16xf32>
    %37 = arith.subf %36, %35 : vector<2x16xf32>
    %38 = math.exp %37 : vector<2x16xf32>
    %39 = math.log1p %38 : vector<2x16xf32>
    %40 = arith.addf %34, %39 : vector<2x16xf32>
    %cst_18 = arith.constant 1.000000e-01 : f32
    %41 = vector.broadcast %cst_18 : f32 to vector<2x16xf32>
    %42 = arith.addf %40, %41 : vector<2x16xf32>
    %cst_19 = arith.constant 0.000000e+00 : f32
    %43 = vector.broadcast %cst_19 : f32 to vector<2x16xf32>
    %44 = arith.maximumf %18, %43 : vector<2x16xf32>
    %cst_20 = arith.constant 0.000000e+00 : f32
    %45 = vector.broadcast %cst_20 : f32 to vector<2x16xf32>
    %46 = arith.maximumf %44, %45 : vector<2x16xf32>
    %47 = math.absf %44 : vector<2x16xf32>
    %cst_21 = arith.constant 0.000000e+00 : f32
    %48 = vector.broadcast %cst_21 : f32 to vector<2x16xf32>
    %49 = arith.subf %48, %47 : vector<2x16xf32>
    %50 = math.exp %49 : vector<2x16xf32>
    %51 = math.log1p %50 : vector<2x16xf32>
    %52 = arith.addf %46, %51 : vector<2x16xf32>
    %cst_22 = arith.constant 1.000000e-01 : f32
    %53 = vector.broadcast %cst_22 : f32 to vector<2x16xf32>
    %54 = arith.addf %52, %53 : vector<2x16xf32>
    %c0_23 = arith.constant 0 : index
    %c0_24 = arith.constant 0 : index
    %55 = vector.load %arg6[%c0_23, %c0_24] : memref<2x16xf32, #tpu.memory_space<vmem>>, vector<2x16xf32>
    %56 = arith.mulf %30, %55 : vector<2x16xf32>
    %57 = arith.addf %15, %56 : vector<2x16xf32>
    %c0_25 = arith.constant 0 : index
    %c0_26 = arith.constant 0 : index
    %58 = vector.load %arg7[%c0_25, %c0_26] : memref<2x16xf32, #tpu.memory_space<vmem>>, vector<2x16xf32>
    %59 = math.log %58 : vector<2x16xf32>
    %cst_27 = arith.constant 0.000000e+00 : f32
    %60 = vector.broadcast %cst_27 : f32 to vector<2x16xf32>
    %61 = arith.subf %60, %58 : vector<2x16xf32>
    %62 = math.log1p %61 : vector<2x16xf32>
    %63 = arith.subf %59, %62 : vector<2x16xf32>
    %64 = math.log %27 : vector<2x16xf32>
    %65 = arith.addf %63, %64 : vector<2x16xf32>
    %cst_28 = arith.constant 0.000000e+00 : f32
    %66 = vector.broadcast %cst_28 : f32 to vector<2x16xf32>
    %67 = arith.subf %66, %27 : vector<2x16xf32>
    %68 = math.log1p %67 : vector<2x16xf32>
    %69 = arith.subf %65, %68 : vector<2x16xf32>
    %cst_29 = arith.constant 5.000000e-01 : f32
    %70 = vector.broadcast %cst_29 : f32 to vector<2x16xf32>
    %71 = arith.divf %69, %70 : vector<2x16xf32>
    %72 = arith.negf %71 : vector<2x16xf32>
    %73 = math.exp %72 : vector<2x16xf32>
    %cst_30 = arith.constant 1.000000e+00 : f32
    %74 = vector.broadcast %cst_30 : f32 to vector<2x16xf32>
    %75 = arith.addf %74, %73 : vector<2x16xf32>
    %76 = arith.divf %74, %75 : vector<2x16xf32>
    %77 = arith.mulf %57, %76 : vector<2x16xf32>
    %78 = arith.truncf %77 : vector<2x16xf32> to vector<2x16xbf16>
    %c0_31 = arith.constant 0 : index
    %c0_32 = arith.constant 0 : index
    %79 = vector.load %arg8[%c0_31, %c0_32] : memref<16x32xbf16, #tpu.memory_space<vmem>>, vector<16x32xbf16>
    %cst_33 = arith.constant dense<0.000000e+00> : vector<2x32xf32>
    %80 = tpu.matmul %78, %79, %cst_33 {dimension_numbers = #tpu.dot_dimension_numbers<[1], [0], [0], [1], [0, 0, 1, 1], [], []>} : vector<2x16xbf16>, vector<16x32xbf16>, vector<2x32xf32> -> vector<2x32xf32>
    %c0_34 = arith.constant 0 : index
    %c0_35 = arith.constant 0 : index
    %81 = vector.load %arg9[%c0_34, %c0_35] : memref<1x32xf32, #tpu.memory_space<vmem>>, vector<1x32xf32>
    %82 = vector.broadcast %81 : vector<1x32xf32> to vector<2x32xf32>
    %83 = arith.addf %80, %82 : vector<2x32xf32>
    %cst_36 = arith.constant 0.000000e+00 : f32
    %84 = vector.broadcast %cst_36 : f32 to vector<2x32xf32>
    %85 = arith.maximumf %83, %84 : vector<2x32xf32>
    %86 = arith.truncf %85 : vector<2x32xf32> to vector<2x32xbf16>
    %c0_37 = arith.constant 0 : index
    %c0_38 = arith.constant 0 : index
    %87 = vector.load %arg10[%c0_37, %c0_38] : memref<32x1024xbf16, #tpu.memory_space<vmem>>, vector<32x1024xbf16>
    %cst_39 = arith.constant dense<0.000000e+00> : vector<2x1024xf32>
    %88 = tpu.matmul %86, %87, %cst_39 {dimension_numbers = #tpu.dot_dimension_numbers<[1], [0], [0], [1], [0, 0, 1, 1], [], []>} : vector<2x32xbf16>, vector<32x1024xbf16>, vector<2x1024xf32> -> vector<2x1024xf32>
    %c0_40 = arith.constant 0 : index
    %c0_41 = arith.constant 0 : index
    %89 = vector.load %arg11[%c0_40, %c0_41] : memref<1x1024xf32, #tpu.memory_space<vmem>>, vector<1x1024xf32>
    %90 = vector.broadcast %89 : vector<1x1024xf32> to vector<2x1024xf32>
    %91 = arith.addf %88, %90 : vector<2x1024xf32>
    %cst_42 = arith.constant 0.000000e+00 : f32
    %92 = vector.broadcast %cst_42 : f32 to vector<2x1024xf32>
    %93 = arith.maximumf %91, %92 : vector<2x1024xf32>
    %c0_43 = arith.constant 0 : index
    %c0_44 = arith.constant 0 : index
    %94 = vector.load %arg12[%c0_43, %c0_44] : memref<2x16xf32, #tpu.memory_space<vmem>>, vector<2x16xf32>
    tpu.vector_store %arg12[%c0_43, %c0_44], %27 {strides = array<i32>} : memref<2x16xf32, #tpu.memory_space<vmem>>, vector<2x16xf32>,
    %c0_45 = arith.constant 0 : index
    %c0_46 = arith.constant 0 : index
    %95 = vector.load %arg13[%c0_45, %c0_46] : memref<2x16xf32, #tpu.memory_space<vmem>>, vector<2x16xf32>
    tpu.vector_store %arg13[%c0_45, %c0_46], %15 {strides = array<i32>} : memref<2x16xf32, #tpu.memory_space<vmem>>, vector<2x16xf32>,
    %c0_47 = arith.constant 0 : index
    %c0_48 = arith.constant 0 : index
    %96 = vector.load %arg14[%c0_47, %c0_48] : memref<2x16xf32, #tpu.memory_space<vmem>>, vector<2x16xf32>
    tpu.vector_store %arg14[%c0_47, %c0_48], %30 {strides = array<i32>} : memref<2x16xf32, #tpu.memory_space<vmem>>, vector<2x16xf32>,
    %c0_49 = arith.constant 0 : index
    %c0_50 = arith.constant 0 : index
    %97 = vector.load %arg15[%c0_49, %c0_50] : memref<2x16xf32, #tpu.memory_space<vmem>>, vector<2x16xf32>
    tpu.vector_store %arg15[%c0_49, %c0_50], %42 {strides = array<i32>} : memref<2x16xf32, #tpu.memory_space<vmem>>, vector<2x16xf32>,
    %c0_51 = arith.constant 0 : index
    %c0_52 = arith.constant 0 : index
    %98 = vector.load %arg16[%c0_51, %c0_52] : memref<2x16xf32, #tpu.memory_space<vmem>>, vector<2x16xf32>
    tpu.vector_store %arg16[%c0_51, %c0_52], %54 {strides = array<i32>} : memref<2x16xf32, #tpu.memory_space<vmem>>, vector<2x16xf32>,
    %99 = arith.truncf %93 : vector<2x1024xf32> to vector<2x1024xbf16>
    %c0_53 = arith.constant 0 : index
    %c0_54 = arith.constant 0 : index
    %100 = vector.load %arg17[%c0_53, %c0_54] : memref<2x1024xbf16, #tpu.memory_space<vmem>>, vector<2x1024xbf16>
    tpu.vector_store %arg17[%c0_53, %c0_54], %99 {strides = array<i32>} : memref<2x1024xbf16, #tpu.memory_space<vmem>>, vector<2x1024xbf16>,
    return
  }
  func.func @transform_0(%arg0: i32) -> (i32, i32) {
    %c0_i32 = arith.constant 0 : i32
    %c0_i32_0 = arith.constant 0 : i32
    %c0_i32_1 = arith.constant 0 : i32
    return %c0_i32, %c0_i32_0 : i32, i32
  }
  func.func @transform_1(%arg0: i32) -> (i32, i32) {
    %c0_i32 = arith.constant 0 : i32
    %c0_i32_0 = arith.constant 0 : i32
    %c0_i32_1 = arith.constant 0 : i32
    return %c0_i32, %c0_i32_0 : i32, i32
  }
  func.func @transform_2(%arg0: i32) -> (i32, i32) {
    %c0_i32 = arith.constant 0 : i32
    %c0_i32_0 = arith.constant 0 : i32
    %c0_i32_1 = arith.constant 0 : i32
    return %c0_i32, %c0_i32_0 : i32, i32
  }
  func.func @transform_3(%arg0: i32) -> (i32, i32) {
    %c0_i32 = arith.constant 0 : i32
    %c0_i32_0 = arith.constant 0 : i32
    %c0_i32_1 = arith.constant 0 : i32
    return %c0_i32, %c0_i32_0 : i32, i32
  }
  func.func @transform_4(%arg0: i32) -> (i32, i32) {
    %c0_i32 = arith.constant 0 : i32
    %c0_i32_0 = arith.constant 0 : i32
    %c0_i32_1 = arith.constant 0 : i32
    return %c0_i32, %c0_i32_0 : i32, i32
  }
  func.func @transform_5(%arg0: i32) -> (i32, i32) {
    %c0_i32 = arith.constant 0 : i32
    %c0_i32_0 = arith.constant 0 : i32
    %c0_i32_1 = arith.constant 0 : i32
    return %c0_i32, %c0_i32_0 : i32, i32
  }
  func.func @transform_6(%arg0: i32) -> (i32, i32) {
    %c0_i32 = arith.constant 0 : i32
    %c0_i32_0 = arith.constant 0 : i32
    %c0_i32_1 = arith.constant 0 : i32
    return %c0_i32, %c0_i32_0 : i32, i32
  }
  func.func @transform_7(%arg0: i32) -> (i32, i32) {
    %c0_i32 = arith.constant 0 : i32
    %c0_i32_0 = arith.constant 0 : i32
    %c0_i32_1 = arith.constant 0 : i32
    return %c0_i32, %c0_i32_0 : i32, i32
  }
  func.func @transform_8(%arg0: i32) -> (i32, i32) {
    %c0_i32 = arith.constant 0 : i32
    %c0_i32_0 = arith.constant 0 : i32
    %c0_i32_1 = arith.constant 0 : i32
    return %c0_i32, %c0_i32_0 : i32, i32
  }
  func.func @transform_9(%arg0: i32) -> (i32, i32) {
    %c0_i32 = arith.constant 0 : i32
    %c0_i32_0 = arith.constant 0 : i32
    %c0_i32_1 = arith.constant 0 : i32
    return %c0_i32, %c0_i32_0 : i32, i32
  }
  func.func @transform_10(%arg0: i32) -> (i32, i32) {
    %c0_i32 = arith.constant 0 : i32
    %c0_i32_0 = arith.constant 0 : i32
    %c0_i32_1 = arith.constant 0 : i32
    return %c0_i32, %c0_i32_0 : i32, i32
  }
  func.func @transform_11(%arg0: i32) -> (i32, i32) {
    %c0_i32 = arith.constant 0 : i32
    %c0_i32_0 = arith.constant 0 : i32
    %c0_i32_1 = arith.constant 0 : i32
    return %c0_i32, %c0_i32_0 : i32, i32
  }
  func.func @transform_12(%arg0: i32) -> (i32, i32) {
    %c0_i32 = arith.constant 0 : i32
    %c0_i32_0 = arith.constant 0 : i32
    %c0_i32_1 = arith.constant 0 : i32
    return %c0_i32, %c0_i32_0 : i32, i32
  }
  func.func @transform_13(%arg0: i32) -> (i32, i32) {
    %c0_i32 = arith.constant 0 : i32
    %c0_i32_0 = arith.constant 0 : i32
    %c0_i32_1 = arith.constant 0 : i32
    return %c0_i32, %c0_i32_0 : i32, i32
  }
  func.func @transform_14(%arg0: i32) -> (i32, i32) {
    %c0_i32 = arith.constant 0 : i32
    %c0_i32_0 = arith.constant 0 : i32
    %c0_i32_1 = arith.constant 0 : i32
    return %c0_i32, %c0_i32_0 : i32, i32
  }
  func.func @transform_15(%arg0: i32) -> (i32, i32) {
    %c0_i32 = arith.constant 0 : i32
    %c0_i32_0 = arith.constant 0 : i32
    %c0_i32_1 = arith.constant 0 : i32
    return %c0_i32, %c0_i32_0 : i32, i32
  }
  func.func @transform_16(%arg0: i32) -> (i32, i32) {
    %c0_i32 = arith.constant 0 : i32
    %c0_i32_0 = arith.constant 0 : i32
    %c0_i32_1 = arith.constant 0 : i32
    return %c0_i32, %c0_i32_0 : i32, i32
  }
}

module attributes {stable_mosaic.version = 11 : i64} {
  func.func @_convt_bn_relu_kernel(%arg0: i32, %arg1: memref<4x256x32xbf16, #tpu.memory_space<vmem>>, %arg2: memref<4x32x256xbf16, #tpu.memory_space<vmem>>, %arg3: memref<32x1xf32, #tpu.memory_space<vmem>>, %arg4: memref<32x1xf32, #tpu.memory_space<vmem>>, %arg5: memref<32x1xf32, #tpu.memory_space<vmem>>, %arg6: memref<4x32x32xbf16, #tpu.memory_space<vmem>>) attributes {dimension_semantics = [#tpu.dimension_semantics<arbitrary>], iteration_bounds = array<i64: 1>, scalar_prefetch = 0 : i64, scratch_operands = 0 : i64, tpu.core_type = #tpu.core_type<tc>, window_params = [{pipeline_mode = #tpu.pipeline_mode<synchronous>, transform_indices = @transform_0, window_bounds = array<i64: 4, 256, 32>}, {pipeline_mode = #tpu.pipeline_mode<synchronous>, transform_indices = @transform_1, window_bounds = array<i64: 4, 32, 256>}, {pipeline_mode = #tpu.pipeline_mode<synchronous>, transform_indices = @transform_2, window_bounds = array<i64: 32, 1>}, {pipeline_mode = #tpu.pipeline_mode<synchronous>, transform_indices = @transform_3, window_bounds = array<i64: 32, 1>}, {pipeline_mode = #tpu.pipeline_mode<synchronous>, transform_indices = @transform_4, window_bounds = array<i64: 32, 1>}, {pipeline_mode = #tpu.pipeline_mode<synchronous>, transform_indices = @transform_5, window_bounds = array<i64: 4, 32, 32>}]} {
    %c0 = arith.constant 0 : index
    %c0_0 = arith.constant 0 : index
    %c0_1 = arith.constant 0 : index
    %0 = vector.load %arg2[%c0, %c0_0, %c0_1] : memref<4x32x256xbf16, #tpu.memory_space<vmem>>, vector<1x32x256xbf16>
    %1 = vector.shape_cast %0 : vector<1x32x256xbf16> to vector<32x256xbf16>
    %c0_2 = arith.constant 0 : index
    %c0_3 = arith.constant 0 : index
    %c0_4 = arith.constant 0 : index
    %2 = vector.load %arg1[%c0_2, %c0_3, %c0_4] : memref<4x256x32xbf16, #tpu.memory_space<vmem>>, vector<1x256x32xbf16>
    %3 = vector.shape_cast %2 : vector<1x256x32xbf16> to vector<256x32xbf16>
    %cst = arith.constant dense<0.000000e+00> : vector<32x32xf32>
    %4 = tpu.matmul %1, %3, %cst {dimension_numbers = #tpu.dot_dimension_numbers<[1], [0], [0], [1], [0, 0, 1, 1], [], []>} : vector<32x256xbf16>, vector<256x32xbf16>, vector<32x32xf32> -> vector<32x32xf32>
    %c0_5 = arith.constant 0 : index
    %c0_6 = arith.constant 0 : index
    %5 = vector.load %arg3[%c0_5, %c0_6] : memref<32x1xf32, #tpu.memory_space<vmem>>, vector<32x1xf32>
    %6 = vector.broadcast %5 : vector<32x1xf32> to vector<32x32xf32>
    %7 = arith.addf %4, %6 : vector<32x32xf32>
    %c1 = arith.constant 1 : index
    %c0_7 = arith.constant 0 : index
    %c0_8 = arith.constant 0 : index
    %8 = vector.load %arg2[%c1, %c0_7, %c0_8] : memref<4x32x256xbf16, #tpu.memory_space<vmem>>, vector<1x32x256xbf16>
    %9 = vector.shape_cast %8 : vector<1x32x256xbf16> to vector<32x256xbf16>
    %c1_9 = arith.constant 1 : index
    %c0_10 = arith.constant 0 : index
    %c0_11 = arith.constant 0 : index
    %10 = vector.load %arg1[%c1_9, %c0_10, %c0_11] : memref<4x256x32xbf16, #tpu.memory_space<vmem>>, vector<1x256x32xbf16>
    %11 = vector.shape_cast %10 : vector<1x256x32xbf16> to vector<256x32xbf16>
    %cst_12 = arith.constant dense<0.000000e+00> : vector<32x32xf32>
    %12 = tpu.matmul %9, %11, %cst_12 {dimension_numbers = #tpu.dot_dimension_numbers<[1], [0], [0], [1], [0, 0, 1, 1], [], []>} : vector<32x256xbf16>, vector<256x32xbf16>, vector<32x32xf32> -> vector<32x32xf32>
    %c0_13 = arith.constant 0 : index
    %c0_14 = arith.constant 0 : index
    %13 = vector.load %arg3[%c0_13, %c0_14] : memref<32x1xf32, #tpu.memory_space<vmem>>, vector<32x1xf32>
    %14 = vector.broadcast %13 : vector<32x1xf32> to vector<32x32xf32>
    %15 = arith.addf %12, %14 : vector<32x32xf32>
    %c2 = arith.constant 2 : index
    %c0_15 = arith.constant 0 : index
    %c0_16 = arith.constant 0 : index
    %16 = vector.load %arg2[%c2, %c0_15, %c0_16] : memref<4x32x256xbf16, #tpu.memory_space<vmem>>, vector<1x32x256xbf16>
    %17 = vector.shape_cast %16 : vector<1x32x256xbf16> to vector<32x256xbf16>
    %c2_17 = arith.constant 2 : index
    %c0_18 = arith.constant 0 : index
    %c0_19 = arith.constant 0 : index
    %18 = vector.load %arg1[%c2_17, %c0_18, %c0_19] : memref<4x256x32xbf16, #tpu.memory_space<vmem>>, vector<1x256x32xbf16>
    %19 = vector.shape_cast %18 : vector<1x256x32xbf16> to vector<256x32xbf16>
    %cst_20 = arith.constant dense<0.000000e+00> : vector<32x32xf32>
    %20 = tpu.matmul %17, %19, %cst_20 {dimension_numbers = #tpu.dot_dimension_numbers<[1], [0], [0], [1], [0, 0, 1, 1], [], []>} : vector<32x256xbf16>, vector<256x32xbf16>, vector<32x32xf32> -> vector<32x32xf32>
    %c0_21 = arith.constant 0 : index
    %c0_22 = arith.constant 0 : index
    %21 = vector.load %arg3[%c0_21, %c0_22] : memref<32x1xf32, #tpu.memory_space<vmem>>, vector<32x1xf32>
    %22 = vector.broadcast %21 : vector<32x1xf32> to vector<32x32xf32>
    %23 = arith.addf %20, %22 : vector<32x32xf32>
    %c3 = arith.constant 3 : index
    %c0_23 = arith.constant 0 : index
    %c0_24 = arith.constant 0 : index
    %24 = vector.load %arg2[%c3, %c0_23, %c0_24] : memref<4x32x256xbf16, #tpu.memory_space<vmem>>, vector<1x32x256xbf16>
    %25 = vector.shape_cast %24 : vector<1x32x256xbf16> to vector<32x256xbf16>
    %c3_25 = arith.constant 3 : index
    %c0_26 = arith.constant 0 : index
    %c0_27 = arith.constant 0 : index
    %26 = vector.load %arg1[%c3_25, %c0_26, %c0_27] : memref<4x256x32xbf16, #tpu.memory_space<vmem>>, vector<1x256x32xbf16>
    %27 = vector.shape_cast %26 : vector<1x256x32xbf16> to vector<256x32xbf16>
    %cst_28 = arith.constant dense<0.000000e+00> : vector<32x32xf32>
    %28 = tpu.matmul %25, %27, %cst_28 {dimension_numbers = #tpu.dot_dimension_numbers<[1], [0], [0], [1], [0, 0, 1, 1], [], []>} : vector<32x256xbf16>, vector<256x32xbf16>, vector<32x32xf32> -> vector<32x32xf32>
    %c0_29 = arith.constant 0 : index
    %c0_30 = arith.constant 0 : index
    %29 = vector.load %arg3[%c0_29, %c0_30] : memref<32x1xf32, #tpu.memory_space<vmem>>, vector<32x1xf32>
    %30 = vector.broadcast %29 : vector<32x1xf32> to vector<32x32xf32>
    %31 = arith.addf %28, %30 : vector<32x32xf32>
    %cst_31 = arith.constant dense<0.000000e+00> : vector<32xf32>
    %32 = vector.multi_reduction <add>, %7, %cst_31 [1] : vector<32x32xf32> to vector<32xf32>
    %33 = vector.shape_cast %32 : vector<32xf32> to vector<32x1xf32>
    %cst_32 = arith.constant 0.000000e+00 : f32
    %34 = vector.broadcast %cst_32 : f32 to vector<32x1xf32>
    %35 = arith.addf %34, %33 : vector<32x1xf32>
    %cst_33 = arith.constant dense<0.000000e+00> : vector<32xf32>
    %36 = vector.multi_reduction <add>, %15, %cst_33 [1] : vector<32x32xf32> to vector<32xf32>
    %37 = vector.shape_cast %36 : vector<32xf32> to vector<32x1xf32>
    %38 = arith.addf %35, %37 : vector<32x1xf32>
    %cst_34 = arith.constant dense<0.000000e+00> : vector<32xf32>
    %39 = vector.multi_reduction <add>, %23, %cst_34 [1] : vector<32x32xf32> to vector<32xf32>
    %40 = vector.shape_cast %39 : vector<32xf32> to vector<32x1xf32>
    %41 = arith.addf %38, %40 : vector<32x1xf32>
    %cst_35 = arith.constant dense<0.000000e+00> : vector<32xf32>
    %42 = vector.multi_reduction <add>, %31, %cst_35 [1] : vector<32x32xf32> to vector<32xf32>
    %43 = vector.shape_cast %42 : vector<32xf32> to vector<32x1xf32>
    %44 = arith.addf %41, %43 : vector<32x1xf32>
    %cst_36 = arith.constant 1.280000e+02 : f32
    %45 = vector.broadcast %cst_36 : f32 to vector<32x1xf32>
    %46 = arith.divf %44, %45 : vector<32x1xf32>
    %47 = vector.broadcast %46 : vector<32x1xf32> to vector<32x32xf32>
    %48 = arith.subf %7, %47 : vector<32x32xf32>
    %49 = arith.mulf %48, %48 : vector<32x32xf32>
    %cst_37 = arith.constant dense<0.000000e+00> : vector<32xf32>
    %50 = vector.multi_reduction <add>, %49, %cst_37 [1] : vector<32x32xf32> to vector<32xf32>
    %51 = vector.shape_cast %50 : vector<32xf32> to vector<32x1xf32>
    %cst_38 = arith.constant 0.000000e+00 : f32
    %52 = vector.broadcast %cst_38 : f32 to vector<32x1xf32>
    %53 = arith.addf %52, %51 : vector<32x1xf32>
    %54 = vector.broadcast %46 : vector<32x1xf32> to vector<32x32xf32>
    %55 = arith.subf %15, %54 : vector<32x32xf32>
    %56 = arith.mulf %55, %55 : vector<32x32xf32>
    %cst_39 = arith.constant dense<0.000000e+00> : vector<32xf32>
    %57 = vector.multi_reduction <add>, %56, %cst_39 [1] : vector<32x32xf32> to vector<32xf32>
    %58 = vector.shape_cast %57 : vector<32xf32> to vector<32x1xf32>
    %59 = arith.addf %53, %58 : vector<32x1xf32>
    %60 = vector.broadcast %46 : vector<32x1xf32> to vector<32x32xf32>
    %61 = arith.subf %23, %60 : vector<32x32xf32>
    %62 = arith.mulf %61, %61 : vector<32x32xf32>
    %cst_40 = arith.constant dense<0.000000e+00> : vector<32xf32>
    %63 = vector.multi_reduction <add>, %62, %cst_40 [1] : vector<32x32xf32> to vector<32xf32>
    %64 = vector.shape_cast %63 : vector<32xf32> to vector<32x1xf32>
    %65 = arith.addf %59, %64 : vector<32x1xf32>
    %66 = vector.broadcast %46 : vector<32x1xf32> to vector<32x32xf32>
    %67 = arith.subf %31, %66 : vector<32x32xf32>
    %68 = arith.mulf %67, %67 : vector<32x32xf32>
    %cst_41 = arith.constant dense<0.000000e+00> : vector<32xf32>
    %69 = vector.multi_reduction <add>, %68, %cst_41 [1] : vector<32x32xf32> to vector<32xf32>
    %70 = vector.shape_cast %69 : vector<32xf32> to vector<32x1xf32>
    %71 = arith.addf %65, %70 : vector<32x1xf32>
    %cst_42 = arith.constant 1.280000e+02 : f32
    %72 = vector.broadcast %cst_42 : f32 to vector<32x1xf32>
    %73 = arith.divf %71, %72 : vector<32x1xf32>
    %cst_43 = arith.constant 9.99999974E-6 : f32
    %74 = vector.broadcast %cst_43 : f32 to vector<32x1xf32>
    %75 = arith.addf %73, %74 : vector<32x1xf32>
    %76 = math.rsqrt %75 : vector<32x1xf32>
    %77 = vector.broadcast %46 : vector<32x1xf32> to vector<32x32xf32>
    %78 = arith.subf %7, %77 : vector<32x32xf32>
    %79 = vector.broadcast %76 : vector<32x1xf32> to vector<32x32xf32>
    %80 = arith.mulf %78, %79 : vector<32x32xf32>
    %c0_44 = arith.constant 0 : index
    %c0_45 = arith.constant 0 : index
    %81 = vector.load %arg4[%c0_44, %c0_45] : memref<32x1xf32, #tpu.memory_space<vmem>>, vector<32x1xf32>
    %82 = vector.broadcast %81 : vector<32x1xf32> to vector<32x32xf32>
    %83 = arith.mulf %80, %82 : vector<32x32xf32>
    %c0_46 = arith.constant 0 : index
    %c0_47 = arith.constant 0 : index
    %84 = vector.load %arg5[%c0_46, %c0_47] : memref<32x1xf32, #tpu.memory_space<vmem>>, vector<32x1xf32>
    %85 = vector.broadcast %84 : vector<32x1xf32> to vector<32x32xf32>
    %86 = arith.addf %83, %85 : vector<32x32xf32>
    %cst_48 = arith.constant 0.000000e+00 : f32
    %87 = vector.broadcast %cst_48 : f32 to vector<32x32xf32>
    %88 = arith.maximumf %86, %87 : vector<32x32xf32>
    %89 = arith.truncf %88 : vector<32x32xf32> to vector<32x32xbf16>
    %c0_49 = arith.constant 0 : index
    %c0_50 = arith.constant 0 : index
    %c0_51 = arith.constant 0 : index
    %90 = vector.load %arg6[%c0_49, %c0_50, %c0_51] : memref<4x32x32xbf16, #tpu.memory_space<vmem>>, vector<1x32x32xbf16>
    %91 = vector.shape_cast %90 : vector<1x32x32xbf16> to vector<32x32xbf16>
    %92 = vector.shape_cast %89 : vector<32x32xbf16> to vector<1x32x32xbf16>
    tpu.vector_store %arg6[%c0_49, %c0_50, %c0_51], %92 {strides = array<i32>} : memref<4x32x32xbf16, #tpu.memory_space<vmem>>, vector<1x32x32xbf16>,
    %93 = vector.broadcast %46 : vector<32x1xf32> to vector<32x32xf32>
    %94 = arith.subf %15, %93 : vector<32x32xf32>
    %95 = vector.broadcast %76 : vector<32x1xf32> to vector<32x32xf32>
    %96 = arith.mulf %94, %95 : vector<32x32xf32>
    %c0_52 = arith.constant 0 : index
    %c0_53 = arith.constant 0 : index
    %97 = vector.load %arg4[%c0_52, %c0_53] : memref<32x1xf32, #tpu.memory_space<vmem>>, vector<32x1xf32>
    %98 = vector.broadcast %97 : vector<32x1xf32> to vector<32x32xf32>
    %99 = arith.mulf %96, %98 : vector<32x32xf32>
    %c0_54 = arith.constant 0 : index
    %c0_55 = arith.constant 0 : index
    %100 = vector.load %arg5[%c0_54, %c0_55] : memref<32x1xf32, #tpu.memory_space<vmem>>, vector<32x1xf32>
    %101 = vector.broadcast %100 : vector<32x1xf32> to vector<32x32xf32>
    %102 = arith.addf %99, %101 : vector<32x32xf32>
    %cst_56 = arith.constant 0.000000e+00 : f32
    %103 = vector.broadcast %cst_56 : f32 to vector<32x32xf32>
    %104 = arith.maximumf %102, %103 : vector<32x32xf32>
    %105 = arith.truncf %104 : vector<32x32xf32> to vector<32x32xbf16>
    %c1_57 = arith.constant 1 : index
    %c0_58 = arith.constant 0 : index
    %c0_59 = arith.constant 0 : index
    %106 = vector.load %arg6[%c1_57, %c0_58, %c0_59] : memref<4x32x32xbf16, #tpu.memory_space<vmem>>, vector<1x32x32xbf16>
    %107 = vector.shape_cast %106 : vector<1x32x32xbf16> to vector<32x32xbf16>
    %108 = vector.shape_cast %105 : vector<32x32xbf16> to vector<1x32x32xbf16>
    tpu.vector_store %arg6[%c1_57, %c0_58, %c0_59], %108 {strides = array<i32>} : memref<4x32x32xbf16, #tpu.memory_space<vmem>>, vector<1x32x32xbf16>,
    %109 = vector.broadcast %46 : vector<32x1xf32> to vector<32x32xf32>
    %110 = arith.subf %23, %109 : vector<32x32xf32>
    %111 = vector.broadcast %76 : vector<32x1xf32> to vector<32x32xf32>
    %112 = arith.mulf %110, %111 : vector<32x32xf32>
    %c0_60 = arith.constant 0 : index
    %c0_61 = arith.constant 0 : index
    %113 = vector.load %arg4[%c0_60, %c0_61] : memref<32x1xf32, #tpu.memory_space<vmem>>, vector<32x1xf32>
    %114 = vector.broadcast %113 : vector<32x1xf32> to vector<32x32xf32>
    %115 = arith.mulf %112, %114 : vector<32x32xf32>
    %c0_62 = arith.constant 0 : index
    %c0_63 = arith.constant 0 : index
    %116 = vector.load %arg5[%c0_62, %c0_63] : memref<32x1xf32, #tpu.memory_space<vmem>>, vector<32x1xf32>
    %117 = vector.broadcast %116 : vector<32x1xf32> to vector<32x32xf32>
    %118 = arith.addf %115, %117 : vector<32x32xf32>
    %cst_64 = arith.constant 0.000000e+00 : f32
    %119 = vector.broadcast %cst_64 : f32 to vector<32x32xf32>
    %120 = arith.maximumf %118, %119 : vector<32x32xf32>
    %121 = arith.truncf %120 : vector<32x32xf32> to vector<32x32xbf16>
    %c2_65 = arith.constant 2 : index
    %c0_66 = arith.constant 0 : index
    %c0_67 = arith.constant 0 : index
    %122 = vector.load %arg6[%c2_65, %c0_66, %c0_67] : memref<4x32x32xbf16, #tpu.memory_space<vmem>>, vector<1x32x32xbf16>
    %123 = vector.shape_cast %122 : vector<1x32x32xbf16> to vector<32x32xbf16>
    %124 = vector.shape_cast %121 : vector<32x32xbf16> to vector<1x32x32xbf16>
    tpu.vector_store %arg6[%c2_65, %c0_66, %c0_67], %124 {strides = array<i32>} : memref<4x32x32xbf16, #tpu.memory_space<vmem>>, vector<1x32x32xbf16>,
    %125 = vector.broadcast %46 : vector<32x1xf32> to vector<32x32xf32>
    %126 = arith.subf %31, %125 : vector<32x32xf32>
    %127 = vector.broadcast %76 : vector<32x1xf32> to vector<32x32xf32>
    %128 = arith.mulf %126, %127 : vector<32x32xf32>
    %c0_68 = arith.constant 0 : index
    %c0_69 = arith.constant 0 : index
    %129 = vector.load %arg4[%c0_68, %c0_69] : memref<32x1xf32, #tpu.memory_space<vmem>>, vector<32x1xf32>
    %130 = vector.broadcast %129 : vector<32x1xf32> to vector<32x32xf32>
    %131 = arith.mulf %128, %130 : vector<32x32xf32>
    %c0_70 = arith.constant 0 : index
    %c0_71 = arith.constant 0 : index
    %132 = vector.load %arg5[%c0_70, %c0_71] : memref<32x1xf32, #tpu.memory_space<vmem>>, vector<32x1xf32>
    %133 = vector.broadcast %132 : vector<32x1xf32> to vector<32x32xf32>
    %134 = arith.addf %131, %133 : vector<32x32xf32>
    %cst_72 = arith.constant 0.000000e+00 : f32
    %135 = vector.broadcast %cst_72 : f32 to vector<32x32xf32>
    %136 = arith.maximumf %134, %135 : vector<32x32xf32>
    %137 = arith.truncf %136 : vector<32x32xf32> to vector<32x32xbf16>
    %c3_73 = arith.constant 3 : index
    %c0_74 = arith.constant 0 : index
    %c0_75 = arith.constant 0 : index
    %138 = vector.load %arg6[%c3_73, %c0_74, %c0_75] : memref<4x32x32xbf16, #tpu.memory_space<vmem>>, vector<1x32x32xbf16>
    %139 = vector.shape_cast %138 : vector<1x32x32xbf16> to vector<32x32xbf16>
    %140 = vector.shape_cast %137 : vector<32x32xbf16> to vector<1x32x32xbf16>
    tpu.vector_store %arg6[%c3_73, %c0_74, %c0_75], %140 {strides = array<i32>} : memref<4x32x32xbf16, #tpu.memory_space<vmem>>, vector<1x32x32xbf16>,
    return
  }
  func.func @transform_0(%arg0: i32) -> (i32, i32, i32) {
    %c0_i32 = arith.constant 0 : i32
    %c0_i32_0 = arith.constant 0 : i32
    %c0_i32_1 = arith.constant 0 : i32
    %c0_i32_2 = arith.constant 0 : i32
    return %c0_i32, %c0_i32_0, %c0_i32_1 : i32, i32, i32
  }
  func.func @transform_1(%arg0: i32) -> (i32, i32, i32) {
    %c0_i32 = arith.constant 0 : i32
    %c0_i32_0 = arith.constant 0 : i32
    %c0_i32_1 = arith.constant 0 : i32
    %c0_i32_2 = arith.constant 0 : i32
    return %c0_i32, %c0_i32_0, %c0_i32_1 : i32, i32, i32
  }
  func.func @transform_2(%arg0: i32) -> (i32, i32) {
    %c0_i32 = arith.constant 0 : i32
    %c0_i32_0 = arith.constant 0 : i32
    %c0_i32_1 = arith.constant 0 : i32
    return %c0_i32, %c0_i32_0 : i32, i32
  }
  func.func @transform_3(%arg0: i32) -> (i32, i32) {
    %c0_i32 = arith.constant 0 : i32
    %c0_i32_0 = arith.constant 0 : i32
    %c0_i32_1 = arith.constant 0 : i32
    return %c0_i32, %c0_i32_0 : i32, i32
  }
  func.func @transform_4(%arg0: i32) -> (i32, i32) {
    %c0_i32 = arith.constant 0 : i32
    %c0_i32_0 = arith.constant 0 : i32
    %c0_i32_1 = arith.constant 0 : i32
    return %c0_i32, %c0_i32_0 : i32, i32
  }
  func.func @transform_5(%arg0: i32) -> (i32, i32, i32) {
    %c0_i32 = arith.constant 0 : i32
    %c0_i32_0 = arith.constant 0 : i32
    %c0_i32_1 = arith.constant 0 : i32
    %c0_i32_2 = arith.constant 0 : i32
    return %c0_i32, %c0_i32_0, %c0_i32_1 : i32, i32, i32
  }
}

module attributes {stable_mosaic.version = 11 : i64} {
  func.func @_convt_bn_relu_kernel(%arg0: i32, %arg1: memref<4x128x128xbf16, #tpu.memory_space<vmem>>, %arg2: memref<4x32x128xbf16, #tpu.memory_space<vmem>>, %arg3: memref<32x1xf32, #tpu.memory_space<vmem>>, %arg4: memref<32x1xf32, #tpu.memory_space<vmem>>, %arg5: memref<32x1xf32, #tpu.memory_space<vmem>>, %arg6: memref<4x32x128xbf16, #tpu.memory_space<vmem>>) attributes {dimension_semantics = [#tpu.dimension_semantics<arbitrary>], iteration_bounds = array<i64: 1>, scalar_prefetch = 0 : i64, scratch_operands = 0 : i64, tpu.core_type = #tpu.core_type<tc>, window_params = [{pipeline_mode = #tpu.pipeline_mode<synchronous>, transform_indices = @transform_0, window_bounds = array<i64: 4, 128, 128>}, {pipeline_mode = #tpu.pipeline_mode<synchronous>, transform_indices = @transform_1, window_bounds = array<i64: 4, 32, 128>}, {pipeline_mode = #tpu.pipeline_mode<synchronous>, transform_indices = @transform_2, window_bounds = array<i64: 32, 1>}, {pipeline_mode = #tpu.pipeline_mode<synchronous>, transform_indices = @transform_3, window_bounds = array<i64: 32, 1>}, {pipeline_mode = #tpu.pipeline_mode<synchronous>, transform_indices = @transform_4, window_bounds = array<i64: 32, 1>}, {pipeline_mode = #tpu.pipeline_mode<synchronous>, transform_indices = @transform_5, window_bounds = array<i64: 4, 32, 128>}]} {
    %c0 = arith.constant 0 : index
    %c0_0 = arith.constant 0 : index
    %c0_1 = arith.constant 0 : index
    %0 = vector.load %arg2[%c0, %c0_0, %c0_1] : memref<4x32x128xbf16, #tpu.memory_space<vmem>>, vector<1x32x128xbf16>
    %1 = vector.shape_cast %0 : vector<1x32x128xbf16> to vector<32x128xbf16>
    %c0_2 = arith.constant 0 : index
    %c0_3 = arith.constant 0 : index
    %c0_4 = arith.constant 0 : index
    %2 = vector.load %arg1[%c0_2, %c0_3, %c0_4] : memref<4x128x128xbf16, #tpu.memory_space<vmem>>, vector<1x128x128xbf16>
    %3 = vector.shape_cast %2 : vector<1x128x128xbf16> to vector<128x128xbf16>
    %cst = arith.constant dense<0.000000e+00> : vector<32x128xf32>
    %4 = tpu.matmul %1, %3, %cst {dimension_numbers = #tpu.dot_dimension_numbers<[1], [0], [0], [1], [0, 0, 1, 1], [], []>} : vector<32x128xbf16>, vector<128x128xbf16>, vector<32x128xf32> -> vector<32x128xf32>
    %c0_5 = arith.constant 0 : index
    %c0_6 = arith.constant 0 : index
    %5 = vector.load %arg3[%c0_5, %c0_6] : memref<32x1xf32, #tpu.memory_space<vmem>>, vector<32x1xf32>
    %6 = vector.broadcast %5 : vector<32x1xf32> to vector<32x128xf32>
    %7 = arith.addf %4, %6 : vector<32x128xf32>
    %c1 = arith.constant 1 : index
    %c0_7 = arith.constant 0 : index
    %c0_8 = arith.constant 0 : index
    %8 = vector.load %arg2[%c1, %c0_7, %c0_8] : memref<4x32x128xbf16, #tpu.memory_space<vmem>>, vector<1x32x128xbf16>
    %9 = vector.shape_cast %8 : vector<1x32x128xbf16> to vector<32x128xbf16>
    %c1_9 = arith.constant 1 : index
    %c0_10 = arith.constant 0 : index
    %c0_11 = arith.constant 0 : index
    %10 = vector.load %arg1[%c1_9, %c0_10, %c0_11] : memref<4x128x128xbf16, #tpu.memory_space<vmem>>, vector<1x128x128xbf16>
    %11 = vector.shape_cast %10 : vector<1x128x128xbf16> to vector<128x128xbf16>
    %cst_12 = arith.constant dense<0.000000e+00> : vector<32x128xf32>
    %12 = tpu.matmul %9, %11, %cst_12 {dimension_numbers = #tpu.dot_dimension_numbers<[1], [0], [0], [1], [0, 0, 1, 1], [], []>} : vector<32x128xbf16>, vector<128x128xbf16>, vector<32x128xf32> -> vector<32x128xf32>
    %c0_13 = arith.constant 0 : index
    %c0_14 = arith.constant 0 : index
    %13 = vector.load %arg3[%c0_13, %c0_14] : memref<32x1xf32, #tpu.memory_space<vmem>>, vector<32x1xf32>
    %14 = vector.broadcast %13 : vector<32x1xf32> to vector<32x128xf32>
    %15 = arith.addf %12, %14 : vector<32x128xf32>
    %c2 = arith.constant 2 : index
    %c0_15 = arith.constant 0 : index
    %c0_16 = arith.constant 0 : index
    %16 = vector.load %arg2[%c2, %c0_15, %c0_16] : memref<4x32x128xbf16, #tpu.memory_space<vmem>>, vector<1x32x128xbf16>
    %17 = vector.shape_cast %16 : vector<1x32x128xbf16> to vector<32x128xbf16>
    %c2_17 = arith.constant 2 : index
    %c0_18 = arith.constant 0 : index
    %c0_19 = arith.constant 0 : index
    %18 = vector.load %arg1[%c2_17, %c0_18, %c0_19] : memref<4x128x128xbf16, #tpu.memory_space<vmem>>, vector<1x128x128xbf16>
    %19 = vector.shape_cast %18 : vector<1x128x128xbf16> to vector<128x128xbf16>
    %cst_20 = arith.constant dense<0.000000e+00> : vector<32x128xf32>
    %20 = tpu.matmul %17, %19, %cst_20 {dimension_numbers = #tpu.dot_dimension_numbers<[1], [0], [0], [1], [0, 0, 1, 1], [], []>} : vector<32x128xbf16>, vector<128x128xbf16>, vector<32x128xf32> -> vector<32x128xf32>
    %c0_21 = arith.constant 0 : index
    %c0_22 = arith.constant 0 : index
    %21 = vector.load %arg3[%c0_21, %c0_22] : memref<32x1xf32, #tpu.memory_space<vmem>>, vector<32x1xf32>
    %22 = vector.broadcast %21 : vector<32x1xf32> to vector<32x128xf32>
    %23 = arith.addf %20, %22 : vector<32x128xf32>
    %c3 = arith.constant 3 : index
    %c0_23 = arith.constant 0 : index
    %c0_24 = arith.constant 0 : index
    %24 = vector.load %arg2[%c3, %c0_23, %c0_24] : memref<4x32x128xbf16, #tpu.memory_space<vmem>>, vector<1x32x128xbf16>
    %25 = vector.shape_cast %24 : vector<1x32x128xbf16> to vector<32x128xbf16>
    %c3_25 = arith.constant 3 : index
    %c0_26 = arith.constant 0 : index
    %c0_27 = arith.constant 0 : index
    %26 = vector.load %arg1[%c3_25, %c0_26, %c0_27] : memref<4x128x128xbf16, #tpu.memory_space<vmem>>, vector<1x128x128xbf16>
    %27 = vector.shape_cast %26 : vector<1x128x128xbf16> to vector<128x128xbf16>
    %cst_28 = arith.constant dense<0.000000e+00> : vector<32x128xf32>
    %28 = tpu.matmul %25, %27, %cst_28 {dimension_numbers = #tpu.dot_dimension_numbers<[1], [0], [0], [1], [0, 0, 1, 1], [], []>} : vector<32x128xbf16>, vector<128x128xbf16>, vector<32x128xf32> -> vector<32x128xf32>
    %c0_29 = arith.constant 0 : index
    %c0_30 = arith.constant 0 : index
    %29 = vector.load %arg3[%c0_29, %c0_30] : memref<32x1xf32, #tpu.memory_space<vmem>>, vector<32x1xf32>
    %30 = vector.broadcast %29 : vector<32x1xf32> to vector<32x128xf32>
    %31 = arith.addf %28, %30 : vector<32x128xf32>
    %cst_31 = arith.constant dense<0.000000e+00> : vector<32xf32>
    %32 = vector.multi_reduction <add>, %7, %cst_31 [1] : vector<32x128xf32> to vector<32xf32>
    %33 = vector.shape_cast %32 : vector<32xf32> to vector<32x1xf32>
    %cst_32 = arith.constant 0.000000e+00 : f32
    %34 = vector.broadcast %cst_32 : f32 to vector<32x1xf32>
    %35 = arith.addf %34, %33 : vector<32x1xf32>
    %cst_33 = arith.constant dense<0.000000e+00> : vector<32xf32>
    %36 = vector.multi_reduction <add>, %15, %cst_33 [1] : vector<32x128xf32> to vector<32xf32>
    %37 = vector.shape_cast %36 : vector<32xf32> to vector<32x1xf32>
    %38 = arith.addf %35, %37 : vector<32x1xf32>
    %cst_34 = arith.constant dense<0.000000e+00> : vector<32xf32>
    %39 = vector.multi_reduction <add>, %23, %cst_34 [1] : vector<32x128xf32> to vector<32xf32>
    %40 = vector.shape_cast %39 : vector<32xf32> to vector<32x1xf32>
    %41 = arith.addf %38, %40 : vector<32x1xf32>
    %cst_35 = arith.constant dense<0.000000e+00> : vector<32xf32>
    %42 = vector.multi_reduction <add>, %31, %cst_35 [1] : vector<32x128xf32> to vector<32xf32>
    %43 = vector.shape_cast %42 : vector<32xf32> to vector<32x1xf32>
    %44 = arith.addf %41, %43 : vector<32x1xf32>
    %cst_36 = arith.constant 5.120000e+02 : f32
    %45 = vector.broadcast %cst_36 : f32 to vector<32x1xf32>
    %46 = arith.divf %44, %45 : vector<32x1xf32>
    %47 = vector.broadcast %46 : vector<32x1xf32> to vector<32x128xf32>
    %48 = arith.subf %7, %47 : vector<32x128xf32>
    %49 = arith.mulf %48, %48 : vector<32x128xf32>
    %cst_37 = arith.constant dense<0.000000e+00> : vector<32xf32>
    %50 = vector.multi_reduction <add>, %49, %cst_37 [1] : vector<32x128xf32> to vector<32xf32>
    %51 = vector.shape_cast %50 : vector<32xf32> to vector<32x1xf32>
    %cst_38 = arith.constant 0.000000e+00 : f32
    %52 = vector.broadcast %cst_38 : f32 to vector<32x1xf32>
    %53 = arith.addf %52, %51 : vector<32x1xf32>
    %54 = vector.broadcast %46 : vector<32x1xf32> to vector<32x128xf32>
    %55 = arith.subf %15, %54 : vector<32x128xf32>
    %56 = arith.mulf %55, %55 : vector<32x128xf32>
    %cst_39 = arith.constant dense<0.000000e+00> : vector<32xf32>
    %57 = vector.multi_reduction <add>, %56, %cst_39 [1] : vector<32x128xf32> to vector<32xf32>
    %58 = vector.shape_cast %57 : vector<32xf32> to vector<32x1xf32>
    %59 = arith.addf %53, %58 : vector<32x1xf32>
    %60 = vector.broadcast %46 : vector<32x1xf32> to vector<32x128xf32>
    %61 = arith.subf %23, %60 : vector<32x128xf32>
    %62 = arith.mulf %61, %61 : vector<32x128xf32>
    %cst_40 = arith.constant dense<0.000000e+00> : vector<32xf32>
    %63 = vector.multi_reduction <add>, %62, %cst_40 [1] : vector<32x128xf32> to vector<32xf32>
    %64 = vector.shape_cast %63 : vector<32xf32> to vector<32x1xf32>
    %65 = arith.addf %59, %64 : vector<32x1xf32>
    %66 = vector.broadcast %46 : vector<32x1xf32> to vector<32x128xf32>
    %67 = arith.subf %31, %66 : vector<32x128xf32>
    %68 = arith.mulf %67, %67 : vector<32x128xf32>
    %cst_41 = arith.constant dense<0.000000e+00> : vector<32xf32>
    %69 = vector.multi_reduction <add>, %68, %cst_41 [1] : vector<32x128xf32> to vector<32xf32>
    %70 = vector.shape_cast %69 : vector<32xf32> to vector<32x1xf32>
    %71 = arith.addf %65, %70 : vector<32x1xf32>
    %cst_42 = arith.constant 5.120000e+02 : f32
    %72 = vector.broadcast %cst_42 : f32 to vector<32x1xf32>
    %73 = arith.divf %71, %72 : vector<32x1xf32>
    %cst_43 = arith.constant 9.99999974E-6 : f32
    %74 = vector.broadcast %cst_43 : f32 to vector<32x1xf32>
    %75 = arith.addf %73, %74 : vector<32x1xf32>
    %76 = math.rsqrt %75 : vector<32x1xf32>
    %77 = vector.broadcast %46 : vector<32x1xf32> to vector<32x128xf32>
    %78 = arith.subf %7, %77 : vector<32x128xf32>
    %79 = vector.broadcast %76 : vector<32x1xf32> to vector<32x128xf32>
    %80 = arith.mulf %78, %79 : vector<32x128xf32>
    %c0_44 = arith.constant 0 : index
    %c0_45 = arith.constant 0 : index
    %81 = vector.load %arg4[%c0_44, %c0_45] : memref<32x1xf32, #tpu.memory_space<vmem>>, vector<32x1xf32>
    %82 = vector.broadcast %81 : vector<32x1xf32> to vector<32x128xf32>
    %83 = arith.mulf %80, %82 : vector<32x128xf32>
    %c0_46 = arith.constant 0 : index
    %c0_47 = arith.constant 0 : index
    %84 = vector.load %arg5[%c0_46, %c0_47] : memref<32x1xf32, #tpu.memory_space<vmem>>, vector<32x1xf32>
    %85 = vector.broadcast %84 : vector<32x1xf32> to vector<32x128xf32>
    %86 = arith.addf %83, %85 : vector<32x128xf32>
    %cst_48 = arith.constant 0.000000e+00 : f32
    %87 = vector.broadcast %cst_48 : f32 to vector<32x128xf32>
    %88 = arith.maximumf %86, %87 : vector<32x128xf32>
    %89 = arith.truncf %88 : vector<32x128xf32> to vector<32x128xbf16>
    %c0_49 = arith.constant 0 : index
    %c0_50 = arith.constant 0 : index
    %c0_51 = arith.constant 0 : index
    %90 = vector.load %arg6[%c0_49, %c0_50, %c0_51] : memref<4x32x128xbf16, #tpu.memory_space<vmem>>, vector<1x32x128xbf16>
    %91 = vector.shape_cast %90 : vector<1x32x128xbf16> to vector<32x128xbf16>
    %92 = vector.shape_cast %89 : vector<32x128xbf16> to vector<1x32x128xbf16>
    tpu.vector_store %arg6[%c0_49, %c0_50, %c0_51], %92 {strides = array<i32>} : memref<4x32x128xbf16, #tpu.memory_space<vmem>>, vector<1x32x128xbf16>,
    %93 = vector.broadcast %46 : vector<32x1xf32> to vector<32x128xf32>
    %94 = arith.subf %15, %93 : vector<32x128xf32>
    %95 = vector.broadcast %76 : vector<32x1xf32> to vector<32x128xf32>
    %96 = arith.mulf %94, %95 : vector<32x128xf32>
    %c0_52 = arith.constant 0 : index
    %c0_53 = arith.constant 0 : index
    %97 = vector.load %arg4[%c0_52, %c0_53] : memref<32x1xf32, #tpu.memory_space<vmem>>, vector<32x1xf32>
    %98 = vector.broadcast %97 : vector<32x1xf32> to vector<32x128xf32>
    %99 = arith.mulf %96, %98 : vector<32x128xf32>
    %c0_54 = arith.constant 0 : index
    %c0_55 = arith.constant 0 : index
    %100 = vector.load %arg5[%c0_54, %c0_55] : memref<32x1xf32, #tpu.memory_space<vmem>>, vector<32x1xf32>
    %101 = vector.broadcast %100 : vector<32x1xf32> to vector<32x128xf32>
    %102 = arith.addf %99, %101 : vector<32x128xf32>
    %cst_56 = arith.constant 0.000000e+00 : f32
    %103 = vector.broadcast %cst_56 : f32 to vector<32x128xf32>
    %104 = arith.maximumf %102, %103 : vector<32x128xf32>
    %105 = arith.truncf %104 : vector<32x128xf32> to vector<32x128xbf16>
    %c1_57 = arith.constant 1 : index
    %c0_58 = arith.constant 0 : index
    %c0_59 = arith.constant 0 : index
    %106 = vector.load %arg6[%c1_57, %c0_58, %c0_59] : memref<4x32x128xbf16, #tpu.memory_space<vmem>>, vector<1x32x128xbf16>
    %107 = vector.shape_cast %106 : vector<1x32x128xbf16> to vector<32x128xbf16>
    %108 = vector.shape_cast %105 : vector<32x128xbf16> to vector<1x32x128xbf16>
    tpu.vector_store %arg6[%c1_57, %c0_58, %c0_59], %108 {strides = array<i32>} : memref<4x32x128xbf16, #tpu.memory_space<vmem>>, vector<1x32x128xbf16>,
    %109 = vector.broadcast %46 : vector<32x1xf32> to vector<32x128xf32>
    %110 = arith.subf %23, %109 : vector<32x128xf32>
    %111 = vector.broadcast %76 : vector<32x1xf32> to vector<32x128xf32>
    %112 = arith.mulf %110, %111 : vector<32x128xf32>
    %c0_60 = arith.constant 0 : index
    %c0_61 = arith.constant 0 : index
    %113 = vector.load %arg4[%c0_60, %c0_61] : memref<32x1xf32, #tpu.memory_space<vmem>>, vector<32x1xf32>
    %114 = vector.broadcast %113 : vector<32x1xf32> to vector<32x128xf32>
    %115 = arith.mulf %112, %114 : vector<32x128xf32>
    %c0_62 = arith.constant 0 : index
    %c0_63 = arith.constant 0 : index
    %116 = vector.load %arg5[%c0_62, %c0_63] : memref<32x1xf32, #tpu.memory_space<vmem>>, vector<32x1xf32>
    %117 = vector.broadcast %116 : vector<32x1xf32> to vector<32x128xf32>
    %118 = arith.addf %115, %117 : vector<32x128xf32>
    %cst_64 = arith.constant 0.000000e+00 : f32
    %119 = vector.broadcast %cst_64 : f32 to vector<32x128xf32>
    %120 = arith.maximumf %118, %119 : vector<32x128xf32>
    %121 = arith.truncf %120 : vector<32x128xf32> to vector<32x128xbf16>
    %c2_65 = arith.constant 2 : index
    %c0_66 = arith.constant 0 : index
    %c0_67 = arith.constant 0 : index
    %122 = vector.load %arg6[%c2_65, %c0_66, %c0_67] : memref<4x32x128xbf16, #tpu.memory_space<vmem>>, vector<1x32x128xbf16>
    %123 = vector.shape_cast %122 : vector<1x32x128xbf16> to vector<32x128xbf16>
    %124 = vector.shape_cast %121 : vector<32x128xbf16> to vector<1x32x128xbf16>
    tpu.vector_store %arg6[%c2_65, %c0_66, %c0_67], %124 {strides = array<i32>} : memref<4x32x128xbf16, #tpu.memory_space<vmem>>, vector<1x32x128xbf16>,
    %125 = vector.broadcast %46 : vector<32x1xf32> to vector<32x128xf32>
    %126 = arith.subf %31, %125 : vector<32x128xf32>
    %127 = vector.broadcast %76 : vector<32x1xf32> to vector<32x128xf32>
    %128 = arith.mulf %126, %127 : vector<32x128xf32>
    %c0_68 = arith.constant 0 : index
    %c0_69 = arith.constant 0 : index
    %129 = vector.load %arg4[%c0_68, %c0_69] : memref<32x1xf32, #tpu.memory_space<vmem>>, vector<32x1xf32>
    %130 = vector.broadcast %129 : vector<32x1xf32> to vector<32x128xf32>
    %131 = arith.mulf %128, %130 : vector<32x128xf32>
    %c0_70 = arith.constant 0 : index
    %c0_71 = arith.constant 0 : index
    %132 = vector.load %arg5[%c0_70, %c0_71] : memref<32x1xf32, #tpu.memory_space<vmem>>, vector<32x1xf32>
    %133 = vector.broadcast %132 : vector<32x1xf32> to vector<32x128xf32>
    %134 = arith.addf %131, %133 : vector<32x128xf32>
    %cst_72 = arith.constant 0.000000e+00 : f32
    %135 = vector.broadcast %cst_72 : f32 to vector<32x128xf32>
    %136 = arith.maximumf %134, %135 : vector<32x128xf32>
    %137 = arith.truncf %136 : vector<32x128xf32> to vector<32x128xbf16>
    %c3_73 = arith.constant 3 : index
    %c0_74 = arith.constant 0 : index
    %c0_75 = arith.constant 0 : index
    %138 = vector.load %arg6[%c3_73, %c0_74, %c0_75] : memref<4x32x128xbf16, #tpu.memory_space<vmem>>, vector<1x32x128xbf16>
    %139 = vector.shape_cast %138 : vector<1x32x128xbf16> to vector<32x128xbf16>
    %140 = vector.shape_cast %137 : vector<32x128xbf16> to vector<1x32x128xbf16>
    tpu.vector_store %arg6[%c3_73, %c0_74, %c0_75], %140 {strides = array<i32>} : memref<4x32x128xbf16, #tpu.memory_space<vmem>>, vector<1x32x128xbf16>,
    return
  }
  func.func @transform_0(%arg0: i32) -> (i32, i32, i32) {
    %c0_i32 = arith.constant 0 : i32
    %c0_i32_0 = arith.constant 0 : i32
    %c0_i32_1 = arith.constant 0 : i32
    %c0_i32_2 = arith.constant 0 : i32
    return %c0_i32, %c0_i32_0, %c0_i32_1 : i32, i32, i32
  }
  func.func @transform_1(%arg0: i32) -> (i32, i32, i32) {
    %c0_i32 = arith.constant 0 : i32
    %c0_i32_0 = arith.constant 0 : i32
    %c0_i32_1 = arith.constant 0 : i32
    %c0_i32_2 = arith.constant 0 : i32
    return %c0_i32, %c0_i32_0, %c0_i32_1 : i32, i32, i32
  }
  func.func @transform_2(%arg0: i32) -> (i32, i32) {
    %c0_i32 = arith.constant 0 : i32
    %c0_i32_0 = arith.constant 0 : i32
    %c0_i32_1 = arith.constant 0 : i32
    return %c0_i32, %c0_i32_0 : i32, i32
  }
  func.func @transform_3(%arg0: i32) -> (i32, i32) {
    %c0_i32 = arith.constant 0 : i32
    %c0_i32_0 = arith.constant 0 : i32
    %c0_i32_1 = arith.constant 0 : i32
    return %c0_i32, %c0_i32_0 : i32, i32
  }
  func.func @transform_4(%arg0: i32) -> (i32, i32) {
    %c0_i32 = arith.constant 0 : i32
    %c0_i32_0 = arith.constant 0 : i32
    %c0_i32_1 = arith.constant 0 : i32
    return %c0_i32, %c0_i32_0 : i32, i32
  }
  func.func @transform_5(%arg0: i32) -> (i32, i32, i32) {
    %c0_i32 = arith.constant 0 : i32
    %c0_i32_0 = arith.constant 0 : i32
    %c0_i32_1 = arith.constant 0 : i32
    %c0_i32_2 = arith.constant 0 : i32
    return %c0_i32, %c0_i32_0, %c0_i32_1 : i32, i32, i32
  }
}

module attributes {stable_mosaic.version = 11 : i64} {
  func.func @_convt_sigmoid_kernel(%arg0: i32, %arg1: memref<4x128x512xbf16, #tpu.memory_space<vmem>>, %arg2: memref<4x4x128xbf16, #tpu.memory_space<vmem>>, %arg3: memref<4x1xf32, #tpu.memory_space<vmem>>, %arg4: memref<4x4x512xf32, #tpu.memory_space<vmem>>) attributes {dimension_semantics = [#tpu.dimension_semantics<arbitrary>], iteration_bounds = array<i64: 1>, scalar_prefetch = 0 : i64, scratch_operands = 0 : i64, tpu.core_type = #tpu.core_type<tc>, window_params = [{pipeline_mode = #tpu.pipeline_mode<synchronous>, transform_indices = @transform_0, window_bounds = array<i64: 4, 128, 512>}, {pipeline_mode = #tpu.pipeline_mode<synchronous>, transform_indices = @transform_1, window_bounds = array<i64: 4, 4, 128>}, {pipeline_mode = #tpu.pipeline_mode<synchronous>, transform_indices = @transform_2, window_bounds = array<i64: 4, 1>}, {pipeline_mode = #tpu.pipeline_mode<synchronous>, transform_indices = @transform_3, window_bounds = array<i64: 4, 4, 512>}]} {
    %c0 = arith.constant 0 : index
    %c0_0 = arith.constant 0 : index
    %c0_1 = arith.constant 0 : index
    %0 = vector.load %arg2[%c0, %c0_0, %c0_1] : memref<4x4x128xbf16, #tpu.memory_space<vmem>>, vector<1x4x128xbf16>
    %1 = vector.shape_cast %0 : vector<1x4x128xbf16> to vector<4x128xbf16>
    %c0_2 = arith.constant 0 : index
    %c0_3 = arith.constant 0 : index
    %c0_4 = arith.constant 0 : index
    %2 = vector.load %arg1[%c0_2, %c0_3, %c0_4] : memref<4x128x512xbf16, #tpu.memory_space<vmem>>, vector<1x128x512xbf16>
    %3 = vector.shape_cast %2 : vector<1x128x512xbf16> to vector<128x512xbf16>
    %cst = arith.constant dense<0.000000e+00> : vector<4x512xf32>
    %4 = tpu.matmul %1, %3, %cst {dimension_numbers = #tpu.dot_dimension_numbers<[1], [0], [0], [1], [0, 0, 1, 1], [], []>} : vector<4x128xbf16>, vector<128x512xbf16>, vector<4x512xf32> -> vector<4x512xf32>
    %c0_5 = arith.constant 0 : index
    %c0_6 = arith.constant 0 : index
    %5 = vector.load %arg3[%c0_5, %c0_6] : memref<4x1xf32, #tpu.memory_space<vmem>>, vector<4x1xf32>
    %6 = vector.broadcast %5 : vector<4x1xf32> to vector<4x512xf32>
    %7 = arith.addf %4, %6 : vector<4x512xf32>
    %8 = arith.negf %7 : vector<4x512xf32>
    %9 = math.exp %8 : vector<4x512xf32>
    %cst_7 = arith.constant 1.000000e+00 : f32
    %10 = vector.broadcast %cst_7 : f32 to vector<4x512xf32>
    %11 = arith.addf %10, %9 : vector<4x512xf32>
    %12 = arith.divf %10, %11 : vector<4x512xf32>
    %c0_8 = arith.constant 0 : index
    %c0_9 = arith.constant 0 : index
    %c0_10 = arith.constant 0 : index
    %13 = vector.load %arg4[%c0_8, %c0_9, %c0_10] : memref<4x4x512xf32, #tpu.memory_space<vmem>>, vector<1x4x512xf32>
    %14 = vector.shape_cast %13 : vector<1x4x512xf32> to vector<4x512xf32>
    %15 = vector.shape_cast %12 : vector<4x512xf32> to vector<1x4x512xf32>
    tpu.vector_store %arg4[%c0_8, %c0_9, %c0_10], %15 {strides = array<i32>} : memref<4x4x512xf32, #tpu.memory_space<vmem>>, vector<1x4x512xf32>,
    %c1 = arith.constant 1 : index
    %c0_11 = arith.constant 0 : index
    %c0_12 = arith.constant 0 : index
    %16 = vector.load %arg2[%c1, %c0_11, %c0_12] : memref<4x4x128xbf16, #tpu.memory_space<vmem>>, vector<1x4x128xbf16>
    %17 = vector.shape_cast %16 : vector<1x4x128xbf16> to vector<4x128xbf16>
    %c1_13 = arith.constant 1 : index
    %c0_14 = arith.constant 0 : index
    %c0_15 = arith.constant 0 : index
    %18 = vector.load %arg1[%c1_13, %c0_14, %c0_15] : memref<4x128x512xbf16, #tpu.memory_space<vmem>>, vector<1x128x512xbf16>
    %19 = vector.shape_cast %18 : vector<1x128x512xbf16> to vector<128x512xbf16>
    %cst_16 = arith.constant dense<0.000000e+00> : vector<4x512xf32>
    %20 = tpu.matmul %17, %19, %cst_16 {dimension_numbers = #tpu.dot_dimension_numbers<[1], [0], [0], [1], [0, 0, 1, 1], [], []>} : vector<4x128xbf16>, vector<128x512xbf16>, vector<4x512xf32> -> vector<4x512xf32>
    %c0_17 = arith.constant 0 : index
    %c0_18 = arith.constant 0 : index
    %21 = vector.load %arg3[%c0_17, %c0_18] : memref<4x1xf32, #tpu.memory_space<vmem>>, vector<4x1xf32>
    %22 = vector.broadcast %21 : vector<4x1xf32> to vector<4x512xf32>
    %23 = arith.addf %20, %22 : vector<4x512xf32>
    %24 = arith.negf %23 : vector<4x512xf32>
    %25 = math.exp %24 : vector<4x512xf32>
    %cst_19 = arith.constant 1.000000e+00 : f32
    %26 = vector.broadcast %cst_19 : f32 to vector<4x512xf32>
    %27 = arith.addf %26, %25 : vector<4x512xf32>
    %28 = arith.divf %26, %27 : vector<4x512xf32>
    %c1_20 = arith.constant 1 : index
    %c0_21 = arith.constant 0 : index
    %c0_22 = arith.constant 0 : index
    %29 = vector.load %arg4[%c1_20, %c0_21, %c0_22] : memref<4x4x512xf32, #tpu.memory_space<vmem>>, vector<1x4x512xf32>
    %30 = vector.shape_cast %29 : vector<1x4x512xf32> to vector<4x512xf32>
    %31 = vector.shape_cast %28 : vector<4x512xf32> to vector<1x4x512xf32>
    tpu.vector_store %arg4[%c1_20, %c0_21, %c0_22], %31 {strides = array<i32>} : memref<4x4x512xf32, #tpu.memory_space<vmem>>, vector<1x4x512xf32>,
    %c2 = arith.constant 2 : index
    %c0_23 = arith.constant 0 : index
    %c0_24 = arith.constant 0 : index
    %32 = vector.load %arg2[%c2, %c0_23, %c0_24] : memref<4x4x128xbf16, #tpu.memory_space<vmem>>, vector<1x4x128xbf16>
    %33 = vector.shape_cast %32 : vector<1x4x128xbf16> to vector<4x128xbf16>
    %c2_25 = arith.constant 2 : index
    %c0_26 = arith.constant 0 : index
    %c0_27 = arith.constant 0 : index
    %34 = vector.load %arg1[%c2_25, %c0_26, %c0_27] : memref<4x128x512xbf16, #tpu.memory_space<vmem>>, vector<1x128x512xbf16>
    %35 = vector.shape_cast %34 : vector<1x128x512xbf16> to vector<128x512xbf16>
    %cst_28 = arith.constant dense<0.000000e+00> : vector<4x512xf32>
    %36 = tpu.matmul %33, %35, %cst_28 {dimension_numbers = #tpu.dot_dimension_numbers<[1], [0], [0], [1], [0, 0, 1, 1], [], []>} : vector<4x128xbf16>, vector<128x512xbf16>, vector<4x512xf32> -> vector<4x512xf32>
    %c0_29 = arith.constant 0 : index
    %c0_30 = arith.constant 0 : index
    %37 = vector.load %arg3[%c0_29, %c0_30] : memref<4x1xf32, #tpu.memory_space<vmem>>, vector<4x1xf32>
    %38 = vector.broadcast %37 : vector<4x1xf32> to vector<4x512xf32>
    %39 = arith.addf %36, %38 : vector<4x512xf32>
    %40 = arith.negf %39 : vector<4x512xf32>
    %41 = math.exp %40 : vector<4x512xf32>
    %cst_31 = arith.constant 1.000000e+00 : f32
    %42 = vector.broadcast %cst_31 : f32 to vector<4x512xf32>
    %43 = arith.addf %42, %41 : vector<4x512xf32>
    %44 = arith.divf %42, %43 : vector<4x512xf32>
    %c2_32 = arith.constant 2 : index
    %c0_33 = arith.constant 0 : index
    %c0_34 = arith.constant 0 : index
    %45 = vector.load %arg4[%c2_32, %c0_33, %c0_34] : memref<4x4x512xf32, #tpu.memory_space<vmem>>, vector<1x4x512xf32>
    %46 = vector.shape_cast %45 : vector<1x4x512xf32> to vector<4x512xf32>
    %47 = vector.shape_cast %44 : vector<4x512xf32> to vector<1x4x512xf32>
    tpu.vector_store %arg4[%c2_32, %c0_33, %c0_34], %47 {strides = array<i32>} : memref<4x4x512xf32, #tpu.memory_space<vmem>>, vector<1x4x512xf32>,
    %c3 = arith.constant 3 : index
    %c0_35 = arith.constant 0 : index
    %c0_36 = arith.constant 0 : index
    %48 = vector.load %arg2[%c3, %c0_35, %c0_36] : memref<4x4x128xbf16, #tpu.memory_space<vmem>>, vector<1x4x128xbf16>
    %49 = vector.shape_cast %48 : vector<1x4x128xbf16> to vector<4x128xbf16>
    %c3_37 = arith.constant 3 : index
    %c0_38 = arith.constant 0 : index
    %c0_39 = arith.constant 0 : index
    %50 = vector.load %arg1[%c3_37, %c0_38, %c0_39] : memref<4x128x512xbf16, #tpu.memory_space<vmem>>, vector<1x128x512xbf16>
    %51 = vector.shape_cast %50 : vector<1x128x512xbf16> to vector<128x512xbf16>
    %cst_40 = arith.constant dense<0.000000e+00> : vector<4x512xf32>
    %52 = tpu.matmul %49, %51, %cst_40 {dimension_numbers = #tpu.dot_dimension_numbers<[1], [0], [0], [1], [0, 0, 1, 1], [], []>} : vector<4x128xbf16>, vector<128x512xbf16>, vector<4x512xf32> -> vector<4x512xf32>
    %c0_41 = arith.constant 0 : index
    %c0_42 = arith.constant 0 : index
    %53 = vector.load %arg3[%c0_41, %c0_42] : memref<4x1xf32, #tpu.memory_space<vmem>>, vector<4x1xf32>
    %54 = vector.broadcast %53 : vector<4x1xf32> to vector<4x512xf32>
    %55 = arith.addf %52, %54 : vector<4x512xf32>
    %56 = arith.negf %55 : vector<4x512xf32>
    %57 = math.exp %56 : vector<4x512xf32>
    %cst_43 = arith.constant 1.000000e+00 : f32
    %58 = vector.broadcast %cst_43 : f32 to vector<4x512xf32>
    %59 = arith.addf %58, %57 : vector<4x512xf32>
    %60 = arith.divf %58, %59 : vector<4x512xf32>
    %c3_44 = arith.constant 3 : index
    %c0_45 = arith.constant 0 : index
    %c0_46 = arith.constant 0 : index
    %61 = vector.load %arg4[%c3_44, %c0_45, %c0_46] : memref<4x4x512xf32, #tpu.memory_space<vmem>>, vector<1x4x512xf32>
    %62 = vector.shape_cast %61 : vector<1x4x512xf32> to vector<4x512xf32>
    %63 = vector.shape_cast %60 : vector<4x512xf32> to vector<1x4x512xf32>
    tpu.vector_store %arg4[%c3_44, %c0_45, %c0_46], %63 {strides = array<i32>} : memref<4x4x512xf32, #tpu.memory_space<vmem>>, vector<1x4x512xf32>,
    return
  }
  func.func @transform_0(%arg0: i32) -> (i32, i32, i32) {
    %c0_i32 = arith.constant 0 : i32
    %c0_i32_0 = arith.constant 0 : i32
    %c0_i32_1 = arith.constant 0 : i32
    %c0_i32_2 = arith.constant 0 : i32
    return %c0_i32, %c0_i32_0, %c0_i32_1 : i32, i32, i32
  }
  func.func @transform_1(%arg0: i32) -> (i32, i32, i32) {
    %c0_i32 = arith.constant 0 : i32
    %c0_i32_0 = arith.constant 0 : i32
    %c0_i32_1 = arith.constant 0 : i32
    %c0_i32_2 = arith.constant 0 : i32
    return %c0_i32, %c0_i32_0, %c0_i32_1 : i32, i32, i32
  }
  func.func @transform_2(%arg0: i32) -> (i32, i32) {
    %c0_i32 = arith.constant 0 : i32
    %c0_i32_0 = arith.constant 0 : i32
    %c0_i32_1 = arith.constant 0 : i32
    return %c0_i32, %c0_i32_0 : i32, i32
  }
  func.func @transform_3(%arg0: i32) -> (i32, i32, i32) {
    %c0_i32 = arith.constant 0 : i32
    %c0_i32_0 = arith.constant 0 : i32
    %c0_i32_1 = arith.constant 0 : i32
    %c0_i32_2 = arith.constant 0 : i32
    return %c0_i32, %c0_i32_0, %c0_i32_1 : i32, i32, i32
  }
}

</mosaic_0001>

<bundles_post_ra>
// kernel: model_forward.7
= control target key start
LH: loop header
LB: loop body
LE: loop exit
PB: predicated region body
PF: predicated region fallthrough
CT: control target
= control target key end

     0   :  { %v614_v3 = vmov 0   ;;  %vm155_vm0 = vcmask 523264   ;;  %s987_s0 = inlined_call_operand.vmem [shape: bf16[64,512], index: 0, kind: input, shape index: {}]   ;;  %s988_s2 = inlined_call_operand.vmem [shape: f32[32,1], index: 2, kind: input, shape index: {}]   ;;  %s989_s1 = inlined_call_operand.vmem [shape: bf16[32,64], index: 1, kind: input, shape index: {}]   ;;  %s990_s3 = inlined_call_operand.vmem [shape: f32[32,1], index: 3, kind: input, shape index: {}]   ;;  %s991_s4 = inlined_call_operand.vmem [shape: f32[32,1], index: 4, kind: input, shape index: {}]   ;;  %s992_s5 = inlined_call_operand.vmem [shape: bf16[32,512], index: 5, kind: output, shape index: {}]  }
   0x1   :  { %v559_v0 = vld [vmem:[%s987_s0 + $0x60] sm:$0xf]  ;;  %v597_v1 = vld [vmem:[%s987_s0 + $0x6c] sm:$0xf0]  ;;  %v595_v2 = vld [vmem:[%s987_s0 + $0x64] sm:$0xf]  ;;  %601 = vset.pattern.permute.xlu0 %v614_v3  ;;  %602 = vset.pattern.permute.xlu1 %v614_v3 }
   0x2   :  { %v560_v4 = vor.u32 %v597_v1, %v559_v0  ;;  %v561_v5 = vld [vmem:[%s987_s0 + $0x70] sm:$0xf0]  ;;  %v567_v6 = vld [vmem:[%s987_s0 + $0x68] sm:$0xf]  ;;  %v598_v7 = vld [vmem:[%s987_s0 + $0x74] sm:$0xf0]  ;;  %603 = vset.pattern.permute.xlu2 %v614_v3 }
   0x3   :  { %v564_v8 = vor.u32 %v595_v2, %v561_v5  ;;  %v568_v9 = vor.u32 %v598_v7, %v567_v6  ;;  %v596_v10 = vld [vmem:[%s987_s0 + $0x6c] sm:$0xf]  ;;  %v569_v11 = vld [vmem:[%s987_s0 + $0x78] sm:$0xf0]  ;;  %v543_v12 = vld [vmem:[%s987_s0 + $0x40] sm:$0xf] }
   0x4   :  { %166 = vmatpush.bf16.msra.mxu0 %v560_v4  ;;  %v572_v13 = vor.u32 %v596_v10, %v569_v11  ;;  %v593_v14 = vld [vmem:[%s987_s0 + $0x4c] sm:$0xf0]  ;;  %v591_v15 = vld [vmem:[%s987_s0 + $0x44] sm:$0xf]  ;;  %v545_v16 = vld [vmem:[%s987_s0 + $0x50] sm:$0xf0] }
   0x5   :  { %185 = vmatpush.bf16.msra.mxu1 %v564_v8  ;;  %204 = vmatpush.bf16.msra.mxu2 %v568_v9  ;;  %v544_v17 = vor.u32 %v593_v14, %v543_v12  ;;  %v548_v18 = vor.u32 %v591_v15, %v545_v16  ;;  %v551_v19 = vld [vmem:[%s987_s0 + $0x48] sm:$0xf]  ;;  %v594_v20 = vld [vmem:[%s987_s0 + $0x54] sm:$0xf0]  ;;  %v592_v21 = vld [vmem:[%s987_s0 + $0x4c] sm:$0xf] }
   0x6   :  { %223 = vmatpush.bf16.msra.mxu3 %v572_v13  ;;  %v552_v22 = vor.u32 %v594_v20, %v551_v19  ;;  %v553_v23 = vld [vmem:[%s987_s0 + $0x58] sm:$0xf0]  ;;  %v527_v24 = vld [vmem:[%s987_s0 + $0x20] sm:$0xf]  ;;  %v589_v25 = vld [vmem:[%s987_s0 + $0x2c] sm:$0xf0] }
   0x7   :  { %v556_v26 = vor.u32 %v592_v21, %v553_v23  ;;  %v587_v27 = vld [vmem:[%s987_s0 + $0x24] sm:$0xf]  ;;  %v529_v28 = vld [vmem:[%s987_s0 + $0x30] sm:$0xf0]  ;;  %v535_v29 = vld [vmem:[%s987_s0 + $0x28] sm:$0xf]  ;;  %v528_v30 = vor.u32 %v589_v25, %v527_v24 }
   0x8   :  { %167 = vmatpush.bf16.msra.mxu0 %v544_v17  ;;  %v590_v31 = vld [vmem:[%s987_s0 + $0x34] sm:$0xf0]  ;;  %v588_v32 = vld [vmem:[%s987_s0 + $0x2c] sm:$0xf]  ;;  %v537_v33 = vld [vmem:[%s987_s0 + $0x38] sm:$0xf0]  ;;  %v532_v34 = vor.u32 %v587_v27, %v529_v28 }
   0x9   :  { %186 = vmatpush.bf16.msra.mxu1 %v548_v18  ;;  %205 = vmatpush.bf16.msra.mxu2 %v552_v22  ;;  %v536_v35 = vor.u32 %v590_v31, %v535_v29  ;;  %v511_v36 = vld [vmem:[%s987_s0] sm:$0xf]  ;;  %v585_v37 = vld [vmem:[%s987_s0 + $0xc] sm:$0xf0]  ;;  %v583_v38 = vld [vmem:[%s987_s0 + $0x4] sm:$0xf]  ;;  %v540_v39 = vor.u32 %v588_v32, %v537_v33 }
   0xa   :  { %224 = vmatpush.bf16.msra.mxu3 %v556_v26  ;;  %v513_v40 = vld [vmem:[%s987_s0 + $0x10] sm:$0xf0]  ;;  %v519_v41 = vld [vmem:[%s987_s0 + $0x8] sm:$0xf]  ;;  %v586_v42 = vld [vmem:[%s987_s0 + $0x14] sm:$0xf0]  ;;  %v512_v45 = vor.u32 %v585_v37, %v511_v36 }
   0xb   :  { %v584_v43 = vld [vmem:[%s987_s0 + $0xc] sm:$0xf]  ;;  %v521_v44 = vld [vmem:[%s987_s0 + $0x18] sm:$0xf0]  ;;  %v41_v46 = vld [vmem:[%s988_s2] sm:$0xff]  ;;  %v516_v47 = vor.u32 %v583_v38, %v513_v40  ;;  %v520_v48 = vor.u32 %v586_v42, %v519_v41 }
   0xc   :  { %168 = vmatpush.bf16.msra.mxu0 %v528_v30  ;;  %v43_v49 = vld [vmem:[%s988_s2 + $0x10] sm:$0xff]  ;;  %v524_v50 = vor.u32 %v584_v43, %v521_v44  ;;  %47 = vperm.xlu0 %601, %v41_v46   ;;  %v581_v51 = vld [vmem:[%s989_s1] sm:$0xff]  ;;  %v42_v52 = vld [vmem:[%s988_s2 + $0x8] sm:$0xff]  ;;  %v615_v46 = vmov 512.0  }
   0xd   :  { %187 = vmatpush.bf16.msra.mxu1 %v532_v34  ;;  %206 = vmatpush.bf16.msra.mxu2 %v536_v35  ;;  %v44_v53 = vld [vmem:[%s988_s2 + $0x18] sm:$0xff]  ;;  %v582_v54 = vld [vmem:[%s989_s1 + $0x8] sm:$0xff]  ;;  %v425_v42 = vld [vmem:[%s991_s4] sm:$0xff]  ;;  %604 = vrcp.f32 %v615_v46 }
   0xe   :  { %225 = vmatpush.bf16.msra.mxu3 %v540_v39  ;;  %57 = vperm.xlu1 %602, %v43_v49   ;;  %v385_v39 = vld [vmem:[%s990_s3] sm:$0xff]  ;;  %v386_v40 = vld [vmem:[%s990_s3 + $0x8] sm:$0xff]  ;;  %v388_v41 = vld [vmem:[%s990_s3 + $0x18] sm:$0xff] }
   0xf   :  { %v387_v43 = vld [vmem:[%s990_s3 + $0x10] sm:$0xff]  ;;  %v428_v44 = vld [vmem:[%s991_s4 + $0x18] sm:$0xff] }
  0x10   :  { %169 = vmatpush.bf16.msra.mxu0 %v512_v45  ;;  %v427_v45 = vld [vmem:[%s991_s4 + $0x10] sm:$0xff] }
  0x11   :  { %188 = vmatpush.bf16.msra.mxu1 %v516_v47  ;;  %207 = vmatpush.bf16.msra.mxu2 %v520_v48 }
  0x12   :  { %226 = vmatpush.bf16.msra.mxu3 %v524_v50 }
  0x13   :  { %573 = vmatmul.msk.bf16.vlgmr.msra.gmra.mxu0 %vm155_vm0, %v581_v51  ;;  %v605_v47 = vpop.eup %604 }
  0x14   :  { %575 = vmatmul.msk.bf16.vlgmr.msra.gmra.mxu1 %vm155_vm0, %v581_v51  ;;  %577 = vmatmul.msk.bf16.vlgmr.msra.gmra.mxu2 %vm155_vm0, %v581_v51  ;;  %v259_v48 = vmul.f32 512.0, %v605_v47  ;;  %vm263_vm1 = vweird.f32 %v605_v47 }
  0x15   :  { %579 = vmatmul.msk.bf16.vlgmr.msra.gmra.mxu3 %vm155_vm0, %v581_v51  ;;  %52 = vperm.xlu0 %601, %v42_v52  }
  0x16   :  { %62 = vperm.xlu1 %602, %v44_v53   ;;  %v260_v49 = vsub.f32 1.0, %v259_v48 }
  0x18   :  { %v261_v50 = vmul.f32 %v605_v47, %v260_v49 }
  0x1a   :  { %v262_v51 = vadd.f32 %v605_v47, %v261_v50 }
  0x1c   :  { %v837_v52 = vsel %vm263_vm1, %v605_v47, %v262_v51 }
  0x23   :  { %574 = vmatmul.msk.bf16.gmra.mxu0 %vm155_vm0, %v582_v54 }
  0x24   :  { %576 = vmatmul.msk.bf16.gmra.mxu1 %vm155_vm0, %v582_v54  ;;  %578 = vmatmul.msk.bf16.gmra.mxu2 %vm155_vm0, %v582_v54 }
  0x25   :  { %580 = vmatmul.msk.bf16.gmra.mxu3 %vm155_vm0, %v582_v54 }
  0x7e   :  { %v48_v56 = vpop.permute.xlu0 %47 }
  0x80   :  { %v58_v13 = vpop.permute.xlu1 %57 }
  0x87   :  { %v53_v4 = vpop.permute.xlu0 %52 }
  0x88   :  { %v63_v28 = vpop.permute.xlu1 %62 }
  0x90   :  { %v171_v55 = vpop.f32.mrf.mxu0 }
  0x91   :  { %v190_v57 = vpop.f32.mrf.mxu1  ;;  %v768_v58 = vadd.f32 %v171_v55, %v48_v56 }
  0x92   :  { %v770_v59 = vadd.f32 %v190_v57, %v48_v56 }
  0x94   :  { %v238_v60 = vadd.f32 %v770_v59, %v768_v58 }
  0x97   :  { %v209_v61 = vpop.f32.mrf.mxu2 }
  0x98   :  { %v774_v62 = vadd.f32 %v209_v61, %v48_v56  ;;  %v228_v63 = vpop.f32.mrf.mxu3  ;;  %v173_v0 = vpop.f32.mrf.mxu0 }
  0x99   :  { %v192_v1 = vpop.f32.mrf.mxu1  ;;  %v776_v2 = vadd.f32 %v228_v63, %v48_v56  ;;  %v779_v5 = vadd.f32 %v173_v0, %v53_v4 }
  0x9a   :  { %v239_v3 = vadd.f32 %v238_v60, %v774_v62  ;;  %v781_v6 = vadd.f32 %v192_v1, %v53_v4 }
  0x9c   :  { %v240_v7 = vadd.f32 %v239_v3, %v776_v2  ;;  %v243_v9 = vadd.f32 %v781_v6, %v779_v5 }
  0x9e   :  { %241 = vadd.xlane.f32.xlu2 %v240_v7 }
  0x9f   :  { %v211_v8 = vpop.f32.mrf.mxu2 }
  0xa0   :  { %v786_v10 = vadd.f32 %v211_v8, %v53_v4  ;;  %v230_v11 = vpop.f32.mrf.mxu3  ;;  %v176_v12 = vpop.f32.mrf.mxu0 }
  0xa1   :  { %v195_v14 = vpop.f32.mrf.mxu1  ;;  %v789_v16 = vadd.f32 %v230_v11, %v53_v4  ;;  %v791_v17 = vadd.f32 %v176_v12, %v58_v13 }
  0xa2   :  { %v244_v15 = vadd.f32 %v243_v9, %v786_v10  ;;  %v793_v18 = vadd.f32 %v195_v14, %v58_v13 }
  0xa4   :  { %v245_v19 = vadd.f32 %v244_v15, %v789_v16  ;;  %v248_v20 = vadd.f32 %v793_v18, %v791_v17 }
  0xa6   :  { %246 = vadd.xlane.f32.xlu2 %v245_v19 }
  0xa7   :  { %v214_v21 = vpop.f32.mrf.mxu2 }
  0xa8   :  { %v798_v22 = vadd.f32 %v214_v21, %v58_v13  ;;  %v233_v23 = vpop.f32.mrf.mxu3  ;;  %v178_v24 = vpop.f32.mrf.mxu0 }
  0xa9   :  { %v197_v25 = vpop.f32.mrf.mxu1  ;;  %v801_v27 = vadd.f32 %v233_v23, %v58_v13  ;;  %v803_v29 = vadd.f32 %v178_v24, %v63_v28 }
  0xaa   :  { %v249_v26 = vadd.f32 %v248_v20, %v798_v22  ;;  %v805_v30 = vadd.f32 %v197_v25, %v63_v28 }
  0xac   :  { %v250_v31 = vadd.f32 %v249_v26, %v801_v27  ;;  %v253_v33 = vadd.f32 %v805_v30, %v803_v29 }
  0xae   :  { %251 = vadd.xlane.f32.xlu0 %v250_v31 }
  0xaf   :  { %v216_v32 = vpop.f32.mrf.mxu2 }
  0xb0   :  { %v810_v34 = vadd.f32 %v216_v32, %v63_v28  ;;  %v235_v35 = vpop.f32.mrf.mxu3 }
  0xb1   :  { %v813_v37 = vadd.f32 %v235_v35, %v63_v28 }
  0xb2   :  { %v254_v36 = vadd.f32 %v253_v33, %v810_v34 }
  0xb4   :  { %v255_v38 = vadd.f32 %v254_v36, %v813_v37 }
  0xb6   :  { %256 = vadd.xlane.f32.xlu1 %v255_v38 }
  0xbe   :  { %391 = vperm.xlu2 %603, %v385_v39  }
  0xc2   :  { %396 = vperm.xlu0 %601, %v386_v40  }
  0xc6   :  { %406 = vperm.xlu2 %603, %v388_v41  }
  0xca   :  { %431 = vperm.xlu0 %601, %v425_v42  }
  0xcf   :  { %401 = vperm.xlu1 %602, %v387_v43  }
  0xd2   :  { %446 = vperm.xlu0 %601, %v428_v44  }
  0xd7   :  { %441 = vperm.xlu1 %602, %v427_v45  }
 0x111   :  { %v242_v53 = vpop.xlane.xlu2 %241 }
 0x112   :  { %v265_v54 = vmul.f32 %v837_v52, %v242_v53 }
 0x114   :  { %v841_v55 = vsub.f32 %v768_v58, %v265_v54  ;;  %v844_v56 = vsub.f32 %v770_v59, %v265_v54  ;;  %v847_v57 = vsub.f32 %v774_v62, %v265_v54  ;;  %v850_v60 = vsub.f32 %v776_v2, %v265_v54 }
 0x116   :  { %v285_v61 = vmul.f32 %v841_v55, %v841_v55  ;;  %v286_v63 = vmul.f32 %v844_v56, %v844_v56  ;;  %v287_v0 = vmul.f32 %v847_v57, %v847_v57  ;;  %v288_v62 = vmul.f32 %v850_v60, %v850_v60 }
 0x118   :  { %v301_v58 = vadd.f32 %v286_v63, %v285_v61 }
 0x119   :  { %v247_v1 = vpop.xlane.xlu2 %246 }
 0x11a   :  { %v266_v59 = vmul.f32 %v837_v52, %v247_v1  ;;  %v302_v3 = vadd.f32 %v301_v58, %v287_v0 }
 0x11c   :  { %v862_v2 = vsub.f32 %v779_v5, %v266_v59  ;;  %v865_v4 = vsub.f32 %v781_v6, %v266_v59  ;;  %v303_v7 = vadd.f32 %v302_v3, %v288_v62  ;;  %v868_v8 = vsub.f32 %v786_v10, %v266_v59 }
 0x11d   :  { %v871_v9 = vsub.f32 %v789_v16, %v266_v59 }
 0x11e   :  { %304 = vadd.xlane.f32.xlu2 %v303_v7  ;;  %v289_v11 = vmul.f32 %v862_v2, %v862_v2  ;;  %v290_v12 = vmul.f32 %v865_v4, %v865_v4  ;;  %v291_v5 = vmul.f32 %v868_v8, %v868_v8 }
 0x11f   :  { %v292_v10 = vmul.f32 %v871_v9, %v871_v9 }
 0x120   :  { %v306_v13 = vadd.f32 %v290_v12, %v289_v11 }
 0x121   :  { %v252_v6 = vpop.xlane.xlu0 %251  ;;  %v392_v42 = vpop.permute.xlu2 %391 }
 0x122   :  { %v267_v14 = vmul.f32 %v837_v52, %v252_v6  ;;  %v307_v15 = vadd.f32 %v306_v13, %v291_v5 }
 0x124   :  { %v883_v16 = vsub.f32 %v791_v17, %v267_v14  ;;  %v886_v19 = vsub.f32 %v793_v18, %v267_v14  ;;  %v308_v20 = vadd.f32 %v307_v15, %v292_v10  ;;  %v889_v21 = vsub.f32 %v798_v22, %v267_v14 }
 0x125   :  { %v892_v23 = vsub.f32 %v801_v27, %v267_v14 }
 0x126   :  { %309 = vadd.xlane.f32.xlu2 %v308_v20  ;;  %v293_v24 = vmul.f32 %v883_v16, %v883_v16  ;;  %v294_v25 = vmul.f32 %v886_v19, %v886_v19  ;;  %v295_v17 = vmul.f32 %v889_v21, %v889_v21 }
 0x127   :  { %v296_v22 = vmul.f32 %v892_v23, %v892_v23 }
 0x128   :  { %v311_v26 = vadd.f32 %v294_v25, %v293_v24 }
 0x129   :  { %v257_v18 = vpop.xlane.xlu1 %256  ;;  %v926_v43 = vpop.permute.xlu2 %406 }
 0x12a   :  { %v268_v28 = vmul.f32 %v837_v52, %v257_v18  ;;  %v312_v31 = vadd.f32 %v311_v26, %v295_v17 }
 0x12c   :  { %v904_v27 = vsub.f32 %v803_v29, %v268_v28  ;;  %v907_v32 = vsub.f32 %v805_v30, %v268_v28  ;;  %v313_v33 = vadd.f32 %v312_v31, %v296_v22  ;;  %v910_v35 = vsub.f32 %v810_v34, %v268_v28 }
 0x12d   :  { %v913_v36 = vsub.f32 %v813_v37, %v268_v28  ;;  %v426_v37 = vld [vmem:[%s991_s4 + $0x8] sm:$0xff] }
 0x12e   :  { %314 = vadd.xlane.f32.xlu2 %v313_v33  ;;  %v297_v38 = vmul.f32 %v904_v27, %v904_v27  ;;  %v298_v39 = vmul.f32 %v907_v32, %v907_v32  ;;  %v299_v29 = vmul.f32 %v910_v35, %v910_v35 }
 0x12f   :  { %v300_v30 = vmul.f32 %v913_v36, %v913_v36 }
 0x130   :  { %v316_v40 = vadd.f32 %v298_v39, %v297_v38 }
 0x132   :  { %v317_v41 = vadd.f32 %v316_v40, %v299_v29 }
 0x134   :  { %v318_v34 = vadd.f32 %v317_v41, %v300_v30  ;;  %v397_v54 = vpop.permute.xlu0 %396 }
 0x136   :  { %319 = vadd.xlane.f32.xlu2 %v318_v34 }
 0x13c   :  { %v432_v17 = vpop.permute.xlu0 %431 }
 0x14e   :  { %436 = vperm.xlu2 %603, %v426_v37  }
 0x191   :  { %v305_v44 = vpop.xlane.xlu2 %304 }
 0x192   :  { %v321_v45 = vmul.f32 %v305_v44, %v837_v52  ;;  %v402_v44 = vpop.permute.xlu1 %401 }
 0x194   :  { %v325_v46 = vadd.f32 1e-05, %v321_v45 }
 0x196   :  { %606 = vrsqrt.f32 %v325_v46  ;;  %vm335_vm3 = vweird.f32 %v325_v46 }
 0x199   :  { %v310_v47 = vpop.xlane.xlu2 %309 }
 0x19a   :  { %v322_v48 = vmul.f32 %v310_v47, %v837_v52 }
 0x19c   :  { %v607_v49 = vpop.eup %606  ;;  %v326_v50 = vadd.f32 1e-05, %v322_v48 }
 0x19d   :  { %v330_v51 = vmul.f32 %v607_v49, %v325_v46  ;;  %vm336_vm2 = vweird.f32 %v607_v49 }
 0x19e   :  { %608 = vrsqrt.f32 %v326_v50  ;;  %vm337_vm4 = vmor %vm335_vm3, %vm336_vm2  ;;  %vm345_vm6 = vweird.f32 %v326_v50 }
 0x19f   :  { %v331_v53 = vmul.f32 %v607_v49, %v330_v51 }
 0x1a1   :  { %v332_v61 = vmul.f32 0.5, %v331_v53  ;;  %v315_v63 = vpop.xlane.xlu2 %314 }
 0x1a2   :  { %v323_v0 = vmul.f32 %v315_v63, %v837_v52 }
 0x1a3   :  { %v333_v58 = vsub.f32 1.5, %v332_v61 }
 0x1a4   :  { %v609_v1 = vpop.eup %608  ;;  %v931_v59 = vadd.f32 1e-05, %v323_v0 }
 0x1a5   :  { %v334_v62 = vmul.f32 %v607_v49, %v333_v58  ;;  %v340_v3 = vmul.f32 %v609_v1, %v326_v50  ;;  %vm346_vm5 = vweird.f32 %v609_v1 }
 0x1a6   :  { %610 = vrsqrt.f32 %v931_v59  ;;  %vm347_vm7 = vmor %vm345_vm6, %vm346_vm5  ;;  %vm355_vm9 = vweird.f32 %v931_v59 }
 0x1a7   :  { %v338_v7 = vsel %vm337_vm4, %v607_v49, %v334_v62  ;;  %v341_v11 = vmul.f32 %v609_v1, %v340_v3 }
 0x1a8   :  { %v369_v12 = vmul.f32 %v338_v7, %v841_v55  ;;  %v370_v5 = vmul.f32 %v338_v7, %v844_v56  ;;  %v371_v13 = vmul.f32 %v338_v7, %v847_v57  ;;  %v372_v6 = vmul.f32 %v338_v7, %v850_v60 }
 0x1a9   :  { %v342_v14 = vmul.f32 0.5, %v341_v11  ;;  %v320_v10 = vpop.xlane.xlu2 %319 }
 0x1aa   :  { %v409_v15 = vmul.f32 %v392_v42, %v369_v12  ;;  %v410_v20 = vmul.f32 %v392_v42, %v370_v5  ;;  %v411_v24 = vmul.f32 %v392_v42, %v371_v13  ;;  %v412_v25 = vmul.f32 %v392_v42, %v372_v6 }
 0x1ab   :  { %v343_v26 = vsub.f32 1.5, %v342_v14  ;;  %v324_v18 = vmul.f32 %v320_v10, %v837_v52 }
 0x1ac   :  { %v611_v28 = vpop.eup %610  ;;  %v449_v22 = vadd.f32 %v432_v17, %v409_v15  ;;  %v450_v55 = vadd.f32 %v432_v17, %v410_v20  ;;  %v451_v31 = vadd.f32 %v432_v17, %v411_v24  ;;  %v452_v56 = vadd.f32 %v432_v17, %v412_v25  ;;  %v442_v25 = vpop.permute.xlu1 %441 }
 0x1ad   :  { %v344_v33 = vmul.f32 %v609_v1, %v343_v26  ;;  %v350_v57 = vmul.f32 %v611_v28, %v931_v59  ;;  %v940_v60 = vadd.f32 1e-05, %v324_v18  ;;  %vm356_vm8 = vweird.f32 %v611_v28 }
 0x1ae   :  { %v465_v38 = vmax.f32 %v449_v22, 0.0  ;;  %v466_v39 = vmax.f32 %v450_v55, 0.0  ;;  %v467_v29 = vmax.f32 %v451_v31, 0.0  ;;  %v468_v40 = vmax.f32 %v452_v56, 0.0  ;;  %vm357_vm10 = vmor %vm355_vm9, %vm356_vm8 }
 0x1af   :  { %v348_v30 = vsel %vm347_vm7, %v609_v1, %v344_v33  ;;  %v351_v41 = vmul.f32 %v611_v28, %v350_v57  ;;  %612 = vrsqrt.f32 %v940_v60  ;;  %vm365_vm12 = vweird.f32 %v940_v60 }
 0x1b0   :  { %v481_v52 = vpack.c.bf16 %v466_v39, %v465_v38  ;;  %v482_v34 = vpack.c.bf16 %v468_v40, %v467_v29  ;;  %v373_v37 = vmul.f32 %v348_v30, %v862_v2  ;;  %v374_v42 = vmul.f32 %v348_v30, %v865_v4 }
 0x1b1   :  { %v352_v45 = vmul.f32 0.5, %v351_v41  ;;  %v375_v46 = vmul.f32 %v348_v30, %v868_v8  ;;  %v376_v47 = vmul.f32 %v348_v30, %v871_v9  ;;  %v437_v51 = vpop.permute.xlu2 %436 }
 0x1b2   :  { %489 = vst [vmem:[%s992_s5] sm:$0xff] %v481_v52  ;;  %v413_v48 = vmul.f32 %v397_v54, %v373_v37  ;;  %v414_v49 = vmul.f32 %v397_v54, %v374_v42 }
 0x1b3   :  { %490 = vst [vmem:[%s992_s5 + $0x8] sm:$0xff] %v482_v34  ;;  %v353_v50 = vsub.f32 1.5, %v352_v45  ;;  %v415_v2 = vmul.f32 %v397_v54, %v375_v46  ;;  %v416_v4 = vmul.f32 %v397_v54, %v376_v47  ;;  %v447_v34 = vpop.permute.xlu0 %446 }
 0x1b4   :  { %v453_v53 = vadd.f32 %v437_v51, %v413_v48  ;;  %v454_v61 = vadd.f32 %v437_v51, %v414_v49 }
 0x1b5   :  { %v613_v8 = vpop.eup %612  ;;  %v354_v63 = vmul.f32 %v611_v28, %v353_v50  ;;  %v455_v9 = vadd.f32 %v437_v51, %v415_v2  ;;  %v456_v0 = vadd.f32 %v437_v51, %v416_v4 }
 0x1b6   :  { %v360_v58 = vmul.f32 %v613_v8, %v940_v60  ;;  %v469_v1 = vmax.f32 %v453_v53, 0.0  ;;  %v470_v62 = vmax.f32 %v454_v61, 0.0  ;;  %vm366_vm11 = vweird.f32 %v613_v8 }
 0x1b7   :  { %v358_v3 = vsel %vm357_vm10, %v611_v28, %v354_v63  ;;  %v471_v7 = vmax.f32 %v455_v9, 0.0  ;;  %v472_v11 = vmax.f32 %v456_v0, 0.0  ;;  %vm367_vm13 = vmor %vm365_vm12, %vm366_vm11 }
 0x1b8   :  { %v377_v12 = vmul.f32 %v358_v3, %v883_v16  ;;  %v378_v54 = vmul.f32 %v358_v3, %v886_v19  ;;  %v379_v5 = vmul.f32 %v358_v3, %v889_v21  ;;  %v380_v13 = vmul.f32 %v358_v3, %v892_v23 }
 0x1b9   :  { %v361_v6 = vmul.f32 %v613_v8, %v360_v58  ;;  %v483_v59 = vpack.c.bf16 %v470_v62, %v469_v1  ;;  %v484_v14 = vpack.c.bf16 %v472_v11, %v471_v7 }
 0x1ba   :  { %v417_v10 = vmul.f32 %v402_v44, %v377_v12  ;;  %v418_v15 = vmul.f32 %v402_v44, %v378_v54  ;;  %v419_v20 = vmul.f32 %v402_v44, %v379_v5  ;;  %v420_v24 = vmul.f32 %v402_v44, %v380_v13 }
 0x1bb   :  { %v362_v17 = vmul.f32 0.5, %v361_v6  ;;  %491 = vst [vmem:[%s992_s5 + $0x10] sm:$0xff] %v483_v59 }
 0x1bc   :  { %v457_v16 = vadd.f32 %v442_v25, %v417_v10  ;;  %v458_v26 = vadd.f32 %v442_v25, %v418_v15  ;;  %v459_v19 = vadd.f32 %v442_v25, %v419_v20  ;;  %v460_v18 = vadd.f32 %v442_v25, %v420_v24  ;;  %492 = vst [vmem:[%s992_s5 + $0x18] sm:$0xff] %v484_v14 }
 0x1bd   :  { %v363_v21 = vsub.f32 1.5, %v362_v17 }
 0x1be   :  { %v473_v23 = vmax.f32 %v457_v16, 0.0  ;;  %v474_v28 = vmax.f32 %v458_v26, 0.0  ;;  %v475_v22 = vmax.f32 %v459_v19, 0.0  ;;  %v476_v55 = vmax.f32 %v460_v18, 0.0 }
 0x1bf   :  { %v364_v31 = vmul.f32 %v613_v8, %v363_v21 }
 0x1c0   :  { %v485_v56 = vpack.c.bf16 %v474_v28, %v473_v23  ;;  %v486_v33 = vpack.c.bf16 %v476_v55, %v475_v22 }
 0x1c1   :  { %v368_v57 = vsel %vm367_vm13, %v613_v8, %v364_v31 }
 0x1c2   :  { %493 = vst [vmem:[%s992_s5 + $0x20] sm:$0xff] %v485_v56  ;;  %v381_v38 = vmul.f32 %v368_v57, %v904_v27  ;;  %v382_v39 = vmul.f32 %v368_v57, %v907_v32  ;;  %v383_v29 = vmul.f32 %v368_v57, %v910_v35  ;;  %v384_v40 = vmul.f32 %v368_v57, %v913_v36 }
 0x1c3   :  { %494 = vst [vmem:[%s992_s5 + $0x28] sm:$0xff] %v486_v33 }
 0x1c4   :  { %v421_v60 = vmul.f32 %v926_v43, %v381_v38  ;;  %v422_v30 = vmul.f32 %v926_v43, %v382_v39  ;;  %v423_v41 = vmul.f32 %v926_v43, %v383_v29  ;;  %v424_v52 = vmul.f32 %v926_v43, %v384_v40 }
 0x1c6   :  { %v461_v27 = vadd.f32 %v447_v34, %v421_v60  ;;  %v462_v37 = vadd.f32 %v447_v34, %v422_v30  ;;  %v463_v32 = vadd.f32 %v447_v34, %v423_v41  ;;  %v464_v42 = vadd.f32 %v447_v34, %v424_v52 }
 0x1c8   :  { %v477_v35 = vmax.f32 %v461_v27, 0.0  ;;  %v478_v44 = vmax.f32 %v462_v37, 0.0  ;;  %v479_v36 = vmax.f32 %v463_v32, 0.0  ;;  %v480_v45 = vmax.f32 %v464_v42, 0.0 }
 0x1ca   :  { %v487_v46 = vpack.c.bf16 %v478_v44, %v477_v35  ;;  %v488_v47 = vpack.c.bf16 %v480_v45, %v479_v36 }
 0x1cc   :  { %495 = vst [vmem:[%s992_s5 + $0x30] sm:$0xff] %v487_v46 }
 0x1cd   :  { %496 = vst [vmem:[%s992_s5 + $0x38] sm:$0xff] %v488_v47 }

// kernel: model_forward.8
= control target key start
LH: loop header
LB: loop body
LE: loop exit
PB: predicated region body
PF: predicated region fallthrough
CT: control target
= control target key end

     0   :  { %v1129_v3 = vmov 0   ;;  %s1566_s0 = inlined_call_operand.vmem [shape: bf16[512,128], index: 0, kind: input, shape index: {}]   ;;  %s1567_s2 = inlined_call_operand.vmem [shape: f32[64,1], index: 2, kind: input, shape index: {}]   ;;  %s1568_s1 = inlined_call_operand.vmem [shape: bf16[64,512], index: 1, kind: input, shape index: {}]   ;;  %s1569_s3 = inlined_call_operand.vmem [shape: f32[64,1], index: 3, kind: input, shape index: {}]   ;;  %s1570_s4 = inlined_call_operand.vmem [shape: f32[64,1], index: 4, kind: input, shape index: {}]   ;;  %s1571_s5 = inlined_call_operand.vmem [shape: bf16[64,128], index: 5, kind: output, shape index: {}]  }
   0x1   :  { %v1058_v0 = vld [vmem:[%s1566_s0 + $0x38] sm:$0xff]  ;;  %1108 = vset.pattern.permute.xlu0 %v1129_v3  ;;  %1109 = vset.pattern.permute.xlu1 %v1129_v3  ;;  %v1057_v5 = vld [vmem:[%s1566_s0 + $0x30] sm:$0xff]  ;;  %v1056_v9 = vld [vmem:[%s1566_s0 + $0x28] sm:$0xff] }
   0x2   :  { %v1066_v1 = vld [vmem:[%s1566_s0 + $0x78] sm:$0xff]  ;;  %1110 = vset.pattern.permute.xlu2 %v1129_v3  ;;  %420 = vmatpush.bf16.msra.mxu0 %v1058_v0  ;;  %v1065_v6 = vld [vmem:[%s1566_s0 + $0x70] sm:$0xff]  ;;  %v1064_v10 = vld [vmem:[%s1566_s0 + $0x68] sm:$0xff] }
   0x3   :  { %v1074_v2 = vld [vmem:[%s1566_s0 + $0xb8] sm:$0xff]  ;;  %449 = vmatpush.bf16.msra.mxu1 %v1066_v1  ;;  %v1073_v7 = vld [vmem:[%s1566_s0 + $0xb0] sm:$0xff]  ;;  %v1072_v11 = vld [vmem:[%s1566_s0 + $0xa8] sm:$0xff] }
   0x4   :  { %v1082_v4 = vld [vmem:[%s1566_s0 + $0xf8] sm:$0xff]  ;;  %478 = vmatpush.bf16.msra.mxu2 %v1074_v2  ;;  %v1081_v8 = vld [vmem:[%s1566_s0 + $0xf0] sm:$0xff]  ;;  %v1080_v12 = vld [vmem:[%s1566_s0 + $0xe8] sm:$0xff] }
   0x5   :  { %507 = vmatpush.bf16.msra.mxu3 %v1082_v4  ;;  %v100_v13 = vld [vmem:[%s1567_s2] sm:$0xff]  ;;  %v102_v18 = vld [vmem:[%s1567_s2 + $0x10] sm:$0xff]  ;;  %v1054_v19 = vld [vmem:[%s1566_s0 + $0x18] sm:$0xff] }
   0x6   :  { %421 = vmatpush.bf16.msra.mxu0 %v1057_v5  ;;  %v1055_v14 = vld [vmem:[%s1566_s0 + $0x20] sm:$0xff]  ;;  %110 = vperm.xlu0 %1108, %v100_v13   ;;  %v1062_v20 = vld [vmem:[%s1566_s0 + $0x58] sm:$0xff]  ;;  %v101_v23 = vld [vmem:[%s1567_s2 + $0x8] sm:$0xff] }
   0x7   :  { %450 = vmatpush.bf16.msra.mxu1 %v1065_v6  ;;  %v1063_v15 = vld [vmem:[%s1566_s0 + $0x60] sm:$0xff]  ;;  %v1070_v21 = vld [vmem:[%s1566_s0 + $0x98] sm:$0xff]  ;;  %120 = vperm.xlu1 %1109, %v102_v18   ;;  %v1053_v24 = vld [vmem:[%s1566_s0 + $0x10] sm:$0xff] }
   0x8   :  { %479 = vmatpush.bf16.msra.mxu2 %v1073_v7  ;;  %v1071_v16 = vld [vmem:[%s1566_s0 + $0xa0] sm:$0xff]  ;;  %v1078_v22 = vld [vmem:[%s1566_s0 + $0xd8] sm:$0xff]  ;;  %v1061_v25 = vld [vmem:[%s1566_s0 + $0x50] sm:$0xff] }
   0x9   :  { %508 = vmatpush.bf16.msra.mxu3 %v1081_v8  ;;  %v1079_v17 = vld [vmem:[%s1566_s0 + $0xe0] sm:$0xff]  ;;  %v1069_v26 = vld [vmem:[%s1566_s0 + $0x90] sm:$0xff]  ;;  %v103_v28 = vld [vmem:[%s1567_s2 + $0x18] sm:$0xff] }
   0xa   :  { %422 = vmatpush.bf16.msra.mxu0 %v1056_v9  ;;  %v1077_v27 = vld [vmem:[%s1566_s0 + $0xd0] sm:$0xff]  ;;  %v1052_v29 = vld [vmem:[%s1566_s0 + $0x8] sm:$0xff]  ;;  %v1051_v33 = vld [vmem:[%s1566_s0] sm:$0xff] }
   0xb   :  { %451 = vmatpush.bf16.msra.mxu1 %v1064_v10  ;;  %v1060_v30 = vld [vmem:[%s1566_s0 + $0x48] sm:$0xff]  ;;  %v1059_v34 = vld [vmem:[%s1566_s0 + $0x40] sm:$0xff]  ;;  %v1037_v38 = vld [vmem:[%s1568_s1 + $0xc] sm:$0xf0] }
   0xc   :  { %480 = vmatpush.bf16.msra.mxu2 %v1072_v11  ;;  %v1068_v31 = vld [vmem:[%s1566_s0 + $0x88] sm:$0xff]  ;;  %v1067_v35 = vld [vmem:[%s1566_s0 + $0x80] sm:$0xff]  ;;  %v106_v39 = vld [vmem:[%s1567_s2 + $0x30] sm:$0xff] }
   0xd   :  { %509 = vmatpush.bf16.msra.mxu3 %v1080_v12  ;;  %v1076_v32 = vld [vmem:[%s1566_s0 + $0xc8] sm:$0xff]  ;;  %v1075_v36 = vld [vmem:[%s1566_s0 + $0xc0] sm:$0xff]  ;;  %v847_v41 = vld [vmem:[%s1568_s1 + $0x10] sm:$0xf0] }
   0xe   :  { %423 = vmatpush.bf16.msra.mxu0 %v1055_v14  ;;  %115 = vperm.xlu0 %1108, %v101_v23   ;;  %v845_v37 = vld [vmem:[%s1568_s1] sm:$0xf]  ;;  %v1035_v40 = vld [vmem:[%s1568_s1 + $0x4] sm:$0xf]  ;;  %v853_v42 = vld [vmem:[%s1568_s1 + $0x8] sm:$0xf] }
   0xf   :  { %452 = vmatpush.bf16.msra.mxu1 %v1063_v15  ;;  %125 = vperm.xlu1 %1109, %v103_v28   ;;  %v1038_v43 = vld [vmem:[%s1568_s1 + $0x14] sm:$0xf0]  ;;  %v1036_v44 = vld [vmem:[%s1568_s1 + $0xc] sm:$0xf]  ;;  %v855_v45 = vld [vmem:[%s1568_s1 + $0x18] sm:$0xf0]  ;;  %v846_v46 = vor.u32 %v1037_v38, %v845_v37  ;;  %v850_v47 = vor.u32 %v1035_v40, %v847_v41 }
  0x10   :  { %481 = vmatpush.bf16.msra.mxu2 %v1071_v16  ;;  %v107_v48 = vld [vmem:[%s1567_s2 + $0x38] sm:$0xff]  ;;  %v854_v49 = vor.u32 %v1038_v43, %v853_v42  ;;  %v858_v50 = vor.u32 %v1036_v44, %v855_v45  ;;  %v704_v51 = vld [vmem:[%s1569_s3 + $0x8] sm:$0xff]  ;;  %v705_v52 = vld [vmem:[%s1569_s3 + $0x10] sm:$0xff] }
  0x11   :  { %510 = vmatpush.bf16.msra.mxu3 %v1079_v17  ;;  %v861_v53 = vld [vmem:[%s1568_s1 + $0x20] sm:$0xf]  ;;  %v1041_v54 = vld [vmem:[%s1568_s1 + $0x2c] sm:$0xf0]  ;;  %v706_v55 = vld [vmem:[%s1569_s3 + $0x18] sm:$0xff] }
  0x12   :  { %424 = vmatpush.bf16.msra.mxu0 %v1054_v19  ;;  %v1039_v56 = vld [vmem:[%s1568_s1 + $0x24] sm:$0xf]  ;;  %v863_v57 = vld [vmem:[%s1568_s1 + $0x30] sm:$0xf0]  ;;  %v869_v58 = vld [vmem:[%s1568_s1 + $0x28] sm:$0xf]  ;;  %v862_v62 = vor.u32 %v1041_v54, %v861_v53 }
  0x13   :  { %453 = vmatpush.bf16.msra.mxu1 %v1062_v20  ;;  %v1042_v59 = vld [vmem:[%s1568_s1 + $0x34] sm:$0xf0]  ;;  %v1040_v60 = vld [vmem:[%s1568_s1 + $0x2c] sm:$0xf]  ;;  %v871_v61 = vld [vmem:[%s1568_s1 + $0x38] sm:$0xf0]  ;;  %v866_v63 = vor.u32 %v1039_v56, %v863_v57 }
  0x14   :  { %482 = vmatpush.bf16.msra.mxu2 %v1070_v21  ;;  %v708_v0 = vld [vmem:[%s1569_s3 + $0x28] sm:$0xff]  ;;  %v870_v1 = vor.u32 %v1042_v59, %v869_v58  ;;  %v874_v2 = vor.u32 %v1040_v60, %v871_v61  ;;  %v709_v3 = vld [vmem:[%s1569_s3 + $0x30] sm:$0xff]  ;;  %v104_v4 = vld [vmem:[%s1567_s2 + $0x20] sm:$0xff] }
  0x15   :  { %511 = vmatpush.bf16.msra.mxu3 %v1078_v22  ;;  %130 = vperm.xlu2 %1110, %v104_v4   ;;  %v759_v5 = vld [vmem:[%s1570_s4] sm:$0xff]  ;;  %v105_v6 = vld [vmem:[%s1567_s2 + $0x28] sm:$0xff]  ;;  %v1045_v8 = vld [vmem:[%s1568_s1 + $0x4c] sm:$0xf0] }
  0x16   :  { %425 = vmatpush.bf16.msra.mxu0 %v1053_v24  ;;  %140 = vperm.xlu0 %1108, %v106_v39   ;;  %v877_v7 = vld [vmem:[%s1568_s1 + $0x40] sm:$0xf]  ;;  %v760_v9 = vld [vmem:[%s1570_s4 + $0x8] sm:$0xff]  ;;  %v1043_v10 = vld [vmem:[%s1568_s1 + $0x44] sm:$0xf] }
  0x17   :  { %454 = vmatpush.bf16.msra.mxu1 %v1061_v25  ;;  %145 = vperm.xlu1 %1109, %v107_v48   ;;  %v879_v11 = vld [vmem:[%s1568_s1 + $0x50] sm:$0xf0]  ;;  %v885_v12 = vld [vmem:[%s1568_s1 + $0x48] sm:$0xf]  ;;  %v1046_v13 = vld [vmem:[%s1568_s1 + $0x54] sm:$0xf0]  ;;  %v878_v16 = vor.u32 %v1045_v8, %v877_v7 }
  0x18   :  { %483 = vmatpush.bf16.msra.mxu2 %v1069_v26  ;;  %v1044_v14 = vld [vmem:[%s1568_s1 + $0x4c] sm:$0xf]  ;;  %v887_v15 = vld [vmem:[%s1568_s1 + $0x58] sm:$0xf0]  ;;  %v882_v17 = vor.u32 %v1043_v10, %v879_v11  ;;  %v886_v18 = vor.u32 %v1046_v13, %v885_v12  ;;  %v703_v20 = vld [vmem:[%s1569_s3] sm:$0xff] }
  0x19   :  { %512 = vmatpush.bf16.msra.mxu3 %v1077_v27  ;;  %v890_v19 = vor.u32 %v1044_v14, %v887_v15  ;;  %v707_v21 = vld [vmem:[%s1569_s3 + $0x20] sm:$0xff]  ;;  %v1049_v23 = vld [vmem:[%s1568_s1 + $0x6c] sm:$0xf0]  ;;  %v895_v25 = vld [vmem:[%s1568_s1 + $0x70] sm:$0xf0] }
  0x1a   :  { %426 = vmatpush.bf16.msra.mxu0 %v1052_v29  ;;  %v893_v22 = vld [vmem:[%s1568_s1 + $0x60] sm:$0xf]  ;;  %v1047_v24 = vld [vmem:[%s1568_s1 + $0x64] sm:$0xf]  ;;  %v901_v26 = vld [vmem:[%s1568_s1 + $0x68] sm:$0xf] }
  0x1b   :  { %455 = vmatpush.bf16.msra.mxu1 %v1060_v30  ;;  %v1050_v27 = vld [vmem:[%s1568_s1 + $0x74] sm:$0xf0]  ;;  %v1048_v28 = vld [vmem:[%s1568_s1 + $0x6c] sm:$0xf]  ;;  %v903_v29 = vld [vmem:[%s1568_s1 + $0x78] sm:$0xf0]  ;;  %v894_v30 = vor.u32 %v1049_v23, %v893_v22 }
  0x1c   :  { %484 = vmatpush.bf16.msra.mxu2 %v1068_v31  ;;  %v898_v31 = vor.u32 %v1047_v24, %v895_v25 }
  0x1d   :  { %513 = vmatpush.bf16.msra.mxu3 %v1076_v32  ;;  %135 = vperm.xlu2 %1110, %v105_v6   ;;  %v902_v32 = vor.u32 %v1050_v27, %v901_v26 }
  0x1e   :  { %427 = vmatpush.bf16.msra.mxu0 %v1051_v33  ;;  %718 = vperm.xlu0 %1108, %v704_v51   ;;  %v906_v33 = vor.u32 %v1048_v28, %v903_v29 }
  0x1f   :  { %456 = vmatpush.bf16.msra.mxu1 %v1059_v34  ;;  %723 = vperm.xlu1 %1109, %v705_v52   ;;  %v710_v34 = vld [vmem:[%s1569_s3 + $0x38] sm:$0xff] }
  0x20   :  { %485 = vmatpush.bf16.msra.mxu2 %v1067_v35 }
  0x21   :  { %514 = vmatpush.bf16.msra.mxu3 %v1075_v36  ;;  %428 = vmatmul.bf16.vlgmr.msra.gmra.mxu0 %v846_v46 }
  0x22   :  { %457 = vmatmul.bf16.vlgmr.msra.gmra.mxu1 %v850_v47 }
  0x23   :  { %486 = vmatmul.bf16.vlgmr.msra.gmra.mxu2 %v854_v49 }
  0x24   :  { %515 = vmatmul.bf16.vlgmr.msra.gmra.mxu3 %v858_v50 }
  0x25   :  { %713 = vperm.xlu2 %1110, %v703_v20  }
  0x26   :  { %728 = vperm.xlu0 %1108, %v706_v55  }
  0x27   :  { %738 = vperm.xlu1 %1109, %v708_v0  }
  0x2d   :  { %733 = vperm.xlu2 %1110, %v707_v21  }
  0x2e   :  { %743 = vperm.xlu0 %1108, %v709_v3  }
  0x2f   :  { %769 = vperm.xlu1 %1109, %v759_v5  }
  0x31   :  { %433 = vmatmul.bf16.gmra.mxu0 %v862_v62 }
  0x32   :  { %462 = vmatmul.bf16.gmra.mxu1 %v866_v63 }
  0x33   :  { %491 = vmatmul.bf16.gmra.mxu2 %v870_v1 }
  0x34   :  { %520 = vmatmul.bf16.gmra.mxu3 %v874_v2 }
  0x35   :  { %748 = vperm.xlu2 %1110, %v710_v34  }
  0x36   :  { %774 = vperm.xlu0 %1108, %v760_v9  }
  0x41   :  { %438 = vmatmul.bf16.gmra.mxu0 %v878_v16 }
  0x42   :  { %467 = vmatmul.bf16.gmra.mxu1 %v882_v17 }
  0x43   :  { %496 = vmatmul.bf16.gmra.mxu2 %v886_v18 }
  0x44   :  { %525 = vmatmul.bf16.gmra.mxu3 %v890_v19 }
  0x51   :  { %443 = vmatmul.bf16.gmra.mxu0 %v894_v30 }
  0x52   :  { %472 = vmatmul.bf16.gmra.mxu1 %v898_v31 }
  0x53   :  { %501 = vmatmul.bf16.gmra.mxu2 %v902_v32 }
  0x54   :  { %530 = vmatmul.bf16.gmra.mxu3 %v906_v33 }
  0x6f   :  { %v131_v2 = vpop.permute.xlu2 %130 }
  0x77   :  { %v136_v16 = vpop.permute.xlu2 %135 }
  0x78   :  { %v111_v35 = vpop.permute.xlu0 %110 }
  0x79   :  { %v121_v48 = vpop.permute.xlu1 %120 }
  0x80   :  { %v116_v45 = vpop.permute.xlu0 %115 }
  0x81   :  { %v126_v63 = vpop.permute.xlu1 %125 }
  0x88   :  { %v141_v25 = vpop.permute.xlu0 %140 }
  0x89   :  { %v146_v34 = vpop.permute.xlu1 %145 }
  0x9e   :  { %v429_v36 = vpop.f32.mrf.mxu0 }
  0x9f   :  { %v458_v37 = vpop.f32.mrf.mxu1  ;;  %v430_v38 = vadd.f32 %v429_v36, %v111_v35 }
  0xa1   :  { %v459_v39 = vadd.f32 %v458_v37, %v430_v38 }
  0xa6   :  { %v487_v40 = vpop.f32.mrf.mxu2  ;;  %v431_v43 = vpop.f32.mrf.mxu0 }
  0xa7   :  { %v516_v41 = vpop.f32.mrf.mxu3  ;;  %v488_v42 = vadd.f32 %v487_v40, %v459_v39  ;;  %v460_v44 = vpop.f32.mrf.mxu1  ;;  %v432_v47 = vadd.f32 %v431_v43, %v116_v45  ;;  %v763_v43 = vld [vmem:[%s1570_s4 + $0x20] sm:$0xff]  ;;  %v761_v45 = vld [vmem:[%s1570_s4 + $0x10] sm:$0xff] }
  0xa9   :  { %v1407_v46 = vadd.f32 %v516_v41, %v488_v42  ;;  %v461_v49 = vadd.f32 %v460_v44, %v432_v47  ;;  %v762_v44 = vld [vmem:[%s1570_s4 + $0x18] sm:$0xff]  ;;  %v1440_v47 = vpop.permute.xlu0 %718 }
  0xab   :  { %536 = vadd.xlane.f32.xlu2 %v1407_v46 }
  0xae   :  { %v489_v50 = vpop.f32.mrf.mxu2  ;;  %v434_v53 = vpop.f32.mrf.mxu0 }
  0xaf   :  { %v518_v51 = vpop.f32.mrf.mxu3  ;;  %v490_v52 = vadd.f32 %v489_v50, %v461_v49  ;;  %v463_v54 = vpop.f32.mrf.mxu1  ;;  %v435_v55 = vadd.f32 %v434_v53, %v121_v48  ;;  %v1130_v49 = vmov 128.0  }
  0xb0   :  { %v1442_v48 = vpop.permute.xlu2 %713  ;;  %1111 = vrcp.f32 %v1130_v49 }
  0xb1   :  { %v1410_v56 = vadd.f32 %v518_v51, %v490_v52  ;;  %v464_v57 = vadd.f32 %v463_v54, %v435_v55  ;;  %v1444_v51 = vpop.permute.xlu0 %728  ;;  %v1448_v55 = vpop.permute.xlu1 %723 }
  0xb3   :  { %538 = vadd.xlane.f32.xlu0 %v1410_v56 }
  0xb6   :  { %v492_v58 = vpop.f32.mrf.mxu2  ;;  %v436_v61 = vpop.f32.mrf.mxu0 }
  0xb7   :  { %v521_v59 = vpop.f32.mrf.mxu3  ;;  %v493_v60 = vadd.f32 %v492_v58, %v464_v57  ;;  %v465_v62 = vpop.f32.mrf.mxu1  ;;  %v437_v1 = vadd.f32 %v436_v61, %v126_v63 }
  0xb8   :  { %v1112_v50 = vpop.eup %1111  ;;  %v1446_v52 = vpop.permute.xlu2 %733 }
  0xb9   :  { %v1413_v0 = vadd.f32 %v521_v59, %v493_v60  ;;  %v466_v3 = vadd.f32 %v465_v62, %v437_v1  ;;  %v553_v53 = vmul.f32 128.0, %v1112_v50  ;;  %v1450_v57 = vpop.permute.xlu0 %743  ;;  %vm557_vm0 = vweird.f32 %v1112_v50  ;;  %v1454_v61 = vpop.permute.xlu1 %738 }
  0xbb   :  { %540 = vadd.xlane.f32.xlu1 %v1413_v0  ;;  %v554_v54 = vsub.f32 1.0, %v553_v53 }
  0xbd   :  { %v555_v58 = vmul.f32 %v1112_v50, %v554_v54 }
  0xbe   :  { %v494_v4 = vpop.f32.mrf.mxu2  ;;  %v439_v7 = vpop.f32.mrf.mxu0 }
  0xbf   :  { %v523_v5 = vpop.f32.mrf.mxu3  ;;  %v495_v6 = vadd.f32 %v494_v4, %v466_v3  ;;  %v468_v8 = vpop.f32.mrf.mxu1  ;;  %v440_v9 = vadd.f32 %v439_v7, %v131_v2  ;;  %v556_v60 = vadd.f32 %v1112_v50, %v555_v58 }
  0xc0   :  { %v1452_v59 = vpop.permute.xlu2 %748 }
  0xc1   :  { %v1416_v10 = vadd.f32 %v523_v5, %v495_v6  ;;  %v469_v11 = vadd.f32 %v468_v8, %v440_v9  ;;  %v1456_v62 = vsel %vm557_vm0, %v1112_v50, %v556_v60  ;;  %v1458_v63 = vpop.permute.xlu0 %774  ;;  %v1466_v5 = vpop.permute.xlu1 %769 }
  0xc3   :  { %542 = vadd.xlane.f32.xlu2 %v1416_v10 }
  0xc6   :  { %v497_v12 = vpop.f32.mrf.mxu2  ;;  %v441_v15 = vpop.f32.mrf.mxu0 }
  0xc7   :  { %v526_v13 = vpop.f32.mrf.mxu3  ;;  %v498_v14 = vadd.f32 %v497_v12, %v469_v11  ;;  %v470_v17 = vpop.f32.mrf.mxu1  ;;  %v442_v19 = vadd.f32 %v441_v15, %v136_v16 }
  0xc9   :  { %v1419_v18 = vadd.f32 %v526_v13, %v498_v14  ;;  %v471_v20 = vadd.f32 %v470_v17, %v442_v19 }
  0xcb   :  { %544 = vadd.xlane.f32.xlu2 %v1419_v18 }
  0xce   :  { %v499_v21 = vpop.f32.mrf.mxu2  ;;  %v444_v24 = vpop.f32.mrf.mxu0 }
  0xcf   :  { %v528_v22 = vpop.f32.mrf.mxu3  ;;  %v500_v23 = vadd.f32 %v499_v21, %v471_v20  ;;  %v445_v27 = vadd.f32 %v444_v24, %v141_v25  ;;  %v473_v28 = vpop.f32.mrf.mxu1 }
  0xd1   :  { %v1422_v26 = vadd.f32 %v528_v22, %v500_v23  ;;  %v474_v29 = vadd.f32 %v473_v28, %v445_v27 }
  0xd3   :  { %546 = vadd.xlane.f32.xlu0 %v1422_v26 }
  0xd6   :  { %v502_v30 = vpop.f32.mrf.mxu2  ;;  %v446_v33 = vpop.f32.mrf.mxu0 }
  0xd7   :  { %v531_v31 = vpop.f32.mrf.mxu3  ;;  %v503_v32 = vadd.f32 %v502_v30, %v474_v29  ;;  %v447_v36 = vadd.f32 %v446_v33, %v146_v34  ;;  %v475_v37 = vpop.f32.mrf.mxu1  ;;  %v765_v33 = vld [vmem:[%s1570_s4 + $0x30] sm:$0xff] }
  0xd9   :  { %v1425_v35 = vadd.f32 %v531_v31, %v503_v32  ;;  %v476_v38 = vadd.f32 %v475_v37, %v447_v36  ;;  %v764_v31 = vld [vmem:[%s1570_s4 + $0x28] sm:$0xff]  ;;  %v766_v32 = vld [vmem:[%s1570_s4 + $0x38] sm:$0xff] }
  0xdb   :  { %548 = vadd.xlane.f32.xlu1 %v1425_v35 }
  0xde   :  { %v504_v39 = vpop.f32.mrf.mxu2 }
  0xdf   :  { %v505_v40 = vadd.f32 %v504_v39, %v476_v38  ;;  %v533_v41 = vpop.f32.mrf.mxu3 }
  0xe1   :  { %v1428_v42 = vadd.f32 %v533_v41, %v505_v40 }
  0xe3   :  { %550 = vadd.xlane.f32.xlu2 %v1428_v42 }
  0xe7   :  { %789 = vperm.xlu0 %1108, %v763_v43  }
  0xf4   :  { %784 = vperm.xlu1 %1109, %v762_v44  }
  0xfb   :  { %779 = vperm.xlu2 %1110, %v761_v45  }
 0x11e   :  { %v537_v1 = vpop.xlane.xlu2 %536 }
 0x11f   :  { %v559_v2 = vmul.f32 %v1456_v62, %v537_v1 }
 0x121   :  { %v1462_v3 = vsub.f32 %v1407_v46, %v559_v2 }
 0x123   :  { %v575_v4 = vmul.f32 %v1462_v3, %v1462_v3 }
 0x125   :  { %583 = vadd.xlane.f32.xlu0 %v575_v4 }
 0x126   :  { %v539_v6 = vpop.xlane.xlu0 %538 }
 0x127   :  { %v560_v7 = vmul.f32 %v1456_v62, %v539_v6 }
 0x129   :  { %v1470_v8 = vsub.f32 %v1410_v56, %v560_v7 }
 0x12b   :  { %v576_v9 = vmul.f32 %v1470_v8, %v1470_v8 }
 0x12d   :  { %585 = vadd.xlane.f32.xlu1 %v576_v9 }
 0x12e   :  { %v541_v11 = vpop.xlane.xlu1 %540 }
 0x12f   :  { %v561_v46 = vmul.f32 %v1456_v62, %v541_v11 }
 0x131   :  { %v1476_v12 = vsub.f32 %v1413_v0, %v561_v46 }
 0x133   :  { %v577_v13 = vmul.f32 %v1476_v12, %v1476_v12 }
 0x135   :  { %587 = vadd.xlane.f32.xlu2 %v577_v13 }
 0x136   :  { %v543_v14 = vpop.xlane.xlu2 %542 }
 0x137   :  { %v562_v15 = vmul.f32 %v1456_v62, %v543_v14 }
 0x139   :  { %v1482_v56 = vsub.f32 %v1416_v10, %v562_v15 }
 0x13b   :  { %v578_v16 = vmul.f32 %v1482_v56, %v1482_v56 }
 0x13d   :  { %589 = vadd.xlane.f32.xlu0 %v578_v16 }
 0x13e   :  { %v545_v17 = vpop.xlane.xlu2 %544 }
 0x13f   :  { %v563_v19 = vmul.f32 %v1456_v62, %v545_v17 }
 0x141   :  { %v1488_v0 = vsub.f32 %v1419_v18, %v563_v19 }
 0x143   :  { %v579_v20 = vmul.f32 %v1488_v0, %v1488_v0 }
 0x145   :  { %591 = vadd.xlane.f32.xlu1 %v579_v20 }
 0x146   :  { %v547_v21 = vpop.xlane.xlu0 %546 }
 0x147   :  { %v564_v22 = vmul.f32 %v1456_v62, %v547_v21 }
 0x149   :  { %v1494_v10 = vsub.f32 %v1422_v26, %v564_v22 }
 0x14b   :  { %v580_v23 = vmul.f32 %v1494_v10, %v1494_v10 }
 0x14d   :  { %593 = vadd.xlane.f32.xlu2 %v580_v23 }
 0x14e   :  { %v549_v24 = vpop.xlane.xlu1 %548 }
 0x14f   :  { %v565_v25 = vmul.f32 %v1456_v62, %v549_v24 }
 0x151   :  { %v1500_v18 = vsub.f32 %v1425_v35, %v565_v25 }
 0x153   :  { %v581_v27 = vmul.f32 %v1500_v18, %v1500_v18 }
 0x155   :  { %595 = vadd.xlane.f32.xlu0 %v581_v27 }
 0x156   :  { %v551_v28 = vpop.xlane.xlu2 %550 }
 0x157   :  { %v566_v29 = vmul.f32 %v1456_v62, %v551_v28 }
 0x159   :  { %v1506_v26 = vsub.f32 %v1428_v42, %v566_v29  ;;  %v1519_v34 = vpop.permute.xlu0 %789 }
 0x15b   :  { %v582_v30 = vmul.f32 %v1506_v26, %v1506_v26 }
 0x15d   :  { %597 = vadd.xlane.f32.xlu1 %v582_v30 }
 0x15e   :  { %v1524_v39 = vpop.permute.xlu2 %779 }
 0x165   :  { %794 = vperm.xlu2 %1110, %v764_v31  }
 0x166   :  { %v1521_v35 = vpop.permute.xlu1 %784 }
 0x169   :  { %804 = vperm.xlu0 %1108, %v766_v32  }
 0x176   :  { %799 = vperm.xlu1 %1109, %v765_v33  }
 0x198   :  { %v584_v36 = vpop.xlane.xlu0 %583 }
 0x199   :  { %v599_v37 = vmul.f32 %v584_v36, %v1456_v62 }
 0x19b   :  { %v607_v38 = vadd.f32 1e-05, %v599_v37 }
 0x19d   :  { %1113 = vrsqrt.f32 %v607_v38  ;;  %vm621_vm2 = vweird.f32 %v607_v38 }
 0x1a0   :  { %v586_v40 = vpop.xlane.xlu1 %585 }
 0x1a1   :  { %v600_v41 = vmul.f32 %v586_v40, %v1456_v62 }
 0x1a3   :  { %v1114_v42 = vpop.eup %1113  ;;  %v608_v43 = vadd.f32 1e-05, %v600_v41 }
 0x1a4   :  { %v616_v44 = vmul.f32 %v1114_v42, %v607_v38  ;;  %vm622_vm1 = vweird.f32 %v1114_v42 }
 0x1a5   :  { %1115 = vrsqrt.f32 %v608_v43  ;;  %vm623_vm3 = vmor %vm621_vm2, %vm622_vm1  ;;  %vm631_vm5 = vweird.f32 %v608_v43 }
 0x1a6   :  { %v617_v45 = vmul.f32 %v1114_v42, %v616_v44 }
 0x1a8   :  { %v618_v49 = vmul.f32 0.5, %v617_v45  ;;  %v588_v50 = vpop.xlane.xlu2 %587 }
 0x1a9   :  { %v601_v53 = vmul.f32 %v588_v50, %v1456_v62 }
 0x1aa   :  { %v619_v54 = vsub.f32 1.5, %v618_v49 }
 0x1ab   :  { %v1116_v58 = vpop.eup %1115  ;;  %v609_v60 = vadd.f32 1e-05, %v601_v53 }
 0x1ac   :  { %v620_v1 = vmul.f32 %v1114_v42, %v619_v54  ;;  %v626_v2 = vmul.f32 %v1116_v58, %v608_v43  ;;  %vm632_vm4 = vweird.f32 %v1116_v58 }
 0x1ad   :  { %1117 = vrsqrt.f32 %v609_v60  ;;  %vm633_vm6 = vmor %vm631_vm5, %vm632_vm4  ;;  %vm641_vm8 = vweird.f32 %v609_v60 }
 0x1ae   :  { %v624_v4 = vsel %vm623_vm3, %v1114_v42, %v620_v1  ;;  %v627_v6 = vmul.f32 %v1116_v58, %v626_v2 }
 0x1af   :  { %v695_v11 = vmul.f32 %v624_v4, %v1462_v3 }
 0x1b0   :  { %v628_v7 = vmul.f32 0.5, %v627_v6  ;;  %v590_v9 = vpop.xlane.xlu0 %589 }
 0x1b1   :  { %v602_v46 = vmul.f32 %v590_v9, %v1456_v62  ;;  %v751_v19 = vmul.f32 %v1442_v48, %v695_v11 }
 0x1b2   :  { %v629_v13 = vsub.f32 1.5, %v628_v7 }
 0x1b3   :  { %v1118_v14 = vpop.eup %1117  ;;  %v610_v15 = vadd.f32 1e-05, %v602_v46  ;;  %v807_v3 = vadd.f32 %v1466_v5, %v751_v19 }
 0x1b4   :  { %v630_v16 = vmul.f32 %v1116_v58, %v629_v13  ;;  %v636_v17 = vmul.f32 %v1118_v14, %v609_v60  ;;  %vm642_vm7 = vweird.f32 %v1118_v14 }
 0x1b5   :  { %1119 = vrsqrt.f32 %v610_v15  ;;  %v815_v33 = vmax.f32 %v807_v3, 0.0  ;;  %vm643_vm9 = vmor %vm641_vm8, %vm642_vm7  ;;  %vm651_vm11 = vweird.f32 %v610_v15 }
 0x1b6   :  { %v634_v20 = vsel %vm633_vm6, %v1116_v58, %v630_v16  ;;  %v637_v21 = vmul.f32 %v1118_v14, %v636_v17 }
 0x1b7   :  { %v696_v22 = vmul.f32 %v634_v20, %v1470_v8 }
 0x1b8   :  { %v638_v23 = vmul.f32 0.5, %v637_v21  ;;  %v592_v24 = vpop.xlane.xlu1 %591 }
 0x1b9   :  { %v752_v25 = vmul.f32 %v1440_v47, %v696_v22  ;;  %v603_v27 = vmul.f32 %v592_v24, %v1456_v62 }
 0x1ba   :  { %v639_v28 = vsub.f32 1.5, %v638_v23 }
 0x1bb   :  { %v1120_v29 = vpop.eup %1119  ;;  %v808_v30 = vadd.f32 %v1458_v63, %v752_v25  ;;  %v611_v48 = vadd.f32 1e-05, %v603_v27 }
 0x1bc   :  { %v640_v31 = vmul.f32 %v1118_v14, %v639_v28  ;;  %v646_v32 = vmul.f32 %v1120_v29, %v610_v15  ;;  %vm652_vm10 = vweird.f32 %v1120_v29 }
 0x1bd   :  { %v816_v36 = vmax.f32 %v808_v30, 0.0  ;;  %1121 = vrsqrt.f32 %v611_v48  ;;  %vm653_vm12 = vmor %vm651_vm11, %vm652_vm10  ;;  %vm661_vm14 = vweird.f32 %v611_v48 }
 0x1be   :  { %v644_v8 = vsel %vm643_vm9, %v1118_v14, %v640_v31  ;;  %v647_v37 = vmul.f32 %v1120_v29, %v646_v32 }
 0x1bf   :  { %v1086_v5 = vpack.c.bf16 %v816_v36, %v815_v33  ;;  %v697_v40 = vmul.f32 %v644_v8, %v1476_v12 }
 0x1c0   :  { %v648_v38 = vmul.f32 0.5, %v647_v37  ;;  %v594_v47 = vpop.xlane.xlu2 %593 }
 0x1c1   :  { %v604_v41 = vmul.f32 %v594_v47, %v1456_v62  ;;  %1087 = vst [vmem:[%s1571_s5] sm:$0xff] %v1086_v5   ;;  %v753_v49 = vmul.f32 %v1448_v55, %v697_v40 }
 0x1c2   :  { %v649_v63 = vsub.f32 1.5, %v648_v38 }
 0x1c3   :  { %v1122_v42 = vpop.eup %1121  ;;  %v612_v43 = vadd.f32 1e-05, %v604_v41  ;;  %v809_v60 = vadd.f32 %v1524_v39, %v753_v49 }
 0x1c4   :  { %v650_v44 = vmul.f32 %v1120_v29, %v649_v63  ;;  %v656_v45 = vmul.f32 %v1122_v42, %v611_v48  ;;  %vm662_vm13 = vweird.f32 %v1122_v42 }
 0x1c5   :  { %1123 = vrsqrt.f32 %v612_v43  ;;  %v817_v46 = vmax.f32 %v809_v60, 0.0  ;;  %vm663_vm15 = vmor %vm661_vm14, %vm662_vm13  ;;  %vm671_vm1 = vweird.f32 %v612_v43 }
 0x1c6   :  { %v654_v50 = vsel %vm653_vm12, %v1120_v29, %v650_v44  ;;  %v657_v53 = vmul.f32 %v1122_v42, %v656_v45 }
 0x1c7   :  { %v698_v12 = vmul.f32 %v654_v50, %v1482_v56 }
 0x1c8   :  { %v658_v54 = vmul.f32 0.5, %v657_v53  ;;  %v596_v58 = vpop.xlane.xlu0 %595  ;;  %v795_v29 = vpop.permute.xlu2 %794 }
 0x1c9   :  { %v754_v1 = vmul.f32 %v1444_v51, %v698_v12  ;;  %v605_v2 = vmul.f32 %v596_v58, %v1456_v62 }
 0x1ca   :  { %v659_v4 = vsub.f32 1.5, %v658_v54 }
 0x1cb   :  { %v1124_v6 = vpop.eup %1123  ;;  %v810_v7 = vadd.f32 %v1521_v35, %v754_v1  ;;  %v613_v55 = vadd.f32 1e-05, %v605_v2 }
 0x1cc   :  { %v660_v9 = vmul.f32 %v1122_v42, %v659_v4  ;;  %v666_v11 = vmul.f32 %v1124_v6, %v612_v43  ;;  %vm672_vm0 = vweird.f32 %v1124_v6 }
 0x1cd   :  { %v818_v13 = vmax.f32 %v810_v7, 0.0  ;;  %1125 = vrsqrt.f32 %v613_v55  ;;  %vm673_vm2 = vmor %vm671_vm1, %vm672_vm0  ;;  %vm681_vm4 = vweird.f32 %v613_v55 }
 0x1ce   :  { %v664_v56 = vsel %vm663_vm15, %v1122_v42, %v660_v9  ;;  %v667_v14 = vmul.f32 %v1124_v6, %v666_v11 }
 0x1cf   :  { %v1091_v39 = vpack.c.bf16 %v818_v13, %v817_v46  ;;  %v699_v16 = vmul.f32 %v664_v56, %v1488_v0 }
 0x1d0   :  { %v668_v15 = vmul.f32 0.5, %v667_v14  ;;  %v598_v51 = vpop.xlane.xlu1 %597 }
 0x1d1   :  { %1103 = vst [vmem:[%s1571_s5 + $0x8] sm:$0xff] %v1091_v39   ;;  %v606_v35 = vmul.f32 %v598_v51, %v1456_v62  ;;  %v755_v23 = vmul.f32 %v1446_v52, %v699_v16 }
 0x1d2   :  { %v669_v17 = vsub.f32 1.5, %v668_v15 }
 0x1d3   :  { %v1126_v19 = vpop.eup %1125  ;;  %v614_v20 = vadd.f32 1e-05, %v606_v35  ;;  %v811_v62 = vadd.f32 %v1519_v34, %v755_v23 }
 0x1d4   :  { %v676_v21 = vmul.f32 %v1126_v19, %v613_v55  ;;  %v670_v22 = vmul.f32 %v1124_v6, %v669_v17  ;;  %vm682_vm3 = vweird.f32 %v1126_v19 }
 0x1d5   :  { %1127 = vrsqrt.f32 %v614_v20  ;;  %v819_v33 = vmax.f32 %v811_v62, 0.0  ;;  %vm683_vm5 = vmor %vm681_vm4, %vm682_vm3  ;;  %vm691_vm7 = vweird.f32 %v614_v20 }
 0x1d6   :  { %v677_v24 = vmul.f32 %v1126_v19, %v676_v21  ;;  %v674_v3 = vsel %vm673_vm2, %v1124_v6, %v670_v22 }
 0x1d7   :  { %v700_v0 = vmul.f32 %v674_v3, %v1494_v10 }
 0x1d8   :  { %v678_v25 = vmul.f32 0.5, %v677_v24 }
 0x1d9   :  { %v756_v27 = vmul.f32 %v1454_v61, %v700_v0 }
 0x1da   :  { %v679_v28 = vsub.f32 1.5, %v678_v25 }
 0x1db   :  { %v1128_v30 = vpop.eup %1127  ;;  %v812_v48 = vadd.f32 %v795_v29, %v756_v27  ;;  %v805_v43 = vpop.permute.xlu0 %804 }
 0x1dc   :  { %v686_v31 = vmul.f32 %v1128_v30, %v614_v20  ;;  %v680_v32 = vmul.f32 %v1126_v19, %v679_v28  ;;  %vm692_vm6 = vweird.f32 %v1128_v30 }
 0x1dd   :  { %v820_v36 = vmax.f32 %v812_v48, 0.0  ;;  %vm693_vm8 = vmor %vm691_vm7, %vm692_vm6 }
 0x1de   :  { %v687_v52 = vmul.f32 %v1128_v30, %v686_v31  ;;  %v684_v10 = vsel %vm683_vm5, %v1126_v19, %v680_v32 }
 0x1df   :  { %v1096_v8 = vpack.c.bf16 %v820_v36, %v819_v33  ;;  %v701_v34 = vmul.f32 %v684_v10, %v1500_v18 }
 0x1e0   :  { %v688_v37 = vmul.f32 0.5, %v687_v52 }
 0x1e1   :  { %1104 = vst [vmem:[%s1571_s5 + $0x10] sm:$0xff] %v1096_v8   ;;  %v757_v40 = vmul.f32 %v1450_v57, %v701_v34 }
 0x1e2   :  { %v689_v61 = vsub.f32 1.5, %v688_v37 }
 0x1e4   :  { %v690_v5 = vmul.f32 %v1128_v30, %v689_v61 }
 0x1e6   :  { %v694_v38 = vsel %vm693_vm8, %v1128_v30, %v690_v5 }
 0x1e7   :  { %v702_v47 = vmul.f32 %v694_v38, %v1506_v26 }
 0x1e8   :  { %v800_v41 = vpop.permute.xlu1 %799 }
 0x1e9   :  { %v758_v63 = vmul.f32 %v1452_v59, %v702_v47  ;;  %v813_v42 = vadd.f32 %v800_v41, %v757_v40 }
 0x1eb   :  { %v814_v44 = vadd.f32 %v805_v43, %v758_v63  ;;  %v821_v49 = vmax.f32 %v813_v42, 0.0 }
 0x1ed   :  { %v822_v45 = vmax.f32 %v814_v44, 0.0 }
 0x1ef   :  { %v1101_v50 = vpack.c.bf16 %v822_v45, %v821_v49 }
 0x1f1   :  { %1105 = vst [vmem:[%s1571_s5 + $0x18] sm:$0xff] %v1101_v50  }

// kernel: model_forward.9
= control target key start
LH: loop header
LB: loop body
LE: loop exit
PB: predicated region body
PF: predicated region fallthrough
CT: control target
= control target key end

     0   :  { %v1832_v8 = vmov 0   ;;  %vm1004_vm0 = vcmask 261120   ;;  %vm1316_vm8 = vcmask 257024   ;;  %s2545_s0 = inlined_call_operand.vmem [shape: bf16[1024,32], index: 0, kind: input, shape index: {}]   ;;  %s2546_s2 = inlined_call_operand.vmem [shape: f32[64,1], index: 2, kind: input, shape index: {}]   ;;  %s2547_s1 = inlined_call_operand.vmem [shape: bf16[64,1024], index: 1, kind: input, shape index: {}]   ;;  %s2548_s3 = inlined_call_operand.vmem [shape: f32[64,1], index: 3, kind: input, shape index: {}]   ;;  %s2549_s4 = inlined_call_operand.vmem [shape: f32[64,1], index: 4, kind: input, shape index: {}]   ;;  %s2550_s5 = inlined_call_operand.vmem [shape: bf16[64,32], index: 5, kind: output, shape index: {}]  }
   0x1   :  { %v1752_v0 = vld [vmem:[%s2545_s0 + $0x38] sm:$0xff]  ;;  %v1751_v4 = vld [vmem:[%s2545_s0 + $0x30] sm:$0xff]  ;;  %1811 = vset.pattern.permute.xlu0 %v1832_v8  ;;  %1812 = vset.pattern.permute.xlu1 %v1832_v8  ;;  %v1750_v9 = vld [vmem:[%s2545_s0 + $0x28] sm:$0xff] }
   0x2   :  { %v1760_v1 = vld [vmem:[%s2545_s0 + $0x78] sm:$0xff]  ;;  %772 = vmatpush.bf16.msra.mxu0 %v1752_v0  ;;  %v1759_v5 = vld [vmem:[%s2545_s0 + $0x70] sm:$0xff]  ;;  %v1758_v10 = vld [vmem:[%s2545_s0 + $0x68] sm:$0xff]  ;;  %1813 = vset.pattern.permute.xlu2 %v1832_v8 }
   0x3   :  { %v1768_v2 = vld [vmem:[%s2545_s0 + $0xb8] sm:$0xff]  ;;  %801 = vmatpush.bf16.msra.mxu1 %v1760_v1  ;;  %v1767_v6 = vld [vmem:[%s2545_s0 + $0xb0] sm:$0xff]  ;;  %v1766_v11 = vld [vmem:[%s2545_s0 + $0xa8] sm:$0xff] }
   0x4   :  { %v1776_v3 = vld [vmem:[%s2545_s0 + $0xf8] sm:$0xff]  ;;  %830 = vmatpush.bf16.msra.mxu2 %v1768_v2  ;;  %v1775_v7 = vld [vmem:[%s2545_s0 + $0xf0] sm:$0xff]  ;;  %v1774_v12 = vld [vmem:[%s2545_s0 + $0xe8] sm:$0xff] }
   0x5   :  { %859 = vmatpush.bf16.msra.mxu3 %v1776_v3  ;;  %v1749_v13 = vld [vmem:[%s2545_s0 + $0x20] sm:$0xff]  ;;  %v1748_v17 = vld [vmem:[%s2545_s0 + $0x18] sm:$0xff]  ;;  %v1747_v22 = vld [vmem:[%s2545_s0 + $0x10] sm:$0xff] }
   0x6   :  { %773 = vmatpush.bf16.msra.mxu0 %v1751_v4  ;;  %v1757_v14 = vld [vmem:[%s2545_s0 + $0x60] sm:$0xff]  ;;  %v1756_v18 = vld [vmem:[%s2545_s0 + $0x58] sm:$0xff]  ;;  %v1755_v23 = vld [vmem:[%s2545_s0 + $0x50] sm:$0xff] }
   0x7   :  { %802 = vmatpush.bf16.msra.mxu1 %v1759_v5  ;;  %v1765_v15 = vld [vmem:[%s2545_s0 + $0xa0] sm:$0xff]  ;;  %v1764_v19 = vld [vmem:[%s2545_s0 + $0x98] sm:$0xff]  ;;  %v1763_v24 = vld [vmem:[%s2545_s0 + $0x90] sm:$0xff] }
   0x8   :  { %831 = vmatpush.bf16.msra.mxu2 %v1767_v6  ;;  %v1773_v16 = vld [vmem:[%s2545_s0 + $0xe0] sm:$0xff]  ;;  %v1772_v20 = vld [vmem:[%s2545_s0 + $0xd8] sm:$0xff]  ;;  %v1771_v25 = vld [vmem:[%s2545_s0 + $0xd0] sm:$0xff] }
   0x9   :  { %860 = vmatpush.bf16.msra.mxu3 %v1775_v7  ;;  %v180_v21 = vld [vmem:[%s2546_s2] sm:$0xff]  ;;  %v181_v26 = vld [vmem:[%s2546_s2 + $0x8] sm:$0xff]  ;;  %v182_v27 = vld [vmem:[%s2546_s2 + $0x10] sm:$0xff] }
   0xa   :  { %774 = vmatpush.bf16.msra.mxu0 %v1750_v9  ;;  %190 = vperm.xlu0 %1811, %v180_v21   ;;  %v1746_v28 = vld [vmem:[%s2545_s0 + $0x8] sm:$0xff]  ;;  %v1745_v32 = vld [vmem:[%s2545_s0] sm:$0xff]  ;;  %v1800_v44 = vld [vmem:[%s2545_s0 + $0x1b8] sm:$0xff] }
   0xb   :  { %803 = vmatpush.bf16.msra.mxu1 %v1758_v10  ;;  %v1754_v29 = vld [vmem:[%s2545_s0 + $0x48] sm:$0xff]  ;;  %v1753_v33 = vld [vmem:[%s2545_s0 + $0x40] sm:$0xff]  ;;  %200 = vperm.xlu1 %1812, %v182_v27   ;;  %v1784_v45 = vld [vmem:[%s2545_s0 + $0x138] sm:$0xff] }
   0xc   :  { %832 = vmatpush.bf16.msra.mxu2 %v1766_v11  ;;  %v1762_v30 = vld [vmem:[%s2545_s0 + $0x88] sm:$0xff]  ;;  %v1761_v34 = vld [vmem:[%s2545_s0 + $0x80] sm:$0xff]  ;;  %v1808_v50 = vld [vmem:[%s2545_s0 + $0x1f8] sm:$0xff] }
   0xd   :  { %861 = vmatpush.bf16.msra.mxu3 %v1774_v12  ;;  %v1770_v31 = vld [vmem:[%s2545_s0 + $0xc8] sm:$0xff]  ;;  %v1769_v35 = vld [vmem:[%s2545_s0 + $0xc0] sm:$0xff]  ;;  %v1792_v51 = vld [vmem:[%s2545_s0 + $0x178] sm:$0xff] }
   0xe   :  { %775 = vmatpush.bf16.msra.mxu0 %v1749_v13  ;;  %v1331_v36 = vld [vmem:[%s2547_s1] sm:$0xf]  ;;  %v1713_v38 = vld [vmem:[%s2547_s1 + $0x4] sm:$0xf]  ;;  %v1339_v40 = vld [vmem:[%s2547_s1 + $0x8] sm:$0xf] }
   0xf   :  { %804 = vmatpush.bf16.msra.mxu1 %v1757_v14  ;;  %v1717_v37 = vld [vmem:[%s2547_s1 + $0x1c] sm:$0xf0]  ;;  %v1333_v39 = vld [vmem:[%s2547_s1 + $0x20] sm:$0xf0]  ;;  %v1718_v41 = vld [vmem:[%s2547_s1 + $0x24] sm:$0xf0] }
  0x10   :  { %833 = vmatpush.bf16.msra.mxu2 %v1765_v15  ;;  %v1714_v42 = vld [vmem:[%s2547_s1 + $0xc] sm:$0xf]  ;;  %v1332_v46 = vor.u32 %v1717_v37, %v1331_v36  ;;  %v1336_v47 = vor.u32 %v1713_v38, %v1333_v39  ;;  %v1340_v48 = vor.u32 %v1718_v41, %v1339_v40  ;;  %v1799_v52 = vld [vmem:[%s2545_s0 + $0x1b0] sm:$0xff]  ;;  %v183_v56 = vld [vmem:[%s2546_s2 + $0x18] sm:$0xff] }
  0x11   :  { %862 = vmatpush.bf16.msra.mxu3 %v1773_v16  ;;  %v1341_v43 = vld [vmem:[%s2547_s1 + $0x28] sm:$0xf0]  ;;  %v1783_v53 = vld [vmem:[%s2545_s0 + $0x130] sm:$0xff]  ;;  %v1363_v61 = vld [vmem:[%s2547_s1 + $0x40] sm:$0xf] }
  0x12   :  { %776 = vmatpush.bf16.msra.mxu0 %v1748_v17  ;;  %195 = vperm.xlu0 %1811, %v181_v26   ;;  %v1344_v49 = vor.u32 %v1714_v42, %v1341_v43  ;;  %v1807_v54 = vld [vmem:[%s2545_s0 + $0x1f0] sm:$0xff]  ;;  %v1798_v57 = vld [vmem:[%s2545_s0 + $0x1a8] sm:$0xff]  ;;  %v1797_v62 = vld [vmem:[%s2545_s0 + $0x1a0] sm:$0xff] }
  0x13   :  { %805 = vmatpush.bf16.msra.mxu1 %v1756_v18  ;;  %v1791_v55 = vld [vmem:[%s2545_s0 + $0x170] sm:$0xff]  ;;  %v1782_v58 = vld [vmem:[%s2545_s0 + $0x128] sm:$0xff]  ;;  %205 = vperm.xlu1 %1812, %v183_v56   ;;  %v1781_v63 = vld [vmem:[%s2545_s0 + $0x120] sm:$0xff] }
  0x14   :  { %834 = vmatpush.bf16.msra.mxu2 %v1764_v19  ;;  %v1806_v59 = vld [vmem:[%s2545_s0 + $0x1e8] sm:$0xff]  ;;  %v1725_v0 = vld [vmem:[%s2547_s1 + $0x5c] sm:$0xf0]  ;;  %v1721_v1 = vld [vmem:[%s2547_s1 + $0x44] sm:$0xf] }
  0x15   :  { %863 = vmatpush.bf16.msra.mxu3 %v1772_v20  ;;  %v1790_v60 = vld [vmem:[%s2545_s0 + $0x168] sm:$0xff]  ;;  %v1365_v2 = vld [vmem:[%s2547_s1 + $0x60] sm:$0xf0]  ;;  %v1796_v9 = vld [vmem:[%s2545_s0 + $0x198] sm:$0xff]  ;;  %v1364_v11 = vor.u32 %v1725_v0, %v1363_v61 }
  0x16   :  { %777 = vmatpush.bf16.msra.mxu0 %v1747_v22  ;;  %v1371_v3 = vld [vmem:[%s2547_s1 + $0x48] sm:$0xf]  ;;  %v1722_v5 = vld [vmem:[%s2547_s1 + $0x4c] sm:$0xf]  ;;  %v1805_v7 = vld [vmem:[%s2545_s0 + $0x1e0] sm:$0xff]  ;;  %v1368_v12 = vor.u32 %v1721_v1, %v1365_v2 }
  0x17   :  { %806 = vmatpush.bf16.msra.mxu1 %v1755_v23  ;;  %v1726_v4 = vld [vmem:[%s2547_s1 + $0x64] sm:$0xf0]  ;;  %v1373_v6 = vld [vmem:[%s2547_s1 + $0x68] sm:$0xf0]  ;;  %v1789_v8 = vld [vmem:[%s2545_s0 + $0x160] sm:$0xff] }
  0x18   :  { %835 = vmatpush.bf16.msra.mxu2 %v1763_v24  ;;  %v1780_v10 = vld [vmem:[%s2545_s0 + $0x118] sm:$0xff]  ;;  %v1372_v13 = vor.u32 %v1726_v4, %v1371_v3  ;;  %v1376_v14 = vor.u32 %v1722_v5, %v1373_v6  ;;  %v1795_v17 = vld [vmem:[%s2545_s0 + $0x190] sm:$0xff]  ;;  %v1794_v21 = vld [vmem:[%s2545_s0 + $0x188] sm:$0xff] }
  0x19   :  { %864 = vmatpush.bf16.msra.mxu3 %v1771_v25  ;;  %v1804_v15 = vld [vmem:[%s2545_s0 + $0x1d8] sm:$0xff]  ;;  %v1779_v18 = vld [vmem:[%s2545_s0 + $0x110] sm:$0xff]  ;;  %v1778_v22 = vld [vmem:[%s2545_s0 + $0x108] sm:$0xff] }
  0x1a   :  { %778 = vmatpush.bf16.msra.mxu0 %v1746_v28  ;;  %v1788_v16 = vld [vmem:[%s2545_s0 + $0x158] sm:$0xff]  ;;  %v1803_v19 = vld [vmem:[%s2545_s0 + $0x1d0] sm:$0xff]  ;;  %v1802_v24 = vld [vmem:[%s2545_s0 + $0x1c8] sm:$0xff] }
  0x1b   :  { %807 = vmatpush.bf16.msra.mxu1 %v1754_v29  ;;  %v1787_v20 = vld [vmem:[%s2545_s0 + $0x150] sm:$0xff]  ;;  %v1786_v25 = vld [vmem:[%s2545_s0 + $0x148] sm:$0xff]  ;;  %v1395_v26 = vld [vmem:[%s2547_s1 + $0x80] sm:$0xf] }
  0x1c   :  { %836 = vmatpush.bf16.msra.mxu2 %v1762_v30  ;;  %v186_v23 = vld [vmem:[%s2546_s2 + $0x30] sm:$0xff]  ;;  %v1793_v27 = vld [vmem:[%s2545_s0 + $0x180] sm:$0xff]  ;;  %v187_v43 = vld [vmem:[%s2546_s2 + $0x38] sm:$0xff] }
  0x1d   :  { %865 = vmatpush.bf16.msra.mxu3 %v1770_v31  ;;  %220 = vperm.xlu0 %1811, %v186_v23   ;;  %v1777_v28 = vld [vmem:[%s2545_s0 + $0x100] sm:$0xff]  ;;  %v1194_v61 = vld [vmem:[%s2548_s3 + $0x30] sm:$0xff]  ;;  %v1355_v2 = vld [vmem:[%s2547_s1 + $0x18] sm:$0xf] }
  0x1e   :  { %779 = vmatpush.bf16.msra.mxu0 %v1745_v32  ;;  %v1733_v29 = vld [vmem:[%s2547_s1 + $0x9c] sm:$0xf0]  ;;  %v1729_v30 = vld [vmem:[%s2547_s1 + $0x84] sm:$0xf]  ;;  %v1403_v32 = vld [vmem:[%s2547_s1 + $0x88] sm:$0xf]  ;;  %225 = vperm.xlu1 %1812, %v187_v43  }
  0x1f   :  { %808 = vmatpush.bf16.msra.mxu1 %v1753_v33  ;;  %v1397_v31 = vld [vmem:[%s2547_s1 + $0xa0] sm:$0xf0]  ;;  %v1734_v33 = vld [vmem:[%s2547_s1 + $0xa4] sm:$0xf0]  ;;  %v1396_v38 = vor.u32 %v1733_v29, %v1395_v26  ;;  %v1715_v0 = vld [vmem:[%s2547_s1 + $0x14] sm:$0xf] }
  0x20   :  { %837 = vmatpush.bf16.msra.mxu2 %v1761_v34  ;;  %v1730_v34 = vld [vmem:[%s2547_s1 + $0x8c] sm:$0xf]  ;;  %v1801_v36 = vld [vmem:[%s2545_s0 + $0x1c0] sm:$0xff]  ;;  %v1400_v39 = vor.u32 %v1729_v30, %v1397_v31  ;;  %v1404_v40 = vor.u32 %v1734_v33, %v1403_v32  ;;  %v1349_v1 = vld [vmem:[%s2547_s1 + $0x30] sm:$0xf0] }
  0x21   :  { %866 = vmatpush.bf16.msra.mxu3 %v1769_v35  ;;  %780 = vmatmul.bf16.vlgmr.msra.gmra.mxu0 %v1332_v46  ;;  %v1405_v35 = vld [vmem:[%s2547_s1 + $0xa8] sm:$0xf0]  ;;  %v1785_v37 = vld [vmem:[%s2545_s0 + $0x140] sm:$0xff]  ;;  %v1720_v3 = vld [vmem:[%s2547_s1 + $0x34] sm:$0xf0] }
  0x22   :  { %888 = vmatpush.bf16.msrb.mxu0 %v1784_v45  ;;  %809 = vmatmul.bf16.vlgmr.msra.gmra.mxu1 %v1336_v47  ;;  %v1408_v41 = vor.u32 %v1730_v34, %v1405_v35  ;;  %v184_v42 = vld [vmem:[%s2546_s2 + $0x20] sm:$0xff]  ;;  %v185_v45 = vld [vmem:[%s2546_s2 + $0x28] sm:$0xff]  ;;  %v1716_v4 = vld [vmem:[%s2547_s1 + $0x1c] sm:$0xf] }
  0x23   :  { %838 = vmatmul.bf16.vlgmr.msra.gmra.mxu2 %v1340_v48  ;;  %917 = vmatpush.bf16.msrb.mxu1 %v1792_v51  ;;  %v1427_v46 = vld [vmem:[%s2547_s1 + $0xc0] sm:$0xf]  ;;  %v1737_v48 = vld [vmem:[%s2547_s1 + $0xc4] sm:$0xf]  ;;  %v1742_v51 = vld [vmem:[%s2547_s1 + $0xe4] sm:$0xf0] }
  0x24   :  { %946 = vmatpush.bf16.msrb.mxu2 %v1800_v44  ;;  %867 = vmatmul.bf16.vlgmr.msra.gmra.mxu3 %v1344_v49  ;;  %v1189_v44 = vld [vmem:[%s2548_s3 + $0x8] sm:$0xff]  ;;  %v1741_v47 = vld [vmem:[%s2547_s1 + $0xdc] sm:$0xf0]  ;;  %v1429_v49 = vld [vmem:[%s2547_s1 + $0xe0] sm:$0xf0] }
  0x25   :  { %975 = vmatpush.bf16.msrb.mxu3 %v1808_v50  ;;  %210 = vperm.xlu2 %1813, %v184_v42   ;;  %v1435_v50 = vld [vmem:[%s2547_s1 + $0xc8] sm:$0xf]  ;;  %v1357_v5 = vld [vmem:[%s2547_s1 + $0x38] sm:$0xf0]  ;;  %v1735_v26 = vld [vmem:[%s2547_s1 + $0xac] sm:$0xf0] }
  0x26   :  { %889 = vmatpush.bf16.msrb.mxu0 %v1783_v53  ;;  %1203 = vperm.xlu0 %1811, %v1189_v44   ;;  %v1437_v53 = vld [vmem:[%s2547_s1 + $0xe8] sm:$0xf0]  ;;  %v1436_v56 = vor.u32 %v1742_v51, %v1435_v50  ;;  %v1419_v29 = vld [vmem:[%s2547_s1 + $0x98] sm:$0xf]  ;;  %v1732_v31 = vld [vmem:[%s2547_s1 + $0x9c] sm:$0xf] }
  0x27   :  { %918 = vmatpush.bf16.msrb.mxu1 %v1791_v55  ;;  %v1432_v55 = vor.u32 %v1737_v48, %v1429_v49  ;;  %v1736_v30 = vld [vmem:[%s2547_s1 + $0xb4] sm:$0xf0]  ;;  %v1421_v32 = vld [vmem:[%s2547_s1 + $0xb8] sm:$0xf0] }
  0x28   :  { %947 = vmatpush.bf16.msrb.mxu2 %v1799_v52  ;;  %v1738_v52 = vld [vmem:[%s2547_s1 + $0xcc] sm:$0xf]  ;;  %v1420_v35 = vor.u32 %v1736_v30, %v1419_v29  ;;  %v1451_v42 = vld [vmem:[%s2547_s1 + $0xd8] sm:$0xf]  ;;  %v1740_v44 = vld [vmem:[%s2547_s1 + $0xdc] sm:$0xf] }
  0x29   :  { %976 = vmatpush.bf16.msrb.mxu3 %v1807_v54  ;;  %v1428_v54 = vor.u32 %v1741_v47, %v1427_v46  ;;  %v1744_v43 = vld [vmem:[%s2547_s1 + $0xf4] sm:$0xf0] }
  0x2a   :  { %890 = vmatpush.bf16.msrb.mxu0 %v1782_v58  ;;  %v1190_v58 = vld [vmem:[%s2548_s3 + $0x10] sm:$0xff]  ;;  %v1452_v48 = vor.u32 %v1744_v43, %v1451_v42  ;;  %v1195_v50 = vld [vmem:[%s2548_s3 + $0x38] sm:$0xff] }
  0x2b   :  { %919 = vmatpush.bf16.msrb.mxu1 %v1790_v60  ;;  %1208 = vperm.xlu1 %1812, %v1190_v58   ;;  %v1193_v60 = vld [vmem:[%s2548_s3 + $0x28] sm:$0xff] }
  0x2c   :  { %948 = vmatpush.bf16.msrb.mxu2 %v1798_v57  ;;  %v1440_v57 = vor.u32 %v1738_v52, %v1437_v53 }
  0x2d   :  { %977 = vmatpush.bf16.msrb.mxu3 %v1806_v59  ;;  %215 = vperm.xlu2 %1813, %v185_v45   ;;  %v1191_v59 = vld [vmem:[%s2548_s3 + $0x18] sm:$0xff] }
  0x2e   :  { %891 = vmatpush.bf16.msrb.mxu0 %v1781_v63  ;;  %1213 = vperm.xlu0 %1811, %v1191_v59   ;;  %v1719_v63 = vld [vmem:[%s2547_s1 + $0x2c] sm:$0xf0]  ;;  %v1453_v45 = vld [vmem:[%s2547_s1 + $0xf8] sm:$0xf0] }
  0x2f   :  { %920 = vmatpush.bf16.msrb.mxu1 %v1789_v8  ;;  %v1356_v8 = vor.u32 %v1720_v3, %v1355_v2  ;;  %v1456_v49 = vor.u32 %v1740_v44, %v1453_v45 }
  0x30   :  { %949 = vmatpush.bf16.msrb.mxu2 %v1797_v62  ;;  %v1347_v62 = vld [vmem:[%s2547_s1 + $0x10] sm:$0xf] }
  0x31   :  { %978 = vmatpush.bf16.msrb.mxu3 %v1805_v7  ;;  %785 = vmatmul.bf16.gmra.mxu0 %v1364_v11  ;;  %v1348_v6 = vor.u32 %v1719_v63, %v1347_v62  ;;  %v1352_v7 = vor.u32 %v1715_v0, %v1349_v1  ;;  %v1245_v11 = vld [vmem:[%s2549_s4 + $0x8] sm:$0xff] }
  0x32   :  { %892 = vmatpush.bf16.msrb.mxu0 %v1780_v10  ;;  %814 = vmatmul.bf16.gmra.mxu1 %v1368_v12  ;;  %v1244_v10 = vld [vmem:[%s2549_s4] sm:$0xff]  ;;  %v1379_v12 = vld [vmem:[%s2547_s1 + $0x50] sm:$0xf] }
  0x33   :  { %843 = vmatmul.bf16.gmra.mxu2 %v1372_v13  ;;  %921 = vmatpush.bf16.msrb.mxu1 %v1788_v16  ;;  %v1727_v13 = vld [vmem:[%s2547_s1 + $0x6c] sm:$0xf0]  ;;  %v1387_v16 = vld [vmem:[%s2547_s1 + $0x58] sm:$0xf] }
  0x34   :  { %950 = vmatpush.bf16.msrb.mxu2 %v1796_v9  ;;  %872 = vmatmul.bf16.gmra.mxu3 %v1376_v14  ;;  %v1360_v9 = vor.u32 %v1716_v4, %v1357_v5  ;;  %v1723_v14 = vld [vmem:[%s2547_s1 + $0x54] sm:$0xf] }
  0x35   :  { %979 = vmatpush.bf16.msrb.mxu3 %v1804_v15  ;;  %1223 = vperm.xlu1 %1812, %v1193_v60   ;;  %v1381_v15 = vld [vmem:[%s2547_s1 + $0x70] sm:$0xf0] }
  0x36   :  { %893 = vmatpush.bf16.msrb.mxu0 %v1779_v18  ;;  %1228 = vperm.xlu0 %1811, %v1194_v61   ;;  %v1724_v18 = vld [vmem:[%s2547_s1 + $0x5c] sm:$0xf] }
  0x37   :  { %922 = vmatpush.bf16.msrb.mxu1 %v1787_v20  ;;  %v1380_v20 = vor.u32 %v1727_v13, %v1379_v12 }
  0x38   :  { %951 = vmatpush.bf16.msrb.mxu2 %v1795_v17  ;;  %v1728_v17 = vld [vmem:[%s2547_s1 + $0x74] sm:$0xf0] }
  0x39   :  { %980 = vmatpush.bf16.msrb.mxu3 %v1803_v19  ;;  %v1389_v19 = vld [vmem:[%s2547_s1 + $0x78] sm:$0xf0] }
  0x3a   :  { %894 = vmatpush.bf16.msrb.mxu0 %v1778_v22  ;;  %v1388_v22 = vor.u32 %v1728_v17, %v1387_v16  ;;  %v1392_v23 = vor.u32 %v1724_v18, %v1389_v19 }
  0x3b   :  { %923 = vmatpush.bf16.msrb.mxu1 %v1786_v25  ;;  %v1411_v25 = vld [vmem:[%s2547_s1 + $0x90] sm:$0xf] }
  0x3c   :  { %952 = vmatpush.bf16.msrb.mxu2 %v1794_v21  ;;  %v1384_v21 = vor.u32 %v1723_v14, %v1381_v15  ;;  %v1412_v33 = vor.u32 %v1735_v26, %v1411_v25 }
  0x3d   :  { %981 = vmatpush.bf16.msrb.mxu3 %v1802_v24  ;;  %1254 = vperm.xlu1 %1812, %v1244_v10   ;;  %v1188_v24 = vld [vmem:[%s2548_s3] sm:$0xff] }
  0x3e   :  { %895 = vmatpush.bf16.msrb.mxu0 %v1777_v28  ;;  %1259 = vperm.xlu0 %1811, %v1245_v11   ;;  %v1413_v28 = vld [vmem:[%s2547_s1 + $0xb0] sm:$0xf0] }
  0x3f   :  { %924 = vmatpush.bf16.msrb.mxu1 %v1785_v37  ;;  %1198 = vperm.xlu2 %1813, %v1188_v24   ;;  %v1192_v37 = vld [vmem:[%s2548_s3 + $0x20] sm:$0xff] }
  0x40   :  { %953 = vmatpush.bf16.msrb.mxu2 %v1793_v27  ;;  %v1731_v27 = vld [vmem:[%s2547_s1 + $0x94] sm:$0xf] }
  0x41   :  { %982 = vmatpush.bf16.msrb.mxu3 %v1801_v36  ;;  %790 = vmatmul.bf16.gmra.mxu0 %v1396_v38  ;;  %v1416_v34 = vor.u32 %v1731_v27, %v1413_v28  ;;  %v1424_v36 = vor.u32 %v1732_v31, %v1421_v32  ;;  %v1443_v38 = vld [vmem:[%s2547_s1 + $0xd0] sm:$0xf] }
  0x42   :  { %819 = vmatmul.bf16.gmra.mxu1 %v1400_v39  ;;  %v1743_v39 = vld [vmem:[%s2547_s1 + $0xec] sm:$0xf0] }
  0x43   :  { %848 = vmatmul.bf16.gmra.mxu2 %v1404_v40  ;;  %v1739_v40 = vld [vmem:[%s2547_s1 + $0xd4] sm:$0xf]  ;;  %v1444_v46 = vor.u32 %v1743_v39, %v1443_v38 }
  0x44   :  { %877 = vmatmul.bf16.gmra.mxu3 %v1408_v41  ;;  %v1445_v41 = vld [vmem:[%s2547_s1 + $0xf0] sm:$0xf0] }
  0x45   :  { %v1448_v47 = vor.u32 %v1739_v40, %v1445_v41 }
  0x47   :  { %1218 = vperm.xlu2 %1813, %v1192_v37  }
  0x4f   :  { %1233 = vperm.xlu2 %1813, %v1195_v50  }
  0x51   :  { %795 = vmatmul.bf16.gmra.mxu0 %v1428_v54 }
  0x52   :  { %824 = vmatmul.bf16.gmra.mxu1 %v1432_v55 }
  0x53   :  { %853 = vmatmul.bf16.gmra.mxu2 %v1436_v56 }
  0x54   :  { %882 = vmatmul.bf16.gmra.mxu3 %v1440_v57 }
  0x61   :  { %896 = vmatmul.bf16.vlgmr.msrb.gmra.mxu0 %v1348_v6 }
  0x62   :  { %925 = vmatmul.bf16.vlgmr.msrb.gmra.mxu1 %v1352_v7 }
  0x63   :  { %954 = vmatmul.bf16.vlgmr.msrb.gmra.mxu2 %v1356_v8 }
  0x64   :  { %983 = vmatmul.bf16.vlgmr.msrb.gmra.mxu3 %v1360_v9 }
  0x71   :  { %901 = vmatmul.bf16.gmra.mxu0 %v1380_v20 }
  0x72   :  { %930 = vmatmul.bf16.gmra.mxu1 %v1384_v21 }
  0x73   :  { %959 = vmatmul.bf16.gmra.mxu2 %v1388_v22 }
  0x74   :  { %988 = vmatmul.bf16.gmra.mxu3 %v1392_v23 }
  0x7c   :  { %v191_v13 = vpop.permute.xlu0 %190 }
  0x7d   :  { %v201_v28 = vpop.permute.xlu1 %200 }
  0x81   :  { %906 = vmatmul.bf16.gmra.mxu0 %v1412_v33 }
  0x82   :  { %935 = vmatmul.bf16.gmra.mxu1 %v1416_v34 }
  0x83   :  { %964 = vmatmul.bf16.gmra.mxu2 %v1420_v35 }
  0x84   :  { %993 = vmatmul.bf16.gmra.mxu3 %v1424_v36  ;;  %v196_v20 = vpop.permute.xlu0 %195 }
  0x85   :  { %v206_v43 = vpop.permute.xlu1 %205 }
  0x91   :  { %911 = vmatmul.bf16.gmra.mxu0 %v1444_v46 }
  0x92   :  { %940 = vmatmul.bf16.gmra.mxu1 %v1448_v47 }
  0x93   :  { %969 = vmatmul.bf16.gmra.mxu2 %v1452_v48 }
  0x94   :  { %998 = vmatmul.bf16.gmra.mxu3 %v1456_v49 }
  0x9e   :  { %v781_v51 = vpop.f32.mrf.mxu0 }
  0x9f   :  { %v810_v52 = vpop.f32.mrf.mxu1  ;;  %v782_v14 = vadd.f32 %v781_v51, %v191_v13 }
  0xa1   :  { %v811_v17 = vadd.f32 %v810_v52, %v782_v14 }
  0xa6   :  { %v839_v53 = vpop.f32.mrf.mxu2  ;;  %v783_v55 = vpop.f32.mrf.mxu0 }
  0xa7   :  { %v868_v54 = vpop.f32.mrf.mxu3  ;;  %v812_v56 = vpop.f32.mrf.mxu1  ;;  %v840_v21 = vadd.f32 %v839_v53, %v811_v17  ;;  %v784_v22 = vadd.f32 %v783_v55, %v196_v20 }
  0xa9   :  { %v869_v25 = vadd.f32 %v868_v54, %v840_v21  ;;  %v813_v29 = vadd.f32 %v812_v56, %v784_v22  ;;  %v211_v54 = vpop.permute.xlu2 %210 }
  0xae   :  { %v841_v57 = vpop.f32.mrf.mxu2  ;;  %v786_v59 = vpop.f32.mrf.mxu0 }
  0xaf   :  { %v870_v58 = vpop.f32.mrf.mxu3  ;;  %v815_v60 = vpop.f32.mrf.mxu1  ;;  %v842_v31 = vadd.f32 %v841_v57, %v813_v29  ;;  %v787_v32 = vadd.f32 %v786_v59, %v201_v28 }
  0xb1   :  { %v871_v36 = vadd.f32 %v870_v58, %v842_v31  ;;  %v816_v37 = vadd.f32 %v815_v60, %v787_v32  ;;  %v221_v32 = vpop.permute.xlu0 %220 }
  0xb6   :  { %v844_v61 = vpop.f32.mrf.mxu2  ;;  %v788_v63 = vpop.f32.mrf.mxu0 }
  0xb7   :  { %v873_v62 = vpop.f32.mrf.mxu3  ;;  %v817_v0 = vpop.f32.mrf.mxu1  ;;  %v845_v44 = vadd.f32 %v844_v61, %v816_v37  ;;  %v789_v46 = vadd.f32 %v788_v63, %v206_v43 }
  0xb9   :  { %v874_v50 = vadd.f32 %v873_v62, %v845_v44  ;;  %v818_v55 = vadd.f32 %v817_v0, %v789_v46 }
  0xbe   :  { %v846_v1 = vpop.f32.mrf.mxu2  ;;  %v791_v3 = vpop.f32.mrf.mxu0 }
  0xbf   :  { %v2302_v2 = vpop.f32.mrf.mxu3  ;;  %v2304_v4 = vpop.f32.mrf.mxu1  ;;  %v847_v58 = vadd.f32 %v846_v1, %v818_v55  ;;  %v792_v59 = vadd.f32 %v791_v3, %v211_v54 }
  0xc1   :  { %v876_v14 = vadd.f32 %v2302_v2, %v847_v58  ;;  %v821_v62 = vadd.f32 %v2304_v4, %v792_v59 }
  0xc6   :  { %v2306_v5 = vpop.f32.mrf.mxu2  ;;  %v2310_v7 = vpop.f32.mrf.mxu0 }
  0xc7   :  { %v2308_v6 = vpop.f32.mrf.mxu3  ;;  %v2312_v8 = vpop.f32.mrf.mxu1  ;;  %v850_v1 = vadd.f32 %v2306_v5, %v821_v62 }
  0xc9   :  { %v879_v4 = vadd.f32 %v2308_v6, %v850_v1  ;;  %v1246_v1 = vld [vmem:[%s2549_s4 + $0x10] sm:$0xff] }
  0xce   :  { %v2314_v9 = vpop.f32.mrf.mxu2  ;;  %v2318_v11 = vpop.f32.mrf.mxu0 }
  0xcf   :  { %v2316_v10 = vpop.f32.mrf.mxu3  ;;  %v2320_v12 = vpop.f32.mrf.mxu1 }
  0xd6   :  { %v2322_v15 = vpop.f32.mrf.mxu2  ;;  %v2326_v18 = vpop.f32.mrf.mxu0 }
  0xd7   :  { %v2324_v16 = vpop.f32.mrf.mxu3  ;;  %v2328_v19 = vpop.f32.mrf.mxu1 }
  0xde   :  { %v2330_v23 = vpop.f32.mrf.mxu2  ;;  %v897_v26 = vpop.f32.mrf.mxu0 }
  0xdf   :  { %v2332_v24 = vpop.f32.mrf.mxu3  ;;  %v926_v27 = vpop.f32.mrf.mxu1  ;;  %v898_v30 = vadd.f32 %v897_v26, %v869_v25 }
  0xe0   :  { %v216_v25 = vpop.permute.xlu2 %215 }
  0xe1   :  { %v927_v33 = vadd.f32 %v926_v27, %v898_v30  ;;  %v794_v26 = vadd.f32 %v2310_v7, %v216_v25  ;;  %v1247_v25 = vld [vmem:[%s2549_s4 + $0x18] sm:$0xff] }
  0xe6   :  { %v955_v34 = vpop.f32.mrf.mxu2  ;;  %v899_v39 = vpop.f32.mrf.mxu0 }
  0xe7   :  { %v984_v35 = vpop.f32.mrf.mxu3  ;;  %v956_v38 = vadd.f32 %v955_v34, %v927_v33  ;;  %v928_v40 = vpop.f32.mrf.mxu1  ;;  %v900_v42 = vadd.f32 %v899_v39, %v871_v36  ;;  %v823_v33 = vadd.f32 %v2312_v8, %v794_v26  ;;  %v797_v36 = vadd.f32 %v2318_v11, %v221_v32 }
  0xe8   :  { %v2393_v26 = vpop.permute.xlu2 %1198 }
  0xe9   :  { %v2334_v41 = vadd.f32 %v984_v35, %v956_v38  ;;  %v929_v47 = vadd.f32 %v928_v40, %v900_v42  ;;  %v852_v35 = vadd.f32 %v2314_v9, %v823_v33  ;;  %v826_v40 = vadd.f32 %v2320_v12, %v797_v36  ;;  %v226_v9 = vpop.permute.xlu1 %225 }
  0xeb   :  { %v1005_v45 = vsel %vm1004_vm0, %v2334_v41, 0.0  ;;  %v881_v39 = vadd.f32 %v2316_v10, %v852_v35  ;;  %v855_v11 = vadd.f32 %v2322_v15, %v826_v40 }
  0xec   :  { %1006 = vadd.xlane.f32.xlu2 %v1005_v45 }
  0xed   :  { %v884_v12 = vadd.f32 %v2324_v16, %v855_v11 }
  0xee   :  { %v957_v48 = vpop.f32.mrf.mxu2  ;;  %v902_v52 = vpop.f32.mrf.mxu0 }
  0xef   :  { %v986_v49 = vpop.f32.mrf.mxu3  ;;  %v958_v51 = vadd.f32 %v957_v48, %v929_v47  ;;  %v931_v53 = vpop.f32.mrf.mxu1  ;;  %v903_v57 = vadd.f32 %v902_v52, %v874_v50  ;;  %v799_v47 = vadd.f32 %v2326_v18, %v226_v9 }
  0xf1   :  { %v2338_v56 = vadd.f32 %v986_v49, %v958_v51  ;;  %v932_v61 = vadd.f32 %v931_v53, %v903_v57  ;;  %v828_v52 = vadd.f32 %v2328_v19, %v799_v47 }
  0xf3   :  { %v1008_v60 = vsel %vm1004_vm0, %v2338_v56, 0.0  ;;  %v857_v15 = vadd.f32 %v2330_v23, %v828_v52 }
  0xf4   :  { %1009 = vadd.xlane.f32.xlu0 %v1008_v60 }
  0xf5   :  { %v886_v60 = vadd.f32 %v2332_v24, %v857_v15  ;;  %v1248_v24 = vld [vmem:[%s2549_s4 + $0x20] sm:$0xff] }
  0xf6   :  { %v960_v63 = vpop.f32.mrf.mxu2  ;;  %v904_v20 = vpop.f32.mrf.mxu0 }
  0xf7   :  { %v989_v13 = vpop.f32.mrf.mxu3  ;;  %v961_v17 = vadd.f32 %v960_v63, %v932_v61  ;;  %v933_v21 = vpop.f32.mrf.mxu1  ;;  %v905_v22 = vadd.f32 %v904_v20, %v876_v14 }
  0xf9   :  { %v2344_v0 = vadd.f32 %v989_v13, %v961_v17  ;;  %v934_v27 = vadd.f32 %v933_v21, %v905_v22 }
  0xfb   :  { %v1011_v3 = vsel %vm1004_vm0, %v2344_v0, 0.0 }
  0xfc   :  { %1012 = vadd.xlane.f32.xlu1 %v1011_v3  ;;  %v2391_v3 = vpop.permute.xlu0 %1203 }
  0xfe   :  { %v962_v28 = vpop.f32.mrf.mxu2  ;;  %v907_v30 = vpop.f32.mrf.mxu0 }
  0xff   :  { %v991_v2 = vpop.f32.mrf.mxu3  ;;  %v963_v29 = vadd.f32 %v962_v28, %v934_v27  ;;  %v936_v31 = vpop.f32.mrf.mxu1  ;;  %v908_v5 = vadd.f32 %v907_v30, %v879_v4  ;;  %v1833_v27 = vmov 32.0  }
 0x100   :  { %1814 = vrcp.f32 %v1833_v27  ;;  %v2397_v4 = vpop.permute.xlu2 %1218 }
 0x101   :  { %v2352_v34 = vadd.f32 %v991_v2, %v963_v29  ;;  %v937_v37 = vadd.f32 %v936_v31, %v908_v5  ;;  %v2399_v31 = vpop.permute.xlu1 %1208 }
 0x103   :  { %v1014_v7 = vsel %vm1004_vm0, %v2352_v34, 0.0 }
 0x104   :  { %1015 = vadd.xlane.f32.xlu2 %v1014_v7  ;;  %v2395_v2 = vpop.permute.xlu0 %1213 }
 0x106   :  { %v965_v38 = vpop.f32.mrf.mxu2  ;;  %v909_v8 = vpop.f32.mrf.mxu0 }
 0x107   :  { %v994_v6 = vpop.f32.mrf.mxu3  ;;  %v966_v42 = vadd.f32 %v965_v38, %v937_v37  ;;  %v938_v43 = vpop.f32.mrf.mxu1  ;;  %v910_v45 = vadd.f32 %v909_v8, %v881_v39 }
 0x108   :  { %v1815_v28 = vpop.eup %1814  ;;  %v2403_v5 = vpop.permute.xlu2 %1233 }
 0x109   :  { %v2360_v44 = vadd.f32 %v994_v6, %v966_v42  ;;  %v939_v48 = vadd.f32 %v938_v43, %v910_v45  ;;  %v1030_v29 = vmul.f32 32.0, %v1815_v28  ;;  %vm1034_vm1 = vweird.f32 %v1815_v28  ;;  %v2405_v36 = vpop.permute.xlu1 %1223 }
 0x10b   :  { %v1017_v46 = vsel %vm1004_vm0, %v2360_v44, 0.0  ;;  %v1031_v30 = vsub.f32 1.0, %v1030_v29 }
 0x10c   :  { %1018 = vadd.xlane.f32.xlu2 %v1017_v46  ;;  %v2401_v32 = vpop.permute.xlu0 %1228 }
 0x10d   :  { %v1032_v33 = vmul.f32 %v1815_v28, %v1031_v30 }
 0x10e   :  { %v967_v49 = vpop.f32.mrf.mxu2  ;;  %v912_v51 = vpop.f32.mrf.mxu0 }
 0x10f   :  { %v996_v10 = vpop.f32.mrf.mxu3  ;;  %v968_v50 = vadd.f32 %v967_v49, %v939_v48  ;;  %v913_v54 = vadd.f32 %v912_v51, %v884_v12  ;;  %v941_v55 = vpop.f32.mrf.mxu1  ;;  %v1033_v35 = vadd.f32 %v1815_v28, %v1032_v33 }
 0x111   :  { %v2368_v53 = vadd.f32 %v996_v10, %v968_v50  ;;  %v942_v18 = vadd.f32 %v941_v55, %v913_v54  ;;  %v2407_v7 = vsel %vm1034_vm1, %v1815_v28, %v1033_v35  ;;  %v2418_v8 = vpop.permute.xlu1 %1254 }
 0x113   :  { %v1020_v57 = vsel %vm1004_vm0, %v2368_v53, 0.0 }
 0x114   :  { %1021 = vadd.xlane.f32.xlu0 %v1020_v57  ;;  %v2409_v37 = vpop.permute.xlu0 %1259 }
 0x116   :  { %v970_v58 = vpop.f32.mrf.mxu2  ;;  %v914_v61 = vpop.f32.mrf.mxu0 }
 0x117   :  { %v999_v59 = vpop.f32.mrf.mxu3  ;;  %v971_v16 = vadd.f32 %v970_v58, %v942_v18  ;;  %v915_v19 = vadd.f32 %v914_v61, %v886_v60  ;;  %v943_v14 = vpop.f32.mrf.mxu1 }
 0x119   :  { %v2374_v63 = vadd.f32 %v999_v59, %v971_v16  ;;  %v944_v23 = vadd.f32 %v943_v14, %v915_v19 }
 0x11b   :  { %v1023_v13 = vsel %vm1004_vm0, %v2374_v63, 0.0 }
 0x11c   :  { %1024 = vadd.xlane.f32.xlu1 %v1023_v13 }
 0x11e   :  { %v972_v62 = vpop.f32.mrf.mxu2 }
 0x11f   :  { %v973_v17 = vadd.f32 %v972_v62, %v944_v23  ;;  %v1001_v20 = vpop.f32.mrf.mxu3 }
 0x121   :  { %v2378_v21 = vadd.f32 %v1001_v20, %v973_v17  ;;  %v1251_v20 = vld [vmem:[%s2549_s4 + $0x38] sm:$0xff] }
 0x123   :  { %v1026_v22 = vsel %vm1004_vm0, %v2378_v21, 0.0 }
 0x124   :  { %1027 = vadd.xlane.f32.xlu2 %v1026_v22 }
 0x128   :  { %1274 = vperm.xlu0 %1811, %v1248_v24  }
 0x135   :  { %1269 = vperm.xlu1 %1812, %v1247_v25  }
 0x13c   :  { %1264 = vperm.xlu2 %1813, %v1246_v1  }
 0x15f   :  { %v1007_v38 = vpop.xlane.xlu2 %1006 }
 0x160   :  { %v1036_v6 = vmul.f32 %v2407_v7, %v1007_v38 }
 0x162   :  { %v2413_v39 = vsub.f32 %v2334_v41, %v1036_v6 }
 0x164   :  { %v1052_v40 = vmul.f32 %v2413_v39, %v2413_v39 }
 0x166   :  { %v1060_v42 = vsel %vm1004_vm0, %v1052_v40, 0.0 }
 0x167   :  { %v1010_v43 = vpop.xlane.xlu0 %1009  ;;  %1061 = vadd.xlane.f32.xlu0 %v1060_v42 }
 0x168   :  { %v1037_v45 = vmul.f32 %v2407_v7, %v1010_v43 }
 0x16a   :  { %v2422_v9 = vsub.f32 %v2338_v56, %v1037_v45 }
 0x16c   :  { %v1053_v11 = vmul.f32 %v2422_v9, %v2422_v9 }
 0x16e   :  { %v1063_v41 = vsel %vm1004_vm0, %v1053_v11, 0.0 }
 0x16f   :  { %v1013_v46 = vpop.xlane.xlu1 %1012  ;;  %1064 = vadd.xlane.f32.xlu1 %v1063_v41 }
 0x170   :  { %v1038_v47 = vmul.f32 %v2407_v7, %v1013_v46 }
 0x172   :  { %v2429_v48 = vsub.f32 %v2344_v0, %v1038_v47 }
 0x174   :  { %v1054_v49 = vmul.f32 %v2429_v48, %v2429_v48 }
 0x176   :  { %v1066_v10 = vsel %vm1004_vm0, %v1054_v49, 0.0 }
 0x177   :  { %1067 = vadd.xlane.f32.xlu2 %v1066_v10  ;;  %v1016_v56 = vpop.xlane.xlu2 %1015 }
 0x178   :  { %v1039_v12 = vmul.f32 %v2407_v7, %v1016_v56 }
 0x17a   :  { %v2436_v50 = vsub.f32 %v2352_v34, %v1039_v12 }
 0x17c   :  { %v1055_v51 = vmul.f32 %v2436_v50, %v2436_v50 }
 0x17e   :  { %v1069_v52 = vsel %vm1004_vm0, %v1055_v51, 0.0 }
 0x17f   :  { %1070 = vadd.xlane.f32.xlu0 %v1069_v52  ;;  %v1019_v0 = vpop.xlane.xlu2 %1018 }
 0x180   :  { %v1040_v54 = vmul.f32 %v2407_v7, %v1019_v0 }
 0x182   :  { %v2443_v55 = vsub.f32 %v2360_v44, %v1040_v54 }
 0x184   :  { %v1056_v15 = vmul.f32 %v2443_v55, %v2443_v55 }
 0x186   :  { %v1072_v57 = vsel %vm1004_vm0, %v1056_v15, 0.0 }
 0x187   :  { %v1022_v18 = vpop.xlane.xlu0 %1021  ;;  %1073 = vadd.xlane.f32.xlu1 %v1072_v57 }
 0x188   :  { %v1041_v34 = vmul.f32 %v2407_v7, %v1022_v18 }
 0x18a   :  { %v2450_v58 = vsub.f32 %v2368_v53, %v1041_v34 }
 0x18c   :  { %v1057_v59 = vmul.f32 %v2450_v58, %v2450_v58 }
 0x18e   :  { %v1075_v60 = vsel %vm1004_vm0, %v1057_v59, 0.0 }
 0x18f   :  { %v1025_v16 = vpop.xlane.xlu1 %1024  ;;  %1076 = vadd.xlane.f32.xlu2 %v1075_v60 }
 0x190   :  { %v1042_v44 = vmul.f32 %v2407_v7, %v1025_v16 }
 0x192   :  { %v2457_v61 = vsub.f32 %v2374_v63, %v1042_v44  ;;  %v1249_v63 = vld [vmem:[%s2549_s4 + $0x28] sm:$0xff] }
 0x194   :  { %v1058_v19 = vmul.f32 %v2457_v61, %v2457_v61 }
 0x196   :  { %v1078_v13 = vsel %vm1004_vm0, %v1058_v19, 0.0 }
 0x197   :  { %1079 = vadd.xlane.f32.xlu0 %v1078_v13  ;;  %v1028_v53 = vpop.xlane.xlu2 %1027 }
 0x198   :  { %v1043_v14 = vmul.f32 %v2407_v7, %v1028_v53 }
 0x19a   :  { %v2464_v23 = vsub.f32 %v2378_v21, %v1043_v14  ;;  %v1250_v21 = vld [vmem:[%s2549_s4 + $0x30] sm:$0xff]  ;;  %v2478_v22 = vpop.permute.xlu0 %1274 }
 0x19c   :  { %v1059_v62 = vmul.f32 %v2464_v23, %v2464_v23 }
 0x19e   :  { %v1081_v17 = vsel %vm1004_vm0, %v1059_v62, 0.0 }
 0x19f   :  { %1082 = vadd.xlane.f32.xlu1 %v1081_v17  ;;  %v2483_v28 = vpop.permute.xlu2 %1264 }
 0x1a7   :  { %1279 = vperm.xlu2 %1813, %v1249_v63   ;;  %v2480_v24 = vpop.permute.xlu1 %1269 }
 0x1ab   :  { %1289 = vperm.xlu0 %1811, %v1251_v20  }
 0x1b8   :  { %1284 = vperm.xlu1 %1812, %v1250_v21  }
 0x1da   :  { %v1062_v25 = vpop.xlane.xlu0 %1061 }
 0x1db   :  { %v1084_v1 = vmul.f32 %v1062_v25, %v2407_v7 }
 0x1dd   :  { %v1092_v27 = vadd.f32 1e-05, %v1084_v1 }
 0x1df   :  { %1816 = vrsqrt.f32 %v1092_v27  ;;  %vm1106_vm3 = vweird.f32 %v1092_v27 }
 0x1e2   :  { %v1065_v29 = vpop.xlane.xlu1 %1064 }
 0x1e3   :  { %v1085_v30 = vmul.f32 %v1065_v29, %v2407_v7 }
 0x1e5   :  { %v1817_v33 = vpop.eup %1816  ;;  %v1093_v35 = vadd.f32 1e-05, %v1085_v30 }
 0x1e6   :  { %v1101_v38 = vmul.f32 %v1817_v33, %v1092_v27  ;;  %vm1107_vm2 = vweird.f32 %v1817_v33 }
 0x1e7   :  { %1818 = vrsqrt.f32 %v1093_v35  ;;  %vm1108_vm4 = vmor %vm1106_vm3, %vm1107_vm2  ;;  %vm1116_vm6 = vweird.f32 %v1093_v35 }
 0x1e8   :  { %v1102_v6 = vmul.f32 %v1817_v33, %v1101_v38 }
 0x1ea   :  { %v1103_v40 = vmul.f32 0.5, %v1102_v6  ;;  %v1068_v42 = vpop.xlane.xlu2 %1067 }
 0x1eb   :  { %v1086_v43 = vmul.f32 %v1068_v42, %v2407_v7 }
 0x1ec   :  { %v1104_v45 = vsub.f32 1.5, %v1103_v40 }
 0x1ed   :  { %v1819_v11 = vpop.eup %1818  ;;  %v1094_v41 = vadd.f32 1e-05, %v1086_v43 }
 0x1ee   :  { %v1105_v46 = vmul.f32 %v1817_v33, %v1104_v45  ;;  %v1111_v47 = vmul.f32 %v1819_v11, %v1093_v35  ;;  %vm1117_vm5 = vweird.f32 %v1819_v11 }
 0x1ef   :  { %1820 = vrsqrt.f32 %v1094_v41  ;;  %vm1118_vm7 = vmor %vm1116_vm6, %vm1117_vm5  ;;  %vm1126_vm10 = vweird.f32 %v1094_v41 }
 0x1f0   :  { %v1109_v49 = vsel %vm1108_vm4, %v1817_v33, %v1105_v46  ;;  %v1112_v10 = vmul.f32 %v1819_v11, %v1111_v47 }
 0x1f1   :  { %v1180_v56 = vmul.f32 %v1109_v49, %v2413_v39 }
 0x1f2   :  { %v1113_v12 = vmul.f32 0.5, %v1112_v10  ;;  %v1071_v51 = vpop.xlane.xlu0 %1070 }
 0x1f3   :  { %v1236_v52 = vmul.f32 %v2393_v26, %v1180_v56  ;;  %v1087_v0 = vmul.f32 %v1071_v51, %v2407_v7 }
 0x1f4   :  { %v1114_v54 = vsub.f32 1.5, %v1113_v12 }
 0x1f5   :  { %v1821_v15 = vpop.eup %1820  ;;  %v1292_v57 = vadd.f32 %v2418_v8, %v1236_v52  ;;  %v1095_v18 = vadd.f32 1e-05, %v1087_v0 }
 0x1f6   :  { %v1115_v34 = vmul.f32 %v1819_v11, %v1114_v54  ;;  %v1121_v59 = vmul.f32 %v1821_v15, %v1094_v41  ;;  %vm1127_vm9 = vweird.f32 %v1821_v15 }
 0x1f7   :  { %v1300_v60 = vmax.f32 %v1292_v57, 0.0  ;;  %1822 = vrsqrt.f32 %v1095_v18  ;;  %vm1128_vm11 = vmor %vm1126_vm10, %vm1127_vm9  ;;  %vm1136_vm13 = vweird.f32 %v1095_v18 }
 0x1f8   :  { %v1119_v39 = vsel %vm1118_vm7, %v1819_v11, %v1115_v34  ;;  %v1122_v16 = vmul.f32 %v1821_v15, %v1121_v59 }
 0x1f9   :  { %v1308_v44 = vpack.c.bf16 %v1300_v60, %v1300_v60  ;;  %v1181_v26 = vmul.f32 %v1119_v39, %v2422_v9 }
 0x1fa   :  { %v1123_v19 = vmul.f32 0.5, %v1122_v16  ;;  %v1074_v13 = vpop.xlane.xlu1 %1073 }
 0x1fb   :  { %1317 = vst.msk [vmem:[%s2550_s5] sm:$0xf] %vm1316_vm8, %v1308_v44  ;;  %v1237_v8 = vmul.f32 %v2391_v3, %v1181_v26  ;;  %v1088_v53 = vmul.f32 %v1074_v13, %v2407_v7 }
 0x1fc   :  { %v1124_v14 = vsub.f32 1.5, %v1123_v19 }
 0x1fd   :  { %v1823_v62 = vpop.eup %1822  ;;  %v1293_v17 = vadd.f32 %v2409_v37, %v1237_v8  ;;  %v1096_v63 = vadd.f32 1e-05, %v1088_v53 }
 0x1fe   :  { %v1125_v20 = vmul.f32 %v1821_v15, %v1124_v14  ;;  %v1131_v9 = vmul.f32 %v1823_v62, %v1095_v18  ;;  %vm1137_vm12 = vweird.f32 %v1823_v62 }
 0x1ff   :  { %v1301_v21 = vmax.f32 %v1293_v17, 0.0  ;;  %1824 = vrsqrt.f32 %v1096_v63  ;;  %vm1138_vm14 = vmor %vm1136_vm13, %vm1137_vm12  ;;  %vm1146_vm0 = vweird.f32 %v1096_v63 }
 0x200   :  { %v1129_v25 = vsel %vm1128_vm11, %v1821_v15, %v1125_v20  ;;  %v1132_v1 = vmul.f32 %v1823_v62, %v1131_v9 }
 0x201   :  { %v1309_v27 = vpack.c.bf16 %v1301_v21, %v1301_v21  ;;  %v1182_v29 = vmul.f32 %v1129_v25, %v2429_v48 }
 0x202   :  { %v1133_v3 = vmul.f32 0.5, %v1132_v1  ;;  %v1077_v30 = vpop.xlane.xlu2 %1076 }
 0x203   :  { %1318 = vst.msk [vmem:[%s2550_s5 + $0x4] sm:$0xf] %vm1316_vm8, %v1309_v27  ;;  %v1238_v37 = vmul.f32 %v2399_v31, %v1182_v29  ;;  %v1089_v33 = vmul.f32 %v1077_v30, %v2407_v7 }
 0x204   :  { %v1134_v35 = vsub.f32 1.5, %v1133_v3 }
 0x205   :  { %v1825_v38 = vpop.eup %1824  ;;  %v1294_v6 = vadd.f32 %v2483_v28, %v1238_v37  ;;  %v1097_v40 = vadd.f32 1e-05, %v1089_v33 }
 0x206   :  { %v1135_v42 = vmul.f32 %v1823_v62, %v1134_v35  ;;  %v1141_v48 = vmul.f32 %v1825_v38, %v1096_v63  ;;  %vm1147_vm15 = vweird.f32 %v1825_v38 }
 0x207   :  { %v1302_v43 = vmax.f32 %v1294_v6, 0.0  ;;  %1826 = vrsqrt.f32 %v1097_v40  ;;  %vm1148_vm1 = vmor %vm1146_vm0, %vm1147_vm15  ;;  %vm1156_vm3 = vweird.f32 %v1097_v40 }
 0x208   :  { %v1139_v45 = vsel %vm1138_vm14, %v1823_v62, %v1135_v42  ;;  %v1142_v11 = vmul.f32 %v1825_v38, %v1141_v48 }
 0x209   :  { %v1310_v41 = vpack.c.bf16 %v1302_v43, %v1302_v43  ;;  %v1183_v46 = vmul.f32 %v1139_v45, %v2436_v50 }
 0x20a   :  { %v1143_v31 = vmul.f32 0.5, %v1142_v11  ;;  %v1080_v47 = vpop.xlane.xlu0 %1079  ;;  %v1280_v62 = vpop.permute.xlu2 %1279 }
 0x20b   :  { %1319 = vst.msk [vmem:[%s2550_s5 + $0x8] sm:$0xf] %vm1316_vm8, %v1310_v41  ;;  %v1239_v28 = vmul.f32 %v2395_v2, %v1183_v46  ;;  %v1090_v49 = vmul.f32 %v1080_v47, %v2407_v7 }
 0x20c   :  { %v1144_v10 = vsub.f32 1.5, %v1143_v31 }
 0x20d   :  { %v1827_v56 = vpop.eup %1826  ;;  %v1295_v12 = vadd.f32 %v2480_v24, %v1239_v28  ;;  %v1098_v51 = vadd.f32 1e-05, %v1090_v49 }
 0x20e   :  { %v1145_v52 = vmul.f32 %v1825_v38, %v1144_v10  ;;  %v1151_v50 = vmul.f32 %v1827_v56, %v1097_v40  ;;  %vm1157_vm2 = vweird.f32 %v1827_v56 }
 0x20f   :  { %v1303_v0 = vmax.f32 %v1295_v12, 0.0  ;;  %1828 = vrsqrt.f32 %v1098_v51  ;;  %vm1158_vm4 = vmor %vm1156_vm3, %vm1157_vm2  ;;  %vm1166_vm6 = vweird.f32 %v1098_v51 }
 0x210   :  { %v1149_v54 = vsel %vm1148_vm1, %v1825_v38, %v1145_v52  ;;  %v1152_v15 = vmul.f32 %v1827_v56, %v1151_v50 }
 0x211   :  { %v1311_v57 = vpack.c.bf16 %v1303_v0, %v1303_v0  ;;  %v1184_v18 = vmul.f32 %v1149_v54, %v2443_v55 }
 0x212   :  { %v1153_v2 = vmul.f32 0.5, %v1152_v15  ;;  %v1083_v34 = vpop.xlane.xlu1 %1082 }
 0x213   :  { %1320 = vst.msk [vmem:[%s2550_s5 + $0xc] sm:$0xf] %vm1316_vm8, %v1311_v57  ;;  %v1240_v24 = vmul.f32 %v2397_v4, %v1184_v18  ;;  %v1091_v59 = vmul.f32 %v1083_v34, %v2407_v7 }
 0x214   :  { %v1154_v60 = vsub.f32 1.5, %v1153_v2 }
 0x215   :  { %v1829_v39 = vpop.eup %1828  ;;  %v1296_v16 = vadd.f32 %v2478_v22, %v1240_v24  ;;  %v1099_v44 = vadd.f32 1e-05, %v1091_v59 }
 0x216   :  { %v1161_v26 = vmul.f32 %v1829_v39, %v1098_v51  ;;  %v1155_v55 = vmul.f32 %v1827_v56, %v1154_v60  ;;  %vm1167_vm5 = vweird.f32 %v1829_v39 }
 0x217   :  { %v1304_v19 = vmax.f32 %v1296_v16, 0.0  ;;  %1830 = vrsqrt.f32 %v1099_v44  ;;  %vm1168_vm7 = vmor %vm1166_vm6, %vm1167_vm5  ;;  %vm1176_vm10 = vweird.f32 %v1099_v44 }
 0x218   :  { %v1162_v13 = vmul.f32 %v1829_v39, %v1161_v26  ;;  %v1159_v8 = vsel %vm1158_vm4, %v1827_v56, %v1155_v55 }
 0x219   :  { %v1312_v53 = vpack.c.bf16 %v1304_v19, %v1304_v19  ;;  %v1185_v14 = vmul.f32 %v1159_v8, %v2450_v58 }
 0x21a   :  { %v1163_v4 = vmul.f32 0.5, %v1162_v13 }
 0x21b   :  { %1321 = vst.msk [vmem:[%s2550_s5 + $0x10] sm:$0xf] %vm1316_vm8, %v1312_v53  ;;  %v1241_v7 = vmul.f32 %v2405_v36, %v1185_v14 }
 0x21c   :  { %v1164_v22 = vsub.f32 1.5, %v1163_v4 }
 0x21d   :  { %v1831_v17 = vpop.eup %1830  ;;  %v1297_v63 = vadd.f32 %v1280_v62, %v1241_v7  ;;  %v1290_v40 = vpop.permute.xlu0 %1289 }
 0x21e   :  { %v1171_v20 = vmul.f32 %v1831_v17, %v1099_v44  ;;  %v1165_v9 = vmul.f32 %v1829_v39, %v1164_v22  ;;  %vm1177_vm9 = vweird.f32 %v1831_v17 }
 0x21f   :  { %v1305_v21 = vmax.f32 %v1297_v63, 0.0  ;;  %vm1178_vm11 = vmor %vm1176_vm10, %vm1177_vm9 }
 0x220   :  { %v1172_v25 = vmul.f32 %v1831_v17, %v1171_v20  ;;  %v1169_v27 = vsel %vm1168_vm7, %v1829_v39, %v1165_v9 }
 0x221   :  { %v1313_v58 = vpack.c.bf16 %v1305_v21, %v1305_v21  ;;  %v1186_v29 = vmul.f32 %v1169_v27, %v2457_v61 }
 0x222   :  { %v1173_v1 = vmul.f32 0.5, %v1172_v25 }
 0x223   :  { %1322 = vst.msk [vmem:[%s2550_s5 + $0x14] sm:$0xf] %vm1316_vm8, %v1313_v58  ;;  %v1242_v33 = vmul.f32 %v2401_v32, %v1186_v29 }
 0x224   :  { %v1174_v36 = vsub.f32 1.5, %v1173_v1 }
 0x226   :  { %v1175_v3 = vmul.f32 %v1831_v17, %v1174_v36 }
 0x228   :  { %v1179_v30 = vsel %vm1178_vm11, %v1831_v17, %v1175_v3 }
 0x229   :  { %v1187_v37 = vmul.f32 %v1179_v30, %v2464_v23 }
 0x22a   :  { %v1285_v35 = vpop.permute.xlu1 %1284 }
 0x22b   :  { %v1243_v38 = vmul.f32 %v2403_v5, %v1187_v37  ;;  %v1298_v6 = vadd.f32 %v1285_v35, %v1242_v33 }
 0x22d   :  { %v1299_v42 = vadd.f32 %v1290_v40, %v1243_v38  ;;  %v1306_v48 = vmax.f32 %v1298_v6, 0.0 }
 0x22f   :  { %v1307_v43 = vmax.f32 %v1299_v42, 0.0  ;;  %v1314_v45 = vpack.c.bf16 %v1306_v48, %v1306_v48 }
 0x231   :  { %v1315_v11 = vpack.c.bf16 %v1307_v43, %v1307_v43  ;;  %1323 = vst.msk [vmem:[%s2550_s5 + $0x18] sm:$0xf] %vm1316_vm8, %v1314_v45 }
 0x233   :  { %1324 = vst.msk [vmem:[%s2550_s5 + $0x1c] sm:$0xf] %vm1316_vm8, %v1315_v11 }

// kernel: model_forward.10
= control target key start
LH: loop header
LB: loop body
LE: loop exit
PB: predicated region body
PF: predicated region fallthrough
CT: control target
= control target key end

     0   :  { %s2297_s0 = inlined_call_operand.vmem [shape: bf16[2,1024], index: 0, kind: input, shape index: {}]   ;;  %s2298_s1 = inlined_call_operand.vmem [shape: bf16[1024,32], index: 1, kind: input, shape index: {}]   ;;  %s2299_s2 = inlined_call_operand.vmem [shape: f32[1,32], index: 2, kind: input, shape index: {}]   ;;  %s2300_s3 = inlined_call_operand.vmem [shape: bf16[32,80], index: 3, kind: input, shape index: {}]   ;;  %s2301_s4 = inlined_call_operand.vmem [shape: f32[1,80], index: 4, kind: input, shape index: {}]   ;;  %s2302_s5 = inlined_call_operand.vmem [shape: f32[2,16], index: 5, kind: input, shape index: {}]   ;;  %s2303_s6 = inlined_call_operand.vmem [shape: f32[2,16], index: 6, kind: input, shape index: {}]   ;;  %s2304_s7 = inlined_call_operand.vmem [shape: bf16[16,32], index: 7, kind: input, shape index: {}]   ;;  %s2305_s8 = inlined_call_operand.vmem [shape: f32[1,32], index: 8, kind: input, shape index: {}]   ;;  %s2306_s9 = inlined_call_operand.vmem [shape: bf16[32,1024], index: 9, kind: input, shape index: {}]   ;;  %s2307_s10 = inlined_call_operand.vmem [shape: f32[1,1024], index: 10, kind: input, shape index: {}]   ;;  %s2308_s11 = inlined_call_operand.hbm [shape: f32[2,16], index: 11, kind: output, shape index: {0}]   ;;  %s2309_s12 = inlined_call_operand.hbm [shape: f32[2,16], index: 12, kind: output, shape index: {1}]   ;;  %s2310_s13 = inlined_call_operand.hbm [shape: f32[2,16], index: 13, kind: output, shape index: {2}]   ;;  %s2311_s14 = inlined_call_operand.hbm [shape: f32[2,16], index: 14, kind: output, shape index: {3}]   ;;  %s2312_s15 = inlined_call_operand.hbm [shape: f32[2,16], index: 15, kind: output, shape index: {4}]   ;;  %s2313_s16 = inlined_call_operand.vmem [shape: bf16[2,1024], index: 16, kind: output, shape index: {5}]  }
   0x1   :  { %2314 = sst [smem:[#allocation13_spill]] %s2297_s0 }
   0x2   :  { %22 = vsyncpa [#allocation3], 0 }
   0x3   :  { %23 = vsyncpa [#allocation5], 0  ;;  %v1595_v0 = vld [vmem:[%s2298_s1 + $0x38] sm:$0xff]  ;;  %v1594_v4 = vld [vmem:[%s2298_s1 + $0x30] sm:$0xff]  ;;  %s2315_s25 = sld [smem:[#allocation13_spill]] }
   0x4   :  { %v1603_v1 = vld [vmem:[%s2298_s1 + $0x78] sm:$0xff]  ;;  %583 = vmatpush.bf16.msra.mxu0 %v1595_v0  ;;  %v1602_v5 = vld [vmem:[%s2298_s1 + $0x70] sm:$0xff]  ;;  %v1593_v8 = vld [vmem:[%s2298_s1 + $0x28] sm:$0xff] }
   0x5   :  { %v1611_v2 = vld [vmem:[%s2298_s1 + $0xb8] sm:$0xff]  ;;  %596 = vmatpush.bf16.msra.mxu1 %v1603_v1  ;;  %v1610_v6 = vld [vmem:[%s2298_s1 + $0xb0] sm:$0xff]  ;;  %v1601_v9 = vld [vmem:[%s2298_s1 + $0x68] sm:$0xff] }
   0x6   :  { %v1619_v3 = vld [vmem:[%s2298_s1 + $0xf8] sm:$0xff]  ;;  %609 = vmatpush.bf16.msra.mxu2 %v1611_v2  ;;  %v1618_v7 = vld [vmem:[%s2298_s1 + $0xf0] sm:$0xff]  ;;  %v1609_v10 = vld [vmem:[%s2298_s1 + $0xa8] sm:$0xff] }
   0x7   :  { %622 = vmatpush.bf16.msra.mxu3 %v1619_v3  ;;  %v1617_v11 = vld [vmem:[%s2298_s1 + $0xe8] sm:$0xff]  ;;  %v1592_v12 = vld [vmem:[%s2298_s1 + $0x20] sm:$0xff]  ;;  %v1591_v17 = vld [vmem:[%s2298_s1 + $0x18] sm:$0xff] }
   0x8   :  { %584 = vmatpush.bf16.msra.mxu0 %v1594_v4  ;;  %v1600_v13 = vld [vmem:[%s2298_s1 + $0x60] sm:$0xff]  ;;  %v1599_v18 = vld [vmem:[%s2298_s1 + $0x58] sm:$0xff]  ;;  %v1590_v21 = vld [vmem:[%s2298_s1 + $0x10] sm:$0xff] }
   0x9   :  { %597 = vmatpush.bf16.msra.mxu1 %v1602_v5  ;;  %v1608_v14 = vld [vmem:[%s2298_s1 + $0xa0] sm:$0xff]  ;;  %v1607_v19 = vld [vmem:[%s2298_s1 + $0x98] sm:$0xff]  ;;  %v1598_v22 = vld [vmem:[%s2298_s1 + $0x50] sm:$0xff] }
   0xa   :  { %610 = vmatpush.bf16.msra.mxu2 %v1610_v6  ;;  %v1616_v15 = vld [vmem:[%s2298_s1 + $0xe0] sm:$0xff]  ;;  %v1615_v20 = vld [vmem:[%s2298_s1 + $0xd8] sm:$0xff]  ;;  %v1606_v23 = vld [vmem:[%s2298_s1 + $0x90] sm:$0xff] }
   0xb   :  { %623 = vmatpush.bf16.msra.mxu3 %v1618_v7  ;;  %v48_v16 = vld [vmem:[%s2315_s25] sm:$0xff]  ;;  %v1614_v24 = vld [vmem:[%s2298_s1 + $0xd0] sm:$0xff] }
   0xc   :  { %585 = vmatpush.bf16.msra.mxu0 %v1593_v8  ;;  %182 = vst [vmem:[#allocation1] ss:$9 sm:$0xff] %v48_v16 }
   0xd   :  { %598 = vmatpush.bf16.msra.mxu1 %v1601_v9 }
   0xe   :  { %611 = vmatpush.bf16.msra.mxu2 %v1609_v10 }
   0xf   :  { %624 = vmatpush.bf16.msra.mxu3 %v1617_v11 }
  0x10   :  { %586 = vmatpush.bf16.msra.mxu0 %v1592_v12 }
  0x11   :  { %599 = vmatpush.bf16.msra.mxu1 %v1600_v13 }
  0x12   :  { %612 = vmatpush.bf16.msra.mxu2 %v1608_v14 }
  0x13   :  { %625 = vmatpush.bf16.msra.mxu3 %v1616_v15 }
  0x14   :  { %587 = vmatpush.bf16.msra.mxu0 %v1591_v17 }
  0x15   :  { %600 = vmatpush.bf16.msra.mxu1 %v1599_v18 }
  0x16   :  { %613 = vmatpush.bf16.msra.mxu2 %v1607_v19 }
  0x17   :  { %626 = vmatpush.bf16.msra.mxu3 %v1615_v20 }
  0x18   :  { %24 = vsyncpa [#allocation8], 0  ;;  %588 = vmatpush.bf16.msra.mxu0 %v1590_v21  ;;  %v1589_v25 = vld [vmem:[%s2298_s1 + $0x8] sm:$0xff]  ;;  %v1588_v29 = vld [vmem:[%s2298_s1] sm:$0xff]  ;;  %s1836_s24 = smov 32   ;;  %vm709_vm0 = vcmask 261120  }
  0x19   :  { %601 = vmatpush.bf16.msra.mxu1 %v1598_v22  ;;  %v1597_v26 = vld [vmem:[%s2298_s1 + $0x48] sm:$0xff]  ;;  %v1596_v30 = vld [vmem:[%s2298_s1 + $0x40] sm:$0xff]  ;;  %v1627_v33 = vld [vmem:[%s2298_s1 + $0x138] sm:$0xff]  ;;  %vm1102_vm6 = vcmask 123904   ;;  %s1840_s26 = smov 80   ;;  %s1841_s27 = smov 16  }
  0x1a   :  { %614 = vmatpush.bf16.msra.mxu2 %v1606_v23  ;;  %v1605_v27 = vld [vmem:[%s2298_s1 + $0x88] sm:$0xff]  ;;  %v1604_v31 = vld [vmem:[%s2298_s1 + $0x80] sm:$0xff]  ;;  %v1635_v34 = vld [vmem:[%s2298_s1 + $0x178] sm:$0xff]  ;;  %s1842_s30 = smov 64   ;;  %vm854_vm14 = vcmask 130048   ;;  %s1180_s18 = sshll.u32 %s2309_s12, 4  ;;  %s1181_s18 = int_to_ptr.hbm [resolvable:$true] %s1180_s18 }
  0x1b   :  { %627 = vmatpush.bf16.msra.mxu3 %v1614_v24  ;;  %v1613_v28 = vld [vmem:[%s2298_s1 + $0xc8] sm:$0xff]  ;;  %v1612_v32 = vld [vmem:[%s2298_s1 + $0xc0] sm:$0xff]  ;;  %v1643_v35 = vld [vmem:[%s2298_s1 + $0x1b8] sm:$0xff]  ;;  %s1202_s21 = sshll.u32 %s2311_s14, 4  ;;  %s1846_s12 = smov [#allocation6]   ;;  %vm1138_vm15 = vcmask 1040384   ;;  %s1203_s21 = int_to_ptr.hbm [resolvable:$true] %s1202_s21 }
  0x1c   :  { %589 = vmatpush.bf16.msra.mxu0 %v1589_v25  ;;  %v1651_v36 = vld [vmem:[%s2298_s1 + $0x1f8] sm:$0xff]  ;;  %v1626_v37 = vld [vmem:[%s2298_s1 + $0x130] sm:$0xff]  ;;  %v183_v39 = vld [vmem:[#allocation1] sm:$0xff]  ;;  %s1847_s28 = smov [#allocation9]  }
  0x1d   :  { %602 = vmatpush.bf16.msra.mxu1 %v1597_v26  ;;  %v185_v38 = vld [vmem:[#allocation1 + $0x12] sm:$0xff]  ;;  %v186_v41 = vld [vmem:[#allocation1 + $0x1b] sm:$0xff]  ;;  %v184_v42 = vld [vmem:[#allocation1 + $0x9] sm:$0xff] }
  0x1e   :  { %615 = vmatpush.bf16.msra.mxu2 %v1605_v27  ;;  %v1634_v40 = vld [vmem:[%s2298_s1 + $0x170] sm:$0xff]  ;;  %v1625_v45 = vld [vmem:[%s2298_s1 + $0x128] sm:$0xff]  ;;  %v1624_v49 = vld [vmem:[%s2298_s1 + $0x120] sm:$0xff] }
  0x1f   :  { %628 = vmatpush.bf16.msra.mxu3 %v1613_v28  ;;  %v1642_v43 = vld [vmem:[%s2298_s1 + $0x1b0] sm:$0xff]  ;;  %v1633_v46 = vld [vmem:[%s2298_s1 + $0x168] sm:$0xff]  ;;  %v1632_v50 = vld [vmem:[%s2298_s1 + $0x160] sm:$0xff] }
  0x20   :  { %590 = vmatpush.bf16.msra.mxu0 %v1588_v29  ;;  %v1650_v44 = vld [vmem:[%s2298_s1 + $0x1f0] sm:$0xff]  ;;  %v1641_v47 = vld [vmem:[%s2298_s1 + $0x1a8] sm:$0xff]  ;;  %v1640_v51 = vld [vmem:[%s2298_s1 + $0x1a0] sm:$0xff] }
  0x21   :  { %603 = vmatpush.bf16.msra.mxu1 %v1596_v30  ;;  %v1649_v48 = vld [vmem:[%s2298_s1 + $0x1e8] sm:$0xff]  ;;  %v1648_v52 = vld [vmem:[%s2298_s1 + $0x1e0] sm:$0xff]  ;;  %v1623_v53 = vld [vmem:[%s2298_s1 + $0x118] sm:$0xff] }
  0x22   :  { %616 = vmatpush.bf16.msra.mxu2 %v1604_v31  ;;  %v1631_v54 = vld [vmem:[%s2298_s1 + $0x158] sm:$0xff]  ;;  %v1622_v57 = vld [vmem:[%s2298_s1 + $0x110] sm:$0xff]  ;;  %v1621_v61 = vld [vmem:[%s2298_s1 + $0x108] sm:$0xff] }
  0x23   :  { %629 = vmatpush.bf16.msra.mxu3 %v1612_v32  ;;  %591 = vmatmul.bf16.vlgmr.msra.gmra.mxu0 %v183_v39  ;;  %v1639_v55 = vld [vmem:[%s2298_s1 + $0x198] sm:$0xff]  ;;  %v1630_v58 = vld [vmem:[%s2298_s1 + $0x150] sm:$0xff]  ;;  %v1629_v62 = vld [vmem:[%s2298_s1 + $0x148] sm:$0xff] }
  0x24   :  { %635 = vmatpush.bf16.msrb.mxu0 %v1627_v33  ;;  %604 = vmatmul.bf16.vlgmr.msra.gmra.mxu1 %v184_v42  ;;  %v1647_v56 = vld [vmem:[%s2298_s1 + $0x1d8] sm:$0xff]  ;;  %v1638_v59 = vld [vmem:[%s2298_s1 + $0x190] sm:$0xff]  ;;  %v1637_v63 = vld [vmem:[%s2298_s1 + $0x188] sm:$0xff] }
  0x25   :  { %648 = vmatpush.bf16.msrb.mxu1 %v1635_v34  ;;  %617 = vmatmul.bf16.vlgmr.msra.gmra.mxu2 %v185_v38  ;;  %v1646_v60 = vld [vmem:[%s2298_s1 + $0x1d0] sm:$0xff]  ;;  %v1645_v0 = vld [vmem:[%s2298_s1 + $0x1c8] sm:$0xff]  ;;  %v1620_v1 = vld [vmem:[%s2298_s1 + $0x100] sm:$0xff] }
  0x26   :  { %661 = vmatpush.bf16.msrb.mxu2 %v1643_v35  ;;  %630 = vmatmul.bf16.vlgmr.msra.gmra.mxu3 %v186_v41  ;;  %v1628_v2 = vld [vmem:[%s2298_s1 + $0x140] sm:$0xff]  ;;  %v188_v6 = vld [vmem:[#allocation1 + $0x2d] sm:$0xff]  ;;  %v189_v7 = vld [vmem:[#allocation1 + $0x36] sm:$0xff] }
  0x27   :  { %674 = vmatpush.bf16.msrb.mxu3 %v1651_v36  ;;  %v1636_v3 = vld [vmem:[%s2298_s1 + $0x180] sm:$0xff]  ;;  %v1653_v9 = vld [vmem:[%s2300_s3 + $0x8] sm:$0xff] }
  0x28   :  { %636 = vmatpush.bf16.msrb.mxu0 %v1626_v37  ;;  %v1644_v4 = vld [vmem:[%s2298_s1 + $0x1c0] sm:$0xff]  ;;  %s1844_s1 = smov [#allocation7]  }
  0x29   :  { %649 = vmatpush.bf16.msrb.mxu1 %v1634_v40  ;;  %v187_v5 = vld [vmem:[#allocation1 + $0x24] sm:$0xff]  ;;  %v1683_v17 = vld [vmem:[%s2299_s2] ss:$0 sm:$0xff]  ;;  %s1845_s2 = smov [#allocation2]  }
  0x2a   :  { %662 = vmatpush.bf16.msrb.mxu2 %v1642_v43  ;;  %v190_v8 = vld [vmem:[#allocation1 + $0x3f] sm:$0xff] }
  0x2b   :  { %675 = vmatpush.bf16.msrb.mxu3 %v1650_v44  ;;  %v1652_v15 = vld [vmem:[%s2300_s3] sm:$0xff]  ;;  %s1167_s3 = sshll.u32 %s1845_s2, 4  ;;  %s1168_s3 = int_to_ptr.vmem [resolvable:$true] %s1167_s3 }
  0x2c   :  { %637 = vmatpush.bf16.msrb.mxu0 %v1625_v45  ;;  %v767_v18 = vld [vmem:[%s2302_s5] sm:$0x3]  ;;  %s1837_s5 = smov 112  }
  0x2d   :  { %650 = vmatpush.bf16.msrb.mxu1 %v1633_v46  ;;  %769 = vrot.lane.b32.xlu0 %v767_v18, %s1836_s24  ;;  %v1684_v39 = vld [vmem:[%s2301_s4] ss:$0 sm:$0xff]  ;;  %s1169_s24 = sshll.u32 %s2308_s11, 4  ;;  %s1211_s11 = sshll.u32 %s1847_s28, 4  ;;  %s1170_s24 = int_to_ptr.hbm [resolvable:$true] %s1169_s24  ;;  %s1212_s11 = int_to_ptr.vmem [resolvable:$true] %s1211_s11 }
  0x2e   :  { %663 = vmatpush.bf16.msrb.mxu2 %v1641_v47 }
  0x2f   :  { %676 = vmatpush.bf16.msrb.mxu3 %v1649_v48 }
  0x30   :  { %638 = vmatpush.bf16.msrb.mxu0 %v1624_v49 }
  0x31   :  { %651 = vmatpush.bf16.msrb.mxu1 %v1632_v50 }
  0x32   :  { %664 = vmatpush.bf16.msrb.mxu2 %v1640_v51 }
  0x33   :  { %677 = vmatpush.bf16.msrb.mxu3 %v1648_v52 }
  0x34   :  { %639 = vmatpush.bf16.msrb.mxu0 %v1623_v53 }
  0x35   :  { %652 = vmatpush.bf16.msrb.mxu1 %v1631_v54 }
  0x36   :  { %665 = vmatpush.bf16.msrb.mxu2 %v1639_v55  ;;  %v778_v55 = vld [vmem:[%s2303_s6] sm:$0x3]  ;;  %s1839_s6 = smov 96  }
  0x37   :  { %678 = vmatpush.bf16.msrb.mxu3 %v1647_v56 }
  0x38   :  { %640 = vmatpush.bf16.msrb.mxu0 %v1622_v57 }
  0x39   :  { %653 = vmatpush.bf16.msrb.mxu1 %v1630_v58  ;;  %v781_v58 = vsub.f32 0.0, %v778_v55 }
  0x3a   :  { %666 = vmatpush.bf16.msrb.mxu2 %v1638_v59 }
  0x3b   :  { %679 = vmatpush.bf16.msrb.mxu3 %v1646_v60 }
  0x3c   :  { %641 = vmatpush.bf16.msrb.mxu0 %v1621_v61 }
  0x3d   :  { %654 = vmatpush.bf16.msrb.mxu1 %v1629_v62  ;;  %v782_v62 = vadd.f32 1.0, %v781_v58 }
  0x3e   :  { %667 = vmatpush.bf16.msrb.mxu2 %v1637_v63 }
  0x3f   :  { %680 = vmatpush.bf16.msrb.mxu3 %v1645_v0 }
  0x40   :  { %642 = vmatpush.bf16.msrb.mxu0 %v1620_v1  ;;  %v1838_v1 = vmov 0.5  }
  0x41   :  { %655 = vmatpush.bf16.msrb.mxu1 %v1628_v2 }
  0x42   :  { %668 = vmatpush.bf16.msrb.mxu2 %v1636_v3 }
  0x43   :  { %681 = vmatpush.bf16.msrb.mxu3 %v1644_v4  ;;  %643 = vmatmul.bf16.vlgmr.msrb.gmra.mxu0 %v187_v5 }
  0x44   :  { %656 = vmatmul.bf16.vlgmr.msrb.gmra.mxu1 %v188_v6  ;;  %719 = vmatpush.bf16.msra.mxu0 %v1653_v9 }
  0x45   :  { %669 = vmatmul.bf16.vlgmr.msrb.gmra.mxu2 %v189_v7 }
  0x46   :  { %682 = vmatmul.bf16.vlgmr.msrb.gmra.mxu3 %v190_v8 }
  0x48   :  { %720 = vmatpush.bf16.msra.mxu0 %v1652_v15 }
  0x9f   :  { %v770_v52 = vpop.permute.xlu0 %769 }
  0xa0   :  { %v592_v10 = vpop.f32.mrf.mxu0 }
  0xa1   :  { %v605_v11 = vpop.f32.mrf.mxu1  ;;  %v593_v21 = vadd.f32 %v1683_v17, %v592_v10 }
  0xa3   :  { %v606_v22 = vadd.f32 %v605_v11, %v593_v21 }
  0xa8   :  { %v618_v12 = vpop.f32.mrf.mxu2  ;;  %v594_v14 = vpop.f32.mrf.mxu0 }
  0xa9   :  { %v631_v13 = vpop.f32.mrf.mxu3  ;;  %v607_v16 = vpop.f32.mrf.mxu1  ;;  %v619_v23 = vadd.f32 %v618_v12, %v606_v22  ;;  %v785_v12 = vmul.f32 -0.5, %v781_v58 }
  0xab   :  { %v632_v24 = vadd.f32 %v631_v13, %v619_v23  ;;  %v786_v21 = vadd.f32 1.0, %v785_v12  ;;  %v1558_v12 = vld [vmem:[%s2306_s9 + $0x48] sm:$0xf] }
  0xb0   :  { %v620_v19 = vpop.f32.mrf.mxu2 }
  0xb1   :  { %v633_v20 = vpop.f32.mrf.mxu3 }
  0xc0   :  { %v644_v25 = vpop.f32.mrf.mxu0 }
  0xc1   :  { %v657_v26 = vpop.f32.mrf.mxu1  ;;  %v645_v27 = vadd.f32 %v644_v25, %v632_v24  ;;  %v788_v24 = vand.u32 2147483647, %v781_v58 }
  0xc3   :  { %v658_v28 = vadd.f32 %v657_v26, %v645_v27  ;;  %vm789_vm7 = vcmp.lt.f32.partialorder %v788_v24, 0.0004427343 }
  0xc8   :  { %v670_v29 = vpop.f32.mrf.mxu2  ;;  %v646_v32 = vpop.f32.mrf.mxu0 }
  0xc9   :  { %v683_v30 = vpop.f32.mrf.mxu3  ;;  %v671_v31 = vadd.f32 %v670_v29, %v658_v28  ;;  %v659_v33 = vpop.f32.mrf.mxu1  ;;  %v787_v28 = vmul.f32 %v786_v21, %v781_v58  ;;  %v1655_v21 = vld [vmem:[%s2306_s9 + $0x4] sm:$0xf] }
  0xcb   :  { %v684_v34 = vadd.f32 %v683_v30, %v671_v31 }
  0xcd   :  { %v687_v35 = vmax.f32 %v684_v34, 0.0 }
  0xcf   :  { %v688_v36 = vpack.c.bf16 %v687_v35, %v687_v35 }
  0xd0   :  { %v672_v37 = vpop.f32.mrf.mxu2 }
  0xd1   :  { %v685_v38 = vpop.f32.mrf.mxu3  ;;  %1508 = vmatmul.msk.bf16.vlgmr.msra.gmra.mxu0 %vm709_vm0, %v688_v36 }
 0x14e   :  { %v722_v40 = vpop.f32.mrf.mxu0 }
 0x14f   :  { %v2144_v41 = vadd.f32 %v1684_v39, %v722_v40 }
 0x151   :  { %v1509_v42 = vmul.f32 -1.442695, %v2144_v41  ;;  %1105 = vrot.lane.b32.xlu2 %v2144_v41, %s1837_s5  ;;  %v747_v43 = vmul.f32 0.5, %v2144_v41  ;;  %v750_v44 = vmax.f32 %v2144_v41, 0.0 }
 0x153   :  { %1686 = vpow2.f32 %v1509_v42  ;;  %v748_v45 = vmul.f32 1.442695, %v747_v43  ;;  %v752_v46 = vand.u32 2147483647, %v750_v44  ;;  %v751_v11 = vmax.f32 %v750_v44, 0.0 }
 0x155   :  { %1688 = vpow2.f32 %v748_v45  ;;  %v753_v47 = vsub.f32 0.0, %v752_v46 }
 0x156   :  { %v724_v48 = vpop.f32.mrf.mxu0 }
 0x157   :  { %v754_v49 = vmul.f32 1.442695, %v753_v47 }
 0x159   :  { %v1687_v50 = vpop.eup %1686  ;;  %1690 = vpow2.f32 %v754_v49 }
 0x15a   :  { %v729_v51 = vadd.f32 1.0, %v1687_v50 }
 0x15b   :  { %v1689_v53 = vpop.eup %1688 }
 0x15c   :  { %1692 = vrcp.f32 %v729_v51  ;;  %v772_v54 = vmul.f32 %v1689_v53, %v770_v52  ;;  %v741_v2 = vand.u32 2147483648, %v729_v51  ;;  %v739_v5 = vand.u32 2147483647, %v729_v51 }
 0x15d   :  { %vm735_vm2 = vweird.f32 %v729_v51 }
 0x15e   :  { %774 = vrot.lane.b32.xlu0 %v772_v54, %s1837_s5  ;;  %v742_v10 = vor.u32 1.1754944e-38, %v741_v2  ;;  %vm740_vm5 = vcmp.eq.f32.partialorder %v739_v5, 8.507059e+37 }
 0x15f   :  { %v1691_v56 = vpop.eup %1690 }
 0x160   :  { %v756_v57 = vadd.f32 1.0, %v1691_v56  ;;  %v759_v59 = vmul.f32 -0.5, %v1691_v56  ;;  %v762_v3 = vand.u32 2147483647, %v1691_v56 }
 0x162   :  { %v1693_v60 = vpop.eup %1692  ;;  %1694 = vlog2.f32 %v756_v57  ;;  %v760_v0 = vadd.f32 1.0, %v759_v59  ;;  %vm763_vm4 = vcmp.lt.f32.partialorder %v762_v3, 0.0004427343  ;;  %v1654_v3 = vld [vmem:[%s2304_s7] sm:$0xff]  ;;  %s1200_s7 = sshll.u32 %s1844_s1, 4  ;;  %s1201_s7 = int_to_ptr.vmem [resolvable:$true] %s1200_s7 }
 0x163   :  { %v731_v61 = vmul.f32 %v1693_v60, %v729_v51  ;;  %1696 = vrcp.f32 %v1838_v1  ;;  %vm736_vm1 = vweird.f32 %v1693_v60  ;;  %865 = vmatpush.bf16.msra.mxu1 %v1654_v3 }
 0x164   :  { %1698 = vlog2.f32 %v782_v62  ;;  %v761_v9 = vmul.f32 %v1691_v56, %v760_v0  ;;  %vm737_vm3 = vmor %vm735_vm2, %vm736_vm1  ;;  %vm1146_vm1 = vcmask 1041408   ;;  %vm1152_vm2 = vcmask 1046534  }
 0x165   :  { %v732_v63 = vsub.f32 1.0, %v731_v61  ;;  %1700 = vlog2.f32 %v778_v55 }
 0x166   :  { %1110 = vrot.lane.b32.xlu0 %v1689_v53, %s1839_s6  ;;  %s1191_s6 = sshll.u32 %s2310_s13, 4  ;;  %s1192_s6 = int_to_ptr.hbm [resolvable:$true] %s1191_s6 }
 0x167   :  { %v733_v4 = vmul.f32 %v1693_v60, %v732_v63 }
 0x168   :  { %v1695_v6 = vpop.eup %1694 }
 0x169   :  { %v734_v7 = vadd.f32 %v1693_v60, %v733_v4  ;;  %v758_v8 = vmul.f32 0.6931472, %v1695_v6  ;;  %v1697_v13 = vpop.eup %1696 }
 0x16a   :  { %v1699_v19 = vpop.eup %1698  ;;  %v807_v22 = vmul.f32 0.5, %v1697_v13  ;;  %vm811_vm8 = vweird.f32 %v1697_v13 }
 0x16b   :  { %v738_v14 = vsel %vm737_vm3, %v1693_v60, %v734_v7  ;;  %v764_v15 = vsel %vm763_vm4, %v761_v9, %v758_v8  ;;  %v1701_v26 = vpop.eup %1700  ;;  %v784_v27 = vmul.f32 0.6931472, %v1699_v19  ;;  %v1550_v8 = vld [vmem:[%s2306_s9 + $0x40] sm:$0xf]  ;;  %vm1148_vm3 = vcmask 1044484  }
 0x16c   :  { %v743_v16 = vsel %vm740_vm5, %v742_v10, %v738_v14  ;;  %v765_v17 = vadd.f32 %v764_v15, %v751_v11  ;;  %v808_v29 = vsub.f32 1.0, %v807_v22  ;;  %v780_v32 = vmul.f32 0.6931472, %v1701_v26  ;;  %v1667_v9 = vld [vmem:[%s2306_s9 + $0x5c] sm:$0xf0] }
 0x16d   :  { %v745_v18 = vmax.f32 %v743_v16, 0.0001  ;;  %v790_v33 = vsel %vm789_vm7, %v787_v28, %v784_v27  ;;  %v1551_v10 = vor.u32 %v1667_v9, %v1550_v8  ;;  %v1552_v11 = vld [vmem:[%s2306_s9 + $0x60] sm:$0xf0]  ;;  %v1664_v16 = vld [vmem:[%s2306_s9 + $0x4c] sm:$0xf] }
 0x16e   :  { %v2155_v20 = vadd.f32 0.1, %v765_v17  ;;  %v809_v34 = vmul.f32 %v1697_v13, %v808_v29  ;;  %v791_v37 = vsub.f32 %v780_v32, %v790_v33  ;;  %v1560_v17 = vld [vmem:[%s2306_s9 + $0x68] sm:$0xf0]  ;;  %v1520_v22 = vld [vmem:[%s2306_s9 + $0x20] sm:$0xf0] }
 0x16f   :  { %v746_v23 = vmin.f32 %v745_v18, 0.9999  ;;  %v1518_v18 = vld [vmem:[%s2306_s9] sm:$0xf]  ;;  %996 = vmatpush.bf16.msra.mxu2 %v1551_v10  ;;  %v1563_v19 = vor.u32 %v1664_v16, %v1560_v17  ;;  %v1523_v24 = vor.u32 %v1655_v21, %v1520_v22  ;;  %v1526_v27 = vld [vmem:[%s2306_s9 + $0x8] sm:$0xf] }
 0x170   :  { %1115 = vrot.lane.b32.xlu2 %v2155_v20, %s1840_s26  ;;  %v810_v40 = vadd.f32 %v1697_v13, %v809_v34  ;;  %v1660_v28 = vld [vmem:[%s2306_s9 + $0x24] sm:$0xf0]  ;;  %v1656_v29 = vld [vmem:[%s2306_s9 + $0xc] sm:$0xf]  ;;  %v1566_v33 = vld [vmem:[%s2306_s9 + $0x50] sm:$0xf] }
 0x171   :  { %1702 = vlog2.f32 %v746_v23  ;;  %v795_v25 = vsub.f32 0.0, %v746_v23  ;;  %1103 = vst.msk [vmem:[#allocation2] sm:$0x3] %vm1102_vm6, %v746_v23  ;;  %1035 = vmatpush.bf16.msrb.mxu1 %v1563_v19  ;;  %v1669_v34 = vld [vmem:[%s2306_s9 + $0x6c] sm:$0xf0]  ;;  %vm1156_vm4 = vcmask 1045508  }
 0x172   :  { %v812_v47 = vsel %vm811_vm8, %v1697_v13, %v810_v40  ;;  %v1668_v13 = vld [vmem:[%s2306_s9 + $0x64] sm:$0xf0]  ;;  %1172 = dma.vmem_to_hbm [thread:$0]  %s1168_s3, 32, %s1170_s24, [#allocation3]   ;;  %vm1158_vm5 = vcmask 1043456  }
 0x173   :  { %v796_v30 = vadd.f32 1.0, %v795_v25  ;;  %v799_v31 = vmul.f32 -0.5, %v795_v25  ;;  %v802_v39 = vand.u32 2147483647, %v795_v25  ;;  %v1559_v15 = vor.u32 %v1668_v13, %v1558_v12 }
 0x175   :  { %1704 = vlog2.f32 %v796_v30  ;;  %v800_v36 = vadd.f32 1.0, %v799_v31  ;;  %vm803_vm9 = vcmp.lt.f32.partialorder %v802_v39, 0.0004427343  ;;  %1022 = vmatpush.bf16.msrb.mxu0 %v1559_v15  ;;  %v1527_v30 = vor.u32 %v1660_v28, %v1526_v27  ;;  %v1528_v31 = vld [vmem:[%s2306_s9 + $0x28] sm:$0xf0] }
 0x176   :  { %v1531_v32 = vor.u32 %v1656_v29, %v1528_v31  ;;  %v1670_v39 = vld [vmem:[%s2306_s9 + $0x74] sm:$0xf0] }
 0x177   :  { %v1703_v35 = vpop.eup %1702  ;;  %v801_v44 = vmul.f32 %v800_v36, %v795_v25  ;;  %v1567_v36 = vor.u32 %v1669_v34, %v1566_v33 }
 0x178   :  { %v793_v38 = vmul.f32 0.6931472, %v1703_v35  ;;  %1036 = vmatpush.bf16.msrb.mxu1 %v1531_v32  ;;  %v1665_v35 = vld [vmem:[%s2306_s9 + $0x54] sm:$0xf] }
 0x179   :  { %1023 = vmatpush.bf16.msrb.mxu0 %v1527_v30 }
 0x17a   :  { %v794_v45 = vadd.f32 %v793_v38, %v791_v37  ;;  %v1568_v37 = vld [vmem:[%s2306_s9 + $0x70] sm:$0xf0]  ;;  %v1574_v38 = vld [vmem:[%s2306_s9 + $0x58] sm:$0xf] }
 0x17b   :  { %v1705_v42 = vpop.eup %1704  ;;  %v1571_v40 = vor.u32 %v1665_v35, %v1568_v37 }
 0x17c   :  { %v798_v43 = vmul.f32 0.6931472, %v1705_v42  ;;  %v1575_v42 = vor.u32 %v1670_v39, %v1574_v38 }
 0x17e   :  { %v804_v46 = vsel %vm803_vm9, %v801_v44, %v798_v43  ;;  %v1666_v43 = vld [vmem:[%s2306_s9 + $0x5c] sm:$0xf]  ;;  %1074 = vmatpush.bf16.msra.mxu0 %v1575_v42 }
 0x17f   :  { %v805_v48 = vsub.f32 %v794_v45, %v804_v46  ;;  %v1576_v44 = vld [vmem:[%s2306_s9 + $0x78] sm:$0xf0]  ;;  %v1534_v45 = vld [vmem:[%s2306_s9 + $0x10] sm:$0xf] }
 0x180   :  { %v1579_v46 = vor.u32 %v1666_v43, %v1576_v44 }
 0x181   :  { %v813_v49 = vmul.f32 %v812_v47, %v805_v48  ;;  %v1661_v47 = vld [vmem:[%s2306_s9 + $0x2c] sm:$0xf0]  ;;  %v1657_v48 = vld [vmem:[%s2306_s9 + $0x14] sm:$0xf] }
 0x183   :  { %v1510_v50 = vmul.f32 -1.442695, %v813_v49  ;;  %v1536_v49 = vld [vmem:[%s2306_s9 + $0x30] sm:$0xf0] }
 0x185   :  { %1706 = vpow2.f32 %v1510_v50  ;;  %v1535_v50 = vor.u32 %v1661_v47, %v1534_v45 }
 0x18b   :  { %v1707_v51 = vpop.eup %1706 }
 0x18c   :  { %v817_v52 = vadd.f32 1.0, %v1707_v51  ;;  %v1539_v51 = vor.u32 %v1657_v48, %v1536_v49 }
 0x18e   :  { %1708 = vrcp.f32 %v817_v52  ;;  %v829_v56 = vand.u32 2147483648, %v817_v52  ;;  %v827_v58 = vand.u32 2147483647, %v817_v52  ;;  %vm823_vm11 = vweird.f32 %v817_v52 }
 0x190   :  { %v830_v60 = vor.u32 1.1754944e-38, %v829_v56  ;;  %vm828_vm13 = vcmp.eq.f32.partialorder %v827_v58, 8.507059e+37  ;;  %v1544_v56 = vld [vmem:[%s2306_s9 + $0x38] sm:$0xf0]  ;;  %v1685_v58 = vld [vmem:[%s2305_s8] ss:$0 sm:$0xff] }
 0x191   :  { %s1843_s8 = smov [#allocation4]  }
 0x194   :  { %v1709_v53 = vpop.eup %1708 }
 0x195   :  { %v819_v54 = vmul.f32 %v1709_v53, %v817_v52  ;;  %vm824_vm10 = vweird.f32 %v1709_v53  ;;  %v1542_v52 = vld [vmem:[%s2306_s9 + $0x18] sm:$0xf] }
 0x196   :  { %vm825_vm12 = vmor %vm823_vm11, %vm824_vm10 }
 0x197   :  { %v820_v55 = vsub.f32 1.0, %v819_v54  ;;  %v1658_v54 = vld [vmem:[%s2306_s9 + $0x1c] sm:$0xf] }
 0x199   :  { %v821_v57 = vmul.f32 %v1709_v53, %v820_v55 }
 0x19b   :  { %v822_v59 = vadd.f32 %v1709_v53, %v821_v57  ;;  %v1547_v57 = vor.u32 %v1658_v54, %v1544_v56 }
 0x19d   :  { %v826_v61 = vsel %vm825_vm12, %v1709_v53, %v822_v59  ;;  %v1662_v53 = vld [vmem:[%s2306_s9 + $0x34] sm:$0xf0] }
 0x19e   :  { %v831_v62 = vsel %vm828_vm13, %v830_v60, %v826_v61  ;;  %v1543_v55 = vor.u32 %v1662_v53, %v1542_v52 }
 0x19f   :  { %834 = vrot.lane.b32.xlu1 %v831_v62, %s1841_s27  ;;  %s1213_s27 = sshll.u32 %s2312_s15, 4  ;;  %s1214_s27 = int_to_ptr.hbm [resolvable:$true] %s1213_s27 }
 0x1a0   :  { %1075 = vmatpush.bf16.msra.mxu0 %v1543_v55 }
 0x1ab   :  { %v1106_v63 = vpop.permute.xlu2 %1105 }
 0x1ac   :  { %1108 = vst.msk [vmem:[#allocation4] sm:$0x3] %vm1102_vm6, %v1106_v63 }
 0x1ca   :  { %v1116_v0 = vpop.permute.xlu2 %1115 }
 0x1cb   :  { %1118 = vst.msk [vmem:[#allocation7] sm:$0x3] %vm1102_vm6, %v1116_v0 }
 0x1cc   :  { %1205 = dma.vmem_to_hbm [thread:$0]  %s1201_s7, 32, %s1203_s21, [#allocation8]  }
 0x1d0   :  { %v775_v1 = vpop.permute.xlu0 %774 }
 0x1d1   :  { %v777_v4 = vadd.f32 %v775_v1, %v2144_v41  ;;  %v1663_v41 = vld [vmem:[%s2306_s9 + $0x44] sm:$0xf] }
 0x1d2   :  { %v1555_v14 = vor.u32 %v1663_v41, %v1552_v11 }
 0x1d4   :  { %1009 = vmatpush.bf16.msra.mxu3 %v1555_v14 }
 0x1d8   :  { %v1111_v2 = vpop.permute.xlu0 %1110  ;;  %1010 = vmatpush.bf16.msra.mxu3 %v1523_v24 }
 0x1d9   :  { %1113 = vst.msk [vmem:[#allocation6] sm:$0x3] %vm1102_vm6, %v1111_v2 }
 0x1dc   :  { %1061 = vmatpush.bf16.msrb.mxu3 %v1571_v40 }
 0x1e0   :  { %1062 = vmatpush.bf16.msrb.mxu3 %v1539_v51 }
 0x211   :  { %v835_v5 = vpop.permute.xlu1 %834 }
 0x212   :  { %v837_v6 = vmul.f32 %v835_v5, %v777_v4  ;;  %v889_v4 = vld [vmem:[%s2307_s10] sm:$0xff] }
 0x213   :  { %v891_v5 = vperm.slane %v889_v4, 0  ;;  %v893_v9 = vperm.slane %v889_v4, 2  ;;  %v894_v41 = vperm.slane %v889_v4, 3  ;;  %v897_v16 = vperm.slane %v889_v4, 6 }
 0x214   :  { %v838_v7 = vpack.c.bf16 %v837_v6, %v837_v6  ;;  %v892_v6 = vperm.slane %v889_v4, 1  ;;  %v898_v17 = vperm.slane %v889_v4, 7  ;;  %v896_v27 = vperm.slane %v889_v4, 5 }
 0x216   :  { %846 = vrot.lane.b32.xlu1 %v838_v7, %s1837_s5  ;;  %s1189_s5 = sshll.u32 %s1846_s12, 4  ;;  %s1190_s5 = int_to_ptr.vmem [resolvable:$true] %s1189_s5 }
 0x21e   :  { %1119 = vrot.lane.b32.xlu1 %v2155_v20, %s1842_s30  ;;  %v1659_v20 = vld [vmem:[%s2306_s9 + $0x1c] sm:$0xf0]  ;;  %s1178_s9 = sshll.u32 %s1843_s8, 4  ;;  %s1179_s9 = int_to_ptr.vmem [resolvable:$true] %s1178_s9 }
 0x21f   :  { %v1519_v23 = vor.u32 %v1659_v20, %v1518_v18  ;;  %1183 = dma.vmem_to_hbm [thread:$0]  %s1179_s9, 32, %s1181_s18, [#allocation5]  }
 0x220   :  { %1194 = dma.vmem_to_hbm [thread:$0]  %s1190_s5, 32, %s1192_s6, [#allocation5]  }
 0x221   :  { %997 = vmatpush.bf16.msra.mxu2 %v1519_v23 }
 0x225   :  { %1048 = vmatpush.bf16.msrb.mxu2 %v1567_v36 }
 0x229   :  { %1049 = vmatpush.bf16.msrb.mxu2 %v1535_v50 }
 0x288   :  { %v847_v25 = vpop.permute.xlu1 %846 }
 0x289   :  { %1515 = vmatmul.msk.bf16.vlgmr.msra.gmra.mxu1 %vm854_vm14, %v847_v25 }
 0x28a   :  { %1087 = vmatpush.bf16.msra.mxu1 %v1579_v46 }
 0x28e   :  { %1088 = vmatpush.bf16.msra.mxu1 %v1547_v57 }
 0x290   :  { %v1120_v26 = vpop.permute.xlu1 %1119 }
 0x291   :  { %1122 = vst.msk [vmem:[#allocation9] sm:$0x3] %vm1102_vm6, %v1120_v26  ;;  %v895_v26 = vperm.slane %v889_v4, 4 }
 0x292   :  { %1216 = dma.vmem_to_hbm [thread:$0]  %s1212_s11, 32, %s1214_s27, [#allocation8]  }
 0x306   :  { %v867_v59 = vpop.f32.mrf.mxu1 }
 0x307   :  { %v868_v60 = vadd.f32 %v1685_v58, %v867_v59 }
 0x309   :  { %v871_v61 = vmax.f32 %v868_v60, 0.0 }
 0x30b   :  { %v872_v62 = vpack.c.bf16 %v871_v61, %v871_v61 }
 0x30d   :  { %1580 = vmatmul.msk.bf16.vlgmr.msra.gmra.mxu2 %vm709_vm0, %v872_v62  ;;  %1581 = vmatmul.msk.bf16.vlgmr.msra.gmra.mxu3 %vm709_vm0, %v872_v62 }
 0x30e   :  { %1582 = vmatmul.msk.bf16.vlgmr.msrb.gmra.mxu0 %vm709_vm0, %v872_v62  ;;  %1583 = vmatmul.msk.bf16.vlgmr.msrb.gmra.mxu1 %vm709_vm0, %v872_v62  ;;  %v869_v63 = vpop.f32.mrf.mxu1 }
 0x31d   :  { %1584 = vmatmul.msk.bf16.vlgmr.msrb.gmra.mxu2 %vm709_vm0, %v872_v62  ;;  %1585 = vmatmul.msk.bf16.vlgmr.msrb.gmra.mxu3 %vm709_vm0, %v872_v62 }
 0x31e   :  { %1586 = vmatmul.msk.bf16.vlgmr.msra.gmra.mxu0 %vm709_vm0, %v872_v62  ;;  %1587 = vmatmul.msk.bf16.vlgmr.msra.gmra.mxu1 %vm709_vm0, %v872_v62  ;;  %vm1142_vm0 = vcmask 1042434  }
 0x38b   :  { %v1025_v0 = vpop.f32.mrf.mxu0  ;;  %v1038_v1 = vpop.f32.mrf.mxu1 }
 0x38c   :  { %v1026_v12 = vadd.f32 %v1025_v0, %v893_v9  ;;  %v1039_v13 = vadd.f32 %v1038_v1, %v894_v41 }
 0x38e   :  { %v1096_v22 = vmax.f32 %v1026_v12, 0.0  ;;  %v1097_v23 = vmax.f32 %v1039_v13, 0.0 }
 0x390   :  { %v999_v2 = vpop.f32.mrf.mxu2  ;;  %v1012_v3 = vpop.f32.mrf.mxu3  ;;  %v1124_v31 = vpack.c.bf16 %v1097_v23, %v1096_v22 }
 0x391   :  { %v1000_v10 = vadd.f32 %v999_v2, %v891_v5  ;;  %v1013_v11 = vadd.f32 %v1012_v3, %v892_v6 }
 0x392   :  { %v1132_v43 = vrot.slane %v1124_v31, 6  ;;  %v1133_v44 = vrot.slane %v1124_v31, 1 }
 0x393   :  { %v1027_v7 = vpop.f32.mrf.mxu0  ;;  %v1040_v8 = vpop.f32.mrf.mxu1  ;;  %v1094_v18 = vmax.f32 %v1000_v10, 0.0  ;;  %v1095_v19 = vmax.f32 %v1013_v11, 0.0 }
 0x394   :  { %v1145_v53 = vsel %vm1142_vm0, %v1132_v43, %v1133_v44 }
 0x395   :  { %v1123_v30 = vpack.c.bf16 %v1095_v19, %v1094_v18 }
 0x397   :  { %v1131_v37 = vrot.slane %v1123_v30, 3 }
 0x398   :  { %v1001_v14 = vpop.f32.mrf.mxu2  ;;  %v1014_v15 = vpop.f32.mrf.mxu3 }
 0x399   :  { %v1141_v48 = vsel %vm1138_vm15, %v1123_v30, %v1131_v37 }
 0x39a   :  { %v1147_v56 = vsel %vm1146_vm1, %v1141_v48, %v1145_v53 }
 0x39b   :  { %v1077_v20 = vpop.f32.mrf.mxu0  ;;  %v1090_v21 = vpop.f32.mrf.mxu1 }
 0x39c   :  { %v1078_v24 = vadd.f32 %v1077_v20, %v897_v16  ;;  %v1091_v25 = vadd.f32 %v1090_v21, %v898_v17 }
 0x39e   :  { %v1100_v28 = vmax.f32 %v1078_v24, 0.0  ;;  %v1101_v29 = vmax.f32 %v1091_v25, 0.0 }
 0x3a0   :  { %v1051_v32 = vpop.f32.mrf.mxu2  ;;  %v1064_v33 = vpop.f32.mrf.mxu3  ;;  %v1126_v34 = vpack.c.bf16 %v1101_v29, %v1100_v28 }
 0x3a1   :  { %v1052_v35 = vadd.f32 %v1051_v32, %v895_v26  ;;  %v1065_v36 = vadd.f32 %v1064_v33, %v896_v27 }
 0x3a2   :  { %v1136_v45 = vrot.slane %v1126_v34, 2  ;;  %v1137_v46 = vrot.slane %v1126_v34, 5 }
 0x3a3   :  { %v1098_v38 = vmax.f32 %v1052_v35, 0.0  ;;  %v1099_v39 = vmax.f32 %v1065_v36, 0.0  ;;  %v1079_v40 = vpop.f32.mrf.mxu0  ;;  %v1092_v42 = vpop.f32.mrf.mxu1 }
 0x3a4   :  { %v1155_v54 = vsel %vm1152_vm2, %v1136_v45, %v1137_v46 }
 0x3a5   :  { %v1125_v47 = vpack.c.bf16 %v1099_v39, %v1098_v38 }
 0x3a7   :  { %v1134_v49 = vrot.slane %v1125_v47, 4  ;;  %v1135_v50 = vrot.slane %v1125_v47, 7 }
 0x3a8   :  { %v1053_v51 = vpop.f32.mrf.mxu2  ;;  %v1066_v52 = vpop.f32.mrf.mxu3 }
 0x3a9   :  { %v1151_v55 = vsel %vm1148_vm3, %v1134_v49, %v1135_v50 }
 0x3aa   :  { %v1157_v57 = vsel %vm1156_vm4, %v1151_v55, %v1155_v54 }
 0x3ab   :  { %v1159_v58 = vsel %vm1158_vm5, %v1147_v56, %v1157_v57 }
 0x3ac   :  { %1161 = vst [vmem:[%s2313_s16] sm:$0xff] %v1159_v58 }
 0x3ad   :  { %1830 = dma.done.wait [#allocation3], 32  }
 0x3ae   :  { %1831 = vsyncadd [#allocation3], 4294967264 }
 0x3af   :  { %1832 = dma.done.wait [#allocation5], 64  }
 0x3b0   :  { %1833 = vsyncadd [#allocation5], 4294967232 }
 0x3b1   :  { %1834 = dma.done.wait [#allocation8], 64  }
 0x3b2   :  { %1835 = vsyncadd [#allocation8], 4294967232 }
 0x3b3   :  { %1241 = vsyncpa [#allocation3], 1 }
 0x3b4   :  { %1242 = vsyncpa [#allocation5], 1 }
 0x3b5   :  { %1243 = vsyncpa [#allocation8], 1 }

// kernel: model_forward.11
= control target key start
LH: loop header
LB: loop body
LE: loop exit
PB: predicated region body
PF: predicated region fallthrough
CT: control target
= control target key end

     0   :  { %v1861_v0 = vmov 0   ;;  %vm810_vm0 = vcmask 261120   ;;  %vm1098_vm6 = vcmask 257024   ;;  %s2624_s2 = inlined_call_operand.vmem [shape: f32[32,1], index: 2, kind: input, shape index: {}]   ;;  %s2625_s0 = inlined_call_operand.vmem [shape: bf16[4,256,32], index: 0, kind: input, shape index: {}]   ;;  %s2626_s3 = inlined_call_operand.vmem [shape: f32[32,1], index: 3, kind: input, shape index: {}]   ;;  %s2627_s4 = inlined_call_operand.vmem [shape: f32[32,1], index: 4, kind: input, shape index: {}]   ;;  %s2628_s1 = inlined_call_operand.vmem [shape: bf16[4,32,256], index: 1, kind: input, shape index: {}]   ;;  %s2629_s5 = inlined_call_operand.vmem [shape: bf16[4,32,32], index: 5, kind: output, shape index: {}]  }
   0x1   :  { %1849 = vset.pattern.permute.xlu1 %v1861_v0  ;;  %1848 = vset.pattern.permute.xlu0 %v1861_v0  ;;  %v58_v1 = vld [vmem:[%s2624_s2 + $0x10] sm:$0xff]  ;;  %v56_v2 = vld [vmem:[%s2624_s2] sm:$0xff]  ;;  %v1777_v3 = vld [vmem:[%s2625_s0 + $0x38] sm:$0xff] }
   0x2   :  { %72 = vperm.xlu1 %1849, %v58_v1   ;;  %62 = vperm.xlu0 %1848, %v56_v2   ;;  %v1785_v4 = vld [vmem:[%s2625_s0 + $0x78] sm:$0xff]  ;;  %v1776_v7 = vld [vmem:[%s2625_s0 + $0x30] sm:$0xff]  ;;  %v1926_v11 = vld [vmem:[%s2626_s3 + $0x8] sm:$0xff] }
   0x3   :  { %v1797_v5 = vld [vmem:[%s2625_s0 + $0xb8] sm:$0xff]  ;;  %196 = vmatpush.bf16.msra.mxu0 %v1777_v3  ;;  %1850 = vset.pattern.permute.xlu2 %v1861_v0  ;;  %v1784_v8 = vld [vmem:[%s2625_s0 + $0x70] sm:$0xff]  ;;  %v57_v13 = vld [vmem:[%s2624_s2 + $0x8] sm:$0xff] }
   0x4   :  { %v1805_v6 = vld [vmem:[%s2625_s0 + $0xf8] sm:$0xff]  ;;  %215 = vmatpush.bf16.msra.mxu1 %v1785_v4  ;;  %388 = vmatpush.bf16.msra.mxu2 %v1797_v5  ;;  %v1796_v9 = vld [vmem:[%s2625_s0 + $0xb0] sm:$0xff]  ;;  %v1775_v14 = vld [vmem:[%s2625_s0 + $0x28] sm:$0xff] }
   0x5   :  { %407 = vmatpush.bf16.msra.mxu3 %v1805_v6  ;;  %v1804_v10 = vld [vmem:[%s2625_s0 + $0xf0] sm:$0xff]  ;;  %v59_v12 = vld [vmem:[%s2624_s2 + $0x18] sm:$0xff]  ;;  %1045 = vperm.xlu2 %1850, %v1926_v11   ;;  %v1783_v15 = vld [vmem:[%s2625_s0 + $0x68] sm:$0xff] }
   0x6   :  { %v1795_v16 = vld [vmem:[%s2625_s0 + $0xa8] sm:$0xff]  ;;  %v1774_v18 = vld [vmem:[%s2625_s0 + $0x20] sm:$0xff]  ;;  %v1972_v24 = vld [vmem:[%s2626_s3 + $0x10] sm:$0xff] }
   0x7   :  { %197 = vmatpush.bf16.msra.mxu0 %v1776_v7  ;;  %v1803_v17 = vld [vmem:[%s2625_s0 + $0xe8] sm:$0xff]  ;;  %v1782_v19 = vld [vmem:[%s2625_s0 + $0x60] sm:$0xff]  ;;  %v1773_v25 = vld [vmem:[%s2625_s0 + $0x18] sm:$0xff] }
   0x8   :  { %216 = vmatpush.bf16.msra.mxu1 %v1784_v8  ;;  %389 = vmatpush.bf16.msra.mxu2 %v1796_v9  ;;  %v1794_v20 = vld [vmem:[%s2625_s0 + $0xa0] sm:$0xff]  ;;  %v1959_v21 = vld [vmem:[%s2627_s4 + $0x8] sm:$0xff]  ;;  %v1781_v26 = vld [vmem:[%s2625_s0 + $0x58] sm:$0xff] }
   0x9   :  { %408 = vmatpush.bf16.msra.mxu3 %v1804_v10  ;;  %v1802_v22 = vld [vmem:[%s2625_s0 + $0xe0] sm:$0xff]  ;;  %v1793_v27 = vld [vmem:[%s2625_s0 + $0x98] sm:$0xff]  ;;  %v1772_v29 = vld [vmem:[%s2625_s0 + $0x10] sm:$0xff] }
   0xa   :  { %77 = vperm.xlu1 %1849, %v59_v12   ;;  %67 = vperm.xlu0 %1848, %v57_v13   ;;  %v1967_v23 = vld [vmem:[%s2626_s3] sm:$0xff]  ;;  %v1801_v28 = vld [vmem:[%s2625_s0 + $0xd8] sm:$0xff]  ;;  %v1780_v30 = vld [vmem:[%s2625_s0 + $0x50] sm:$0xff] }
   0xb   :  { %198 = vmatpush.bf16.msra.mxu0 %v1775_v14  ;;  %v1792_v31 = vld [vmem:[%s2625_s0 + $0x90] sm:$0xff]  ;;  %v2004_v33 = vld [vmem:[%s2626_s3 + $0x18] sm:$0xff]  ;;  %v2009_v34 = vld [vmem:[%s2627_s4] sm:$0xff] }
   0xc   :  { %217 = vmatpush.bf16.msra.mxu1 %v1783_v15  ;;  %390 = vmatpush.bf16.msra.mxu2 %v1795_v16  ;;  %v1800_v32 = vld [vmem:[%s2625_s0 + $0xd0] sm:$0xff]  ;;  %v1771_v35 = vld [vmem:[%s2625_s0 + $0x8] sm:$0xff]  ;;  %v1770_v39 = vld [vmem:[%s2625_s0] sm:$0xff] }
   0xd   :  { %409 = vmatpush.bf16.msra.mxu3 %v1803_v17  ;;  %1073 = vperm.xlu2 %1850, %v1959_v21   ;;  %v1779_v36 = vld [vmem:[%s2625_s0 + $0x48] sm:$0xff]  ;;  %v1778_v40 = vld [vmem:[%s2625_s0 + $0x40] sm:$0xff]  ;;  %v1817_v51 = vld [vmem:[%s2625_s0 + $0x138] sm:$0xff] }
   0xe   :  { %v1791_v37 = vld [vmem:[%s2625_s0 + $0x88] sm:$0xff]  ;;  %v1790_v41 = vld [vmem:[%s2625_s0 + $0x80] sm:$0xff]  ;;  %v2068_v52 = vld [vmem:[%s2627_s4 + $0x10] sm:$0xff] }
   0xf   :  { %199 = vmatpush.bf16.msra.mxu0 %v1774_v18  ;;  %v1799_v38 = vld [vmem:[%s2625_s0 + $0xc8] sm:$0xff]  ;;  %v1798_v42 = vld [vmem:[%s2625_s0 + $0xc0] sm:$0xff]  ;;  %v2073_v53 = vld [vmem:[%s2627_s4 + $0x18] sm:$0xff] }
  0x10   :  { %218 = vmatpush.bf16.msra.mxu1 %v1782_v19  ;;  %391 = vmatpush.bf16.msra.mxu2 %v1794_v20  ;;  %v1328_v43 = vld [vmem:[%s2628_s1] sm:$0xf]  ;;  %v1767_v44 = vld [vmem:[%s2628_s1 + $0x4] sm:$0xf0]  ;;  %v1766_v45 = vld [vmem:[%s2628_s1 + $0x4] sm:$0xf] }
  0x11   :  { %410 = vmatpush.bf16.msra.mxu3 %v1802_v22  ;;  %v1330_v46 = vld [vmem:[%s2628_s1 + $0x8] sm:$0xf0]  ;;  %v1444_v47 = vld [vmem:[%s2628_s1 + $0x20] sm:$0xf]  ;;  %v1787_v48 = vld [vmem:[%s2628_s1 + $0x24] sm:$0xf0]  ;;  %v1329_v54 = vor.u32 %v1767_v44, %v1328_v43 }
  0x12   :  { %1040 = vperm.xlu1 %1849, %v1967_v23   ;;  %1050 = vperm.xlu0 %1848, %v1972_v24   ;;  %v1786_v49 = vld [vmem:[%s2628_s1 + $0x24] sm:$0xf]  ;;  %v1446_v50 = vld [vmem:[%s2628_s1 + $0x28] sm:$0xf0]  ;;  %v1333_v55 = vor.u32 %v1766_v45, %v1330_v46  ;;  %v1445_v56 = vor.u32 %v1787_v48, %v1444_v47  ;;  %v1837_v58 = vld [vmem:[%s2625_s0 + $0x1b8] sm:$0xff] }
  0x13   :  { %200 = vmatpush.bf16.msra.mxu0 %v1773_v25  ;;  %v1449_v57 = vor.u32 %v1786_v49, %v1446_v50  ;;  %v1825_v59 = vld [vmem:[%s2625_s0 + $0x178] sm:$0xff]  ;;  %v1816_v61 = vld [vmem:[%s2625_s0 + $0x130] sm:$0xff]  ;;  %v1815_v1 = vld [vmem:[%s2625_s0 + $0x128] sm:$0xff] }
  0x14   :  { %219 = vmatpush.bf16.msra.mxu1 %v1781_v26  ;;  %392 = vmatpush.bf16.msra.mxu2 %v1793_v27  ;;  %v1845_v60 = vld [vmem:[%s2625_s0 + $0x1f8] sm:$0xff]  ;;  %v1836_v62 = vld [vmem:[%s2625_s0 + $0x1b0] sm:$0xff]  ;;  %v1835_v2 = vld [vmem:[%s2625_s0 + $0x1a8] sm:$0xff] }
  0x15   :  { %411 = vmatpush.bf16.msra.mxu3 %v1801_v28  ;;  %1113 = vperm.xlu2 %1850, %v1967_v23   ;;  %v1824_v63 = vld [vmem:[%s2625_s0 + $0x170] sm:$0xff]  ;;  %v1823_v3 = vld [vmem:[%s2625_s0 + $0x168] sm:$0xff]  ;;  %v1814_v5 = vld [vmem:[%s2625_s0 + $0x120] sm:$0xff] }
  0x16   :  { %v1844_v0 = vld [vmem:[%s2625_s0 + $0x1f0] sm:$0xff]  ;;  %v1843_v4 = vld [vmem:[%s2625_s0 + $0x1e8] sm:$0xff]  ;;  %v1834_v6 = vld [vmem:[%s2625_s0 + $0x1a0] sm:$0xff] }
  0x17   :  { %201 = vmatpush.bf16.msra.mxu0 %v1772_v29  ;;  %v1336_v7 = vld [vmem:[%s2628_s1 + $0x10] sm:$0xf]  ;;  %v1769_v8 = vld [vmem:[%s2628_s1 + $0x14] sm:$0xf0]  ;;  %v1822_v9 = vld [vmem:[%s2625_s0 + $0x160] sm:$0xff] }
  0x18   :  { %220 = vmatpush.bf16.msra.mxu1 %v1780_v30  ;;  %393 = vmatpush.bf16.msra.mxu2 %v1792_v31  ;;  %v1452_v10 = vld [vmem:[%s2628_s1 + $0x30] sm:$0xf]  ;;  %v1789_v12 = vld [vmem:[%s2628_s1 + $0x34] sm:$0xf0]  ;;  %v1768_v13 = vld [vmem:[%s2628_s1 + $0x14] sm:$0xf]  ;;  %v1337_v16 = vor.u32 %v1769_v8, %v1336_v7 }
  0x19   :  { %412 = vmatpush.bf16.msra.mxu3 %v1800_v32  ;;  %v1338_v14 = vld [vmem:[%s2628_s1 + $0x18] sm:$0xf0]  ;;  %v1842_v15 = vld [vmem:[%s2625_s0 + $0x1e0] sm:$0xff]  ;;  %v1788_v17 = vld [vmem:[%s2628_s1 + $0x34] sm:$0xf]  ;;  %v1453_v19 = vor.u32 %v1789_v12, %v1452_v10 }
  0x1a   :  { %1055 = vperm.xlu1 %1849, %v2004_v33   ;;  %1068 = vperm.xlu0 %1848, %v2009_v34   ;;  %v1454_v18 = vld [vmem:[%s2628_s1 + $0x38] sm:$0xf0]  ;;  %v1341_v25 = vor.u32 %v1768_v13, %v1338_v14  ;;  %v1812_v29 = vld [vmem:[%s2625_s0 + $0x110] sm:$0xff]  ;;  %v1676_v43 = vld [vmem:[%s2628_s1 + $0x60] sm:$0xf] }
  0x1b   :  { %202 = vmatpush.bf16.msra.mxu0 %v1771_v35  ;;  %v1813_v20 = vld [vmem:[%s2625_s0 + $0x118] sm:$0xff]  ;;  %v1457_v26 = vor.u32 %v1788_v17, %v1454_v18  ;;  %v1832_v30 = vld [vmem:[%s2625_s0 + $0x190] sm:$0xff]  ;;  %v1811_v35 = vld [vmem:[%s2625_s0 + $0x108] sm:$0xff] }
  0x1c   :  { %221 = vmatpush.bf16.msra.mxu1 %v1779_v36  ;;  %394 = vmatpush.bf16.msra.mxu2 %v1791_v37  ;;  %v1833_v22 = vld [vmem:[%s2625_s0 + $0x198] sm:$0xff]  ;;  %v1820_v31 = vld [vmem:[%s2625_s0 + $0x150] sm:$0xff]  ;;  %v1831_v36 = vld [vmem:[%s2625_s0 + $0x188] sm:$0xff] }
  0x1d   :  { %413 = vmatpush.bf16.msra.mxu3 %v1799_v38  ;;  %1128 = vperm.xlu2 %1850, %v2004_v33   ;;  %v1821_v27 = vld [vmem:[%s2625_s0 + $0x158] sm:$0xff]  ;;  %v1840_v32 = vld [vmem:[%s2625_s0 + $0x1d0] sm:$0xff]  ;;  %v1819_v37 = vld [vmem:[%s2625_s0 + $0x148] sm:$0xff] }
  0x1e   :  { %v1841_v28 = vld [vmem:[%s2625_s0 + $0x1d8] sm:$0xff]  ;;  %v1839_v38 = vld [vmem:[%s2625_s0 + $0x1c8] sm:$0xff]  ;;  %v1818_v45 = vld [vmem:[%s2625_s0 + $0x140] sm:$0xff] }
  0x1f   :  { %203 = vmatpush.bf16.msra.mxu0 %v1770_v39  ;;  %v1810_v39 = vld [vmem:[%s2625_s0 + $0x100] sm:$0xff]  ;;  %v1827_v44 = vld [vmem:[%s2628_s1 + $0x64] sm:$0xf0]  ;;  %v1562_v48 = vld [vmem:[%s2628_s1 + $0x48] sm:$0xf0] }
  0x20   :  { %222 = vmatpush.bf16.msra.mxu1 %v1778_v40  ;;  %395 = vmatpush.bf16.msra.mxu2 %v1790_v41  ;;  %v1830_v40 = vld [vmem:[%s2625_s0 + $0x180] sm:$0xff]  ;;  %v1678_v50 = vld [vmem:[%s2628_s1 + $0x68] sm:$0xf0] }
  0x21   :  { %414 = vmatpush.bf16.msra.mxu3 %v1798_v42  ;;  %v1560_v41 = vld [vmem:[%s2628_s1 + $0x40] sm:$0xf]  ;;  %v1807_v42 = vld [vmem:[%s2628_s1 + $0x44] sm:$0xf0]  ;;  %v1806_v47 = vld [vmem:[%s2628_s1 + $0x44] sm:$0xf] }
  0x22   :  { %1078 = vperm.xlu1 %1849, %v2068_v52   ;;  %1083 = vperm.xlu0 %1848, %v2073_v53   ;;  %v1838_v46 = vld [vmem:[%s2625_s0 + $0x1c0] sm:$0xff] }
  0x23   :  { %580 = vmatpush.bf16.msrb.mxu0 %v1817_v51  ;;  %223 = vmatmul.bf16.vlgmr.msra.gmra.mxu1 %v1333_v55  ;;  %v1826_v49 = vld [vmem:[%s2628_s1 + $0x64] sm:$0xf]  ;;  %v1561_v51 = vor.u32 %v1807_v42, %v1560_v41  ;;  %v1565_v55 = vor.u32 %v1806_v47, %v1562_v48 }
  0x24   :  { %204 = vmatmul.bf16.vlgmr.msra.gmra.mxu0 %v1329_v54  ;;  %396 = vmatmul.bf16.vlgmr.msra.gmra.mxu2 %v1445_v56  ;;  %v1677_v54 = vor.u32 %v1827_v44, %v1676_v43  ;;  %v1681_v56 = vor.u32 %v1826_v49, %v1678_v50 }
  0x25   :  { %415 = vmatmul.bf16.vlgmr.msra.gmra.mxu3 %v1449_v57  ;;  %772 = vmatpush.bf16.msrb.mxu2 %v1837_v58  ;;  %v1568_v57 = vld [vmem:[%s2628_s1 + $0x50] sm:$0xf]  ;;  %v1809_v58 = vld [vmem:[%s2628_s1 + $0x54] sm:$0xf0] }
  0x26   :  { %599 = vmatpush.bf16.msrb.mxu1 %v1825_v59  ;;  %791 = vmatpush.bf16.msrb.mxu3 %v1845_v60  ;;  %v1684_v59 = vld [vmem:[%s2628_s1 + $0x70] sm:$0xf]  ;;  %v1829_v60 = vld [vmem:[%s2628_s1 + $0x74] sm:$0xf0] }
  0x27   :  { %581 = vmatpush.bf16.msrb.mxu0 %v1816_v61  ;;  %1151 = vperm.xlu2 %1850, %v2068_v52   ;;  %v1570_v61 = vld [vmem:[%s2628_s1 + $0x58] sm:$0xf0] }
  0x29   :  { %773 = vmatpush.bf16.msrb.mxu2 %v1836_v62  ;;  %v1828_v62 = vld [vmem:[%s2628_s1 + $0x74] sm:$0xf] }
  0x2a   :  { %600 = vmatpush.bf16.msrb.mxu1 %v1824_v63  ;;  %1118 = vperm.xlu1 %1849, %v1926_v11   ;;  %v1686_v63 = vld [vmem:[%s2628_s1 + $0x78] sm:$0xf0] }
  0x2b   :  { %1123 = vperm.xlu0 %1848, %v1972_v24   ;;  %792 = vmatpush.bf16.msrb.mxu3 %v1844_v0  ;;  %v1569_v0 = vor.u32 %v1809_v58, %v1568_v57 }
  0x2c   :  { %582 = vmatpush.bf16.msrb.mxu0 %v1815_v1  ;;  %v1685_v1 = vor.u32 %v1829_v60, %v1684_v59 }
  0x2d   :  { %774 = vmatpush.bf16.msrb.mxu2 %v1835_v2 }
  0x2e   :  { %601 = vmatpush.bf16.msrb.mxu1 %v1823_v3  ;;  %v1689_v3 = vor.u32 %v1828_v62, %v1686_v63 }
  0x2f   :  { %793 = vmatpush.bf16.msrb.mxu3 %v1843_v4  ;;  %1191 = vperm.xlu2 %1850, %v1926_v11  }
  0x30   :  { %583 = vmatpush.bf16.msrb.mxu0 %v1814_v5 }
  0x31   :  { %775 = vmatpush.bf16.msrb.mxu2 %v1834_v6 }
  0x32   :  { %602 = vmatpush.bf16.msrb.mxu1 %v1822_v9  ;;  %1141 = vperm.xlu1 %1849, %v2009_v34  }
  0x33   :  { %1146 = vperm.xlu0 %1848, %v1959_v21   ;;  %794 = vmatpush.bf16.msrb.mxu3 %v1842_v15 }
  0x34   :  { %209 = vmatmul.bf16.gmra.mxu0 %v1337_v16  ;;  %401 = vmatmul.bf16.gmra.mxu2 %v1453_v19 }
  0x35   :  { %584 = vmatpush.bf16.msrb.mxu0 %v1813_v20  ;;  %776 = vmatpush.bf16.msrb.mxu2 %v1833_v22 }
  0x36   :  { %228 = vmatmul.bf16.gmra.mxu1 %v1341_v25  ;;  %420 = vmatmul.bf16.gmra.mxu3 %v1457_v26 }
  0x37   :  { %603 = vmatpush.bf16.msrb.mxu1 %v1821_v27  ;;  %795 = vmatpush.bf16.msrb.mxu3 %v1841_v28 }
  0x38   :  { %1214 = vperm.xlu2 %1850, %v2009_v34  }
  0x39   :  { %585 = vmatpush.bf16.msrb.mxu0 %v1812_v29  ;;  %777 = vmatpush.bf16.msrb.mxu2 %v1832_v30 }
  0x3a   :  { %1156 = vperm.xlu1 %1849, %v2073_v53  }
  0x3b   :  { %1186 = vperm.xlu0 %1848, %v1967_v23   ;;  %604 = vmatpush.bf16.msrb.mxu1 %v1820_v31 }
  0x3c   :  { %796 = vmatpush.bf16.msrb.mxu3 %v1840_v32 }
  0x3d   :  { %586 = vmatpush.bf16.msrb.mxu0 %v1811_v35  ;;  %778 = vmatpush.bf16.msrb.mxu2 %v1831_v36 }
  0x3f   :  { %605 = vmatpush.bf16.msrb.mxu1 %v1819_v37 }
  0x40   :  { %797 = vmatpush.bf16.msrb.mxu3 %v1839_v38  ;;  %1229 = vperm.xlu2 %1850, %v2073_v53  }
  0x41   :  { %587 = vmatpush.bf16.msrb.mxu0 %v1810_v39  ;;  %779 = vmatpush.bf16.msrb.mxu2 %v1830_v40 }
  0x42   :  { %1196 = vperm.xlu1 %1849, %v1972_v24  }
  0x43   :  { %1201 = vperm.xlu0 %1848, %v2004_v33   ;;  %606 = vmatpush.bf16.msrb.mxu1 %v1818_v45 }
  0x44   :  { %798 = vmatpush.bf16.msrb.mxu3 %v1838_v46  ;;  %588 = vmatmul.bf16.vlgmr.msrb.gmra.mxu0 %v1561_v51 }
  0x45   :  { %780 = vmatmul.bf16.vlgmr.msrb.gmra.mxu2 %v1677_v54 }
  0x46   :  { %607 = vmatmul.bf16.vlgmr.msrb.gmra.mxu1 %v1565_v55 }
  0x47   :  { %799 = vmatmul.bf16.vlgmr.msrb.gmra.mxu3 %v1681_v56 }
  0x4a   :  { %1219 = vperm.xlu1 %1849, %v1959_v21   ;;  %v1808_v21 = vld [vmem:[%s2628_s1 + $0x54] sm:$0xf] }
  0x4b   :  { %1224 = vperm.xlu0 %1848, %v2068_v52   ;;  %v1573_v2 = vor.u32 %v1808_v21, %v1570_v61 }
  0x52   :  { %1259 = vperm.xlu1 %1849, %v1967_v23  }
  0x53   :  { %1264 = vperm.xlu0 %1848, %v1926_v11  }
  0x54   :  { %593 = vmatmul.bf16.gmra.mxu0 %v1569_v0 }
  0x55   :  { %785 = vmatmul.bf16.gmra.mxu2 %v1685_v1 }
  0x56   :  { %612 = vmatmul.bf16.gmra.mxu1 %v1573_v2 }
  0x57   :  { %804 = vmatmul.bf16.gmra.mxu3 %v1689_v3 }
  0x5f   :  { %v2301_v58 = vpop.permute.xlu2 %1045 }
  0x74   :  { %v2259_v4 = vpop.permute.xlu0 %62  ;;  %v73_v18 = vpop.permute.xlu1 %72 }
  0x7c   :  { %v2269_v15 = vpop.permute.xlu0 %67  ;;  %v2283_v35 = vpop.permute.xlu1 %77 }
  0xa0   :  { %v224_v6 = vpop.f32.mrf.mxu1 }
  0xa1   :  { %v205_v5 = vpop.f32.mrf.mxu0 }
  0xa2   :  { %v206_v7 = vadd.f32 %v205_v5, %v2259_v4 }
  0xa4   :  { %v2262_v8 = vadd.f32 %v224_v6, %v206_v7  ;;  %v2313_v7 = vpop.permute.xlu2 %1073 }
  0xa6   :  { %v811_v23 = vsel %vm810_vm0, %v2262_v8, 0.0 }
  0xa7   :  { %812 = vadd.xlane.f32.xlu2 %v811_v23  ;;  %v397_v11 = vpop.f32.mrf.mxu2 }
  0xa8   :  { %v416_v9 = vpop.f32.mrf.mxu3  ;;  %v398_v10 = vadd.f32 %v397_v11, %v2259_v4  ;;  %v226_v14 = vpop.f32.mrf.mxu1 }
  0xa9   :  { %v207_v12 = vpop.f32.mrf.mxu0 }
  0xaa   :  { %v2267_v13 = vadd.f32 %v416_v9, %v398_v10  ;;  %v208_v16 = vadd.f32 %v207_v12, %v2269_v15 }
  0xac   :  { %v827_v17 = vsel %vm810_vm0, %v2267_v13, 0.0  ;;  %v2274_v22 = vadd.f32 %v226_v14, %v208_v16 }
  0xae   :  { %v814_v30 = vsel %vm810_vm0, %v2274_v22, 0.0 }
  0xaf   :  { %828 = vadd.xlane.f32.xlu2 %v827_v17  ;;  %v399_v19 = vpop.f32.mrf.mxu2 }
  0xb0   :  { %v418_v25 = vpop.f32.mrf.mxu3  ;;  %v400_v29 = vadd.f32 %v399_v19, %v2269_v15 }
  0xb1   :  { %v210_v20 = vpop.f32.mrf.mxu0 }
  0xb2   :  { %v211_v26 = vadd.f32 %v210_v20, %v73_v18  ;;  %v2285_v37 = vadd.f32 %v418_v25, %v400_v29  ;;  %v2332_v29 = vpop.permute.xlu2 %1113 }
  0xb3   :  { %v229_v27 = vpop.f32.mrf.mxu1 }
  0xb4   :  { %v2276_v28 = vadd.f32 %v229_v27, %v211_v26  ;;  %v830_v43 = vsel %vm810_vm0, %v2285_v37, 0.0 }
  0xb6   :  { %v817_v31 = vsel %vm810_vm0, %v2276_v28, 0.0 }
  0xb7   :  { %815 = vadd.xlane.f32.xlu2 %v814_v30  ;;  %818 = vadd.xlane.f32.xlu0 %v817_v31  ;;  %v402_v32 = vpop.f32.mrf.mxu2 }
  0xb8   :  { %v403_v41 = vadd.f32 %v402_v32, %v73_v18 }
  0xb9   :  { %v212_v36 = vpop.f32.mrf.mxu0  ;;  %v421_v39 = vpop.f32.mrf.mxu3 }
  0xba   :  { %v213_v38 = vadd.f32 %v212_v36, %v2283_v35  ;;  %v2294_v45 = vadd.f32 %v421_v39, %v403_v41 }
  0xbb   :  { %v231_v40 = vpop.f32.mrf.mxu1 }
  0xbc   :  { %v2288_v42 = vadd.f32 %v231_v40, %v213_v38  ;;  %v833_v50 = vsel %vm810_vm0, %v2294_v45, 0.0  ;;  %v2343_v40 = vpop.permute.xlu2 %1128 }
  0xbe   :  { %v820_v44 = vsel %vm810_vm0, %v2288_v42, 0.0 }
  0xbf   :  { %831 = vadd.xlane.f32.xlu2 %v830_v43  ;;  %821 = vadd.xlane.f32.xlu1 %v820_v44  ;;  %v404_v46 = vpop.f32.mrf.mxu2  ;;  %v2347_v43 = vpop.permute.xlu0 %1050 }
  0xc0   :  { %v405_v51 = vadd.f32 %v404_v46, %v2283_v35 }
  0xc1   :  { %v423_v47 = vpop.f32.mrf.mxu3  ;;  %v589_v48 = vpop.f32.mrf.mxu0 }
  0xc2   :  { %v2299_v55 = vadd.f32 %v423_v47, %v405_v51  ;;  %v590_v60 = vadd.f32 %v589_v48, %v2259_v4  ;;  %v2356_v47 = vpop.permute.xlu1 %1040 }
  0xc3   :  { %v608_v49 = vpop.f32.mrf.mxu1 }
  0xc4   :  { %v836_v21 = vsel %vm810_vm0, %v2299_v55, 0.0  ;;  %v2307_v63 = vadd.f32 %v608_v49, %v590_v60  ;;  %v2352_v46 = vpop.permute.xlu2 %1151 }
  0xc6   :  { %v843_v11 = vsel %vm810_vm0, %v2307_v63, 0.0 }
  0xc7   :  { %834 = vadd.xlane.f32.xlu2 %v833_v50 }
  0xc8   :  { %v781_v54 = vpop.f32.mrf.mxu2 }
  0xc9   :  { %v591_v56 = vpop.f32.mrf.mxu0  ;;  %v782_v23 = vadd.f32 %v781_v54, %v2259_v4 }
  0xca   :  { %v800_v57 = vpop.f32.mrf.mxu3  ;;  %v592_v26 = vadd.f32 %v591_v56, %v2269_v15  ;;  %v2363_v50 = vpop.permute.xlu1 %1055 }
  0xcb   :  { %v610_v59 = vpop.f32.mrf.mxu1  ;;  %v2320_v14 = vadd.f32 %v800_v57, %v782_v23 }
  0xcc   :  { %v2336_v31 = vadd.f32 %v610_v59, %v592_v26  ;;  %v2358_v48 = vpop.permute.xlu2 %1191 }
  0xcf   :  { %837 = vadd.xlane.f32.xlu2 %v836_v21 }
  0xd0   :  { %v783_v61 = vpop.f32.mrf.mxu2 }
  0xd1   :  { %v784_v62 = vadd.f32 %v783_v61, %v2269_v15  ;;  %v594_v0 = vpop.f32.mrf.mxu0  ;;  %v846_v15 = vsel %vm810_vm0, %v2336_v31, 0.0 }
  0xd2   :  { %v802_v1 = vpop.f32.mrf.mxu3  ;;  %v595_v5 = vadd.f32 %v594_v0, %v73_v18 }
  0xd3   :  { %v2309_v2 = vadd.f32 %v802_v1, %v784_v62  ;;  %v613_v3 = vpop.f32.mrf.mxu1 }
  0xd4   :  { %v2318_v10 = vadd.f32 %v613_v3, %v595_v5  ;;  %v2366_v51 = vpop.permute.xlu2 %1214 }
  0xd5   :  { %v862_v6 = vsel %vm810_vm0, %v2309_v2, 0.0 }
  0xd6   :  { %863 = vadd.xlane.f32.xlu0 %v862_v6  ;;  %v849_v25 = vsel %vm810_vm0, %v2318_v10, 0.0  ;;  %v1862_v6 = vmov 128.0  }
  0xd7   :  { %844 = vadd.xlane.f32.xlu2 %v843_v11  ;;  %1851 = vrcp.f32 %v1862_v6 }
  0xd8   :  { %v786_v9 = vpop.f32.mrf.mxu2 }
  0xd9   :  { %v787_v12 = vadd.f32 %v786_v9, %v73_v18  ;;  %v596_v16 = vpop.f32.mrf.mxu0  ;;  %v859_v18 = vsel %vm810_vm0, %v2320_v14, 0.0 }
  0xda   :  { %v805_v17 = vpop.f32.mrf.mxu3  ;;  %v597_v20 = vadd.f32 %v596_v16, %v2283_v35 }
  0xdb   :  { %v2322_v19 = vadd.f32 %v805_v17, %v787_v12  ;;  %v615_v27 = vpop.f32.mrf.mxu1 }
  0xdc   :  { %v2334_v30 = vadd.f32 %v615_v27, %v597_v20  ;;  %v2372_v56 = vpop.permute.xlu2 %1229 }
  0xdd   :  { %v865_v4 = vsel %vm810_vm0, %v2322_v19, 0.0  ;;  %2631 = vst [vmem:[#allocation3_spill] sm:$0xff] %v2372_v56  ;;  %v1852_v9 = vpop.eup %1851 }
  0xde   :  { %866 = vadd.xlane.f32.xlu1 %v865_v4  ;;  %850 = vadd.xlane.f32.xlu0 %v849_v25  ;;  %v852_v36 = vsel %vm810_vm0, %v2334_v30, 0.0  ;;  %v876_v17 = vmul.f32 128.0, %v1852_v9  ;;  %vm880_vm1 = vweird.f32 %v1852_v9 }
  0xdf   :  { %860 = vadd.xlane.f32.xlu2 %v859_v18 }
  0xe0   :  { %v788_v32 = vpop.f32.mrf.mxu2  ;;  %v877_v4 = vsub.f32 1.0, %v876_v17 }
  0xe1   :  { %v789_v38 = vadd.f32 %v788_v32, %v2283_v35  ;;  %v2354_v35 = vpop.permute.xlu0 %1068 }
  0xe2   :  { %v807_v39 = vpop.f32.mrf.mxu3  ;;  %v878_v26 = vmul.f32 %v1852_v9, %v877_v4 }
  0xe3   :  { %v2345_v41 = vadd.f32 %v807_v39, %v789_v38 }
  0xe4   :  { %v879_v32 = vadd.f32 %v1852_v9, %v878_v26 }
  0xe5   :  { %v868_v44 = vsel %vm810_vm0, %v2345_v41, 0.0 }
  0xe6   :  { %853 = vadd.xlane.f32.xlu1 %v852_v36 }
  0xe7   :  { %847 = vadd.xlane.f32.xlu2 %v846_v15  ;;  %v2396_v15 = vsel %vm880_vm1, %v1852_v9, %v879_v32 }
  0xe9   :  { %v2361_v49 = vpop.permute.xlu0 %1083 }
  0xea   :  { %2630 = vst [vmem:[#allocation2_spill] sm:$0xff] %v2361_v49 }
  0xef   :  { %869 = vadd.xlane.f32.xlu2 %v868_v44 }
  0xf1   :  { %v2368_v54 = vpop.permute.xlu0 %1123 }
  0xf2   :  { %1287 = vperm.xlu0 %1848, %v2009_v34   ;;  %v2370_v34 = vpop.permute.xlu1 %1078 }
  0xf9   :  { %v2374_v57 = vpop.permute.xlu0 %1146 }
  0xfa   :  { %v2376_v59 = vpop.permute.xlu1 %1118 }
  0xff   :  { %1274 = vperm.xlu1 %1849, %v2004_v33  }
 0x101   :  { %v2378_v33 = vpop.permute.xlu0 %1186 }
 0x102   :  { %v2380_v61 = vpop.permute.xlu1 %1141 }
 0x107   :  { %1269 = vperm.xlu2 %1850, %v1972_v24  }
 0x109   :  { %v2382_v62 = vpop.permute.xlu0 %1201 }
 0x10a   :  { %v2384_v0 = vpop.permute.xlu1 %1156 }
 0x10b   :  { %2632 = vst [vmem:[#allocation4_spill] sm:$0xff] %v2384_v0 }
 0x111   :  { %v2386_v1 = vpop.permute.xlu0 %1224 }
 0x112   :  { %v2388_v5 = vpop.permute.xlu1 %1196 }
 0x119   :  { %v2390_v11 = vpop.permute.xlu0 %1264 }
 0x11a   :  { %v813_v60 = vpop.xlane.xlu2 %812  ;;  %v2392_v12 = vpop.permute.xlu1 %1219 }
 0x122   :  { %v829_v21 = vpop.xlane.xlu2 %828  ;;  %v2394_v27 = vpop.permute.xlu1 %1259 }
 0x123   :  { %v839_v36 = vadd.f32 %v829_v21, %v813_v60 }
 0x12a   :  { %v816_v24 = vpop.xlane.xlu2 %815  ;;  %v819_v20 = vpop.xlane.xlu0 %818 }
 0x132   :  { %v832_v3 = vpop.xlane.xlu2 %831  ;;  %v822_v6 = vpop.xlane.xlu1 %821 }
 0x133   :  { %v840_v60 = vadd.f32 %v832_v3, %v816_v24 }
 0x13a   :  { %v835_v23 = vpop.xlane.xlu2 %834 }
 0x13b   :  { %v841_v49 = vadd.f32 %v835_v23, %v819_v20 }
 0x142   :  { %v838_v16 = vpop.xlane.xlu2 %837 }
 0x149   :  { %v864_v18 = vpop.xlane.xlu0 %863 }
 0x14a   :  { %v845_v25 = vpop.xlane.xlu2 %844 }
 0x14b   :  { %v855_v38 = vadd.f32 %v845_v25, %v839_v36 }
 0x151   :  { %v851_v0 = vpop.xlane.xlu0 %850  ;;  %v867_v36 = vpop.xlane.xlu1 %866 }
 0x152   :  { %v861_v39 = vpop.xlane.xlu2 %860  ;;  %v857_v21 = vadd.f32 %v851_v0, %v841_v49 }
 0x153   :  { %v871_v44 = vadd.f32 %v861_v39, %v855_v38 }
 0x154   :  { %v873_v24 = vadd.f32 %v867_v36, %v857_v21 }
 0x155   :  { %v882_v56 = vmul.f32 %v2396_v15, %v871_v44 }
 0x156   :  { %v884_v39 = vmul.f32 %v2396_v15, %v873_v24 }
 0x157   :  { %v2400_v17 = vsub.f32 %v2307_v63, %v882_v56  ;;  %v2403_v4 = vsub.f32 %v2267_v13, %v882_v56  ;;  %v2406_v26 = vsub.f32 %v2262_v8, %v882_v56  ;;  %v2418_v49 = vsub.f32 %v2320_v14, %v882_v56 }
 0x158   :  { %v2459_v24 = vsub.f32 %v2322_v19, %v884_v39 }
 0x159   :  { %v938_v9 = vmul.f32 %v2400_v17, %v2400_v17  ;;  %v914_v25 = vmul.f32 %v2403_v4, %v2403_v4  ;;  %v890_v23 = vmul.f32 %v2406_v26, %v2406_v26  ;;  %v962_v38 = vmul.f32 %v2418_v49, %v2418_v49 }
 0x15a   :  { %v848_v20 = vpop.xlane.xlu2 %847 }
 0x15b   :  { %v856_v63 = vadd.f32 %v848_v20, %v840_v60  ;;  %v942_v32 = vsel %vm810_vm0, %v938_v9, 0.0  ;;  %v918_v13 = vsel %vm810_vm0, %v914_v25, 0.0  ;;  %v894_v8 = vsel %vm810_vm0, %v890_v23, 0.0  ;;  %v854_v23 = vpop.xlane.xlu1 %853 }
 0x15c   :  { %943 = vadd.xlane.f32.xlu2 %v942_v32  ;;  %919 = vadd.xlane.f32.xlu1 %v918_v13  ;;  %v2441_v25 = vsub.f32 %v2276_v28, %v884_v39  ;;  %v842_v20 = vadd.f32 %v838_v16, %v822_v6 }
 0x15d   :  { %v872_v0 = vadd.f32 %v864_v18, %v856_v63  ;;  %895 = vadd.xlane.f32.xlu0 %v894_v8  ;;  %v966_v18 = vsel %vm810_vm0, %v962_v38, 0.0 }
 0x15e   :  { %v892_v32 = vmul.f32 %v2441_v25, %v2441_v25  ;;  %v858_v8 = vadd.f32 %v854_v23, %v842_v20 }
 0x15f   :  { %v883_v3 = vmul.f32 %v2396_v15, %v872_v0  ;;  %v2462_v0 = vsub.f32 %v2318_v10, %v884_v39 }
 0x160   :  { %v900_v16 = vsel %vm810_vm0, %v892_v32, 0.0 }
 0x161   :  { %v2425_v44 = vsub.f32 %v2285_v37, %v883_v3  ;;  %v2428_v60 = vsub.f32 %v2274_v22, %v883_v3  ;;  %v2436_v21 = vsub.f32 %v2336_v31, %v883_v3  ;;  %v2444_v22 = vsub.f32 %v2309_v2, %v883_v3 }
 0x162   :  { %v870_v31 = vpop.xlane.xlu2 %869  ;;  %v2454_v2 = vsub.f32 %v2294_v45, %v884_v39  ;;  %v964_v45 = vmul.f32 %v2459_v24, %v2459_v24 }
 0x163   :  { %v915_v14 = vmul.f32 %v2425_v44, %v2425_v44  ;;  %v891_v56 = vmul.f32 %v2428_v60, %v2428_v60  ;;  %v939_v63 = vmul.f32 %v2436_v21, %v2436_v21  ;;  %v963_v13 = vmul.f32 %v2444_v22, %v2444_v22 }
 0x164   :  { %v874_v28 = vadd.f32 %v870_v31, %v858_v8  ;;  %v916_v38 = vmul.f32 %v2454_v2, %v2454_v2  ;;  %v972_v10 = vsel %vm810_vm0, %v964_v45, 0.0 }
 0x165   :  { %967 = vadd.xlane.f32.xlu0 %v966_v18  ;;  %v921_v9 = vsel %vm810_vm0, %v915_v14, 0.0  ;;  %v897_v37 = vsel %vm810_vm0, %v891_v56, 0.0  ;;  %v945_v36 = vsel %vm810_vm0, %v939_v63, 0.0  ;;  %v969_v6 = vsel %vm810_vm0, %v963_v13, 0.0  ;;  %v1282_v13 = vld [vmem:[%s2627_s4 + $0x8] sm:$0xff] }
 0x166   :  { %922 = vadd.xlane.f32.xlu2 %v921_v9  ;;  %898 = vadd.xlane.f32.xlu1 %v897_v37  ;;  %v885_v3 = vmul.f32 %v2396_v15, %v874_v28  ;;  %v940_v14 = vmul.f32 %v2462_v0, %v2462_v0  ;;  %v924_v56 = vsel %vm810_vm0, %v916_v38, 0.0 }
 0x168   :  { %v2473_v19 = vsub.f32 %v2288_v42, %v885_v3  ;;  %v948_v39 = vsel %vm810_vm0, %v940_v14, 0.0  ;;  %v2478_v18 = vsub.f32 %v2334_v30, %v885_v3  ;;  %v2481_v9 = vsub.f32 %v2299_v55, %v885_v3 }
 0x169   :  { %v2491_v63 = vsub.f32 %v2345_v41, %v885_v3  ;;  %v1288_v41 = vpop.permute.xlu0 %1287 }
 0x16a   :  { %v893_v37 = vmul.f32 %v2473_v19, %v2473_v19  ;;  %v941_v42 = vmul.f32 %v2478_v18, %v2478_v18  ;;  %v917_v23 = vmul.f32 %v2481_v9, %v2481_v9  ;;  %v2505_v28 = vpop.permute.xlu2 %1269 }
 0x16b   :  { %v965_v31 = vmul.f32 %v2491_v63, %v2491_v63 }
 0x16c   :  { %v903_v20 = vsel %vm810_vm0, %v893_v37, 0.0  ;;  %v951_v55 = vsel %vm810_vm0, %v941_v42, 0.0  ;;  %v927_v30 = vsel %vm810_vm0, %v917_v23, 0.0 }
 0x16d   :  { %946 = vadd.xlane.f32.xlu0 %v945_v36  ;;  %v975_v32 = vsel %vm810_vm0, %v965_v31, 0.0 }
 0x16e   :  { %901 = vadd.xlane.f32.xlu2 %v900_v16  ;;  %970 = vadd.xlane.f32.xlu1 %v969_v6 }
 0x171   :  { %v2503_v8 = vpop.permute.xlu1 %1274 }
 0x175   :  { %925 = vadd.xlane.f32.xlu0 %v924_v56 }
 0x176   :  { %973 = vadd.xlane.f32.xlu2 %v972_v10  ;;  %949 = vadd.xlane.f32.xlu1 %v948_v39 }
 0x17d   :  { %904 = vadd.xlane.f32.xlu0 %v903_v20 }
 0x17e   :  { %952 = vadd.xlane.f32.xlu2 %v951_v55  ;;  %928 = vadd.xlane.f32.xlu1 %v927_v30 }
 0x185   :  { %976 = vadd.xlane.f32.xlu0 %v975_v32 }
 0x196   :  { %1292 = vperm.xlu2 %1850, %v1282_v13  }
 0x197   :  { %1297 = vperm.xlu1 %1849, %v2068_v52  }
 0x199   :  { %1302 = vperm.xlu0 %1848, %v2073_v53  }
 0x1cf   :  { %v920_v36 = vpop.xlane.xlu1 %919  ;;  %v944_v6 = vpop.xlane.xlu2 %943 }
 0x1d0   :  { %v896_v16 = vpop.xlane.xlu0 %895 }
 0x1d1   :  { %v930_v3 = vadd.f32 %v920_v36, %v896_v16 }
 0x1d3   :  { %v954_v38 = vadd.f32 %v944_v6, %v930_v3 }
 0x1d8   :  { %v968_v45 = vpop.xlane.xlu0 %967 }
 0x1d9   :  { %v978_v14 = vadd.f32 %v968_v45, %v954_v38  ;;  %v899_v56 = vpop.xlane.xlu1 %898  ;;  %v923_v10 = vpop.xlane.xlu2 %922 }
 0x1da   :  { %v931_v52 = vadd.f32 %v923_v10, %v899_v56 }
 0x1db   :  { %v982_v39 = vmul.f32 %v978_v14, %v2396_v15 }
 0x1dd   :  { %v986_v37 = vadd.f32 1e-05, %v982_v39 }
 0x1df   :  { %1853 = vrsqrt.f32 %v986_v37  ;;  %vm996_vm3 = vweird.f32 %v986_v37 }
 0x1e0   :  { %v947_v53 = vpop.xlane.xlu0 %946 }
 0x1e1   :  { %v955_v42 = vadd.f32 %v947_v53, %v931_v52  ;;  %v971_v23 = vpop.xlane.xlu1 %970  ;;  %v902_v20 = vpop.xlane.xlu2 %901 }
 0x1e3   :  { %v979_v55 = vadd.f32 %v971_v23, %v955_v42 }
 0x1e5   :  { %v1854_v30 = vpop.eup %1853  ;;  %v983_v31 = vmul.f32 %v979_v55, %v2396_v15 }
 0x1e6   :  { %v991_v32 = vmul.f32 %v1854_v30, %v986_v37  ;;  %vm997_vm2 = vweird.f32 %v1854_v30 }
 0x1e7   :  { %v987_v13 = vadd.f32 1e-05, %v983_v31  ;;  %vm998_vm4 = vmor %vm996_vm3, %vm997_vm2 }
 0x1e8   :  { %v992_v36 = vmul.f32 %v1854_v30, %v991_v32  ;;  %v926_v16 = vpop.xlane.xlu0 %925 }
 0x1e9   :  { %1855 = vrsqrt.f32 %v987_v13  ;;  %v932_v6 = vadd.f32 %v926_v16, %v902_v20  ;;  %v950_v3 = vpop.xlane.xlu1 %949  ;;  %v974_v14 = vpop.xlane.xlu2 %973  ;;  %vm1006_vm7 = vweird.f32 %v987_v13 }
 0x1ea   :  { %v993_v38 = vmul.f32 0.5, %v992_v36 }
 0x1eb   :  { %v956_v45 = vadd.f32 %v950_v3, %v932_v6 }
 0x1ec   :  { %v994_v39 = vsub.f32 1.5, %v993_v38 }
 0x1ed   :  { %v980_v56 = vadd.f32 %v974_v14, %v956_v45 }
 0x1ee   :  { %v995_v10 = vmul.f32 %v1854_v30, %v994_v39 }
 0x1ef   :  { %v1856_v52 = vpop.eup %1855  ;;  %v984_v53 = vmul.f32 %v980_v56, %v2396_v15 }
 0x1f0   :  { %v999_v42 = vsel %vm998_vm4, %v1854_v30, %v995_v10  ;;  %v1001_v23 = vmul.f32 %v1856_v52, %v987_v13  ;;  %v905_v55 = vpop.xlane.xlu0 %904  ;;  %vm1007_vm5 = vweird.f32 %v1856_v52 }
 0x1f1   :  { %v1030_v31 = vmul.f32 %v999_v42, %v2406_v26  ;;  %v1103_v20 = vmul.f32 %v999_v42, %v2403_v4  ;;  %v1176_v32 = vmul.f32 %v999_v42, %v2400_v17  ;;  %v1249_v36 = vmul.f32 %v999_v42, %v2418_v49  ;;  %v929_v16 = vpop.xlane.xlu1 %928  ;;  %v953_v56 = vpop.xlane.xlu2 %952  ;;  %vm1008_vm8 = vmor %vm1006_vm7, %vm1007_vm5 }
 0x1f2   :  { %v1002_v6 = vmul.f32 %v1856_v52, %v1001_v23  ;;  %v2514_v3 = vadd.f32 1e-05, %v984_v53  ;;  %v933_v4 = vadd.f32 %v929_v16, %v905_v55 }
 0x1f3   :  { %v1058_v37 = vmul.f32 %v2356_v47, %v1030_v31  ;;  %v1131_v38 = vmul.f32 %v2332_v29, %v1103_v20  ;;  %v1204_v30 = vmul.f32 %v2378_v33, %v1176_v32  ;;  %v1277_v45 = vmul.f32 %v2394_v27, %v1249_v36 }
 0x1f4   :  { %v1003_v14 = vmul.f32 0.5, %v1002_v6  ;;  %1857 = vrsqrt.f32 %v2514_v3  ;;  %v957_v42 = vadd.f32 %v953_v56, %v933_v4  ;;  %vm1016_vm10 = vweird.f32 %v2514_v3 }
 0x1f5   :  { %v1086_v17 = vadd.f32 %v2354_v35, %v1058_v37  ;;  %v1159_v26 = vadd.f32 %v2380_v61, %v1131_v38  ;;  %v1232_v49 = vadd.f32 %v2366_v51, %v1204_v30  ;;  %v1305_v39 = vadd.f32 %v1288_v41, %v1277_v45 }
 0x1f6   :  { %v1004_v10 = vsub.f32 1.5, %v1003_v14 }
 0x1f7   :  { %v1090_v47 = vmax.f32 %v1086_v17, 0.0  ;;  %v1163_v29 = vmax.f32 %v1159_v26, 0.0  ;;  %v1236_v53 = vmax.f32 %v1232_v49, 0.0  ;;  %v1309_v33 = vmax.f32 %v1305_v39, 0.0 }
 0x1f8   :  { %v1005_v27 = vmul.f32 %v1856_v52, %v1004_v10  ;;  %v977_v23 = vpop.xlane.xlu0 %976 }
 0x1f9   :  { %v1094_v55 = vpack.c.bf16 %v1090_v47, %v1090_v47  ;;  %v1167_v31 = vpack.c.bf16 %v1163_v29, %v1163_v29  ;;  %v1240_v35 = vpack.c.bf16 %v1236_v53, %v1236_v53  ;;  %v1313_v20 = vpack.c.bf16 %v1309_v33, %v1309_v33  ;;  %v1293_v14 = vpop.permute.xlu2 %1292 }
 0x1fa   :  { %v1858_v61 = vpop.eup %1857  ;;  %v981_v51 = vadd.f32 %v977_v23, %v957_v42  ;;  %v1009_v41 = vsel %vm1008_vm8, %v1856_v52, %v1005_v27 }
 0x1fb   :  { %1099 = vst.msk [vmem:[%s2629_s5] sm:$0xf] %vm1098_vm6, %v1094_v55  ;;  %v1011_v32 = vmul.f32 %v1858_v61, %v2514_v3  ;;  %v1031_v36 = vmul.f32 %v1009_v41, %v2428_v60  ;;  %v1104_v13 = vmul.f32 %v1009_v41, %v2425_v44  ;;  %v1177_v52 = vmul.f32 %v1009_v41, %v2436_v21 }
 0x1fc   :  { %1754 = vst.msk [vmem:[%s2629_s5 + $0x10] sm:$0xf] %vm1098_vm6, %v1167_v31  ;;  %v985_v16 = vmul.f32 %v981_v51, %v2396_v15  ;;  %v1250_v6 = vmul.f32 %v1009_v41, %v2444_v22  ;;  %vm1017_vm9 = vweird.f32 %v1858_v61 }
 0x1fd   :  { %1758 = vst.msk [vmem:[%s2629_s5 + $0x20] sm:$0xf] %vm1098_vm6, %v1240_v35  ;;  %v1012_v37 = vmul.f32 %v1858_v61, %v1011_v32  ;;  %v1059_v60 = vmul.f32 %v2301_v58, %v1031_v36  ;;  %v1132_v44 = vmul.f32 %v2376_v59, %v1104_v13  ;;  %v1205_v21 = vmul.f32 %v2358_v48, %v1177_v52  ;;  %vm1018_vm11 = vmor %vm1016_vm10, %vm1017_vm9 }
 0x1fe   :  { %1762 = vst.msk [vmem:[%s2629_s5 + $0x30] sm:$0xf] %vm1098_vm6, %v1313_v20  ;;  %v989_v15 = vadd.f32 1e-05, %v985_v16  ;;  %v1278_v22 = vmul.f32 %v2390_v11, %v1250_v6 }
 0x1ff   :  { %v1013_v38 = vmul.f32 0.5, %v1012_v37  ;;  %v1087_v30 = vadd.f32 %v2313_v7, %v1059_v60  ;;  %v1160_v45 = vadd.f32 %v2374_v57, %v1132_v44  ;;  %v1233_v58 = vadd.f32 %v2392_v12, %v1205_v21  ;;  %v2634_v21 = vld [vmem:[#allocation4_spill] sm:$0xff] }
 0x200   :  { %1859 = vrsqrt.f32 %v989_v15  ;;  %v1306_v59 = vadd.f32 %v1293_v14, %v1278_v22  ;;  %vm1026_vm13 = vweird.f32 %v989_v15  ;;  %v2635_v22 = vld [vmem:[#allocation3_spill] sm:$0xff] }
 0x201   :  { %v1014_v4 = vsub.f32 1.5, %v1013_v38  ;;  %v1091_v17 = vmax.f32 %v1087_v30, 0.0  ;;  %v1164_v26 = vmax.f32 %v1160_v45, 0.0  ;;  %v1237_v49 = vmax.f32 %v1233_v58, 0.0 }
 0x202   :  { %v1310_v39 = vmax.f32 %v1306_v59, 0.0 }
 0x203   :  { %v1015_v56 = vmul.f32 %v1858_v61, %v1014_v4  ;;  %v1095_v48 = vpack.c.bf16 %v1091_v17, %v1091_v17  ;;  %v1168_v11 = vpack.c.bf16 %v1164_v26, %v1164_v26  ;;  %v1241_v7 = vpack.c.bf16 %v1237_v49, %v1237_v49 }
 0x204   :  { %v1314_v10 = vpack.c.bf16 %v1310_v39, %v1310_v39 }
 0x205   :  { %1100 = vst.msk [vmem:[%s2629_s5 + $0x4] sm:$0xf] %vm1098_vm6, %v1095_v48  ;;  %v1019_v57 = vsel %vm1018_vm11, %v1858_v61, %v1015_v56 }
 0x206   :  { %v1860_v12 = vpop.eup %1859  ;;  %1755 = vst.msk [vmem:[%s2629_s5 + $0x14] sm:$0xf] %vm1098_vm6, %v1168_v11  ;;  %v1032_v47 = vmul.f32 %v1019_v57, %v2441_v25  ;;  %v1105_v3 = vmul.f32 %v1019_v57, %v2454_v2  ;;  %v1178_v29 = vmul.f32 %v1019_v57, %v2462_v0  ;;  %v1251_v53 = vmul.f32 %v1019_v57, %v2459_v24 }
 0x207   :  { %v1021_v33 = vmul.f32 %v1860_v12, %v989_v15  ;;  %1759 = vst.msk [vmem:[%s2629_s5 + $0x24] sm:$0xf] %vm1098_vm6, %v1241_v7  ;;  %vm1027_vm12 = vweird.f32 %v1860_v12  ;;  %v2633_v15 = vld [vmem:[#allocation2_spill] sm:$0xff] }
 0x208   :  { %1763 = vst.msk [vmem:[%s2629_s5 + $0x34] sm:$0xf] %vm1098_vm6, %v1314_v10  ;;  %v1060_v27 = vmul.f32 %v2347_v43, %v1032_v47  ;;  %v1133_v25 = vmul.f32 %v2368_v54, %v1105_v3  ;;  %v1206_v2 = vmul.f32 %v2388_v5, %v1178_v29  ;;  %v1279_v0 = vmul.f32 %v2505_v28, %v1251_v53  ;;  %vm1028_vm14 = vmor %vm1026_vm13, %vm1027_vm12 }
 0x209   :  { %v1022_v24 = vmul.f32 %v1860_v12, %v1021_v33  ;;  %v1298_v42 = vpop.permute.xlu1 %1297 }
 0x20a   :  { %v1088_v23 = vadd.f32 %v2370_v34, %v1060_v27  ;;  %v1161_v55 = vadd.f32 %v2352_v46, %v1133_v25  ;;  %v1234_v31 = vadd.f32 %v2386_v1, %v1206_v2  ;;  %v1307_v35 = vadd.f32 %v1298_v42, %v1279_v0 }
 0x20b   :  { %v1023_v61 = vmul.f32 0.5, %v1022_v24 }
 0x20c   :  { %v1092_v20 = vmax.f32 %v1088_v23, 0.0  ;;  %v1165_v51 = vmax.f32 %v1161_v55, 0.0  ;;  %v1238_v41 = vmax.f32 %v1234_v31, 0.0  ;;  %v1311_v43 = vmax.f32 %v1307_v35, 0.0 }
 0x20d   :  { %v1024_v32 = vsub.f32 1.5, %v1023_v61 }
 0x20e   :  { %v1096_v54 = vpack.c.bf16 %v1092_v20, %v1092_v20  ;;  %v1169_v5 = vpack.c.bf16 %v1165_v51, %v1165_v51  ;;  %v1242_v36 = vpack.c.bf16 %v1238_v41, %v1238_v41  ;;  %v1315_v13 = vpack.c.bf16 %v1311_v43, %v1311_v43 }
 0x20f   :  { %v1025_v28 = vmul.f32 %v1860_v12, %v1024_v32 }
 0x210   :  { %1101 = vst.msk [vmem:[%s2629_s5 + $0x8] sm:$0xf] %vm1098_vm6, %v1096_v54 }
 0x211   :  { %1756 = vst.msk [vmem:[%s2629_s5 + $0x18] sm:$0xf] %vm1098_vm6, %v1169_v5  ;;  %v1029_v46 = vsel %vm1028_vm14, %v1860_v12, %v1025_v28 }
 0x212   :  { %1760 = vst.msk [vmem:[%s2629_s5 + $0x28] sm:$0xf] %vm1098_vm6, %v1242_v36  ;;  %v1033_v34 = vmul.f32 %v1029_v46, %v2473_v19  ;;  %v1106_v1 = vmul.f32 %v1029_v46, %v2481_v9  ;;  %v1179_v16 = vmul.f32 %v1029_v46, %v2478_v18  ;;  %v1252_v52 = vmul.f32 %v1029_v46, %v2491_v63  ;;  %v1303_v19 = vpop.permute.xlu0 %1302 }
 0x213   :  { %1764 = vst.msk [vmem:[%s2629_s5 + $0x38] sm:$0xf] %vm1098_vm6, %v1315_v13 }
 0x214   :  { %v1061_v6 = vmul.f32 %v2363_v50, %v1033_v34  ;;  %v1134_v37 = vmul.f32 %v2343_v40, %v1106_v1  ;;  %v1207_v60 = vmul.f32 %v2382_v62, %v1179_v16  ;;  %v1280_v44 = vmul.f32 %v2503_v8, %v1252_v52 }
 0x216   :  { %v1089_v9 = vadd.f32 %v2633_v15, %v1061_v6  ;;  %v1162_v18 = vadd.f32 %v2634_v21, %v1134_v37  ;;  %v1235_v63 = vadd.f32 %v2635_v22, %v1207_v60  ;;  %v1308_v38 = vadd.f32 %v1303_v19, %v1280_v44 }
 0x218   :  { %v1093_v30 = vmax.f32 %v1089_v9, 0.0  ;;  %v1166_v45 = vmax.f32 %v1162_v18, 0.0  ;;  %v1239_v14 = vmax.f32 %v1235_v63, 0.0  ;;  %v1312_v58 = vmax.f32 %v1308_v38, 0.0 }
 0x21a   :  { %v1097_v59 = vpack.c.bf16 %v1093_v30, %v1093_v30  ;;  %v1170_v50 = vpack.c.bf16 %v1166_v45, %v1166_v45  ;;  %v1243_v4 = vpack.c.bf16 %v1239_v14, %v1239_v14  ;;  %v1316_v40 = vpack.c.bf16 %v1312_v58, %v1312_v58 }
 0x21c   :  { %1102 = vst.msk [vmem:[%s2629_s5 + $0xc] sm:$0xf] %vm1098_vm6, %v1097_v59 }
 0x21d   :  { %1757 = vst.msk [vmem:[%s2629_s5 + $0x1c] sm:$0xf] %vm1098_vm6, %v1170_v50 }
 0x21e   :  { %1761 = vst.msk [vmem:[%s2629_s5 + $0x2c] sm:$0xf] %vm1098_vm6, %v1243_v4 }
 0x21f   :  { %1765 = vst.msk [vmem:[%s2629_s5 + $0x3c] sm:$0xf] %vm1098_vm6, %v1316_v40 }

// kernel: model_forward.12
= control target key start
LH: loop header
LB: loop body
LE: loop exit
PB: predicated region body
PF: predicated region fallthrough
CT: control target
= control target key end

     0   :  { %v1262_v0 = vmov 0   ;;  %s1768_s3 = inlined_call_operand.vmem [shape: f32[32,1], index: 3, kind: input, shape index: {}]   ;;  %s1769_s2 = inlined_call_operand.vmem [shape: f32[32,1], index: 2, kind: input, shape index: {}]   ;;  %s1770_s0 = inlined_call_operand.vmem [shape: bf16[4,128,128], index: 0, kind: input, shape index: {}]   ;;  %s1771_s4 = inlined_call_operand.vmem [shape: f32[32,1], index: 4, kind: input, shape index: {}]   ;;  %s1772_s1 = inlined_call_operand.vmem [shape: bf16[4,32,128], index: 1, kind: input, shape index: {}]   ;;  %s1773_s5 = inlined_call_operand.vmem [shape: bf16[4,32,128], index: 5, kind: output, shape index: {}]  }
   0x1   :  { %1251 = vset.pattern.permute.xlu2 %v1262_v0  ;;  %1249 = vset.pattern.permute.xlu0 %v1262_v0  ;;  %v1297_v1 = vld [vmem:[%s1768_s3 + $0x8] sm:$0xff]  ;;  %v40_v2 = vld [vmem:[%s1769_s2] sm:$0xff]  ;;  %v1169_v3 = vld [vmem:[%s1770_s0 + $0x38] sm:$0xff] }
   0x2   :  { %648 = vperm.xlu2 %1251, %v1297_v1   ;;  %46 = vperm.xlu0 %1249, %v40_v2   ;;  %v1179_v4 = vld [vmem:[%s1770_s0 + $0x78] sm:$0xff]  ;;  %v1168_v7 = vld [vmem:[%s1770_s0 + $0x30] sm:$0xff]  ;;  %v1333_v12 = vld [vmem:[%s1771_s4 + $0x8] sm:$0xff] }
   0x3   :  { %v1189_v5 = vld [vmem:[%s1770_s0 + $0xb8] sm:$0xff]  ;;  %124 = vmatpush.bf16.msra.mxu0 %v1169_v3  ;;  %1250 = vset.pattern.permute.xlu1 %v1262_v0  ;;  %v1178_v8 = vld [vmem:[%s1770_s0 + $0x70] sm:$0xff]  ;;  %v41_v13 = vld [vmem:[%s1769_s2 + $0x8] sm:$0xff] }
   0x4   :  { %v1199_v6 = vld [vmem:[%s1770_s0 + $0xf8] sm:$0xff]  ;;  %225 = vmatpush.bf16.msra.mxu1 %v1179_v4  ;;  %326 = vmatpush.bf16.msra.mxu2 %v1189_v5  ;;  %v1188_v9 = vld [vmem:[%s1770_s0 + $0xb0] sm:$0xff]  ;;  %v1167_v14 = vld [vmem:[%s1770_s0 + $0x28] sm:$0xff] }
   0x5   :  { %427 = vmatpush.bf16.msra.mxu3 %v1199_v6  ;;  %v1198_v10 = vld [vmem:[%s1770_s0 + $0xf0] sm:$0xff]  ;;  %v1177_v15 = vld [vmem:[%s1770_s0 + $0x68] sm:$0xff]  ;;  %v1166_v18 = vld [vmem:[%s1770_s0 + $0x20] sm:$0xff] }
   0x6   :  { %v42_v11 = vld [vmem:[%s1769_s2 + $0x10] sm:$0xff]  ;;  %v1187_v16 = vld [vmem:[%s1770_s0 + $0xa8] sm:$0xff]  ;;  %v1176_v19 = vld [vmem:[%s1770_s0 + $0x60] sm:$0xff] }
   0x7   :  { %125 = vmatpush.bf16.msra.mxu0 %v1168_v7  ;;  %56 = vperm.xlu1 %1250, %v42_v11   ;;  %v1197_v17 = vld [vmem:[%s1770_s0 + $0xe8] sm:$0xff]  ;;  %v1186_v20 = vld [vmem:[%s1770_s0 + $0xa0] sm:$0xff]  ;;  %v43_v21 = vld [vmem:[%s1769_s2 + $0x18] sm:$0xff] }
   0x8   :  { %226 = vmatpush.bf16.msra.mxu1 %v1178_v8  ;;  %327 = vmatpush.bf16.msra.mxu2 %v1188_v9  ;;  %v1196_v22 = vld [vmem:[%s1770_s0 + $0xe0] sm:$0xff]  ;;  %v1374_v24 = vld [vmem:[%s1768_s3 + $0x10] sm:$0xff]  ;;  %v1165_v25 = vld [vmem:[%s1770_s0 + $0x18] sm:$0xff] }
   0x9   :  { %428 = vmatpush.bf16.msra.mxu3 %v1198_v10  ;;  %v1369_v23 = vld [vmem:[%s1768_s3] sm:$0xff]  ;;  %v1175_v26 = vld [vmem:[%s1770_s0 + $0x58] sm:$0xff]  ;;  %v1164_v29 = vld [vmem:[%s1770_s0 + $0x10] sm:$0xff] }
   0xa   :  { %676 = vperm.xlu2 %1251, %v1333_v12   ;;  %51 = vperm.xlu0 %1249, %v41_v13   ;;  %v1185_v27 = vld [vmem:[%s1770_s0 + $0x98] sm:$0xff]  ;;  %v1174_v30 = vld [vmem:[%s1770_s0 + $0x50] sm:$0xff]  ;;  %v1410_v34 = vld [vmem:[%s1771_s4] sm:$0xff] }
   0xb   :  { %126 = vmatpush.bf16.msra.mxu0 %v1167_v14  ;;  %v1195_v28 = vld [vmem:[%s1770_s0 + $0xd8] sm:$0xff]  ;;  %v1184_v31 = vld [vmem:[%s1770_s0 + $0x90] sm:$0xff]  ;;  %v1163_v35 = vld [vmem:[%s1770_s0 + $0x8] sm:$0xff] }
   0xc   :  { %227 = vmatpush.bf16.msra.mxu1 %v1177_v15  ;;  %328 = vmatpush.bf16.msra.mxu2 %v1187_v16  ;;  %v1194_v32 = vld [vmem:[%s1770_s0 + $0xd0] sm:$0xff]  ;;  %v1405_v33 = vld [vmem:[%s1768_s3 + $0x18] sm:$0xff]  ;;  %v1173_v36 = vld [vmem:[%s1770_s0 + $0x48] sm:$0xff] }
   0xd   :  { %429 = vmatpush.bf16.msra.mxu3 %v1197_v17  ;;  %v1183_v37 = vld [vmem:[%s1770_s0 + $0x88] sm:$0xff]  ;;  %v1162_v39 = vld [vmem:[%s1770_s0] sm:$0xff]  ;;  %v1442_v43 = vld [vmem:[%s1771_s4 + $0x10] sm:$0xff] }
   0xe   :  { %v1193_v38 = vld [vmem:[%s1770_s0 + $0xc8] sm:$0xff]  ;;  %v1172_v40 = vld [vmem:[%s1770_s0 + $0x40] sm:$0xff]  ;;  %v1447_v44 = vld [vmem:[%s1771_s4 + $0x18] sm:$0xff] }
   0xf   :  { %127 = vmatpush.bf16.msra.mxu0 %v1166_v18  ;;  %61 = vperm.xlu1 %1250, %v43_v21   ;;  %v1182_v41 = vld [vmem:[%s1770_s0 + $0x80] sm:$0xff]  ;;  %v1170_v46 = vld [vmem:[%s1772_s1 + $0x10] sm:$0xff]  ;;  %v1161_v49 = vld [vmem:[%s1772_s1 + $0x8] sm:$0xff] }
  0x10   :  { %228 = vmatpush.bf16.msra.mxu1 %v1176_v19  ;;  %329 = vmatpush.bf16.msra.mxu2 %v1186_v20  ;;  %v1192_v42 = vld [vmem:[%s1770_s0 + $0xc0] sm:$0xff]  ;;  %v1190_v48 = vld [vmem:[%s1772_s1 + $0x30] sm:$0xff]  ;;  %v1171_v50 = vld [vmem:[%s1772_s1 + $0x18] sm:$0xff] }
  0x11   :  { %430 = vmatpush.bf16.msra.mxu3 %v1196_v22  ;;  %v1160_v45 = vld [vmem:[%s1772_s1] sm:$0xff]  ;;  %v1191_v51 = vld [vmem:[%s1772_s1 + $0x38] sm:$0xff]  ;;  %v1181_v52 = vld [vmem:[%s1772_s1 + $0x28] sm:$0xff] }
  0x12   :  { %715 = vperm.xlu2 %1251, %v1369_v23   ;;  %653 = vperm.xlu0 %1249, %v1374_v24   ;;  %v1180_v47 = vld [vmem:[%s1772_s1 + $0x20] sm:$0xff] }
  0x13   :  { %128 = vmatpush.bf16.msra.mxu0 %v1165_v25 }
  0x14   :  { %229 = vmatpush.bf16.msra.mxu1 %v1175_v26  ;;  %330 = vmatpush.bf16.msra.mxu2 %v1185_v27 }
  0x15   :  { %431 = vmatpush.bf16.msra.mxu3 %v1195_v28 }
  0x17   :  { %129 = vmatpush.bf16.msra.mxu0 %v1164_v29  ;;  %643 = vperm.xlu1 %1250, %v1369_v23  }
  0x18   :  { %230 = vmatpush.bf16.msra.mxu1 %v1174_v30  ;;  %331 = vmatpush.bf16.msra.mxu2 %v1184_v31 }
  0x19   :  { %432 = vmatpush.bf16.msra.mxu3 %v1194_v32 }
  0x1a   :  { %730 = vperm.xlu2 %1251, %v1405_v33   ;;  %671 = vperm.xlu0 %1249, %v1410_v34  }
  0x1b   :  { %130 = vmatpush.bf16.msra.mxu0 %v1163_v35 }
  0x1c   :  { %231 = vmatpush.bf16.msra.mxu1 %v1173_v36  ;;  %332 = vmatpush.bf16.msra.mxu2 %v1183_v37 }
  0x1d   :  { %433 = vmatpush.bf16.msra.mxu3 %v1193_v38 }
  0x1f   :  { %131 = vmatpush.bf16.msra.mxu0 %v1162_v39  ;;  %658 = vperm.xlu1 %1250, %v1405_v33  }
  0x20   :  { %232 = vmatpush.bf16.msra.mxu1 %v1172_v40  ;;  %333 = vmatpush.bf16.msra.mxu2 %v1182_v41 }
  0x21   :  { %434 = vmatpush.bf16.msra.mxu3 %v1192_v42 }
  0x22   :  { %753 = vperm.xlu2 %1251, %v1442_v43   ;;  %686 = vperm.xlu0 %1249, %v1447_v44  }
  0x23   :  { %132 = vmatmul.bf16.vlgmr.msra.gmra.mxu0 %v1160_v45  ;;  %233 = vmatmul.bf16.vlgmr.msra.gmra.mxu1 %v1170_v46  ;;  %v1263_v46 = vmov 512.0  }
  0x24   :  { %334 = vmatmul.bf16.vlgmr.msra.gmra.mxu2 %v1180_v47  ;;  %435 = vmatmul.bf16.vlgmr.msra.gmra.mxu3 %v1190_v48  ;;  %1252 = vrcp.f32 %v1263_v46 }
  0x27   :  { %681 = vperm.xlu1 %1250, %v1442_v43  }
  0x2a   :  { %793 = vperm.xlu2 %1251, %v1297_v1   ;;  %725 = vperm.xlu0 %1249, %v1374_v24  }
  0x2f   :  { %720 = vperm.xlu1 %1250, %v1297_v1  }
  0x32   :  { %816 = vperm.xlu2 %1251, %v1410_v34   ;;  %748 = vperm.xlu0 %1249, %v1333_v12  }
  0x33   :  { %137 = vmatmul.bf16.gmra.mxu0 %v1161_v49  ;;  %238 = vmatmul.bf16.gmra.mxu1 %v1171_v50  ;;  %v1253_v50 = vpop.eup %1252 }
  0x34   :  { %440 = vmatmul.bf16.gmra.mxu3 %v1191_v51  ;;  %339 = vmatmul.bf16.gmra.mxu2 %v1181_v52  ;;  %v495_v52 = vmul.f32 512.0, %v1253_v50  ;;  %vm499_vm0 = vweird.f32 %v1253_v50 }
  0x37   :  { %743 = vperm.xlu1 %1250, %v1410_v34  }
  0x3a   :  { %831 = vperm.xlu2 %1251, %v1447_v44   ;;  %788 = vperm.xlu0 %1249, %v1369_v23  }
  0x3f   :  { %758 = vperm.xlu1 %1250, %v1447_v44  }
  0x42   :  { %871 = vperm.xlu2 %1251, %v1374_v24   ;;  %803 = vperm.xlu0 %1249, %v1405_v33  }
  0x47   :  { %798 = vperm.xlu1 %1250, %v1374_v24  }
  0x4a   :  { %826 = vperm.xlu0 %1249, %v1442_v43  }
  0x4f   :  { %821 = vperm.xlu1 %1250, %v1333_v12  }
  0x52   :  { %866 = vperm.xlu0 %1249, %v1297_v1  }
  0x57   :  { %861 = vperm.xlu1 %1250, %v1369_v23  }
  0x5c   :  { %v1514_v10 = vpop.permute.xlu2 %648 }
  0x64   :  { %v1527_v19 = vpop.permute.xlu2 %676 }
  0x6c   :  { %v1533_v21 = vpop.permute.xlu2 %715 }
  0x74   :  { %v47_v53 = vpop.permute.xlu0 %46  ;;  %v1541_v25 = vpop.permute.xlu2 %730 }
  0x79   :  { %v57_v3 = vpop.permute.xlu1 %56 }
  0x7c   :  { %v52_v61 = vpop.permute.xlu0 %51  ;;  %v1548_v28 = vpop.permute.xlu2 %753 }
  0x81   :  { %v62_v11 = vpop.permute.xlu1 %61 }
  0x84   :  { %v1550_v29 = vpop.permute.xlu0 %653 }
  0x89   :  { %v1555_v32 = vpop.permute.xlu1 %643 }
  0x8c   :  { %v1559_v35 = vpop.permute.xlu0 %671 }
  0x91   :  { %v1561_v36 = vpop.permute.xlu1 %658 }
  0x94   :  { %v1565_v37 = vpop.permute.xlu0 %686 }
  0x95   :  { %1774 = vst [vmem:[#allocation2_spill] sm:$0xff] %v1565_v37 }
  0x99   :  { %v1567_v38 = vpop.permute.xlu1 %681 }
  0x9c   :  { %v1571_v40 = vpop.permute.xlu0 %725 }
  0xa0   :  { %v133_v54 = vpop.f32.mrf.mxu0  ;;  %v234_v56 = vpop.f32.mrf.mxu1 }
  0xa1   :  { %v1493_v55 = vadd.f32 %v133_v54, %v47_v53  ;;  %v1496_v59 = vadd.f32 %v234_v56, %v47_v53  ;;  %v1573_v41 = vpop.permute.xlu1 %720  ;;  %v496_v56 = vsub.f32 1.0, %v495_v52 }
  0xa3   :  { %446 = vadd.xlane.f32.xlu2 %v1493_v55 }
  0xa4   :  { %v1577_v45 = vpop.permute.xlu0 %748 }
  0xa7   :  { %v335_v57 = vpop.f32.mrf.mxu2  ;;  %v436_v58 = vpop.f32.mrf.mxu3 }
  0xa8   :  { %v135_v60 = vpop.f32.mrf.mxu0  ;;  %v1501_v0 = vadd.f32 %v335_v57, %v47_v53  ;;  %v1509_v7 = vadd.f32 %v436_v58, %v47_v53  ;;  %v236_v17 = vpop.f32.mrf.mxu1  ;;  %v497_v58 = vmul.f32 %v1253_v50, %v496_v56 }
  0xa9   :  { %v1520_v15 = vadd.f32 %v135_v60, %v52_v61  ;;  %v1529_v20 = vadd.f32 %v236_v17, %v52_v61  ;;  %v1579_v48 = vpop.permute.xlu1 %743 }
  0xaa   :  { %v498_v60 = vadd.f32 %v1253_v50, %v497_v58 }
  0xab   :  { %458 = vadd.xlane.f32.xlu2 %v1496_v59 }
  0xac   :  { %v1581_v49 = vpop.permute.xlu0 %788 }
  0xaf   :  { %v438_v62 = vpop.f32.mrf.mxu3  ;;  %v337_v1 = vpop.f32.mrf.mxu2 }
  0xb0   :  { %v1499_v63 = vadd.f32 %v438_v62, %v52_v61  ;;  %v138_v2 = vpop.f32.mrf.mxu0  ;;  %v1535_v22 = vadd.f32 %v337_v1, %v52_v61  ;;  %v239_v23 = vpop.f32.mrf.mxu1 }
  0xb1   :  { %v1505_v4 = vadd.f32 %v138_v2, %v57_v3  ;;  %v1539_v24 = vadd.f32 %v239_v23, %v57_v3  ;;  %v1583_v53 = vpop.permute.xlu1 %758 }
  0xb2   :  { %484 = vadd.xlane.f32.xlu0 %v1499_v63  ;;  %1776 = vst [vmem:[#allocation4_spill] sm:$0xff] %v1583_v53 }
  0xb3   :  { %470 = vadd.xlane.f32.xlu2 %v1501_v0 }
  0xb4   :  { %v1585_v54 = vpop.permute.xlu0 %803 }
  0xb7   :  { %v441_v5 = vpop.f32.mrf.mxu3  ;;  %v340_v8 = vpop.f32.mrf.mxu2 }
  0xb8   :  { %v1507_v6 = vadd.f32 %v441_v5, %v57_v3  ;;  %v140_v9 = vpop.f32.mrf.mxu0  ;;  %v1518_v14 = vadd.f32 %v340_v8, %v57_v3  ;;  %v241_v26 = vpop.f32.mrf.mxu1  ;;  %v1591_v3 = vsel %vm499_vm0, %v1253_v50, %v498_v60 }
  0xb9   :  { %v1516_v13 = vadd.f32 %v140_v9, %v62_v11  ;;  %v1544_v27 = vadd.f32 %v241_v26, %v62_v11  ;;  %v1587_v61 = vpop.permute.xlu1 %798 }
  0xba   :  { %486 = vadd.xlane.f32.xlu1 %v1507_v6  ;;  %450 = vadd.xlane.f32.xlu0 %v1505_v4 }
  0xbb   :  { %482 = vadd.xlane.f32.xlu2 %v1509_v7 }
  0xbc   :  { %v1589_v1 = vpop.permute.xlu0 %826 }
  0xbf   :  { %v342_v16 = vpop.f32.mrf.mxu2  ;;  %v443_v30 = vpop.f32.mrf.mxu3 }
  0xc0   :  { %v1525_v18 = vadd.f32 %v342_v16, %v62_v11  ;;  %v1552_v31 = vadd.f32 %v443_v30, %v62_v11 }
  0xc1   :  { %v1603_v23 = vpop.permute.xlu1 %821 }
  0xc2   :  { %452 = vadd.xlane.f32.xlu1 %v1516_v13  ;;  %474 = vadd.xlane.f32.xlu0 %v1518_v14 }
  0xc3   :  { %448 = vadd.xlane.f32.xlu2 %v1520_v15 }
  0xc9   :  { %v1618_v52 = vpop.permute.xlu1 %861 }
  0xca   :  { %476 = vadd.xlane.f32.xlu1 %v1525_v18 }
  0xcb   :  { %460 = vadd.xlane.f32.xlu2 %v1529_v20 }
  0xd3   :  { %472 = vadd.xlane.f32.xlu2 %v1535_v22 }
  0xd6   :  { %889 = vperm.xlu0 %1249, %v1410_v34   ;;  %v1557_v34 = vpop.permute.xlu2 %793 }
  0xdb   :  { %462 = vadd.xlane.f32.xlu2 %v1539_v24 }
  0xe3   :  { %876 = vperm.xlu1 %1250, %v1405_v33   ;;  %464 = vadd.xlane.f32.xlu2 %v1544_v27  ;;  %v1563_v33 = vpop.permute.xlu2 %816 }
  0xeb   :  { %488 = vadd.xlane.f32.xlu2 %v1552_v31  ;;  %v1569_v39 = vpop.permute.xlu2 %831 }
  0xec   :  { %1775 = vst [vmem:[#allocation3_spill] sm:$0xff] %v1569_v39 }
  0xf3   :  { %v1575_v42 = vpop.permute.xlu2 %871 }
 0x116   :  { %v447_v47 = vpop.xlane.xlu2 %446 }
 0x11e   :  { %v459_v51 = vpop.xlane.xlu2 %458 }
 0x11f   :  { %v466_v62 = vadd.f32 %v459_v51, %v447_v47  ;;  %v1611_v47 = vpop.permute.xlu0 %866 }
 0x126   :  { %v471_v57 = vpop.xlane.xlu2 %470 }
 0x127   :  { %v478_v2 = vadd.f32 %v471_v57, %v466_v62 }
 0x12d   :  { %v487_v62 = vpop.xlane.xlu1 %486 }
 0x12e   :  { %v483_v5 = vpop.xlane.xlu2 %482 }
 0x12f   :  { %v490_v8 = vadd.f32 %v483_v5, %v478_v2 }
 0x131   :  { %v501_v9 = vmul.f32 %v1591_v3, %v490_v8 }
 0x133   :  { %v1595_v11 = vsub.f32 %v1501_v0, %v501_v9  ;;  %v1598_v16 = vsub.f32 %v1496_v59, %v501_v9  ;;  %v1601_v17 = vsub.f32 %v1493_v55, %v501_v9  ;;  %v1614_v55 = vsub.f32 %v1509_v7, %v501_v9  ;;  %v485_v59 = vpop.xlane.xlu0 %484 }
 0x135   :  { %v549_v26 = vmul.f32 %v1595_v11, %v1595_v11  ;;  %v529_v30 = vmul.f32 %v1598_v16, %v1598_v16  ;;  %v509_v46 = vmul.f32 %v1601_v17, %v1601_v17  ;;  %v569_v51 = vmul.f32 %v1614_v55, %v1614_v55 }
 0x136   :  { %v449_v0 = vpop.xlane.xlu2 %448 }
 0x137   :  { %553 = vadd.xlane.f32.xlu2 %v549_v26  ;;  %533 = vadd.xlane.f32.xlu1 %v529_v30 }
 0x138   :  { %513 = vadd.xlane.f32.xlu0 %v509_v46 }
 0x13b   :  { %v451_v57 = vpop.xlane.xlu0 %450 }
 0x13e   :  { %v461_v50 = vpop.xlane.xlu2 %460 }
 0x13f   :  { %v467_v56 = vadd.f32 %v461_v50, %v449_v0 }
 0x140   :  { %573 = vadd.xlane.f32.xlu0 %v569_v51 }
 0x143   :  { %v475_v50 = vpop.xlane.xlu0 %474 }
 0x146   :  { %v473_v58 = vpop.xlane.xlu2 %472 }
 0x147   :  { %v479_v60 = vadd.f32 %v473_v58, %v467_v56 }
 0x149   :  { %v491_v2 = vadd.f32 %v485_v59, %v479_v60 }
 0x14b   :  { %v502_v5 = vmul.f32 %v1591_v3, %v491_v2 }
 0x14d   :  { %v1622_v8 = vsub.f32 %v1535_v22, %v502_v5  ;;  %v1625_v7 = vsub.f32 %v1529_v20, %v502_v5  ;;  %v1628_v9 = vsub.f32 %v1520_v15, %v502_v5  ;;  %v453_v20 = vpop.xlane.xlu1 %452  ;;  %v1637_v15 = vsub.f32 %v1499_v63, %v502_v5 }
 0x14e   :  { %v463_v26 = vpop.xlane.xlu2 %462 }
 0x14f   :  { %v468_v30 = vadd.f32 %v463_v26, %v451_v57  ;;  %v550_v46 = vmul.f32 %v1622_v8, %v1622_v8  ;;  %v530_v0 = vmul.f32 %v1625_v7, %v1625_v7  ;;  %v510_v59 = vmul.f32 %v1628_v9, %v1628_v9 }
 0x150   :  { %v570_v2 = vmul.f32 %v1637_v15, %v1637_v15 }
 0x151   :  { %v480_v22 = vadd.f32 %v475_v50, %v468_v30  ;;  %555 = vadd.xlane.f32.xlu0 %v550_v46  ;;  %535 = vadd.xlane.f32.xlu2 %v530_v0 }
 0x152   :  { %515 = vadd.xlane.f32.xlu1 %v510_v59 }
 0x153   :  { %v492_v51 = vadd.f32 %v487_v62, %v480_v22 }
 0x155   :  { %v503_v56 = vmul.f32 %v1591_v3, %v492_v51  ;;  %v477_v62 = vpop.xlane.xlu1 %476 }
 0x156   :  { %v465_v57 = vpop.xlane.xlu2 %464 }
 0x157   :  { %v1641_v58 = vsub.f32 %v1539_v24, %v503_v56  ;;  %v1644_v60 = vsub.f32 %v1505_v4, %v503_v56  ;;  %v469_v26 = vadd.f32 %v465_v57, %v453_v20  ;;  %v1653_v24 = vsub.f32 %v1518_v14, %v503_v56 }
 0x158   :  { %v1656_v4 = vsub.f32 %v1507_v6, %v503_v56 }
 0x159   :  { %v531_v30 = vmul.f32 %v1641_v58, %v1641_v58  ;;  %v511_v63 = vmul.f32 %v1644_v60, %v1644_v60  ;;  %v481_v5 = vadd.f32 %v477_v62, %v469_v26  ;;  %v551_v59 = vmul.f32 %v1653_v24, %v1653_v24 }
 0x15a   :  { %575 = vadd.xlane.f32.xlu1 %v570_v2  ;;  %v571_v22 = vmul.f32 %v1656_v4, %v1656_v4 }
 0x15b   :  { %537 = vadd.xlane.f32.xlu0 %v531_v30  ;;  %517 = vadd.xlane.f32.xlu2 %v511_v63 }
 0x15e   :  { %v489_v46 = vpop.xlane.xlu2 %488 }
 0x15f   :  { %v493_v0 = vadd.f32 %v489_v46, %v481_v5 }
 0x161   :  { %v504_v50 = vmul.f32 %v1591_v3, %v493_v0 }
 0x162   :  { %557 = vadd.xlane.f32.xlu1 %v551_v59 }
 0x163   :  { %577 = vadd.xlane.f32.xlu2 %v571_v22  ;;  %v1664_v20 = vsub.f32 %v1516_v13, %v504_v50  ;;  %v1667_v14 = vsub.f32 %v1544_v27, %v504_v50  ;;  %v1672_v51 = vsub.f32 %v1525_v18, %v504_v50  ;;  %v1679_v2 = vsub.f32 %v1552_v31, %v504_v50  ;;  %v1686_v18 = vpop.permute.xlu0 %889  ;;  %v1688_v27 = vpop.permute.xlu1 %876 }
 0x164   :  { %1777 = vst [vmem:[#allocation5_spill] sm:$0xff] %v1688_v27 }
 0x165   :  { %v512_v6 = vmul.f32 %v1664_v20, %v1664_v20  ;;  %v532_v56 = vmul.f32 %v1667_v14, %v1667_v14  ;;  %v552_v57 = vmul.f32 %v1672_v51, %v1672_v51  ;;  %v572_v13 = vmul.f32 %v1679_v2, %v1679_v2 }
 0x167   :  { %519 = vadd.xlane.f32.xlu0 %v512_v6 }
 0x16a   :  { %539 = vadd.xlane.f32.xlu1 %v532_v56 }
 0x16b   :  { %559 = vadd.xlane.f32.xlu2 %v552_v57 }
 0x16f   :  { %579 = vadd.xlane.f32.xlu0 %v572_v13 }
 0x183   :  { %899 = vperm.xlu1 %1250, %v1442_v43   ;;  %894 = vperm.xlu2 %1251, %v1333_v12  }
 0x184   :  { %904 = vperm.xlu0 %1249, %v1447_v44  }
 0x1aa   :  { %v534_v26 = vpop.xlane.xlu1 %533  ;;  %v554_v63 = vpop.xlane.xlu2 %553 }
 0x1ab   :  { %v514_v30 = vpop.xlane.xlu0 %513 }
 0x1ac   :  { %v541_v31 = vadd.f32 %v534_v26, %v514_v30 }
 0x1ae   :  { %v561_v62 = vadd.f32 %v554_v63, %v541_v31 }
 0x1b3   :  { %v574_v5 = vpop.xlane.xlu0 %573 }
 0x1b4   :  { %v581_v46 = vadd.f32 %v574_v5, %v561_v62 }
 0x1b6   :  { %v585_v0 = vmul.f32 %v581_v46, %v1591_v3 }
 0x1b8   :  { %v589_v59 = vadd.f32 1e-05, %v585_v0 }
 0x1ba   :  { %1254 = vrsqrt.f32 %v589_v59  ;;  %vm599_vm2 = vweird.f32 %v589_v59 }
 0x1c0   :  { %v1255_v43 = vpop.eup %1254 }
 0x1c1   :  { %v594_v22 = vmul.f32 %v1255_v43, %v589_v59  ;;  %vm600_vm1 = vweird.f32 %v1255_v43 }
 0x1c2   :  { %vm601_vm3 = vmor %vm599_vm2, %vm600_vm1 }
 0x1c3   :  { %v595_v56 = vmul.f32 %v1255_v43, %v594_v22 }
 0x1c4   :  { %v536_v12 = vpop.xlane.xlu2 %535  ;;  %v556_v6 = vpop.xlane.xlu0 %555 }
 0x1c5   :  { %v516_v50 = vpop.xlane.xlu1 %515  ;;  %v596_v39 = vmul.f32 0.5, %v595_v56 }
 0x1c6   :  { %v542_v44 = vadd.f32 %v536_v12, %v516_v50 }
 0x1c7   :  { %v597_v63 = vsub.f32 1.5, %v596_v39 }
 0x1c8   :  { %v562_v57 = vadd.f32 %v556_v6, %v542_v44 }
 0x1c9   :  { %v598_v0 = vmul.f32 %v1255_v43, %v597_v63 }
 0x1cb   :  { %v602_v22 = vsel %vm601_vm3, %v1255_v43, %v598_v0 }
 0x1cc   :  { %v633_v39 = vmul.f32 %v602_v22, %v1601_v17  ;;  %v851_v43 = vmul.f32 %v602_v22, %v1614_v55 }
 0x1cd   :  { %v576_v13 = vpop.xlane.xlu1 %575 }
 0x1ce   :  { %v582_v53 = vadd.f32 %v576_v13, %v562_v57  ;;  %v518_v26 = vpop.xlane.xlu2 %517  ;;  %v538_v31 = vpop.xlane.xlu0 %537 }
 0x1cf   :  { %v543_v5 = vadd.f32 %v538_v31, %v518_v26  ;;  %v705_v26 = vmul.f32 %v602_v22, %v1598_v16  ;;  %v661_v31 = vmul.f32 %v1555_v32, %v633_v39 }
 0x1d0   :  { %v586_v30 = vmul.f32 %v582_v53, %v1591_v3 }
 0x1d1   :  { %v733_v17 = vmul.f32 %v1533_v21, %v705_v26 }
 0x1d2   :  { %v590_v62 = vadd.f32 1e-05, %v586_v30 }
 0x1d3   :  { %v761_v39 = vadd.f32 %v1579_v48, %v733_v17 }
 0x1d4   :  { %1256 = vrsqrt.f32 %v590_v62  ;;  %vm609_vm5 = vweird.f32 %v590_v62 }
 0x1d5   :  { %v558_v46 = vpop.xlane.xlu1 %557 }
 0x1d6   :  { %v563_v37 = vadd.f32 %v558_v46, %v543_v5  ;;  %v578_v27 = vpop.xlane.xlu2 %577 }
 0x1d8   :  { %v583_v50 = vadd.f32 %v578_v27, %v563_v37  ;;  %v778_v37 = vmul.f32 %v602_v22, %v1595_v11  ;;  %v879_v11 = vmul.f32 %v1618_v52, %v851_v43 }
 0x1da   :  { %v1257_v12 = vpop.eup %1256  ;;  %v587_v44 = vmul.f32 %v583_v50, %v1591_v3  ;;  %v520_v6 = vpop.xlane.xlu0 %519  ;;  %v806_v0 = vmul.f32 %v1581_v49, %v778_v37 }
 0x1db   :  { %v604_v56 = vmul.f32 %v1257_v12, %v590_v62  ;;  %vm610_vm4 = vweird.f32 %v1257_v12 }
 0x1dc   :  { %v1693_v53 = vadd.f32 1e-05, %v587_v44  ;;  %vm611_vm6 = vmor %vm609_vm5, %vm610_vm4 }
 0x1dd   :  { %v605_v57 = vmul.f32 %v1257_v12, %v604_v56  ;;  %v540_v13 = vpop.xlane.xlu1 %539 }
 0x1de   :  { %1258 = vrsqrt.f32 %v1693_v53  ;;  %v544_v30 = vadd.f32 %v540_v13, %v520_v6  ;;  %v560_v59 = vpop.xlane.xlu2 %559  ;;  %v689_v6 = vadd.f32 %v1559_v35, %v661_v31  ;;  %vm619_vm8 = vweird.f32 %v1693_v53 }
 0x1df   :  { %v606_v27 = vmul.f32 0.5, %v605_v57  ;;  %v834_v57 = vadd.f32 %v1563_v33, %v806_v0 }
 0x1e0   :  { %v564_v5 = vadd.f32 %v560_v59, %v544_v30  ;;  %v693_v59 = vmax.f32 %v689_v6, 0.0 }
 0x1e1   :  { %v607_v63 = vsub.f32 1.5, %v606_v27  ;;  %v838_v37 = vmax.f32 %v834_v57, 0.0 }
 0x1e2   :  { %v580_v46 = vpop.xlane.xlu0 %579 }
 0x1e3   :  { %v608_v16 = vmul.f32 %v1257_v12, %v607_v63  ;;  %v584_v50 = vadd.f32 %v580_v46, %v564_v5 }
 0x1e4   :  { %v1259_v44 = vpop.eup %1258 }
 0x1e5   :  { %v614_v55 = vmul.f32 %v1259_v44, %v1693_v53  ;;  %v588_v32 = vmul.f32 %v584_v50, %v1591_v3  ;;  %v612_v22 = vsel %vm611_vm6, %v1257_v12, %v608_v16  ;;  %vm620_vm7 = vweird.f32 %v1259_v44 }
 0x1e6   :  { %v634_v56 = vmul.f32 %v612_v22, %v1628_v9  ;;  %v706_v21 = vmul.f32 %v612_v22, %v1625_v7  ;;  %v779_v49 = vmul.f32 %v612_v22, %v1622_v8  ;;  %v852_v62 = vmul.f32 %v612_v22, %v1637_v15  ;;  %v895_v7 = vpop.permute.xlu2 %894  ;;  %vm621_vm9 = vmor %vm619_vm8, %vm620_vm7 }
 0x1e7   :  { %v615_v52 = vmul.f32 %v1259_v44, %v614_v55  ;;  %v592_v13 = vadd.f32 1e-05, %v588_v32  ;;  %v907_v8 = vadd.f32 %v1686_v18, %v879_v11 }
 0x1e8   :  { %v662_v35 = vmul.f32 %v1514_v10, %v634_v56  ;;  %v734_v26 = vmul.f32 %v1573_v41, %v706_v21  ;;  %v807_v3 = vmul.f32 %v1557_v34, %v779_v49  ;;  %v880_v9 = vmul.f32 %v1611_v47, %v852_v62 }
 0x1e9   :  { %v616_v12 = vmul.f32 0.5, %v615_v52  ;;  %1260 = vrsqrt.f32 %v592_v13  ;;  %v765_v10 = vmax.f32 %v761_v39, 0.0  ;;  %v911_v63 = vmax.f32 %v907_v8, 0.0  ;;  %v1778_v52 = vld [vmem:[#allocation5_spill] sm:$0xff] }
 0x1ea   :  { %v690_v15 = vadd.f32 %v1527_v19, %v662_v35  ;;  %v762_v48 = vadd.f32 %v1577_v45, %v734_v26  ;;  %v835_v33 = vadd.f32 %v1603_v23, %v807_v3  ;;  %v908_v30 = vadd.f32 %v895_v7, %v880_v9  ;;  %v1779_v35 = vld [vmem:[#allocation2_spill] sm:$0xff]  ;;  %v1780_v26 = vld [vmem:[#allocation4_spill] sm:$0xff]  ;;  %v1781_v3 = vld [vmem:[#allocation3_spill] sm:$0xff] }
 0x1eb   :  { %v617_v41 = vsub.f32 1.5, %v616_v12  ;;  %vm629_vm11 = vweird.f32 %v592_v13 }
 0x1ec   :  { %v694_v27 = vmax.f32 %v690_v15, 0.0  ;;  %v766_v34 = vmax.f32 %v762_v48, 0.0  ;;  %v839_v43 = vmax.f32 %v835_v33, 0.0  ;;  %v912_v47 = vmax.f32 %v908_v30, 0.0 }
 0x1ed   :  { %v618_v31 = vmul.f32 %v1259_v44, %v617_v41 }
 0x1ee   :  { %v1203_v18 = vpack.c.bf16 %v694_v27, %v693_v59  ;;  %v1213_v5 = vpack.c.bf16 %v766_v34, %v765_v10  ;;  %v1223_v17 = vpack.c.bf16 %v839_v43, %v838_v37  ;;  %v1233_v45 = vpack.c.bf16 %v912_v47, %v911_v63 }
 0x1ef   :  { %v1261_v19 = vpop.eup %1260  ;;  %v622_v46 = vsel %vm621_vm9, %v1259_v44, %v618_v31 }
 0x1f0   :  { %v624_v23 = vmul.f32 %v1261_v19, %v592_v13  ;;  %1204 = vst [vmem:[%s1773_s5] sm:$0xff] %v1203_v18   ;;  %v635_v16 = vmul.f32 %v622_v46, %v1644_v60  ;;  %v707_v50 = vmul.f32 %v622_v46, %v1641_v58  ;;  %v780_v11 = vmul.f32 %v622_v46, %v1653_v24 }
 0x1f1   :  { %1241 = vst [vmem:[%s1773_s5 + $0x10] sm:$0xff] %v1213_v5   ;;  %vm630_vm10 = vweird.f32 %v1261_v19  ;;  %v853_v44 = vmul.f32 %v622_v46, %v1656_v4 }
 0x1f2   :  { %v625_v0 = vmul.f32 %v1261_v19, %v624_v23  ;;  %1243 = vst [vmem:[%s1773_s5 + $0x20] sm:$0xff] %v1223_v17   ;;  %v663_v32 = vmul.f32 %v1550_v29, %v635_v16  ;;  %v735_v22 = vmul.f32 %v1571_v40, %v707_v50  ;;  %v808_v56 = vmul.f32 %v1587_v61, %v780_v11  ;;  %vm631_vm12 = vmor %vm629_vm11, %vm630_vm10 }
 0x1f3   :  { %1245 = vst [vmem:[%s1773_s5 + $0x30] sm:$0xff] %v1233_v45   ;;  %v881_v40 = vmul.f32 %v1575_v42, %v853_v44 }
 0x1f4   :  { %v626_v53 = vmul.f32 0.5, %v625_v0  ;;  %v691_v4 = vadd.f32 %v1567_v38, %v663_v32  ;;  %v763_v39 = vadd.f32 %v1548_v28, %v735_v22  ;;  %v836_v29 = vadd.f32 %v1589_v1, %v808_v56 }
 0x1f5   :  { %v900_v49 = vpop.permute.xlu1 %899 }
 0x1f6   :  { %v627_v6 = vsub.f32 1.5, %v626_v53  ;;  %v909_v13 = vadd.f32 %v900_v49, %v881_v40  ;;  %v695_v1 = vmax.f32 %v691_v4, 0.0  ;;  %v767_v12 = vmax.f32 %v763_v39, 0.0 }
 0x1f7   :  { %v840_v42 = vmax.f32 %v836_v29, 0.0 }
 0x1f8   :  { %v628_v55 = vmul.f32 %v1261_v19, %v627_v6  ;;  %v913_v15 = vmax.f32 %v909_v13, 0.0 }
 0x1fa   :  { %v632_v21 = vsel %vm631_vm12, %v1261_v19, %v628_v55 }
 0x1fb   :  { %v636_v60 = vmul.f32 %v632_v21, %v1664_v20  ;;  %v708_v58 = vmul.f32 %v632_v21, %v1667_v14  ;;  %v781_v24 = vmul.f32 %v632_v21, %v1672_v51  ;;  %v854_v62 = vmul.f32 %v632_v21, %v1679_v2  ;;  %v905_v51 = vpop.permute.xlu0 %904 }
 0x1fd   :  { %v664_v61 = vmul.f32 %v1561_v36, %v636_v60  ;;  %v736_v57 = vmul.f32 %v1541_v25, %v708_v58  ;;  %v809_v20 = vmul.f32 %v1585_v54, %v781_v24  ;;  %v882_v14 = vmul.f32 %v1778_v52, %v854_v62 }
 0x1ff   :  { %v692_v2 = vadd.f32 %v1779_v35, %v664_v61  ;;  %v764_v38 = vadd.f32 %v1780_v26, %v736_v57  ;;  %v837_v28 = vadd.f32 %v1781_v3, %v809_v20  ;;  %v910_v9 = vadd.f32 %v905_v51, %v882_v14 }
 0x201   :  { %v696_v8 = vmax.f32 %v692_v2, 0.0  ;;  %v768_v36 = vmax.f32 %v764_v38, 0.0  ;;  %v841_v7 = vmax.f32 %v837_v28, 0.0  ;;  %v914_v25 = vmax.f32 %v910_v9, 0.0 }
 0x203   :  { %v1208_v54 = vpack.c.bf16 %v696_v8, %v695_v1  ;;  %v1218_v48 = vpack.c.bf16 %v768_v36, %v767_v12  ;;  %v1228_v33 = vpack.c.bf16 %v841_v7, %v840_v42  ;;  %v1238_v30 = vpack.c.bf16 %v914_v25, %v913_v15 }
 0x205   :  { %1240 = vst [vmem:[%s1773_s5 + $0x8] sm:$0xff] %v1208_v54  }
 0x206   :  { %1242 = vst [vmem:[%s1773_s5 + $0x18] sm:$0xff] %v1218_v48  }
 0x207   :  { %1244 = vst [vmem:[%s1773_s5 + $0x28] sm:$0xff] %v1228_v33  }
 0x208   :  { %1246 = vst [vmem:[%s1773_s5 + $0x38] sm:$0xff] %v1238_v30  }

// kernel: model_forward.13
= control target key start
LH: loop header
LB: loop body
LE: loop exit
PB: predicated region body
PF: predicated region fallthrough
CT: control target
= control target key end

     0   :  { %vm347_vm4 = vcmask 1043456   ;;  %s3212_s0 = inlined_call_operand.vmem [shape: bf16[4,128,512], index: 0, kind: input, shape index: {}]   ;;  %s3213_s1 = inlined_call_operand.vmem [shape: bf16[4,4,128], index: 1, kind: input, shape index: {}]   ;;  %s3214_s2 = inlined_call_operand.vmem [shape: f32[4,1], index: 2, kind: input, shape index: {}]   ;;  %s3215_s3 = inlined_call_operand.vmem [shape: f32[4,4,512], index: 3, kind: output, shape index: {}]  }
   0x1   :  { %v1498_v0 = vld [vmem:[%s3212_s0 + $0xe0] sm:$0xf]  ;;  %v2047_v1 = vld [vmem:[%s3212_s0 + $0xec] sm:$0xf0]  ;;  %v2045_v2 = vld [vmem:[%s3212_s0 + $0xe4] sm:$0xf] }
   0x2   :  { %v1499_v3 = vor.u32 %v2047_v1, %v1498_v0  ;;  %v1500_v4 = vld [vmem:[%s3212_s0 + $0xf0] sm:$0xf0]  ;;  %v1506_v5 = vld [vmem:[%s3212_s0 + $0xe8] sm:$0xf]  ;;  %v2048_v6 = vld [vmem:[%s3212_s0 + $0xf4] sm:$0xf0] }
   0x3   :  { %v1503_v7 = vor.u32 %v2045_v2, %v1500_v4  ;;  %v1507_v8 = vor.u32 %v2048_v6, %v1506_v5  ;;  %v2046_v9 = vld [vmem:[%s3212_s0 + $0xec] sm:$0xf]  ;;  %v1508_v10 = vld [vmem:[%s3212_s0 + $0xf8] sm:$0xf0]  ;;  %v1482_v11 = vld [vmem:[%s3212_s0 + $0xc0] sm:$0xf] }
   0x4   :  { %213 = vmatpush.bf16.msra.mxu0 %v1499_v3  ;;  %v1511_v12 = vor.u32 %v2046_v9, %v1508_v10  ;;  %v2043_v13 = vld [vmem:[%s3212_s0 + $0xcc] sm:$0xf0]  ;;  %v2041_v14 = vld [vmem:[%s3212_s0 + $0xc4] sm:$0xf]  ;;  %v1484_v15 = vld [vmem:[%s3212_s0 + $0xd0] sm:$0xf0] }
   0x5   :  { %226 = vmatpush.bf16.msra.mxu1 %v1503_v7  ;;  %239 = vmatpush.bf16.msra.mxu2 %v1507_v8  ;;  %v1483_v16 = vor.u32 %v2043_v13, %v1482_v11  ;;  %v1487_v17 = vor.u32 %v2041_v14, %v1484_v15  ;;  %v1490_v18 = vld [vmem:[%s3212_s0 + $0xc8] sm:$0xf]  ;;  %v2044_v19 = vld [vmem:[%s3212_s0 + $0xd4] sm:$0xf0]  ;;  %v2042_v20 = vld [vmem:[%s3212_s0 + $0xcc] sm:$0xf] }
   0x6   :  { %252 = vmatpush.bf16.msra.mxu3 %v1511_v12  ;;  %v1491_v21 = vor.u32 %v2044_v19, %v1490_v18  ;;  %v1492_v22 = vld [vmem:[%s3212_s0 + $0xd8] sm:$0xf0]  ;;  %v1466_v23 = vld [vmem:[%s3212_s0 + $0xa0] sm:$0xf]  ;;  %v2039_v24 = vld [vmem:[%s3212_s0 + $0xac] sm:$0xf0] }
   0x7   :  { %v1495_v25 = vor.u32 %v2042_v20, %v1492_v22  ;;  %v2037_v26 = vld [vmem:[%s3212_s0 + $0xa4] sm:$0xf]  ;;  %v1468_v27 = vld [vmem:[%s3212_s0 + $0xb0] sm:$0xf0]  ;;  %v1474_v28 = vld [vmem:[%s3212_s0 + $0xa8] sm:$0xf]  ;;  %v1467_v29 = vor.u32 %v2039_v24, %v1466_v23 }
   0x8   :  { %214 = vmatpush.bf16.msra.mxu0 %v1483_v16  ;;  %v2040_v30 = vld [vmem:[%s3212_s0 + $0xb4] sm:$0xf0]  ;;  %v2038_v31 = vld [vmem:[%s3212_s0 + $0xac] sm:$0xf]  ;;  %v1476_v32 = vld [vmem:[%s3212_s0 + $0xb8] sm:$0xf0]  ;;  %v1471_v33 = vor.u32 %v2037_v26, %v1468_v27 }
   0x9   :  { %227 = vmatpush.bf16.msra.mxu1 %v1487_v17  ;;  %240 = vmatpush.bf16.msra.mxu2 %v1491_v21  ;;  %v1475_v34 = vor.u32 %v2040_v30, %v1474_v28  ;;  %v1450_v35 = vld [vmem:[%s3212_s0 + $0x80] sm:$0xf]  ;;  %v2035_v36 = vld [vmem:[%s3212_s0 + $0x8c] sm:$0xf0]  ;;  %v2033_v37 = vld [vmem:[%s3212_s0 + $0x84] sm:$0xf]  ;;  %v1479_v38 = vor.u32 %v2038_v31, %v1476_v32 }
   0xa   :  { %253 = vmatpush.bf16.msra.mxu3 %v1495_v25  ;;  %v1452_v39 = vld [vmem:[%s3212_s0 + $0x90] sm:$0xf0]  ;;  %v1458_v40 = vld [vmem:[%s3212_s0 + $0x88] sm:$0xf]  ;;  %v2036_v41 = vld [vmem:[%s3212_s0 + $0x94] sm:$0xf0]  ;;  %v1451_v44 = vor.u32 %v2035_v36, %v1450_v35 }
   0xb   :  { %v2034_v42 = vld [vmem:[%s3212_s0 + $0x8c] sm:$0xf]  ;;  %v1460_v43 = vld [vmem:[%s3212_s0 + $0x98] sm:$0xf0]  ;;  %v1455_v45 = vor.u32 %v2033_v37, %v1452_v39  ;;  %v1459_v46 = vor.u32 %v2036_v41, %v1458_v40  ;;  %v1434_v47 = vld [vmem:[%s3212_s0 + $0x60] sm:$0xf] }
   0xc   :  { %215 = vmatpush.bf16.msra.mxu0 %v1467_v29  ;;  %v2031_v48 = vld [vmem:[%s3212_s0 + $0x6c] sm:$0xf0]  ;;  %v2029_v49 = vld [vmem:[%s3212_s0 + $0x64] sm:$0xf]  ;;  %v1463_v50 = vor.u32 %v2034_v42, %v1460_v43  ;;  %v1436_v51 = vld [vmem:[%s3212_s0 + $0x70] sm:$0xf0] }
   0xd   :  { %228 = vmatpush.bf16.msra.mxu1 %v1471_v33  ;;  %241 = vmatpush.bf16.msra.mxu2 %v1475_v34  ;;  %v1442_v52 = vld [vmem:[%s3212_s0 + $0x68] sm:$0xf]  ;;  %v2032_v53 = vld [vmem:[%s3212_s0 + $0x74] sm:$0xf0]  ;;  %v2030_v54 = vld [vmem:[%s3212_s0 + $0x6c] sm:$0xf]  ;;  %v1435_v56 = vor.u32 %v2031_v48, %v1434_v47  ;;  %v1439_v57 = vor.u32 %v2029_v49, %v1436_v51 }
   0xe   :  { %254 = vmatpush.bf16.msra.mxu3 %v1479_v38  ;;  %v1444_v55 = vld [vmem:[%s3212_s0 + $0x78] sm:$0xf0]  ;;  %v1443_v58 = vor.u32 %v2032_v53, %v1442_v52  ;;  %v1418_v59 = vld [vmem:[%s3212_s0 + $0x40] sm:$0xf]  ;;  %v2027_v60 = vld [vmem:[%s3212_s0 + $0x4c] sm:$0xf0] }
   0xf   :  { %v2025_v61 = vld [vmem:[%s3212_s0 + $0x44] sm:$0xf]  ;;  %v1447_v62 = vor.u32 %v2030_v54, %v1444_v55  ;;  %v1420_v63 = vld [vmem:[%s3212_s0 + $0x50] sm:$0xf0]  ;;  %v1426_v0 = vld [vmem:[%s3212_s0 + $0x48] sm:$0xf]  ;;  %v1419_v4 = vor.u32 %v2027_v60, %v1418_v59 }
  0x10   :  { %216 = vmatpush.bf16.msra.mxu0 %v1451_v44  ;;  %v2028_v1 = vld [vmem:[%s3212_s0 + $0x54] sm:$0xf0]  ;;  %v2026_v2 = vld [vmem:[%s3212_s0 + $0x4c] sm:$0xf]  ;;  %v1428_v3 = vld [vmem:[%s3212_s0 + $0x58] sm:$0xf0]  ;;  %v1423_v5 = vor.u32 %v2025_v61, %v1420_v63 }
  0x11   :  { %229 = vmatpush.bf16.msra.mxu1 %v1455_v45  ;;  %242 = vmatpush.bf16.msra.mxu2 %v1459_v46  ;;  %v1427_v6 = vor.u32 %v2028_v1, %v1426_v0  ;;  %v1402_v7 = vld [vmem:[%s3212_s0 + $0x20] sm:$0xf]  ;;  %v2023_v8 = vld [vmem:[%s3212_s0 + $0x2c] sm:$0xf0]  ;;  %v2021_v9 = vld [vmem:[%s3212_s0 + $0x24] sm:$0xf]  ;;  %v1431_v10 = vor.u32 %v2026_v2, %v1428_v3 }
  0x12   :  { %255 = vmatpush.bf16.msra.mxu3 %v1463_v50  ;;  %v1404_v11 = vld [vmem:[%s3212_s0 + $0x30] sm:$0xf0]  ;;  %v1410_v12 = vld [vmem:[%s3212_s0 + $0x28] sm:$0xf]  ;;  %v2024_v13 = vld [vmem:[%s3212_s0 + $0x34] sm:$0xf0]  ;;  %v1403_v16 = vor.u32 %v2023_v8, %v1402_v7 }
  0x13   :  { %v2022_v14 = vld [vmem:[%s3212_s0 + $0x2c] sm:$0xf]  ;;  %v1412_v15 = vld [vmem:[%s3212_s0 + $0x38] sm:$0xf0]  ;;  %v1386_v17 = vld [vmem:[%s3212_s0] sm:$0xf]  ;;  %v1407_v19 = vor.u32 %v2021_v9, %v1404_v11  ;;  %v1411_v20 = vor.u32 %v2024_v13, %v1410_v12 }
  0x14   :  { %217 = vmatpush.bf16.msra.mxu0 %v1435_v56  ;;  %v2019_v18 = vld [vmem:[%s3212_s0 + $0xc] sm:$0xf0]  ;;  %v2017_v21 = vld [vmem:[%s3212_s0 + $0x4] sm:$0xf]  ;;  %v1388_v22 = vld [vmem:[%s3212_s0 + $0x10] sm:$0xf0]  ;;  %v1415_v24 = vor.u32 %v2022_v14, %v1412_v15 }
  0x15   :  { %230 = vmatpush.bf16.msra.mxu1 %v1439_v57  ;;  %243 = vmatpush.bf16.msra.mxu2 %v1443_v58  ;;  %v1394_v23 = vld [vmem:[%s3212_s0 + $0x8] sm:$0xf]  ;;  %v2020_v25 = vld [vmem:[%s3212_s0 + $0x14] sm:$0xf0]  ;;  %v2018_v26 = vld [vmem:[%s3212_s0 + $0xc] sm:$0xf]  ;;  %v1387_v31 = vor.u32 %v2019_v18, %v1386_v17  ;;  %v1391_v35 = vor.u32 %v2017_v21, %v1388_v22 }
  0x16   :  { %256 = vmatpush.bf16.msra.mxu3 %v1447_v62  ;;  %v1396_v27 = vld [vmem:[%s3212_s0 + $0x18] sm:$0xf0]  ;;  %v1663_v28 = vld [vmem:[%s3212_s0 + $0x1e0] sm:$0xf]  ;;  %v2079_v29 = vld [vmem:[%s3212_s0 + $0x1ec] sm:$0xf0]  ;;  %v1395_v36 = vor.u32 %v2020_v25, %v1394_v23 }
  0x17   :  { %v2077_v30 = vld [vmem:[%s3212_s0 + $0x1e4] sm:$0xf]  ;;  %v1665_v32 = vld [vmem:[%s3212_s0 + $0x1f0] sm:$0xf0]  ;;  %v1671_v33 = vld [vmem:[%s3212_s0 + $0x1e8] sm:$0xf]  ;;  %v1399_v39 = vor.u32 %v2018_v26, %v1396_v27  ;;  %v1664_v40 = vor.u32 %v2079_v29, %v1663_v28 }
  0x18   :  { %218 = vmatpush.bf16.msra.mxu0 %v1419_v4  ;;  %v2080_v34 = vld [vmem:[%s3212_s0 + $0x1f4] sm:$0xf0]  ;;  %v2078_v37 = vld [vmem:[%s3212_s0 + $0x1ec] sm:$0xf]  ;;  %v1673_v38 = vld [vmem:[%s3212_s0 + $0x1f8] sm:$0xf0]  ;;  %v1668_v41 = vor.u32 %v2077_v30, %v1665_v32 }
  0x19   :  { %231 = vmatpush.bf16.msra.mxu1 %v1423_v5  ;;  %244 = vmatpush.bf16.msra.mxu2 %v1427_v6  ;;  %v1672_v42 = vor.u32 %v2080_v34, %v1671_v33  ;;  %v1647_v43 = vld [vmem:[%s3212_s0 + $0x1c0] sm:$0xf]  ;;  %v2075_v44 = vld [vmem:[%s3212_s0 + $0x1cc] sm:$0xf0]  ;;  %v2073_v45 = vld [vmem:[%s3212_s0 + $0x1c4] sm:$0xf]  ;;  %v1676_v46 = vor.u32 %v2078_v37, %v1673_v38 }
  0x1a   :  { %257 = vmatpush.bf16.msra.mxu3 %v1431_v10  ;;  %v1649_v47 = vld [vmem:[%s3212_s0 + $0x1d0] sm:$0xf0]  ;;  %v1655_v48 = vld [vmem:[%s3212_s0 + $0x1c8] sm:$0xf]  ;;  %v2076_v49 = vld [vmem:[%s3212_s0 + $0x1d4] sm:$0xf0]  ;;  %v1648_v52 = vor.u32 %v2075_v44, %v1647_v43 }
  0x1b   :  { %v2074_v50 = vld [vmem:[%s3212_s0 + $0x1cc] sm:$0xf]  ;;  %v1657_v51 = vld [vmem:[%s3212_s0 + $0x1d8] sm:$0xf0]  ;;  %v14_v53 = vld [vmem:[%s3213_s1] sm:$0x3]  ;;  %v1652_v54 = vor.u32 %v2073_v45, %v1649_v47  ;;  %v1656_v55 = vor.u32 %v2076_v49, %v1655_v48 }
  0x1c   :  { %219 = vmatpush.bf16.msra.mxu0 %v1403_v16  ;;  %v1631_v56 = vld [vmem:[%s3212_s0 + $0x1a0] sm:$0xf]  ;;  %v2071_v57 = vld [vmem:[%s3212_s0 + $0x1ac] sm:$0xf0]  ;;  %v2069_v58 = vld [vmem:[%s3212_s0 + $0x1a4] sm:$0xf]  ;;  %v1660_v59 = vor.u32 %v2074_v50, %v1657_v51 }
  0x1d   :  { %232 = vmatpush.bf16.msra.mxu1 %v1407_v19  ;;  %245 = vmatpush.bf16.msra.mxu2 %v1411_v20  ;;  %v1633_v60 = vld [vmem:[%s3212_s0 + $0x1b0] sm:$0xf0]  ;;  %v1639_v61 = vld [vmem:[%s3212_s0 + $0x1a8] sm:$0xf]  ;;  %v2072_v62 = vld [vmem:[%s3212_s0 + $0x1b4] sm:$0xf0]  ;;  %v1632_v1 = vor.u32 %v2071_v57, %v1631_v56 }
  0x1e   :  { %258 = vmatpush.bf16.msra.mxu3 %v1415_v24  ;;  %v2070_v63 = vld [vmem:[%s3212_s0 + $0x1ac] sm:$0xf]  ;;  %v1641_v0 = vld [vmem:[%s3212_s0 + $0x1b8] sm:$0xf0]  ;;  %v1636_v2 = vor.u32 %v2069_v58, %v1633_v60  ;;  %v1640_v3 = vor.u32 %v2072_v62, %v1639_v61  ;;  %v1615_v4 = vld [vmem:[%s3212_s0 + $0x180] sm:$0xf] }
  0x1f   :  { %v2067_v5 = vld [vmem:[%s3212_s0 + $0x18c] sm:$0xf0]  ;;  %v2065_v6 = vld [vmem:[%s3212_s0 + $0x184] sm:$0xf]  ;;  %v1644_v7 = vor.u32 %v2070_v63, %v1641_v0  ;;  %v1617_v8 = vld [vmem:[%s3212_s0 + $0x190] sm:$0xf0] }
  0x20   :  { %220 = vmatpush.bf16.msra.mxu0 %v1387_v31  ;;  %v1623_v9 = vld [vmem:[%s3212_s0 + $0x188] sm:$0xf]  ;;  %v2068_v10 = vld [vmem:[%s3212_s0 + $0x194] sm:$0xf0]  ;;  %v2066_v11 = vld [vmem:[%s3212_s0 + $0x18c] sm:$0xf]  ;;  %v1616_v13 = vor.u32 %v2067_v5, %v1615_v4  ;;  %v1620_v14 = vor.u32 %v2065_v6, %v1617_v8 }
  0x21   :  { %233 = vmatpush.bf16.msra.mxu1 %v1391_v35  ;;  %246 = vmatpush.bf16.msra.mxu2 %v1395_v36  ;;  %v1625_v12 = vld [vmem:[%s3212_s0 + $0x198] sm:$0xf0]  ;;  %v1624_v15 = vor.u32 %v2068_v10, %v1623_v9  ;;  %v1599_v16 = vld [vmem:[%s3212_s0 + $0x160] sm:$0xf]  ;;  %v2063_v17 = vld [vmem:[%s3212_s0 + $0x16c] sm:$0xf0] }
  0x22   :  { %259 = vmatpush.bf16.msra.mxu3 %v1399_v39  ;;  %v2061_v18 = vld [vmem:[%s3212_s0 + $0x164] sm:$0xf]  ;;  %v1628_v19 = vor.u32 %v2066_v11, %v1625_v12  ;;  %v1601_v20 = vld [vmem:[%s3212_s0 + $0x170] sm:$0xf0]  ;;  %v1607_v21 = vld [vmem:[%s3212_s0 + $0x168] sm:$0xf]  ;;  %v1600_v25 = vor.u32 %v2063_v17, %v1599_v16 }
  0x23   :  { %221 = vmatmul.bf16.vlgmr.msra.gmra.mxu0 %v14_v53  ;;  %v2064_v22 = vld [vmem:[%s3212_s0 + $0x174] sm:$0xf0]  ;;  %v2062_v23 = vld [vmem:[%s3212_s0 + $0x16c] sm:$0xf]  ;;  %v1609_v24 = vld [vmem:[%s3212_s0 + $0x178] sm:$0xf0]  ;;  %v1604_v27 = vor.u32 %v2061_v18, %v1601_v20 }
  0x24   :  { %555 = vmatpush.bf16.msrb.mxu0 %v1664_v40  ;;  %247 = vmatmul.bf16.vlgmr.msra.gmra.mxu2 %v14_v53  ;;  %v1583_v26 = vld [vmem:[%s3212_s0 + $0x140] sm:$0xf]  ;;  %v1608_v28 = vor.u32 %v2064_v22, %v1607_v21  ;;  %v2059_v29 = vld [vmem:[%s3212_s0 + $0x14c] sm:$0xf0]  ;;  %v2057_v30 = vld [vmem:[%s3212_s0 + $0x144] sm:$0xf]  ;;  %v1612_v32 = vor.u32 %v2062_v23, %v1609_v24 }
  0x25   :  { %568 = vmatpush.bf16.msrb.mxu1 %v1668_v41  ;;  %581 = vmatpush.bf16.msrb.mxu2 %v1672_v42  ;;  %v47_v31 = vld [vmem:[%s3214_s2] sm:$0xf]  ;;  %v1585_v33 = vld [vmem:[%s3212_s0 + $0x150] sm:$0xf0]  ;;  %v1591_v34 = vld [vmem:[%s3212_s0 + $0x148] sm:$0xf]  ;;  %v1584_v39 = vor.u32 %v2059_v29, %v1583_v26 }
  0x26   :  { %594 = vmatpush.bf16.msrb.mxu3 %v1676_v46  ;;  %234 = vmatmul.bf16.vlgmr.msra.gmra.mxu1 %v14_v53  ;;  %v2060_v35 = vld [vmem:[%s3212_s0 + $0x154] sm:$0xf0]  ;;  %v2212_v36 = vmov 0   ;;  %v2058_v37 = vld [vmem:[%s3212_s0 + $0x14c] sm:$0xf]  ;;  %v1588_v40 = vor.u32 %v2057_v30, %v1585_v33 }
  0x27   :  { %260 = vmatmul.bf16.vlgmr.msra.gmra.mxu3 %v14_v53  ;;  %2146 = vset.pattern.permute.xlu0 %v2212_v36  ;;  %v1593_v38 = vld [vmem:[%s3212_s0 + $0x158] sm:$0xf0]  ;;  %v1592_v41 = vor.u32 %v2060_v35, %v1591_v34  ;;  %v1567_v42 = vld [vmem:[%s3212_s0 + $0x120] sm:$0xf]  ;;  %v2055_v43 = vld [vmem:[%s3212_s0 + $0x12c] sm:$0xf0] }
  0x28   :  { %556 = vmatpush.bf16.msrb.mxu0 %v1648_v52  ;;  %50 = vperm.xlu0 %2146, %v47_v31   ;;  %v2053_v44 = vld [vmem:[%s3212_s0 + $0x124] sm:$0xf]  ;;  %v1596_v45 = vor.u32 %v2058_v37, %v1593_v38  ;;  %v1569_v46 = vld [vmem:[%s3212_s0 + $0x130] sm:$0xf0]  ;;  %v1575_v47 = vld [vmem:[%s3212_s0 + $0x128] sm:$0xf]  ;;  %v1568_v51 = vor.u32 %v2055_v43, %v1567_v42 }
  0x29   :  { %569 = vmatpush.bf16.msrb.mxu1 %v1652_v54  ;;  %582 = vmatpush.bf16.msrb.mxu2 %v1656_v55  ;;  %v2056_v48 = vld [vmem:[%s3212_s0 + $0x134] sm:$0xf0]  ;;  %v2054_v49 = vld [vmem:[%s3212_s0 + $0x12c] sm:$0xf]  ;;  %v1577_v50 = vld [vmem:[%s3212_s0 + $0x138] sm:$0xf0]  ;;  %v1572_v54 = vor.u32 %v2053_v44, %v1569_v46 }
  0x2a   :  { %595 = vmatpush.bf16.msrb.mxu3 %v1660_v59  ;;  %2147 = vset.pattern.permute.xlu1 %v2212_v36  ;;  %v1551_v52 = vld [vmem:[%s3212_s0 + $0x100] sm:$0xf]  ;;  %v2051_v53 = vld [vmem:[%s3212_s0 + $0x10c] sm:$0xf0]  ;;  %v1576_v55 = vor.u32 %v2056_v48, %v1575_v47  ;;  %v2049_v56 = vld [vmem:[%s3212_s0 + $0x104] sm:$0xf]  ;;  %v1580_v59 = vor.u32 %v2054_v49, %v1577_v50 }
  0x2b   :  { %v1553_v57 = vld [vmem:[%s3212_s0 + $0x110] sm:$0xf0]  ;;  %v1559_v58 = vld [vmem:[%s3212_s0 + $0x108] sm:$0xf]  ;;  %v2052_v60 = vld [vmem:[%s3212_s0 + $0x114] sm:$0xf0] }
  0x2c   :  { %557 = vmatpush.bf16.msrb.mxu0 %v1632_v1  ;;  %v2050_v61 = vld [vmem:[%s3212_s0 + $0x10c] sm:$0xf]  ;;  %v1561_v62 = vld [vmem:[%s3212_s0 + $0x118] sm:$0xf0]  ;;  %v1830_v63 = vld [vmem:[%s3212_s0 + $0x2e0] sm:$0xf]  ;;  %v1556_v6 = vor.u32 %v2049_v56, %v1553_v57 }
  0x2d   :  { %570 = vmatpush.bf16.msrb.mxu1 %v1636_v2  ;;  %583 = vmatpush.bf16.msrb.mxu2 %v1640_v3  ;;  %v2111_v0 = vld [vmem:[%s3212_s0 + $0x2ec] sm:$0xf0]  ;;  %v2109_v1 = vld [vmem:[%s3212_s0 + $0x2e4] sm:$0xf]  ;;  %v1552_v2 = vor.u32 %v2051_v53, %v1551_v52  ;;  %v1832_v3 = vld [vmem:[%s3212_s0 + $0x2f0] sm:$0xf0]  ;;  %v1564_v10 = vor.u32 %v2050_v61, %v1561_v62 }
  0x2e   :  { %596 = vmatpush.bf16.msrb.mxu3 %v1644_v7  ;;  %v1838_v4 = vld [vmem:[%s3212_s0 + $0x2e8] sm:$0xf]  ;;  %v2112_v5 = vld [vmem:[%s3212_s0 + $0x2f4] sm:$0xf0]  ;;  %v1560_v7 = vor.u32 %v2052_v60, %v1559_v58  ;;  %v2110_v8 = vld [vmem:[%s3212_s0 + $0x2ec] sm:$0xf]  ;;  %v1831_v11 = vor.u32 %v2111_v0, %v1830_v63  ;;  %v1835_v12 = vor.u32 %v2109_v1, %v1832_v3 }
  0x2f   :  { %v1840_v9 = vld [vmem:[%s3212_s0 + $0x2f8] sm:$0xf0]  ;;  %v2105_v16 = vld [vmem:[%s3212_s0 + $0x2c4] sm:$0xf]  ;;  %v1816_v18 = vld [vmem:[%s3212_s0 + $0x2d0] sm:$0xf0] }
  0x30   :  { %558 = vmatpush.bf16.msrb.mxu0 %v1616_v13  ;;  %v1839_v13 = vor.u32 %v2112_v5, %v1838_v4  ;;  %v1843_v17 = vor.u32 %v2110_v8, %v1840_v9  ;;  %v2108_v20 = vld [vmem:[%s3212_s0 + $0x2d4] sm:$0xf0]  ;;  %v2106_v21 = vld [vmem:[%s3212_s0 + $0x2cc] sm:$0xf]  ;;  %v1824_v22 = vld [vmem:[%s3212_s0 + $0x2d8] sm:$0xf0] }
  0x31   :  { %571 = vmatpush.bf16.msrb.mxu1 %v1620_v14  ;;  %584 = vmatpush.bf16.msrb.mxu2 %v1624_v15  ;;  %v1814_v14 = vld [vmem:[%s3212_s0 + $0x2c0] sm:$0xf]  ;;  %v2107_v15 = vld [vmem:[%s3212_s0 + $0x2cc] sm:$0xf0]  ;;  %v2101_v29 = vld [vmem:[%s3212_s0 + $0x2a4] sm:$0xf]  ;;  %v1827_v30 = vor.u32 %v2106_v21, %v1824_v22 }
  0x32   :  { %597 = vmatpush.bf16.msrb.mxu3 %v1628_v19  ;;  %v1822_v19 = vld [vmem:[%s3212_s0 + $0x2c8] sm:$0xf]  ;;  %v1815_v23 = vor.u32 %v2107_v15, %v1814_v14  ;;  %v1516_v24 = vld [vmem:[%s3213_s1 + $0x2] sm:$0x3]  ;;  %v1800_v31 = vld [vmem:[%s3212_s0 + $0x2b0] sm:$0xf0] }
  0x33   :  { %v1823_v26 = vor.u32 %v2108_v20, %v1822_v19  ;;  %v2104_v33 = vld [vmem:[%s3212_s0 + $0x2b4] sm:$0xf0]  ;;  %v2102_v34 = vld [vmem:[%s3212_s0 + $0x2ac] sm:$0xf]  ;;  %v1808_v35 = vld [vmem:[%s3212_s0 + $0x2b8] sm:$0xf0]  ;;  %v1803_v38 = vor.u32 %v2101_v29, %v1800_v31 }
  0x34   :  { %559 = vmatpush.bf16.msrb.mxu0 %v1600_v25  ;;  %v1819_v25 = vor.u32 %v2105_v16, %v1816_v18  ;;  %v1782_v37 = vld [vmem:[%s3212_s0 + $0x280] sm:$0xf]  ;;  %v1811_v43 = vor.u32 %v2102_v34, %v1808_v35  ;;  %v1784_v44 = vld [vmem:[%s3212_s0 + $0x290] sm:$0xf0]  ;;  %v2100_v46 = vld [vmem:[%s3212_s0 + $0x294] sm:$0xf0] }
  0x35   :  { %572 = vmatpush.bf16.msrb.mxu1 %v1604_v27  ;;  %585 = vmatpush.bf16.msrb.mxu2 %v1608_v28  ;;  %v1798_v27 = vld [vmem:[%s3212_s0 + $0x2a0] sm:$0xf]  ;;  %v2103_v28 = vld [vmem:[%s3212_s0 + $0x2ac] sm:$0xf0]  ;;  %v2098_v47 = vld [vmem:[%s3212_s0 + $0x28c] sm:$0xf] }
  0x36   :  { %598 = vmatpush.bf16.msrb.mxu3 %v1612_v32  ;;  %v1806_v32 = vld [vmem:[%s3212_s0 + $0x2a8] sm:$0xf]  ;;  %v1799_v36 = vor.u32 %v2103_v28, %v1798_v27  ;;  %v389_v42 = vld [vmem:[%s3214_s2] sm:$0xf]  ;;  %v1792_v48 = vld [vmem:[%s3212_s0 + $0x298] sm:$0xf0] }
  0x37   :  { %392 = vperm.xlu0 %2146, %v389_v42   ;;  %v1766_v52 = vld [vmem:[%s3212_s0 + $0x260] sm:$0xf]  ;;  %v2095_v53 = vld [vmem:[%s3212_s0 + $0x26c] sm:$0xf0]  ;;  %v1768_v56 = vld [vmem:[%s3212_s0 + $0x270] sm:$0xf0] }
  0x38   :  { %560 = vmatpush.bf16.msrb.mxu0 %v1584_v39  ;;  %v1807_v39 = vor.u32 %v2104_v33, %v1806_v32  ;;  %v1774_v57 = vld [vmem:[%s3212_s0 + $0x268] sm:$0xf]  ;;  %v2096_v58 = vld [vmem:[%s3212_s0 + $0x274] sm:$0xf0]  ;;  %v1776_v60 = vld [vmem:[%s3212_s0 + $0x278] sm:$0xf0]  ;;  %v1767_v61 = vor.u32 %v2095_v53, %v1766_v52 }
  0x39   :  { %573 = vmatpush.bf16.msrb.mxu1 %v1588_v40  ;;  %586 = vmatpush.bf16.msrb.mxu2 %v1592_v41  ;;  %v2099_v40 = vld [vmem:[%s3212_s0 + $0x28c] sm:$0xf0]  ;;  %v2097_v41 = vld [vmem:[%s3212_s0 + $0x284] sm:$0xf]  ;;  %v1775_v63 = vor.u32 %v2096_v58, %v1774_v57  ;;  %v1750_v0 = vld [vmem:[%s3212_s0 + $0x240] sm:$0xf] }
  0x3a   :  { %599 = vmatpush.bf16.msrb.mxu3 %v1596_v45  ;;  %v1790_v45 = vld [vmem:[%s3212_s0 + $0x288] sm:$0xf]  ;;  %v1783_v49 = vor.u32 %v2099_v40, %v1782_v37  ;;  %v1787_v50 = vor.u32 %v2097_v41, %v1784_v44  ;;  %v2091_v1 = vld [vmem:[%s3212_s0 + $0x24c] sm:$0xf0]  ;;  %v1752_v4 = vld [vmem:[%s3212_s0 + $0x250] sm:$0xf0] }
  0x3b   :  { %v1758_v5 = vld [vmem:[%s3212_s0 + $0x248] sm:$0xf]  ;;  %v1760_v8 = vld [vmem:[%s3212_s0 + $0x258] sm:$0xf0]  ;;  %v1751_v9 = vor.u32 %v2091_v1, %v1750_v0  ;;  %v2087_v14 = vld [vmem:[%s3212_s0 + $0x22c] sm:$0xf0] }
  0x3c   :  { %561 = vmatpush.bf16.msrb.mxu0 %v1568_v51  ;;  %v1791_v51 = vor.u32 %v2100_v46, %v1790_v45  ;;  %v2085_v15 = vld [vmem:[%s3212_s0 + $0x224] sm:$0xf]  ;;  %v1742_v18 = vld [vmem:[%s3212_s0 + $0x228] sm:$0xf]  ;;  %v2088_v19 = vld [vmem:[%s3212_s0 + $0x234] sm:$0xf0] }
  0x3d   :  { %574 = vmatpush.bf16.msrb.mxu1 %v1572_v54  ;;  %587 = vmatpush.bf16.msrb.mxu2 %v1576_v55  ;;  %v2093_v54 = vld [vmem:[%s3212_s0 + $0x264] sm:$0xf]  ;;  %v1795_v55 = vor.u32 %v2098_v47, %v1792_v48  ;;  %v2086_v20 = vld [vmem:[%s3212_s0 + $0x22c] sm:$0xf]  ;;  %v1744_v21 = vld [vmem:[%s3212_s0 + $0x238] sm:$0xf0] }
  0x3e   :  { %600 = vmatpush.bf16.msrb.mxu3 %v1580_v59  ;;  %v2094_v59 = vld [vmem:[%s3212_s0 + $0x26c] sm:$0xf]  ;;  %v1771_v62 = vor.u32 %v2093_v54, %v1768_v56  ;;  %v2081_v27 = vld [vmem:[%s3212_s0 + $0x204] sm:$0xf]  ;;  %v1720_v28 = vld [vmem:[%s3212_s0 + $0x210] sm:$0xf0] }
  0x3f   :  { %v1779_v3 = vor.u32 %v2094_v59, %v1776_v60  ;;  %v1726_v29 = vld [vmem:[%s3212_s0 + $0x208] sm:$0xf]  ;;  %v2084_v31 = vld [vmem:[%s3212_s0 + $0x214] sm:$0xf0]  ;;  %v2082_v32 = vld [vmem:[%s3212_s0 + $0x20c] sm:$0xf]  ;;  %v1723_v41 = vor.u32 %v2081_v27, %v1720_v28 }
  0x40   :  { %562 = vmatpush.bf16.msrb.mxu0 %v1552_v2  ;;  %v2089_v2 = vld [vmem:[%s3212_s0 + $0x244] sm:$0xf]  ;;  %v1728_v33 = vld [vmem:[%s3212_s0 + $0x218] sm:$0xf0]  ;;  %v1997_v34 = vld [vmem:[%s3212_s0 + $0x3e0] sm:$0xf]  ;;  %v1727_v42 = vor.u32 %v2084_v31, %v1726_v29 }
  0x41   :  { %575 = vmatpush.bf16.msrb.mxu1 %v1556_v6  ;;  %588 = vmatpush.bf16.msrb.mxu2 %v1560_v7  ;;  %v2092_v6 = vld [vmem:[%s3212_s0 + $0x254] sm:$0xf0]  ;;  %v2090_v7 = vld [vmem:[%s3212_s0 + $0x24c] sm:$0xf]  ;;  %v2143_v35 = vld [vmem:[%s3212_s0 + $0x3ec] sm:$0xf0]  ;;  %v1731_v45 = vor.u32 %v2082_v32, %v1728_v33 }
  0x42   :  { %601 = vmatpush.bf16.msrb.mxu3 %v1564_v10  ;;  %v731_v10 = vld [vmem:[%s3214_s2] sm:$0xf]  ;;  %v1763_v16 = vor.u32 %v2090_v7, %v1760_v8  ;;  %v2144_v40 = vld [vmem:[%s3212_s0 + $0x3f4] sm:$0xf0]  ;;  %v2007_v44 = vld [vmem:[%s3212_s0 + $0x3f8] sm:$0xf0]  ;;  %v1998_v46 = vor.u32 %v2143_v35, %v1997_v34 }
  0x43   :  { %563 = vmatmul.bf16.vlgmr.msrb.gmra.mxu0 %v1516_v24  ;;  %734 = vperm.xlu1 %2147, %v731_v10   ;;  %v1983_v53 = vld [vmem:[%s3212_s0 + $0x3d0] sm:$0xf0]  ;;  %v1989_v54 = vld [vmem:[%s3212_s0 + $0x3c8] sm:$0xf]  ;;  %v2138_v56 = vld [vmem:[%s3212_s0 + $0x3cc] sm:$0xf] }
  0x44   :  { %897 = vmatpush.bf16.msra.mxu0 %v1831_v11  ;;  %589 = vmatmul.bf16.vlgmr.msrb.gmra.mxu2 %v1516_v24  ;;  %v1755_v11 = vor.u32 %v2089_v2, %v1752_v4  ;;  %v1991_v57 = vld [vmem:[%s3212_s0 + $0x3d8] sm:$0xf0]  ;;  %v1683_v58 = vld [vmem:[%s3213_s1 + $0x4] sm:$0x3]  ;;  %v1965_v60 = vld [vmem:[%s3212_s0 + $0x3a0] sm:$0xf] }
  0x45   :  { %910 = vmatpush.bf16.msra.mxu1 %v1835_v12  ;;  %923 = vmatpush.bf16.msra.mxu2 %v1839_v13  ;;  %v1759_v12 = vor.u32 %v2092_v6, %v1758_v5  ;;  %v1734_v13 = vld [vmem:[%s3212_s0 + $0x220] sm:$0xf]  ;;  %v2133_v0 = vld [vmem:[%s3212_s0 + $0x3a4] sm:$0xf]  ;;  %v1994_v2 = vor.u32 %v2138_v56, %v1991_v57  ;;  %v1973_v4 = vld [vmem:[%s3212_s0 + $0x3a8] sm:$0xf] }
  0x46   :  { %936 = vmatpush.bf16.msra.mxu3 %v1843_v17  ;;  %576 = vmatmul.bf16.vlgmr.msrb.gmra.mxu1 %v1516_v24  ;;  %v1736_v17 = vld [vmem:[%s3212_s0 + $0x230] sm:$0xf0]  ;;  %v1735_v22 = vor.u32 %v2087_v14, %v1734_v13  ;;  %v1073_v1 = vld [vmem:[%s3214_s2] sm:$0xf]  ;;  %v2136_v5 = vld [vmem:[%s3212_s0 + $0x3b4] sm:$0xf0] }
  0x47   :  { %602 = vmatmul.bf16.vlgmr.msrb.gmra.mxu3 %v1516_v24  ;;  %v2083_v24 = vld [vmem:[%s3212_s0 + $0x20c] sm:$0xf0]  ;;  %v2134_v6 = vld [vmem:[%s3212_s0 + $0x3ac] sm:$0xf]  ;;  %v1975_v7 = vld [vmem:[%s3212_s0 + $0x3b8] sm:$0xf0]  ;;  %v1974_v10 = vor.u32 %v2136_v5, %v1973_v4 }
  0x48   :  { %898 = vmatpush.bf16.msra.mxu0 %v1815_v23  ;;  %v1718_v23 = vld [vmem:[%s3212_s0 + $0x200] sm:$0xf]  ;;  %v2129_v13 = vld [vmem:[%s3212_s0 + $0x384] sm:$0xf]  ;;  %v1978_v14 = vor.u32 %v2134_v6, %v1975_v7  ;;  %v1935_v27 = vld [vmem:[%s3212_s0 + $0x370] sm:$0xf0] }
  0x49   :  { %911 = vmatpush.bf16.msra.mxu1 %v1819_v25  ;;  %924 = vmatpush.bf16.msra.mxu2 %v1823_v26  ;;  %v1739_v25 = vor.u32 %v2085_v15, %v1736_v17  ;;  %v1743_v26 = vor.u32 %v2088_v19, %v1742_v18  ;;  %v1719_v37 = vor.u32 %v2083_v24, %v1718_v23  ;;  %v1951_v15 = vld [vmem:[%s3212_s0 + $0x390] sm:$0xf0]  ;;  %v2132_v17 = vld [vmem:[%s3212_s0 + $0x394] sm:$0xf0]  ;;  %v2130_v18 = vld [vmem:[%s3212_s0 + $0x38c] sm:$0xf] }
  0x4a   :  { %937 = vmatpush.bf16.msra.mxu3 %v1827_v30  ;;  %v1747_v30 = vor.u32 %v2086_v20, %v1744_v21  ;;  %v1959_v19 = vld [vmem:[%s3212_s0 + $0x398] sm:$0xf0]  ;;  %v1954_v21 = vor.u32 %v2129_v13, %v1951_v15  ;;  %v1933_v23 = vld [vmem:[%s3212_s0 + $0x360] sm:$0xf]  ;;  %v2127_v24 = vld [vmem:[%s3212_s0 + $0x36c] sm:$0xf0] }
  0x4b   :  { %1076 = vperm.xlu1 %2147, %v1073_v1   ;;  %v1941_v28 = vld [vmem:[%s3212_s0 + $0x368] sm:$0xf]  ;;  %v2128_v29 = vld [vmem:[%s3212_s0 + $0x374] sm:$0xf0]  ;;  %v1943_v31 = vld [vmem:[%s3212_s0 + $0x378] sm:$0xf0]  ;;  %v1934_v32 = vor.u32 %v2127_v24, %v1933_v23 }
  0x4c   :  { %899 = vmatpush.bf16.msra.mxu0 %v1799_v36  ;;  %v2141_v36 = vld [vmem:[%s3212_s0 + $0x3e4] sm:$0xf]  ;;  %v1942_v34 = vor.u32 %v2128_v29, %v1941_v28  ;;  %v1917_v35 = vld [vmem:[%s3212_s0 + $0x340] sm:$0xf]  ;;  %v2116_v1 = vld [vmem:[%s3212_s0 + $0x314] sm:$0xf0] }
  0x4d   :  { %912 = vmatpush.bf16.msra.mxu1 %v1803_v38  ;;  %925 = vmatpush.bf16.msra.mxu2 %v1807_v39  ;;  %v1999_v38 = vld [vmem:[%s3212_s0 + $0x3f0] sm:$0xf0]  ;;  %v2005_v39 = vld [vmem:[%s3212_s0 + $0x3e8] sm:$0xf] }
  0x4e   :  { %938 = vmatpush.bf16.msra.mxu3 %v1811_v43  ;;  %v2142_v43 = vld [vmem:[%s3212_s0 + $0x3ec] sm:$0xf]  ;;  %v2002_v47 = vor.u32 %v2141_v36, %v1999_v38  ;;  %v2006_v48 = vor.u32 %v2144_v40, %v2005_v39  ;;  %v2123_v36 = vld [vmem:[%s3212_s0 + $0x34c] sm:$0xf0]  ;;  %v1919_v39 = vld [vmem:[%s3212_s0 + $0x350] sm:$0xf0] }
  0x4f   :  { %v2010_v52 = vor.u32 %v2142_v43, %v2007_v44  ;;  %v1925_v40 = vld [vmem:[%s3212_s0 + $0x348] sm:$0xf]  ;;  %v1927_v43 = vld [vmem:[%s3212_s0 + $0x358] sm:$0xf0]  ;;  %v1918_v44 = vor.u32 %v2123_v36, %v1917_v35 }
  0x50   :  { %900 = vmatpush.bf16.msra.mxu0 %v1783_v49  ;;  %v1981_v49 = vld [vmem:[%s3212_s0 + $0x3c0] sm:$0xf] }
  0x51   :  { %913 = vmatpush.bf16.msra.mxu1 %v1787_v50  ;;  %926 = vmatpush.bf16.msra.mxu2 %v1791_v51  ;;  %v2139_v50 = vld [vmem:[%s3212_s0 + $0x3cc] sm:$0xf0]  ;;  %v2137_v51 = vld [vmem:[%s3212_s0 + $0x3c4] sm:$0xf] }
  0x52   :  { %939 = vmatpush.bf16.msra.mxu3 %v1795_v55  ;;  %v2140_v55 = vld [vmem:[%s3212_s0 + $0x3d4] sm:$0xf0]  ;;  %v1982_v59 = vor.u32 %v2139_v50, %v1981_v49  ;;  %v2117_v49 = vld [vmem:[%s3212_s0 + $0x324] sm:$0xf] }
  0x54   :  { %901 = vmatpush.bf16.msra.mxu0 %v1767_v61  ;;  %v1986_v61 = vor.u32 %v2137_v51, %v1983_v53  ;;  %v1903_v51 = vld [vmem:[%s3212_s0 + $0x330] sm:$0xf0]  ;;  %v2120_v53 = vld [vmem:[%s3212_s0 + $0x334] sm:$0xf0] }
  0x55   :  { %914 = vmatpush.bf16.msra.mxu1 %v1771_v62  ;;  %927 = vmatpush.bf16.msra.mxu2 %v1775_v63  ;;  %v1990_v62 = vor.u32 %v2140_v55, %v1989_v54  ;;  %v2135_v63 = vld [vmem:[%s3212_s0 + $0x3ac] sm:$0xf0]  ;;  %v2118_v54 = vld [vmem:[%s3212_s0 + $0x32c] sm:$0xf]  ;;  %v1911_v55 = vld [vmem:[%s3212_s0 + $0x338] sm:$0xf0]  ;;  %v1906_v57 = vor.u32 %v2117_v49, %v1903_v51 }
  0x56   :  { %940 = vmatpush.bf16.msra.mxu3 %v1779_v3  ;;  %v1967_v3 = vld [vmem:[%s3212_s0 + $0x3b0] sm:$0xf0]  ;;  %v1966_v8 = vor.u32 %v2135_v63, %v1965_v60  ;;  %v2115_v60 = vld [vmem:[%s3212_s0 + $0x30c] sm:$0xf0] }
  0x57   :  { %v1887_v63 = vld [vmem:[%s3212_s0 + $0x310] sm:$0xf0] }
  0x58   :  { %902 = vmatpush.bf16.msra.mxu0 %v1751_v9  ;;  %v1970_v9 = vor.u32 %v2133_v0, %v1967_v3  ;;  %v1893_v0 = vld [vmem:[%s3212_s0 + $0x308] sm:$0xf]  ;;  %v1895_v3 = vld [vmem:[%s3212_s0 + $0x318] sm:$0xf0] }
  0x59   :  { %915 = vmatpush.bf16.msra.mxu1 %v1755_v11  ;;  %928 = vmatpush.bf16.msra.mxu2 %v1759_v12  ;;  %v1949_v11 = vld [vmem:[%s3212_s0 + $0x380] sm:$0xf]  ;;  %v2131_v12 = vld [vmem:[%s3212_s0 + $0x38c] sm:$0xf0]  ;;  %v1894_v6 = vor.u32 %v2116_v1, %v1893_v0 }
  0x5a   :  { %941 = vmatpush.bf16.msra.mxu3 %v1763_v16  ;;  %v1957_v16 = vld [vmem:[%s3212_s0 + $0x388] sm:$0xf]  ;;  %v1950_v20 = vor.u32 %v2131_v12, %v1949_v11 }
  0x5c   :  { %903 = vmatpush.bf16.msra.mxu0 %v1735_v22  ;;  %v1958_v22 = vor.u32 %v2132_v17, %v1957_v16 }
  0x5d   :  { %916 = vmatpush.bf16.msra.mxu1 %v1739_v25  ;;  %929 = vmatpush.bf16.msra.mxu2 %v1743_v26  ;;  %v2125_v25 = vld [vmem:[%s3212_s0 + $0x364] sm:$0xf]  ;;  %v1962_v26 = vor.u32 %v2130_v18, %v1959_v19 }
  0x5e   :  { %942 = vmatpush.bf16.msra.mxu3 %v1747_v30  ;;  %v2126_v30 = vld [vmem:[%s3212_s0 + $0x36c] sm:$0xf]  ;;  %v1938_v33 = vor.u32 %v2125_v25, %v1935_v27 }
  0x5f   :  { %v1946_v38 = vor.u32 %v2126_v30, %v1943_v31 }
  0x60   :  { %904 = vmatpush.bf16.msra.mxu0 %v1719_v37  ;;  %v2121_v37 = vld [vmem:[%s3212_s0 + $0x344] sm:$0xf] }
  0x61   :  { %917 = vmatpush.bf16.msra.mxu1 %v1723_v41  ;;  %930 = vmatpush.bf16.msra.mxu2 %v1727_v42  ;;  %v2124_v41 = vld [vmem:[%s3212_s0 + $0x354] sm:$0xf0]  ;;  %v2122_v42 = vld [vmem:[%s3212_s0 + $0x34c] sm:$0xf] }
  0x62   :  { %943 = vmatpush.bf16.msra.mxu3 %v1731_v45  ;;  %v1922_v45 = vor.u32 %v2121_v37, %v1919_v39  ;;  %v1930_v50 = vor.u32 %v2122_v42, %v1927_v43 }
  0x63   :  { %905 = vmatmul.bf16.vlgmr.msra.gmra.mxu0 %v1683_v58 }
  0x64   :  { %1239 = vmatpush.bf16.msrb.mxu0 %v1998_v46  ;;  %931 = vmatmul.bf16.vlgmr.msra.gmra.mxu2 %v1683_v58  ;;  %v1926_v46 = vor.u32 %v2124_v41, %v1925_v40 }
  0x65   :  { %1252 = vmatpush.bf16.msrb.mxu1 %v2002_v47  ;;  %1265 = vmatpush.bf16.msrb.mxu2 %v2006_v48  ;;  %v1901_v47 = vld [vmem:[%s3212_s0 + $0x320] sm:$0xf]  ;;  %v2119_v48 = vld [vmem:[%s3212_s0 + $0x32c] sm:$0xf0] }
  0x66   :  { %1278 = vmatpush.bf16.msrb.mxu3 %v2010_v52  ;;  %918 = vmatmul.bf16.vlgmr.msra.gmra.mxu1 %v1683_v58  ;;  %v1909_v52 = vld [vmem:[%s3212_s0 + $0x328] sm:$0xf]  ;;  %v1902_v56 = vor.u32 %v2119_v48, %v1901_v47 }
  0x67   :  { %944 = vmatmul.bf16.vlgmr.msra.gmra.mxu3 %v1683_v58  ;;  %v1910_v58 = vor.u32 %v2120_v53, %v1909_v52 }
  0x68   :  { %1240 = vmatpush.bf16.msrb.mxu0 %v1982_v59  ;;  %v1885_v59 = vld [vmem:[%s3212_s0 + $0x300] sm:$0xf] }
  0x69   :  { %1253 = vmatpush.bf16.msrb.mxu1 %v1986_v61  ;;  %1266 = vmatpush.bf16.msrb.mxu2 %v1990_v62  ;;  %v2113_v61 = vld [vmem:[%s3212_s0 + $0x304] sm:$0xf]  ;;  %v1914_v62 = vor.u32 %v2118_v54, %v1911_v55  ;;  %v1886_v4 = vor.u32 %v2115_v60, %v1885_v59 }
  0x6a   :  { %1279 = vmatpush.bf16.msrb.mxu3 %v1994_v2  ;;  %v2114_v2 = vld [vmem:[%s3212_s0 + $0x30c] sm:$0xf]  ;;  %v1890_v5 = vor.u32 %v2113_v61, %v1887_v63 }
  0x6b   :  { %v1898_v7 = vor.u32 %v2114_v2, %v1895_v3 }
  0x6c   :  { %1241 = vmatpush.bf16.msrb.mxu0 %v1966_v8  ;;  %v1850_v8 = vld [vmem:[%s3213_s1 + $0x6] sm:$0x3] }
  0x6d   :  { %1254 = vmatpush.bf16.msrb.mxu1 %v1970_v9  ;;  %1267 = vmatpush.bf16.msrb.mxu2 %v1974_v10 }
  0x6e   :  { %1280 = vmatpush.bf16.msrb.mxu3 %v1978_v14 }
  0x70   :  { %1242 = vmatpush.bf16.msrb.mxu0 %v1950_v20 }
  0x71   :  { %1255 = vmatpush.bf16.msrb.mxu1 %v1954_v21  ;;  %1268 = vmatpush.bf16.msrb.mxu2 %v1958_v22 }
  0x72   :  { %1281 = vmatpush.bf16.msrb.mxu3 %v1962_v26 }
  0x74   :  { %1243 = vmatpush.bf16.msrb.mxu0 %v1934_v32 }
  0x75   :  { %1256 = vmatpush.bf16.msrb.mxu1 %v1938_v33  ;;  %1269 = vmatpush.bf16.msrb.mxu2 %v1942_v34 }
  0x76   :  { %1282 = vmatpush.bf16.msrb.mxu3 %v1946_v38 }
  0x78   :  { %1244 = vmatpush.bf16.msrb.mxu0 %v1918_v44 }
  0x79   :  { %1257 = vmatpush.bf16.msrb.mxu1 %v1922_v45  ;;  %1270 = vmatpush.bf16.msrb.mxu2 %v1926_v46 }
  0x7a   :  { %1283 = vmatpush.bf16.msrb.mxu3 %v1930_v50 }
  0x7c   :  { %1245 = vmatpush.bf16.msrb.mxu0 %v1902_v56 }
  0x7d   :  { %1258 = vmatpush.bf16.msrb.mxu1 %v1906_v57  ;;  %1271 = vmatpush.bf16.msrb.mxu2 %v1910_v58 }
  0x7e   :  { %1284 = vmatpush.bf16.msrb.mxu3 %v1914_v62 }
  0x80   :  { %1246 = vmatpush.bf16.msrb.mxu0 %v1886_v4 }
  0x81   :  { %1259 = vmatpush.bf16.msrb.mxu1 %v1890_v5  ;;  %1272 = vmatpush.bf16.msrb.mxu2 %v1894_v6 }
  0x82   :  { %1285 = vmatpush.bf16.msrb.mxu3 %v1898_v7 }
  0x83   :  { %1247 = vmatmul.bf16.vlgmr.msrb.gmra.mxu0 %v1850_v8 }
  0x84   :  { %1260 = vmatmul.bf16.vlgmr.msrb.gmra.mxu1 %v1850_v8  ;;  %1273 = vmatmul.bf16.vlgmr.msrb.gmra.mxu2 %v1850_v8 }
  0x85   :  { %1286 = vmatmul.bf16.vlgmr.msrb.gmra.mxu3 %v1850_v8 }
  0x9a   :  { %v51_v10 = vpop.permute.xlu0 %50 }
  0xa0   :  { %v222_v12 = vpop.f32.mrf.mxu0 }
  0xa1   :  { %v223_v14 = vadd.f32 %v222_v12, %v51_v10 }
  0xa3   :  { %v235_v9 = vpop.f32.mrf.mxu1  ;;  %v1512_v17 = vmul.f32 -1.442695, %v223_v14 }
  0xa4   :  { %v236_v11 = vadd.f32 %v235_v9, %v51_v10 }
  0xa6   :  { %v1513_v13 = vmul.f32 -1.442695, %v236_v11 }
  0xa7   :  { %v248_v15 = vpop.f32.mrf.mxu2 }
  0xa8   :  { %2148 = vpow2.f32 %v1513_v13  ;;  %v249_v18 = vadd.f32 %v248_v15, %v51_v10  ;;  %v224_v23 = vpop.f32.mrf.mxu0 }
  0xa9   :  { %2150 = vpow2.f32 %v1512_v17  ;;  %v393_v58 = vpop.permute.xlu0 %392 }
  0xaa   :  { %v261_v16 = vpop.f32.mrf.mxu3  ;;  %v1514_v20 = vmul.f32 -1.442695, %v249_v18 }
  0xab   :  { %v262_v19 = vadd.f32 %v261_v16, %v51_v10  ;;  %v237_v21 = vpop.f32.mrf.mxu1 }
  0xac   :  { %2152 = vpow2.f32 %v1514_v20 }
  0xad   :  { %v1515_v22 = vmul.f32 -1.442695, %v262_v19 }
  0xae   :  { %v2149_v24 = vpop.eup %2148 }
  0xaf   :  { %2154 = vpow2.f32 %v1515_v22  ;;  %v278_v25 = vadd.f32 1.0, %v2149_v24  ;;  %v250_v26 = vpop.f32.mrf.mxu2  ;;  %v2151_v27 = vpop.eup %2150 }
  0xb0   :  { %v277_v30 = vadd.f32 1.0, %v2151_v27 }
  0xb1   :  { %2156 = vrcp.f32 %v278_v25  ;;  %v305_v34 = vand.u32 2147483647, %v278_v25  ;;  %v307_v35 = vand.u32 2147483648, %v278_v25  ;;  %vm301_vm0 = vweird.f32 %v278_v25 }
  0xb2   :  { %v263_v28 = vpop.f32.mrf.mxu3  ;;  %v2153_v29 = vpop.eup %2152  ;;  %2158 = vrcp.f32 %v277_v30  ;;  %vm286_vm3 = vweird.f32 %v277_v30  ;;  %v290_v42 = vand.u32 2147483647, %v277_v30  ;;  %v292_v45 = vand.u32 2147483648, %v277_v30 }
  0xb3   :  { %v279_v32 = vadd.f32 1.0, %v2153_v29  ;;  %vm3025_vm1 = vcmp.eq.f32.partialorder %v305_v34, 8.507059e+37  ;;  %v308_v39 = vor.u32 1.1754944e-38, %v307_v35 }
  0xb4   :  { %vm3034_vm11 = vcmp.eq.f32.partialorder %v290_v42, 8.507059e+37  ;;  %v293_v0 = vor.u32 1.1754944e-38, %v292_v45 }
  0xb5   :  { %v2155_v31 = vpop.eup %2154  ;;  %2160 = vrcp.f32 %v279_v32  ;;  %vm316_vm5 = vweird.f32 %v279_v32  ;;  %v320_v46 = vand.u32 2147483647, %v279_v32  ;;  %v322_v57 = vand.u32 2147483648, %v279_v32  ;;  %v735_v7 = vpop.permute.xlu1 %734 }
  0xb6   :  { %v280_v33 = vadd.f32 1.0, %v2155_v31 }
  0xb7   :  { %v2157_v36 = vpop.eup %2156  ;;  %vm3045_vm13 = vcmp.eq.f32.partialorder %v320_v46, 8.507059e+37  ;;  %v323_v13 = vor.u32 1.1754944e-38, %v322_v57 }
  0xb8   :  { %2162 = vrcp.f32 %v280_v33  ;;  %v297_v37 = vmul.f32 %v2157_v36, %v278_v25  ;;  %v2159_v40 = vpop.eup %2158  ;;  %vm302_vm2 = vweird.f32 %v2157_v36  ;;  %vm331_vm6 = vweird.f32 %v280_v33 }
  0xb9   :  { %v282_v44 = vmul.f32 %v2159_v40, %v277_v30  ;;  %v335_v49 = vand.u32 2147483647, %v280_v33  ;;  %vm3030_vm7 = vmor %vm301_vm0, %vm302_vm2  ;;  %v337_v53 = vand.u32 2147483648, %v280_v33  ;;  %vm287_vm8 = vweird.f32 %v2159_v40 }
  0xba   :  { %v298_v41 = vsub.f32 1.0, %v297_v37  ;;  %vm3041_vm12 = vmor %vm286_vm3, %vm287_vm8 }
  0xbb   :  { %v2161_v43 = vpop.eup %2160  ;;  %v283_v54 = vsub.f32 1.0, %v282_v44  ;;  %v338_v11 = vor.u32 1.1754944e-38, %v337_v53  ;;  %vm336_vm0 = vcmp.eq.f32.partialorder %v335_v49, 8.507059e+37 }
  0xbc   :  { %v299_v48 = vmul.f32 %v2157_v36, %v298_v41  ;;  %v312_v50 = vmul.f32 %v2161_v43, %v279_v32  ;;  %vm317_vm9 = vweird.f32 %v2161_v43 }
  0xbd   :  { %v284_v60 = vmul.f32 %v2159_v40, %v283_v54  ;;  %vm3053_vm14 = vmor %vm316_vm5, %vm317_vm9 }
  0xbe   :  { %v2163_v47 = vpop.eup %2162  ;;  %v300_v55 = vadd.f32 %v2157_v36, %v299_v48  ;;  %v313_v56 = vsub.f32 1.0, %v312_v50 }
  0xbf   :  { %v327_v52 = vmul.f32 %v2163_v47, %v280_v33  ;;  %vm332_vm10 = vweird.f32 %v2163_v47  ;;  %v285_v6 = vadd.f32 %v2159_v40, %v284_v60 }
  0xc0   :  { %v304_v62 = vsel %vm3030_vm7, %v2157_v36, %v300_v55  ;;  %v314_v1 = vmul.f32 %v2161_v43, %v313_v56  ;;  %vm3059_vm15 = vmor %vm331_vm6, %vm332_vm10  ;;  %v564_v17 = vpop.f32.mrf.mxu0 }
  0xc1   :  { %v328_v59 = vsub.f32 1.0, %v327_v52  ;;  %v309_v4 = vsel %vm3025_vm1, %v308_v39, %v304_v62  ;;  %v289_v15 = vsel %vm3041_vm12, %v2159_v40, %v285_v6  ;;  %v565_v20 = vadd.f32 %v564_v17, %v393_v58 }
  0xc2   :  { %v345_v9 = vrot.slane %v309_v4, 4  ;;  %v315_v12 = vadd.f32 %v2161_v43, %v314_v1  ;;  %v294_v18 = vsel %vm3034_vm11, %v293_v0, %v289_v15 }
  0xc3   :  { %v577_v3 = vpop.f32.mrf.mxu1  ;;  %v329_v5 = vmul.f32 %v2163_v47, %v328_v59  ;;  %v1677_v27 = vmul.f32 -1.442695, %v565_v20  ;;  %v1077_v20 = vpop.permute.xlu1 %1076 }
  0xc4   :  { %v578_v8 = vadd.f32 %v577_v3, %v393_v58  ;;  %v319_v19 = vsel %vm3053_vm14, %v2161_v43, %v315_v12  ;;  %v348_v22 = vsel %vm347_vm4, %v294_v18, %v345_v9 }
  0xc5   :  { %v330_v14 = vadd.f32 %v2163_v47, %v329_v5  ;;  %352 = vst [vmem:[%s3215_s3] sm:$0xff] %v348_v22  ;;  %v324_v25 = vsel %vm3045_vm13, %v323_v13, %v319_v19 }
  0xc6   :  { %v1678_v16 = vmul.f32 -1.442695, %v578_v8 }
  0xc7   :  { %v334_v21 = vsel %vm3059_vm15, %v2163_v47, %v330_v14  ;;  %v590_v23 = vpop.f32.mrf.mxu2 }
  0xc8   :  { %2164 = vpow2.f32 %v1678_v16  ;;  %v339_v24 = vsel %vm336_vm0, %v338_v11, %v334_v21  ;;  %v591_v28 = vadd.f32 %v590_v23, %v393_v58  ;;  %v566_v36 = vpop.f32.mrf.mxu0 }
  0xc9   :  { %v346_v29 = vrot.slane %v339_v24, 4  ;;  %2166 = vpow2.f32 %v1677_v27 }
  0xca   :  { %v603_v26 = vpop.f32.mrf.mxu3  ;;  %v1679_v31 = vmul.f32 -1.442695, %v591_v28 }
  0xcb   :  { %v604_v30 = vadd.f32 %v603_v26, %v393_v58  ;;  %v579_v32 = vpop.f32.mrf.mxu1  ;;  %v349_v33 = vsel %vm347_vm4, %v324_v25, %v346_v29 }
  0xcc   :  { %353 = vst [vmem:[%s3215_s3 + $0x8] sm:$0xff] %v349_v33  ;;  %2168 = vpow2.f32 %v1679_v31 }
  0xcd   :  { %v1680_v34 = vmul.f32 -1.442695, %v604_v30 }
  0xce   :  { %v2165_v35 = vpop.eup %2164 }
  0xcf   :  { %2170 = vpow2.f32 %v1680_v34  ;;  %v620_v37 = vadd.f32 1.0, %v2165_v35  ;;  %v592_v38 = vpop.f32.mrf.mxu2  ;;  %v2167_v39 = vpop.eup %2166 }
  0xd0   :  { %v619_v41 = vadd.f32 1.0, %v2167_v39 }
  0xd1   :  { %2172 = vrcp.f32 %v620_v37  ;;  %v647_v47 = vand.u32 2147483647, %v620_v37  ;;  %v649_v49 = vand.u32 2147483648, %v620_v37  ;;  %vm643_vm1 = vweird.f32 %v620_v37 }
  0xd2   :  { %v605_v40 = vpop.f32.mrf.mxu3  ;;  %v2169_v42 = vpop.eup %2168  ;;  %2174 = vrcp.f32 %v619_v41  ;;  %v632_v50 = vand.u32 2147483647, %v619_v41  ;;  %v634_v51 = vand.u32 2147483648, %v619_v41  ;;  %vm628_vm5 = vweird.f32 %v619_v41 }
  0xd3   :  { %v621_v45 = vadd.f32 1.0, %v2169_v42  ;;  %vm3081_vm3 = vcmp.eq.f32.partialorder %v647_v47, 8.507059e+37  ;;  %v650_v57 = vor.u32 1.1754944e-38, %v649_v49 }
  0xd4   :  { %vm3085_vm6 = vcmp.eq.f32.partialorder %v632_v50, 8.507059e+37  ;;  %v635_v62 = vor.u32 1.1754944e-38, %v634_v51 }
  0xd5   :  { %v2171_v43 = vpop.eup %2170  ;;  %vm658_vm10 = vweird.f32 %v621_v45  ;;  %v662_v6 = vand.u32 2147483647, %v621_v45  ;;  %v664_v11 = vand.u32 2147483648, %v621_v45 }
  0xd6   :  { %v622_v44 = vadd.f32 1.0, %v2171_v43 }
  0xd7   :  { %v2173_v46 = vpop.eup %2172  ;;  %v665_v27 = vor.u32 1.1754944e-38, %v664_v11 }
  0xd8   :  { %2176 = vrcp.f32 %v622_v44  ;;  %v639_v48 = vmul.f32 %v2173_v46, %v620_v37  ;;  %v2175_v52 = vpop.eup %2174  ;;  %vm644_vm2 = vweird.f32 %v2173_v46  ;;  %vm673_vm8 = vweird.f32 %v622_v44 }
  0xd9   :  { %2178 = vrcp.f32 %v621_v45  ;;  %v624_v55 = vmul.f32 %v2175_v52, %v619_v41  ;;  %vm3089_vm7 = vmor %vm643_vm1, %vm644_vm2  ;;  %vm629_vm9 = vweird.f32 %v2175_v52  ;;  %v677_v2 = vand.u32 2147483647, %v622_v44 }
  0xda   :  { %v640_v53 = vsub.f32 1.0, %v639_v48  ;;  %v679_v3 = vand.u32 2147483648, %v622_v44  ;;  %vm3097_vm12 = vmor %vm628_vm5, %vm629_vm9  ;;  %vm663_vm1 = vcmp.eq.f32.partialorder %v662_v6, 8.507059e+37 }
  0xdb   :  { %v625_v61 = vsub.f32 1.0, %v624_v55  ;;  %vm3108_vm15 = vcmp.eq.f32.partialorder %v677_v2, 8.507059e+37 }
  0xdc   :  { %v641_v56 = vmul.f32 %v2173_v46, %v640_v53  ;;  %v680_v21 = vor.u32 1.1754944e-38, %v679_v3 }
  0xdd   :  { %v626_v4 = vmul.f32 %v2175_v52, %v625_v61 }
  0xde   :  { %v2177_v59 = vpop.eup %2176  ;;  %v642_v0 = vadd.f32 %v2173_v46, %v641_v56 }
  0xdf   :  { %v2179_v63 = vpop.eup %2178  ;;  %v669_v1 = vmul.f32 %v2177_v59, %v622_v44  ;;  %vm674_vm11 = vweird.f32 %v2177_v59  ;;  %v627_v13 = vadd.f32 %v2175_v52, %v626_v4 }
  0xe0   :  { %v654_v5 = vmul.f32 %v2179_v63, %v621_v45  ;;  %v646_v8 = vsel %vm3089_vm7, %v2173_v46, %v642_v0  ;;  %vm659_vm13 = vweird.f32 %v2179_v63  ;;  %vm3104_vm14 = vmor %vm673_vm8, %vm674_vm11  ;;  %v906_v29 = vpop.f32.mrf.mxu0 }
  0xe1   :  { %v670_v9 = vsub.f32 1.0, %v669_v1  ;;  %v651_v12 = vsel %vm3081_vm3, %v650_v57, %v646_v8  ;;  %v631_v22 = vsel %vm3097_vm12, %v2175_v52, %v627_v13  ;;  %vm3117_vm0 = vmor %vm658_vm10, %vm659_vm13  ;;  %v907_v32 = vadd.f32 %v906_v29, %v735_v7 }
  0xe2   :  { %v655_v14 = vsub.f32 1.0, %v654_v5  ;;  %v687_v16 = vrot.slane %v651_v12, 4  ;;  %v636_v25 = vsel %vm3085_vm6, %v635_v62, %v631_v22 }
  0xe3   :  { %v919_v15 = vpop.f32.mrf.mxu1  ;;  %v671_v17 = vmul.f32 %v2177_v59, %v670_v9  ;;  %v1844_v38 = vmul.f32 -1.442695, %v907_v32 }
  0xe4   :  { %v920_v18 = vadd.f32 %v919_v15, %v735_v7  ;;  %v656_v23 = vmul.f32 %v2179_v63, %v655_v14  ;;  %v689_v30 = vsel %vm347_vm4, %v636_v25, %v687_v16 }
  0xe5   :  { %v672_v24 = vadd.f32 %v2177_v59, %v671_v17  ;;  %1681 = vst [vmem:[%s3215_s3 + $0x10] sm:$0xff] %v689_v30 }
  0xe6   :  { %v1845_v28 = vmul.f32 -1.442695, %v920_v18  ;;  %v657_v31 = vadd.f32 %v2179_v63, %v656_v23 }
  0xe7   :  { %v676_v33 = vsel %vm3104_vm14, %v2177_v59, %v672_v24  ;;  %v932_v34 = vpop.f32.mrf.mxu2 }
  0xe8   :  { %2180 = vpow2.f32 %v1845_v28  ;;  %v681_v35 = vsel %vm3108_vm15, %v680_v21, %v676_v33  ;;  %v661_v36 = vsel %vm3117_vm0, %v2179_v63, %v657_v31  ;;  %v933_v39 = vadd.f32 %v932_v34, %v735_v7  ;;  %v908_v48 = vpop.f32.mrf.mxu0 }
  0xe9   :  { %v688_v40 = vrot.slane %v681_v35, 4  ;;  %v666_v41 = vsel %vm663_vm1, %v665_v27, %v661_v36  ;;  %2182 = vpow2.f32 %v1844_v38 }
  0xea   :  { %v945_v37 = vpop.f32.mrf.mxu3  ;;  %v1846_v43 = vmul.f32 -1.442695, %v933_v39 }
  0xeb   :  { %v946_v42 = vadd.f32 %v945_v37, %v735_v7  ;;  %v921_v44 = vpop.f32.mrf.mxu1  ;;  %v690_v45 = vsel %vm347_vm4, %v666_v41, %v688_v40 }
  0xec   :  { %1682 = vst [vmem:[%s3215_s3 + $0x18] sm:$0xff] %v690_v45  ;;  %2184 = vpow2.f32 %v1846_v43 }
  0xed   :  { %v1847_v46 = vmul.f32 -1.442695, %v946_v42 }
  0xee   :  { %v2181_v47 = vpop.eup %2180 }
  0xef   :  { %2186 = vpow2.f32 %v1847_v46  ;;  %v962_v49 = vadd.f32 1.0, %v2181_v47  ;;  %v934_v50 = vpop.f32.mrf.mxu2  ;;  %v2183_v51 = vpop.eup %2182 }
  0xf0   :  { %v961_v53 = vadd.f32 1.0, %v2183_v51 }
  0xf1   :  { %2188 = vrcp.f32 %v962_v49  ;;  %v989_v59 = vand.u32 2147483647, %v962_v49  ;;  %v991_v60 = vand.u32 2147483648, %v962_v49  ;;  %vm985_vm2 = vweird.f32 %v962_v49 }
  0xf2   :  { %v947_v52 = vpop.f32.mrf.mxu3  ;;  %v2185_v54 = vpop.eup %2184  ;;  %2190 = vrcp.f32 %v961_v53  ;;  %v974_v62 = vand.u32 2147483647, %v961_v53  ;;  %v976_v63 = vand.u32 2147483648, %v961_v53  ;;  %vm970_vm6 = vweird.f32 %v961_v53 }
  0xf3   :  { %v3135_v57 = vadd.f32 1.0, %v2185_v54  ;;  %vm3138_vm5 = vcmp.eq.f32.partialorder %v989_v59, 8.507059e+37  ;;  %v992_v3 = vor.u32 1.1754944e-38, %v991_v60 }
  0xf4   :  { %vm3142_vm8 = vcmp.eq.f32.partialorder %v974_v62, 8.507059e+37  ;;  %v977_v7 = vor.u32 1.1754944e-38, %v976_v63 }
  0xf5   :  { %v2187_v55 = vpop.eup %2186  ;;  %vm1000_vm11 = vweird.f32 %v3135_v57  ;;  %v1004_v16 = vand.u32 2147483647, %v3135_v57  ;;  %v1006_v19 = vand.u32 2147483648, %v3135_v57 }
  0xf6   :  { %v964_v56 = vadd.f32 1.0, %v2187_v55 }
  0xf7   :  { %v2189_v58 = vpop.eup %2188  ;;  %v1007_v43 = vor.u32 1.1754944e-38, %v1006_v19 }
  0xf8   :  { %2192 = vrcp.f32 %v964_v56  ;;  %v981_v61 = vmul.f32 %v2189_v58, %v962_v49  ;;  %v2191_v0 = vpop.eup %2190  ;;  %vm986_vm3 = vweird.f32 %v2189_v58  ;;  %vm1015_vm7 = vweird.f32 %v964_v56 }
  0xf9   :  { %2194 = vrcp.f32 %v3135_v57  ;;  %v966_v4 = vmul.f32 %v2191_v0, %v961_v53  ;;  %vm3146_vm9 = vmor %vm985_vm2, %vm986_vm3  ;;  %v1019_v10 = vand.u32 2147483647, %v964_v56  ;;  %v1021_v11 = vand.u32 2147483648, %v964_v56 }
  0xfa   :  { %v982_v1 = vsub.f32 1.0, %v981_v61  ;;  %vm971_vm10 = vweird.f32 %v2191_v0  ;;  %vm1005_vm2 = vcmp.eq.f32.partialorder %v1004_v16, 8.507059e+37 }
  0xfb   :  { %v967_v12 = vsub.f32 1.0, %v966_v4  ;;  %vm3157_vm13 = vmor %vm970_vm6, %vm971_vm10  ;;  %vm3163_vm15 = vcmp.eq.f32.partialorder %v1019_v10, 8.507059e+37  ;;  %v1022_v36 = vor.u32 1.1754944e-38, %v1021_v11 }
  0xfc   :  { %v983_v5 = vmul.f32 %v2189_v58, %v982_v1 }
  0xfd   :  { %v968_v17 = vmul.f32 %v2191_v0, %v967_v12 }
  0xfe   :  { %v2193_v8 = vpop.eup %2192  ;;  %v984_v14 = vadd.f32 %v2189_v58, %v983_v5 }
  0xff   :  { %v2195_v13 = vpop.eup %2194  ;;  %v1011_v15 = vmul.f32 %v2193_v8, %v964_v56  ;;  %vm1016_vm12 = vweird.f32 %v2193_v8  ;;  %v969_v28 = vadd.f32 %v2191_v0, %v968_v17 }
 0x100   :  { %v996_v18 = vmul.f32 %v2195_v13, %v3135_v57  ;;  %v1248_v21 = vpop.f32.mrf.mxu0  ;;  %v988_v22 = vsel %vm3146_vm9, %v2189_v58, %v984_v14  ;;  %vm1001_vm14 = vweird.f32 %v2195_v13  ;;  %vm3169_vm0 = vmor %vm1015_vm7, %vm1016_vm12 }
 0x101   :  { %v1012_v23 = vsub.f32 1.0, %v1011_v15  ;;  %v1249_v25 = vadd.f32 %v1248_v21, %v1077_v20  ;;  %v1261_v26 = vpop.f32.mrf.mxu1  ;;  %v993_v27 = vsel %vm3138_vm5, %v992_v3, %v988_v22  ;;  %v973_v37 = vsel %vm3157_vm13, %v2191_v0, %v969_v28  ;;  %vm3180_vm1 = vmor %vm1000_vm11, %vm1001_vm14 }
 0x102   :  { %v997_v29 = vsub.f32 1.0, %v996_v18  ;;  %v1262_v30 = vadd.f32 %v1261_v26, %v1077_v20  ;;  %v1029_v31 = vrot.slane %v993_v27, 4  ;;  %v978_v41 = vsel %vm3142_vm8, %v977_v7, %v973_v37 }
 0x103   :  { %v1013_v32 = vmul.f32 %v2193_v8, %v1012_v23  ;;  %v2011_v34 = vmul.f32 -1.442695, %v1249_v25 }
 0x104   :  { %v998_v38 = vmul.f32 %v2195_v13, %v997_v29  ;;  %v2012_v39 = vmul.f32 -1.442695, %v1262_v30  ;;  %v1031_v44 = vsel %vm347_vm4, %v978_v41, %v1029_v31 }
 0x105   :  { %v1014_v40 = vadd.f32 %v2193_v8, %v1013_v32  ;;  %2196 = vpow2.f32 %v2011_v34  ;;  %1848 = vst [vmem:[%s3215_s3 + $0x20] sm:$0xff] %v1031_v44 }
 0x106   :  { %v999_v45 = vadd.f32 %v2195_v13, %v998_v38  ;;  %2198 = vpow2.f32 %v2012_v39 }
 0x107   :  { %v1018_v46 = vsel %vm3169_vm0, %v2193_v8, %v1014_v40  ;;  %v1274_v47 = vpop.f32.mrf.mxu2 }
 0x108   :  { %v1023_v48 = vsel %vm3163_vm15, %v1022_v36, %v1018_v46  ;;  %v1003_v49 = vsel %vm3180_vm1, %v2195_v13, %v999_v45  ;;  %v1275_v50 = vadd.f32 %v1274_v47, %v1077_v20  ;;  %v1287_v51 = vpop.f32.mrf.mxu3  ;;  %v1250_v52 = vpop.f32.mrf.mxu0 }
 0x109   :  { %v1030_v53 = vrot.slane %v1023_v48, 4  ;;  %v1008_v54 = vsel %vm1005_vm2, %v1007_v43, %v1003_v49  ;;  %v1288_v55 = vadd.f32 %v1287_v51, %v1077_v20  ;;  %v1263_v56 = vpop.f32.mrf.mxu1 }
 0x10a   :  { %v2013_v57 = vmul.f32 -1.442695, %v1275_v50 }
 0x10b   :  { %v2197_v58 = vpop.eup %2196  ;;  %v1032_v59 = vsel %vm347_vm4, %v1008_v54, %v1030_v53  ;;  %v2014_v60 = vmul.f32 -1.442695, %v1288_v55 }
 0x10c   :  { %v2199_v61 = vpop.eup %2198  ;;  %1849 = vst [vmem:[%s3215_s3 + $0x28] sm:$0xff] %v1032_v59  ;;  %v1303_v62 = vadd.f32 1.0, %v2197_v58  ;;  %2200 = vpow2.f32 %v2013_v57 }
 0x10d   :  { %v1304_v63 = vadd.f32 1.0, %v2199_v61  ;;  %2202 = vpow2.f32 %v2014_v60 }
 0x10e   :  { %2204 = vrcp.f32 %v1303_v62  ;;  %vm1312_vm6 = vweird.f32 %v1303_v62  ;;  %v1318_v18 = vand.u32 2147483648, %v1303_v62  ;;  %v1316_v20 = vand.u32 2147483647, %v1303_v62 }
 0x10f   :  { %2206 = vrcp.f32 %v1304_v63  ;;  %v1276_v0 = vpop.f32.mrf.mxu2  ;;  %v1331_v13 = vand.u32 2147483647, %v1304_v63  ;;  %v1333_v14 = vand.u32 2147483648, %v1304_v63  ;;  %vm1327_vm8 = vweird.f32 %v1304_v63 }
 0x110   :  { %v1289_v1 = vpop.f32.mrf.mxu3  ;;  %v1319_v29 = vor.u32 1.1754944e-38, %v1318_v18  ;;  %vm1317_vm11 = vcmp.eq.f32.partialorder %v1316_v20, 8.507059e+37 }
 0x111   :  { %vm1332_vm10 = vcmp.eq.f32.partialorder %v1331_v13, 8.507059e+37  ;;  %v1334_v24 = vor.u32 1.1754944e-38, %v1333_v14 }
 0x112   :  { %v2201_v2 = vpop.eup %2200 }
 0x113   :  { %v2203_v3 = vpop.eup %2202  ;;  %v1305_v4 = vadd.f32 1.0, %v2201_v2 }
 0x114   :  { %v2205_v5 = vpop.eup %2204  ;;  %v1306_v6 = vadd.f32 1.0, %v2203_v3 }
 0x115   :  { %v2207_v7 = vpop.eup %2206  ;;  %v1308_v8 = vmul.f32 %v2205_v5, %v1303_v62  ;;  %2208 = vrcp.f32 %v1305_v4  ;;  %vm1313_vm3 = vweird.f32 %v2205_v5  ;;  %vm1342_vm14 = vweird.f32 %v1305_v4 }
 0x116   :  { %v1323_v9 = vmul.f32 %v2207_v7, %v1304_v63  ;;  %2210 = vrcp.f32 %v1306_v6  ;;  %vm1328_vm5 = vweird.f32 %v2207_v7  ;;  %vm3198_vm7 = vmor %vm1312_vm6, %vm1313_vm3  ;;  %v1361_v35 = vand.u32 2147483647, %v1306_v6 }
 0x117   :  { %v1309_v10 = vsub.f32 1.0, %v1308_v8  ;;  %vm1329_vm9 = vmor %vm1327_vm8, %vm1328_vm5  ;;  %v1363_v36 = vand.u32 2147483648, %v1306_v6  ;;  %v1348_v40 = vand.u32 2147483648, %v1305_v4  ;;  %v1346_v41 = vand.u32 2147483647, %v1305_v4 }
 0x118   :  { %v1324_v11 = vsub.f32 1.0, %v1323_v9  ;;  %vm1357_vm0 = vweird.f32 %v1306_v6  ;;  %vm1362_vm2 = vcmp.eq.f32.partialorder %v1361_v35, 8.507059e+37 }
 0x119   :  { %v1310_v12 = vmul.f32 %v2205_v5, %v1309_v10  ;;  %v1364_v43 = vor.u32 1.1754944e-38, %v1363_v36  ;;  %v1349_v46 = vor.u32 1.1754944e-38, %v1348_v40  ;;  %vm1347_vm3 = vcmp.eq.f32.partialorder %v1346_v41, 8.507059e+37 }
 0x11a   :  { %v1325_v15 = vmul.f32 %v2207_v7, %v1324_v11 }
 0x11b   :  { %v2209_v16 = vpop.eup %2208  ;;  %v1311_v17 = vadd.f32 %v2205_v5, %v1310_v12 }
 0x11c   :  { %v1326_v21 = vadd.f32 %v2207_v7, %v1325_v15  ;;  %v1338_v22 = vmul.f32 %v2209_v16, %v1305_v4  ;;  %v2211_v23 = vpop.eup %2210  ;;  %vm1343_vm12 = vweird.f32 %v2209_v16 }
 0x11d   :  { %v1315_v25 = vsel %vm3198_vm7, %v2205_v5, %v1311_v17  ;;  %v1353_v28 = vmul.f32 %v2211_v23, %v1306_v6  ;;  %vm1358_vm13 = vweird.f32 %v2211_v23  ;;  %vm1344_vm15 = vmor %vm1342_vm14, %vm1343_vm12 }
 0x11e   :  { %v1330_v26 = vsel %vm1329_vm9, %v2207_v7, %v1326_v21  ;;  %v1339_v27 = vsub.f32 1.0, %v1338_v22  ;;  %v1320_v34 = vsel %vm1317_vm11, %v1319_v29, %v1315_v25  ;;  %vm1359_vm1 = vmor %vm1357_vm0, %vm1358_vm13 }
 0x11f   :  { %v1335_v30 = vsel %vm1332_vm10, %v1334_v24, %v1330_v26  ;;  %v1354_v33 = vsub.f32 1.0, %v1353_v28 }
 0x120   :  { %v1371_v31 = vrot.slane %v1335_v30, 4  ;;  %v1340_v32 = vmul.f32 %v2209_v16, %v1339_v27 }
 0x121   :  { %v1355_v39 = vmul.f32 %v2211_v23, %v1354_v33 }
 0x122   :  { %v1373_v37 = vsel %vm347_vm4, %v1320_v34, %v1371_v31  ;;  %v1341_v38 = vadd.f32 %v2209_v16, %v1340_v32 }
 0x123   :  { %2015 = vst [vmem:[%s3215_s3 + $0x30] sm:$0xff] %v1373_v37  ;;  %v1356_v42 = vadd.f32 %v2211_v23, %v1355_v39 }
 0x124   :  { %v1345_v44 = vsel %vm1344_vm15, %v2209_v16, %v1341_v38 }
 0x125   :  { %v1360_v45 = vsel %vm1359_vm1, %v2211_v23, %v1356_v42  ;;  %v1350_v49 = vsel %vm1347_vm3, %v1349_v46, %v1345_v44 }
 0x126   :  { %v1365_v47 = vsel %vm1362_vm2, %v1364_v43, %v1360_v45 }
 0x127   :  { %v1372_v48 = vrot.slane %v1365_v47, 4 }
 0x129   :  { %v1374_v50 = vsel %vm347_vm4, %v1350_v49, %v1372_v48 }
 0x12a   :  { %2016 = vst [vmem:[%s3215_s3 + $0x38] sm:$0xff] %v1374_v50 }

</bundles_post_ra>
